<compile_context>
chip_gen: v7x
topology: tpu7x:2x2x1
jax: 0.10.0
libtpu: 0.0.40
codegen_flags: <defaults>
</compile_context>

<pallas_src>
import functools

import jax
import jax.numpy as jnp
from jax.experimental import pallas as pl
from jax.experimental.pallas import tpu as pltpu

# ----------------------- small config consistent with the module -------------
LATENT_DIM = 8
COND_DIM = 4
SEQ_LEN = 128                      # output_shape=(SEQ_LEN,); module default 252
CHANNELS = 64
DILATIONS = (1, 2, 4, 8, 16, 32)   # module default `layers`
BN_EPS = 1e-5


# --------------------------------- TCN kernel --------------------------------
# Single invocation over the whole (C, N=L*B) slab:
#   block0 (k=1 convs; conv1+downsample packed into one matmul),
#   6 dilated causal blocks (k=2; current + delayed taps as two accumulating
#   matmuls), skip-sum and the output 1x1 conv (VPU mul + sublane reduce).
def _tcn_kernel(x_ref,
                w0_ref, b0_ref, w2_ref, b2_ref,
                wc1_ref, wd1_ref, bb1_ref,
                wc2_ref, wd2_ref, bb2_ref,
                wo_ref, bo_ref,
                o_ref, *, batch):
    bf16 = jnp.bfloat16
    dot = functools.partial(jnp.dot, preferred_element_type=jnp.float32)
    C = w2_ref.shape[0]

    x0 = x_ref[...]                                             # (3, N) f32
    n = x0.shape[1]

    # ---- block 0: TemporalBlock(3, C, kernel_size=1, padding=0) ----
    # conv1 and downsample share the same (3, N) input -> one (2C, 3) matmul.
    r0 = dot(w0_ref[...], x0.astype(bf16)) + b0_ref[...]        # (2C, N) f32
    h = jnp.maximum(r0[:C, :], 0.0)                             # conv1 + relu
    res = r0[C:, :]                                             # downsample (no relu)
    h = jnp.maximum(dot(w2_ref[...], h.astype(bf16)) + b2_ref[...], 0.0)
    skip_sum = h                                                # skip of block 0
    x = jnp.maximum(h + res, 0.0)                               # (C, N) f32

    # Single-row lane index (time-major: lane n = t*batch + b, so t = n//batch).
    lane = jax.lax.broadcasted_iota(jnp.int32, (1, n), 1)       # (1, N)

    def delayed(v, shift, keep_f):
        # y[:, n] = v[:, n - shift]  (same batch, time t-d); causal zero-padding
        # for t < d implemented by the (1, N) float mask (sublane broadcast).
        rolled = pltpu.roll(v, shift=shift, axis=1)             # XLU slot, not VPU
        return rolled * keep_f

    # ---- dilated blocks: TemporalBlock(C, C, k=2, dilation=d, padding=d) ----
    for i, d in enumerate(DILATIONS):
        s = d * batch
        keep_f = (lane >= s).astype(jnp.float32)                # (1, N) mask row
        h = jnp.maximum(
            dot(wc1_ref[i], x.astype(bf16))
            + dot(wd1_ref[i], delayed(x, s, keep_f).astype(bf16))
            + bb1_ref[i], 0.0)                                  # conv1+chomp+relu
        g = jnp.maximum(
            dot(wc2_ref[i], h.astype(bf16))
            + dot(wd2_ref[i], delayed(h, s, keep_f).astype(bf16))
            + bb2_ref[i], 0.0)                                  # conv2+chomp+relu -> skip
        skip_sum = skip_sum + g
        x = jnp.maximum(g + x, 0.0)                             # relu(out + res)

    # ---- output 1x1 conv over sum(skips) + x: broadcast-mul + sublane sum ----
    y = skip_sum + x
    o_ref[...] = jnp.sum(y * wo_ref[...], axis=0, keepdims=True) + bo_ref[...]


def tcn_forward(x0_lanes, tcn_params, batch):
    C = CHANNELS
    L = SEQ_LEN
    nb = len(DILATIONS)
    N = batch * L

    def full_spec(shape):
        return pl.BlockSpec(shape, lambda g, _r=len(shape): (0,) * _r)

    in_specs = [
        full_spec((3, N)),                                      # x0 (time-major lanes)
        full_spec((2 * C, 3)), full_spec((2 * C, 1)),           # block0 conv1 | downsample
        full_spec((C, C)), full_spec((C, 1)),                   # block0 conv2
        full_spec((nb, C, C)), full_spec((nb, C, C)), full_spec((nb, C, 1)),  # dilated conv1
        full_spec((nb, C, C)), full_spec((nb, C, C)), full_spec((nb, C, 1)),  # dilated conv2
        full_spec((C, 1)), full_spec((1, 1)),                   # output 1x1 conv
    ]
    # Single grid step: the whole problem (<2 MiB of live activations) fits
    # VMEM with huge margin, and an extra grid step would only serialize on
    # v5e/v6e's single TensorCore and halve lane width.
    # TODO(synk): when batch*L reaches tens of thousands of lanes, tile the
    # lane axis with a real grid and cap the block per chip VMEM (64 MiB v7x
    # vs 128 MiB v5e/v6e).
    return pl.pallas_call(
        functools.partial(_tcn_kernel, batch=batch),
        out_shape=jax.ShapeDtypeStruct((1, N), jnp.float32),
        grid_spec=pltpu.PrefetchScalarGridSpec(
            num_scalar_prefetch=0,
            grid=(1,),
            in_specs=in_specs,
            out_specs=pl.BlockSpec((1, N), lambda g: (0, 0)),
        ),
        compiler_params=pltpu.CompilerParams(
            dimension_semantics=("arbitrary",)),
    )(x0_lanes, *tcn_params)


# ------------------------------ parameter setup -------------------------------
def _weight_norm_weight(v, g):
    # torch weight_norm(dim=0): w = g * v / ||v||  (norm over in/kernel dims per out-ch)
    norm = jnp.sqrt(jnp.sum(v * v, axis=tuple(range(1, v.ndim)), keepdims=True))
    return g * v / norm


def init_params(key):
    keys = iter(jax.random.split(key, 64))
    nxt = lambda: next(keys)
    std = 0.1
    D = LATENT_DIM + COND_DIM
    F = 3 * SEQ_LEN
    C = CHANNELS
    bf16 = jnp.bfloat16

    p = {}
    # projection: Linear(D, 3L) (torch layout (out,in)) + BatchNorm1d(3L) (eval) + ReLU
    p["proj_w"] = std * jax.random.normal(nxt(), (F, D), jnp.float32)
    p["proj_b"] = std * jax.random.normal(nxt(), (F, 1), jnp.float32)
    p["bn_gamma"] = 1.0 + 0.1 * jax.random.normal(nxt(), (F, 1), jnp.float32)
    p["bn_beta"] = 0.1 * jax.random.normal(nxt(), (F, 1), jnp.float32)
    p["bn_mean"] = 0.1 * jax.random.normal(nxt(), (F, 1), jnp.float32)
    p["bn_var"] = 1.0 + 0.1 * jax.random.uniform(nxt(), (F, 1), jnp.float32)

    # block 0: TemporalBlock(3, C, k=1, padding=0) with weight_norm convs + downsample
    v1 = std * jax.random.normal(nxt(), (C, 3, 1), jnp.float32)
    g1 = 1.0 + 0.1 * jax.random.uniform(nxt(), (C, 1, 1), jnp.float32)
    w1 = _weight_norm_weight(v1, g1)[:, :, 0]
    b1 = std * jax.random.normal(nxt(), (C, 1), jnp.float32)
    v2 = std * jax.random.normal(nxt(), (C, C, 1), jnp.float32)
    g2 = 1.0 + 0.1 * jax.random.uniform(nxt(), (C, 1, 1), jnp.float32)
    w2 = _weight_norm_weight(v2, g2)[:, :, 0]
    b2 = std * jax.random.normal(nxt(), (C, 1), jnp.float32)
    wdn = std * jax.random.normal(nxt(), (C, 3), jnp.float32)
    bdn = std * jax.random.normal(nxt(), (C, 1), jnp.float32)

    # dilated blocks: current / delayed tap halves kept separate (no in-kernel concat)
    wc1, wd1, bb1, wc2, wd2, bb2 = [], [], [], [], [], []
    for _ in DILATIONS:
        vA = std * jax.random.normal(nxt(), (C, C, 2), jnp.float32)
        gA = 1.0 + 0.1 * jax.random.uniform(nxt(), (C, 1, 1), jnp.float32)
        wA = _weight_norm_weight(vA, gA)
        wd1.append(wA[:, :, 0])          # tap 0 -> x[t-d]
        wc1.append(wA[:, :, 1])          # tap 1 -> x[t]
        bb1.append(std * jax.random.normal(nxt(), (C, 1), jnp.float32))
        vB = std * jax.random.normal(nxt(), (C, C, 2), jnp.float32)
        gB = 1.0 + 0.1 * jax.random.uniform(nxt(), (C, 1, 1), jnp.float32)
        wB = _weight_norm_weight(vB, gB)
        wd2.append(wB[:, :, 0])
        wc2.append(wB[:, :, 1])
        bb2.append(std * jax.random.normal(nxt(), (C, 1), jnp.float32))

    wo = std * jax.random.normal(nxt(), (C, 1), jnp.float32)    # output_conv (1x1)
    bo = std * jax.random.normal(nxt(), (1, 1), jnp.float32)

    p["tcn"] = (
        jnp.concatenate([w1, wdn], axis=0).astype(bf16),  # (2C, 3)  block0 conv1 | downsample
        jnp.concatenate([b1, bdn], axis=0),               # (2C, 1)  f32
        w2.astype(bf16), b2,                              # (C, C) bf16, (C, 1) f32
        jnp.stack(wc1).astype(bf16),                      # (nb, C, C) current tap, conv1
        jnp.stack(wd1).astype(bf16),                      # (nb, C, C) delayed tap, conv1
        jnp.stack(bb1),                                   # (nb, C, 1) f32
        jnp.stack(wc2).astype(bf16),                      # (nb, C, C) current tap, conv2
        jnp.stack(wd2).astype(bf16),                      # (nb, C, C) delayed tap, conv2
        jnp.stack(bb2),                                   # (nb, C, 1) f32
        wo, bo,                                           # (C, 1), (1, 1) f32 epilogue
    )
    return p


# ------------------------------ generator forward -----------------------------
def generator_forward(noise, condition, params):
    B = noise.shape[0]
    x = jnp.concatenate([noise, condition], axis=1)             # (B, D)
    # Fold eval-mode BatchNorm1d into the projection (glue-side; raw params kept).
    s = params["bn_gamma"] * jax.lax.rsqrt(params["bn_var"] + BN_EPS)        # (3L, 1)
    w_eff = params["proj_w"] * s                                             # (3L, D)
    b_eff = (params["proj_b"] - params["bn_mean"]) * s + params["bn_beta"]   # (3L, 1)
    # Projection emitted output-major: contract D with D -> (3L, B); no transpose
    # HLO.  The (3L,B)->(3, L*B) reshape is contiguity preserving and yields the
    # time-major lane layout (lane n = t*B + b) the kernel expects.
    proj_t = jax.lax.dot_general(w_eff, x, (((1,), (1,)), ((), ())))         # (3L, B)
    proj_t = jnp.maximum(proj_t + b_eff, 0.0)
    x0 = proj_t.reshape(3, SEQ_LEN * B)
    out = tcn_forward(x0, params["tcn"], B)                                  # (1, L*B)
    return out.reshape(SEQ_LEN, B).T                                         # (B, L)


if __name__ == "__main__":
    key = jax.random.PRNGKey(0)
    kp, kn, kc = jax.random.split(key, 3)
    params = init_params(kp)

    B = 4
    noise = jax.random.normal(kn, (B, LATENT_DIM), jnp.float32)
    condition = jax.random.normal(kc, (B, COND_DIM), jnp.float32)

    fwd = jax.jit(generator_forward)
    out = fwd(noise, condition, params)
    out = jax.block_until_ready(out)
    assert out.shape == (B, SEQ_LEN), out.shape
    assert bool(jnp.all(jnp.isfinite(out)))
    print("KERNEL_OK")
</pallas_src>

<mosaic_0001>
module attributes {stable_mosaic.version = 11 : i64} {
  func.func @_tcn_kernel(%arg0: i32, %arg1: memref<3x512xf32, #tpu.memory_space<vmem>>, %arg2: memref<128x3xbf16, #tpu.memory_space<vmem>>, %arg3: memref<128x1xf32, #tpu.memory_space<vmem>>, %arg4: memref<64x64xbf16, #tpu.memory_space<vmem>>, %arg5: memref<64x1xf32, #tpu.memory_space<vmem>>, %arg6: memref<6x64x64xbf16, #tpu.memory_space<vmem>>, %arg7: memref<6x64x64xbf16, #tpu.memory_space<vmem>>, %arg8: memref<6x64x1xf32, #tpu.memory_space<vmem>>, %arg9: memref<6x64x64xbf16, #tpu.memory_space<vmem>>, %arg10: memref<6x64x64xbf16, #tpu.memory_space<vmem>>, %arg11: memref<6x64x1xf32, #tpu.memory_space<vmem>>, %arg12: memref<64x1xf32, #tpu.memory_space<vmem>>, %arg13: memref<1x1xf32, #tpu.memory_space<vmem>>, %arg14: memref<1x512xf32, #tpu.memory_space<vmem>>) attributes {dimension_semantics = [#tpu.dimension_semantics<arbitrary>], iteration_bounds = array<i64: 1>, scalar_prefetch = 0 : i64, scratch_operands = 0 : i64, tpu.core_type = #tpu.core_type<tc>, window_params = [{pipeline_mode = #tpu.pipeline_mode<synchronous>, transform_indices = @transform_0, window_bounds = array<i64: 3, 512>}, {pipeline_mode = #tpu.pipeline_mode<synchronous>, transform_indices = @transform_1, window_bounds = array<i64: 128, 3>}, {pipeline_mode = #tpu.pipeline_mode<synchronous>, transform_indices = @transform_2, window_bounds = array<i64: 128, 1>}, {pipeline_mode = #tpu.pipeline_mode<synchronous>, transform_indices = @transform_3, window_bounds = array<i64: 64, 64>}, {pipeline_mode = #tpu.pipeline_mode<synchronous>, transform_indices = @transform_4, window_bounds = array<i64: 64, 1>}, {pipeline_mode = #tpu.pipeline_mode<synchronous>, transform_indices = @transform_5, window_bounds = array<i64: 6, 64, 64>}, {pipeline_mode = #tpu.pipeline_mode<synchronous>, transform_indices = @transform_6, window_bounds = array<i64: 6, 64, 64>}, {pipeline_mode = #tpu.pipeline_mode<synchronous>, transform_indices = @transform_7, window_bounds = array<i64: 6, 64, 1>}, {pipeline_mode = #tpu.pipeline_mode<synchronous>, transform_indices = @transform_8, window_bounds = array<i64: 6, 64, 64>}, {pipeline_mode = #tpu.pipeline_mode<synchronous>, transform_indices = @transform_9, window_bounds = array<i64: 6, 64, 64>}, {pipeline_mode = #tpu.pipeline_mode<synchronous>, transform_indices = @transform_10, window_bounds = array<i64: 6, 64, 1>}, {pipeline_mode = #tpu.pipeline_mode<synchronous>, transform_indices = @transform_11, window_bounds = array<i64: 64, 1>}, {pipeline_mode = #tpu.pipeline_mode<synchronous>, transform_indices = @transform_12, window_bounds = array<i64: 1, 1>}, {pipeline_mode = #tpu.pipeline_mode<synchronous>, transform_indices = @transform_13, window_bounds = array<i64: 1, 512>}]} {
    %c0 = arith.constant 0 : index
    %c0_0 = arith.constant 0 : index
    %0 = vector.load %arg1[%c0, %c0_0] : memref<3x512xf32, #tpu.memory_space<vmem>>, vector<3x512xf32>
    %c0_1 = arith.constant 0 : index
    %c0_2 = arith.constant 0 : index
    %1 = vector.load %arg2[%c0_1, %c0_2] : memref<128x3xbf16, #tpu.memory_space<vmem>>, vector<128x3xbf16>
    %2 = arith.truncf %0 : vector<3x512xf32> to vector<3x512xbf16>
    %cst = arith.constant dense<0.000000e+00> : vector<128x512xf32>
    %3 = tpu.matmul %1, %2, %cst {dimension_numbers = #tpu.dot_dimension_numbers<[1], [0], [0], [1], [0, 0, 1, 1], [], []>} : vector<128x3xbf16>, vector<3x512xbf16>, vector<128x512xf32> -> vector<128x512xf32>
    %c0_3 = arith.constant 0 : index
    %c0_4 = arith.constant 0 : index
    %4 = vector.load %arg3[%c0_3, %c0_4] : memref<128x1xf32, #tpu.memory_space<vmem>>, vector<128x1xf32>
    %5 = vector.broadcast %4 : vector<128x1xf32> to vector<128x512xf32>
    %6 = arith.addf %3, %5 : vector<128x512xf32>
    %7 = vector.extract_strided_slice %6 {offsets = [0, 0], sizes = [64, 512], strides = [1, 1]} : vector<128x512xf32> to vector<64x512xf32>
    %cst_5 = arith.constant 0.000000e+00 : f32
    %8 = vector.broadcast %cst_5 : f32 to vector<64x512xf32>
    %9 = arith.maximumf %7, %8 : vector<64x512xf32>
    %10 = vector.extract_strided_slice %6 {offsets = [64, 0], sizes = [64, 512], strides = [1, 1]} : vector<128x512xf32> to vector<64x512xf32>
    %c0_6 = arith.constant 0 : index
    %c0_7 = arith.constant 0 : index
    %11 = vector.load %arg4[%c0_6, %c0_7] : memref<64x64xbf16, #tpu.memory_space<vmem>>, vector<64x64xbf16>
    %12 = arith.truncf %9 : vector<64x512xf32> to vector<64x512xbf16>
    %cst_8 = arith.constant dense<0.000000e+00> : vector<64x512xf32>
    %13 = tpu.matmul %11, %12, %cst_8 {dimension_numbers = #tpu.dot_dimension_numbers<[1], [0], [0], [1], [0, 0, 1, 1], [], []>} : vector<64x64xbf16>, vector<64x512xbf16>, vector<64x512xf32> -> vector<64x512xf32>
    %c0_9 = arith.constant 0 : index
    %c0_10 = arith.constant 0 : index
    %14 = vector.load %arg5[%c0_9, %c0_10] : memref<64x1xf32, #tpu.memory_space<vmem>>, vector<64x1xf32>
    %15 = vector.broadcast %14 : vector<64x1xf32> to vector<64x512xf32>
    %16 = arith.addf %13, %15 : vector<64x512xf32>
    %cst_11 = arith.constant 0.000000e+00 : f32
    %17 = vector.broadcast %cst_11 : f32 to vector<64x512xf32>
    %18 = arith.maximumf %16, %17 : vector<64x512xf32>
    %19 = arith.addf %18, %10 : vector<64x512xf32>
    %cst_12 = arith.constant 0.000000e+00 : f32
    %20 = vector.broadcast %cst_12 : f32 to vector<64x512xf32>
    %21 = arith.maximumf %19, %20 : vector<64x512xf32>
    %22 = tpu.iota {dimensions = array<i32: 1>} : vector<1x512xi32>
    %c4_i32 = arith.constant 4 : i32
    %23 = vector.broadcast %c4_i32 : i32 to vector<1x512xi32>
    %24 = arith.cmpi sge, %22, %23 : vector<1x512xi32>
    %25 = arith.extui %24 : vector<1x512xi1> to vector<1x512xi32>
    %26 = arith.sitofp %25 : vector<1x512xi32> to vector<1x512xf32>
    %c0_13 = arith.constant 0 : index
    %c0_14 = arith.constant 0 : index
    %c0_15 = arith.constant 0 : index
    %27 = vector.load %arg6[%c0_13, %c0_14, %c0_15] : memref<6x64x64xbf16, #tpu.memory_space<vmem>>, vector<1x64x64xbf16>
    %28 = vector.shape_cast %27 : vector<1x64x64xbf16> to vector<64x64xbf16>
    %29 = arith.truncf %21 : vector<64x512xf32> to vector<64x512xbf16>
    %cst_16 = arith.constant dense<0.000000e+00> : vector<64x512xf32>
    %30 = tpu.matmul %28, %29, %cst_16 {dimension_numbers = #tpu.dot_dimension_numbers<[1], [0], [0], [1], [0, 0, 1, 1], [], []>} : vector<64x64xbf16>, vector<64x512xbf16>, vector<64x512xf32> -> vector<64x512xf32>
    %c0_17 = arith.constant 0 : index
    %c0_18 = arith.constant 0 : index
    %c0_19 = arith.constant 0 : index
    %31 = vector.load %arg7[%c0_17, %c0_18, %c0_19] : memref<6x64x64xbf16, #tpu.memory_space<vmem>>, vector<1x64x64xbf16>
    %32 = vector.shape_cast %31 : vector<1x64x64xbf16> to vector<64x64xbf16>
    %c4_i32_20 = arith.constant 4 : i32
    %33 = tpu.dynamic_rotate %21 by %c4_i32_20 dim 1 : vector<64x512xf32>, i32 -> vector<64x512xf32>
    %34 = vector.broadcast %26 : vector<1x512xf32> to vector<64x512xf32>
    %35 = arith.mulf %33, %34 : vector<64x512xf32>
    %36 = arith.truncf %35 : vector<64x512xf32> to vector<64x512xbf16>
    %cst_21 = arith.constant dense<0.000000e+00> : vector<64x512xf32>
    %37 = tpu.matmul %32, %36, %cst_21 {dimension_numbers = #tpu.dot_dimension_numbers<[1], [0], [0], [1], [0, 0, 1, 1], [], []>} : vector<64x64xbf16>, vector<64x512xbf16>, vector<64x512xf32> -> vector<64x512xf32>
    %38 = arith.addf %30, %37 : vector<64x512xf32>
    %c0_22 = arith.constant 0 : index
    %c0_23 = arith.constant 0 : index
    %c0_24 = arith.constant 0 : index
    %39 = vector.load %arg8[%c0_22, %c0_23, %c0_24] : memref<6x64x1xf32, #tpu.memory_space<vmem>>, vector<1x64x1xf32>
    %40 = vector.shape_cast %39 : vector<1x64x1xf32> to vector<64x1xf32>
    %41 = vector.broadcast %40 : vector<64x1xf32> to vector<64x512xf32>
    %42 = arith.addf %38, %41 : vector<64x512xf32>
    %cst_25 = arith.constant 0.000000e+00 : f32
    %43 = vector.broadcast %cst_25 : f32 to vector<64x512xf32>
    %44 = arith.maximumf %42, %43 : vector<64x512xf32>
    %c0_26 = arith.constant 0 : index
    %c0_27 = arith.constant 0 : index
    %c0_28 = arith.constant 0 : index
    %45 = vector.load %arg9[%c0_26, %c0_27, %c0_28] : memref<6x64x64xbf16, #tpu.memory_space<vmem>>, vector<1x64x64xbf16>
    %46 = vector.shape_cast %45 : vector<1x64x64xbf16> to vector<64x64xbf16>
    %47 = arith.truncf %44 : vector<64x512xf32> to vector<64x512xbf16>
    %cst_29 = arith.constant dense<0.000000e+00> : vector<64x512xf32>
    %48 = tpu.matmul %46, %47, %cst_29 {dimension_numbers = #tpu.dot_dimension_numbers<[1], [0], [0], [1], [0, 0, 1, 1], [], []>} : vector<64x64xbf16>, vector<64x512xbf16>, vector<64x512xf32> -> vector<64x512xf32>
    %c0_30 = arith.constant 0 : index
    %c0_31 = arith.constant 0 : index
    %c0_32 = arith.constant 0 : index
    %49 = vector.load %arg10[%c0_30, %c0_31, %c0_32] : memref<6x64x64xbf16, #tpu.memory_space<vmem>>, vector<1x64x64xbf16>
    %50 = vector.shape_cast %49 : vector<1x64x64xbf16> to vector<64x64xbf16>
    %c4_i32_33 = arith.constant 4 : i32
    %51 = tpu.dynamic_rotate %44 by %c4_i32_33 dim 1 : vector<64x512xf32>, i32 -> vector<64x512xf32>
    %52 = vector.broadcast %26 : vector<1x512xf32> to vector<64x512xf32>
    %53 = arith.mulf %51, %52 : vector<64x512xf32>
    %54 = arith.truncf %53 : vector<64x512xf32> to vector<64x512xbf16>
    %cst_34 = arith.constant dense<0.000000e+00> : vector<64x512xf32>
    %55 = tpu.matmul %50, %54, %cst_34 {dimension_numbers = #tpu.dot_dimension_numbers<[1], [0], [0], [1], [0, 0, 1, 1], [], []>} : vector<64x64xbf16>, vector<64x512xbf16>, vector<64x512xf32> -> vector<64x512xf32>
    %56 = arith.addf %48, %55 : vector<64x512xf32>
    %c0_35 = arith.constant 0 : index
    %c0_36 = arith.constant 0 : index
    %c0_37 = arith.constant 0 : index
    %57 = vector.load %arg11[%c0_35, %c0_36, %c0_37] : memref<6x64x1xf32, #tpu.memory_space<vmem>>, vector<1x64x1xf32>
    %58 = vector.shape_cast %57 : vector<1x64x1xf32> to vector<64x1xf32>
    %59 = vector.broadcast %58 : vector<64x1xf32> to vector<64x512xf32>
    %60 = arith.addf %56, %59 : vector<64x512xf32>
    %cst_38 = arith.constant 0.000000e+00 : f32
    %61 = vector.broadcast %cst_38 : f32 to vector<64x512xf32>
    %62 = arith.maximumf %60, %61 : vector<64x512xf32>
    %63 = arith.addf %18, %62 : vector<64x512xf32>
    %64 = arith.addf %62, %21 : vector<64x512xf32>
    %cst_39 = arith.constant 0.000000e+00 : f32
    %65 = vector.broadcast %cst_39 : f32 to vector<64x512xf32>
    %66 = arith.maximumf %64, %65 : vector<64x512xf32>
    %c8_i32 = arith.constant 8 : i32
    %67 = vector.broadcast %c8_i32 : i32 to vector<1x512xi32>
    %68 = arith.cmpi sge, %22, %67 : vector<1x512xi32>
    %69 = arith.extui %68 : vector<1x512xi1> to vector<1x512xi32>
    %70 = arith.sitofp %69 : vector<1x512xi32> to vector<1x512xf32>
    %c1 = arith.constant 1 : index
    %c0_40 = arith.constant 0 : index
    %c0_41 = arith.constant 0 : index
    %71 = vector.load %arg6[%c1, %c0_40, %c0_41] : memref<6x64x64xbf16, #tpu.memory_space<vmem>>, vector<1x64x64xbf16>
    %72 = vector.shape_cast %71 : vector<1x64x64xbf16> to vector<64x64xbf16>
    %73 = arith.truncf %66 : vector<64x512xf32> to vector<64x512xbf16>
    %cst_42 = arith.constant dense<0.000000e+00> : vector<64x512xf32>
    %74 = tpu.matmul %72, %73, %cst_42 {dimension_numbers = #tpu.dot_dimension_numbers<[1], [0], [0], [1], [0, 0, 1, 1], [], []>} : vector<64x64xbf16>, vector<64x512xbf16>, vector<64x512xf32> -> vector<64x512xf32>
    %c1_43 = arith.constant 1 : index
    %c0_44 = arith.constant 0 : index
    %c0_45 = arith.constant 0 : index
    %75 = vector.load %arg7[%c1_43, %c0_44, %c0_45] : memref<6x64x64xbf16, #tpu.memory_space<vmem>>, vector<1x64x64xbf16>
    %76 = vector.shape_cast %75 : vector<1x64x64xbf16> to vector<64x64xbf16>
    %c8_i32_46 = arith.constant 8 : i32
    %77 = tpu.dynamic_rotate %66 by %c8_i32_46 dim 1 : vector<64x512xf32>, i32 -> vector<64x512xf32>
    %78 = vector.broadcast %70 : vector<1x512xf32> to vector<64x512xf32>
    %79 = arith.mulf %77, %78 : vector<64x512xf32>
    %80 = arith.truncf %79 : vector<64x512xf32> to vector<64x512xbf16>
    %cst_47 = arith.constant dense<0.000000e+00> : vector<64x512xf32>
    %81 = tpu.matmul %76, %80, %cst_47 {dimension_numbers = #tpu.dot_dimension_numbers<[1], [0], [0], [1], [0, 0, 1, 1], [], []>} : vector<64x64xbf16>, vector<64x512xbf16>, vector<64x512xf32> -> vector<64x512xf32>
    %82 = arith.addf %74, %81 : vector<64x512xf32>
    %c1_48 = arith.constant 1 : index
    %c0_49 = arith.constant 0 : index
    %c0_50 = arith.constant 0 : index
    %83 = vector.load %arg8[%c1_48, %c0_49, %c0_50] : memref<6x64x1xf32, #tpu.memory_space<vmem>>, vector<1x64x1xf32>
    %84 = vector.shape_cast %83 : vector<1x64x1xf32> to vector<64x1xf32>
    %85 = vector.broadcast %84 : vector<64x1xf32> to vector<64x512xf32>
    %86 = arith.addf %82, %85 : vector<64x512xf32>
    %cst_51 = arith.constant 0.000000e+00 : f32
    %87 = vector.broadcast %cst_51 : f32 to vector<64x512xf32>
    %88 = arith.maximumf %86, %87 : vector<64x512xf32>
    %c1_52 = arith.constant 1 : index
    %c0_53 = arith.constant 0 : index
    %c0_54 = arith.constant 0 : index
    %89 = vector.load %arg9[%c1_52, %c0_53, %c0_54] : memref<6x64x64xbf16, #tpu.memory_space<vmem>>, vector<1x64x64xbf16>
    %90 = vector.shape_cast %89 : vector<1x64x64xbf16> to vector<64x64xbf16>
    %91 = arith.truncf %88 : vector<64x512xf32> to vector<64x512xbf16>
    %cst_55 = arith.constant dense<0.000000e+00> : vector<64x512xf32>
    %92 = tpu.matmul %90, %91, %cst_55 {dimension_numbers = #tpu.dot_dimension_numbers<[1], [0], [0], [1], [0, 0, 1, 1], [], []>} : vector<64x64xbf16>, vector<64x512xbf16>, vector<64x512xf32> -> vector<64x512xf32>
    %c1_56 = arith.constant 1 : index
    %c0_57 = arith.constant 0 : index
    %c0_58 = arith.constant 0 : index
    %93 = vector.load %arg10[%c1_56, %c0_57, %c0_58] : memref<6x64x64xbf16, #tpu.memory_space<vmem>>, vector<1x64x64xbf16>
    %94 = vector.shape_cast %93 : vector<1x64x64xbf16> to vector<64x64xbf16>
    %c8_i32_59 = arith.constant 8 : i32
    %95 = tpu.dynamic_rotate %88 by %c8_i32_59 dim 1 : vector<64x512xf32>, i32 -> vector<64x512xf32>
    %96 = vector.broadcast %70 : vector<1x512xf32> to vector<64x512xf32>
    %97 = arith.mulf %95, %96 : vector<64x512xf32>
    %98 = arith.truncf %97 : vector<64x512xf32> to vector<64x512xbf16>
    %cst_60 = arith.constant dense<0.000000e+00> : vector<64x512xf32>
    %99 = tpu.matmul %94, %98, %cst_60 {dimension_numbers = #tpu.dot_dimension_numbers<[1], [0], [0], [1], [0, 0, 1, 1], [], []>} : vector<64x64xbf16>, vector<64x512xbf16>, vector<64x512xf32> -> vector<64x512xf32>
    %100 = arith.addf %92, %99 : vector<64x512xf32>
    %c1_61 = arith.constant 1 : index
    %c0_62 = arith.constant 0 : index
    %c0_63 = arith.constant 0 : index
    %101 = vector.load %arg11[%c1_61, %c0_62, %c0_63] : memref<6x64x1xf32, #tpu.memory_space<vmem>>, vector<1x64x1xf32>
    %102 = vector.shape_cast %101 : vector<1x64x1xf32> to vector<64x1xf32>
    %103 = vector.broadcast %102 : vector<64x1xf32> to vector<64x512xf32>
    %104 = arith.addf %100, %103 : vector<64x512xf32>
    %cst_64 = arith.constant 0.000000e+00 : f32
    %105 = vector.broadcast %cst_64 : f32 to vector<64x512xf32>
    %106 = arith.maximumf %104, %105 : vector<64x512xf32>
    %107 = arith.addf %63, %106 : vector<64x512xf32>
    %108 = arith.addf %106, %66 : vector<64x512xf32>
    %cst_65 = arith.constant 0.000000e+00 : f32
    %109 = vector.broadcast %cst_65 : f32 to vector<64x512xf32>
    %110 = arith.maximumf %108, %109 : vector<64x512xf32>
    %c16_i32 = arith.constant 16 : i32
    %111 = vector.broadcast %c16_i32 : i32 to vector<1x512xi32>
    %112 = arith.cmpi sge, %22, %111 : vector<1x512xi32>
    %113 = arith.extui %112 : vector<1x512xi1> to vector<1x512xi32>
    %114 = arith.sitofp %113 : vector<1x512xi32> to vector<1x512xf32>
    %c2 = arith.constant 2 : index
    %c0_66 = arith.constant 0 : index
    %c0_67 = arith.constant 0 : index
    %115 = vector.load %arg6[%c2, %c0_66, %c0_67] : memref<6x64x64xbf16, #tpu.memory_space<vmem>>, vector<1x64x64xbf16>
    %116 = vector.shape_cast %115 : vector<1x64x64xbf16> to vector<64x64xbf16>
    %117 = arith.truncf %110 : vector<64x512xf32> to vector<64x512xbf16>
    %cst_68 = arith.constant dense<0.000000e+00> : vector<64x512xf32>
    %118 = tpu.matmul %116, %117, %cst_68 {dimension_numbers = #tpu.dot_dimension_numbers<[1], [0], [0], [1], [0, 0, 1, 1], [], []>} : vector<64x64xbf16>, vector<64x512xbf16>, vector<64x512xf32> -> vector<64x512xf32>
    %c2_69 = arith.constant 2 : index
    %c0_70 = arith.constant 0 : index
    %c0_71 = arith.constant 0 : index
    %119 = vector.load %arg7[%c2_69, %c0_70, %c0_71] : memref<6x64x64xbf16, #tpu.memory_space<vmem>>, vector<1x64x64xbf16>
    %120 = vector.shape_cast %119 : vector<1x64x64xbf16> to vector<64x64xbf16>
    %c16_i32_72 = arith.constant 16 : i32
    %121 = tpu.dynamic_rotate %110 by %c16_i32_72 dim 1 : vector<64x512xf32>, i32 -> vector<64x512xf32>
    %122 = vector.broadcast %114 : vector<1x512xf32> to vector<64x512xf32>
    %123 = arith.mulf %121, %122 : vector<64x512xf32>
    %124 = arith.truncf %123 : vector<64x512xf32> to vector<64x512xbf16>
    %cst_73 = arith.constant dense<0.000000e+00> : vector<64x512xf32>
    %125 = tpu.matmul %120, %124, %cst_73 {dimension_numbers = #tpu.dot_dimension_numbers<[1], [0], [0], [1], [0, 0, 1, 1], [], []>} : vector<64x64xbf16>, vector<64x512xbf16>, vector<64x512xf32> -> vector<64x512xf32>
    %126 = arith.addf %118, %125 : vector<64x512xf32>
    %c2_74 = arith.constant 2 : index
    %c0_75 = arith.constant 0 : index
    %c0_76 = arith.constant 0 : index
    %127 = vector.load %arg8[%c2_74, %c0_75, %c0_76] : memref<6x64x1xf32, #tpu.memory_space<vmem>>, vector<1x64x1xf32>
    %128 = vector.shape_cast %127 : vector<1x64x1xf32> to vector<64x1xf32>
    %129 = vector.broadcast %128 : vector<64x1xf32> to vector<64x512xf32>
    %130 = arith.addf %126, %129 : vector<64x512xf32>
    %cst_77 = arith.constant 0.000000e+00 : f32
    %131 = vector.broadcast %cst_77 : f32 to vector<64x512xf32>
    %132 = arith.maximumf %130, %131 : vector<64x512xf32>
    %c2_78 = arith.constant 2 : index
    %c0_79 = arith.constant 0 : index
    %c0_80 = arith.constant 0 : index
    %133 = vector.load %arg9[%c2_78, %c0_79, %c0_80] : memref<6x64x64xbf16, #tpu.memory_space<vmem>>, vector<1x64x64xbf16>
    %134 = vector.shape_cast %133 : vector<1x64x64xbf16> to vector<64x64xbf16>
    %135 = arith.truncf %132 : vector<64x512xf32> to vector<64x512xbf16>
    %cst_81 = arith.constant dense<0.000000e+00> : vector<64x512xf32>
    %136 = tpu.matmul %134, %135, %cst_81 {dimension_numbers = #tpu.dot_dimension_numbers<[1], [0], [0], [1], [0, 0, 1, 1], [], []>} : vector<64x64xbf16>, vector<64x512xbf16>, vector<64x512xf32> -> vector<64x512xf32>
    %c2_82 = arith.constant 2 : index
    %c0_83 = arith.constant 0 : index
    %c0_84 = arith.constant 0 : index
    %137 = vector.load %arg10[%c2_82, %c0_83, %c0_84] : memref<6x64x64xbf16, #tpu.memory_space<vmem>>, vector<1x64x64xbf16>
    %138 = vector.shape_cast %137 : vector<1x64x64xbf16> to vector<64x64xbf16>
    %c16_i32_85 = arith.constant 16 : i32
    %139 = tpu.dynamic_rotate %132 by %c16_i32_85 dim 1 : vector<64x512xf32>, i32 -> vector<64x512xf32>
    %140 = vector.broadcast %114 : vector<1x512xf32> to vector<64x512xf32>
    %141 = arith.mulf %139, %140 : vector<64x512xf32>
    %142 = arith.truncf %141 : vector<64x512xf32> to vector<64x512xbf16>
    %cst_86 = arith.constant dense<0.000000e+00> : vector<64x512xf32>
    %143 = tpu.matmul %138, %142, %cst_86 {dimension_numbers = #tpu.dot_dimension_numbers<[1], [0], [0], [1], [0, 0, 1, 1], [], []>} : vector<64x64xbf16>, vector<64x512xbf16>, vector<64x512xf32> -> vector<64x512xf32>
    %144 = arith.addf %136, %143 : vector<64x512xf32>
    %c2_87 = arith.constant 2 : index
    %c0_88 = arith.constant 0 : index
    %c0_89 = arith.constant 0 : index
    %145 = vector.load %arg11[%c2_87, %c0_88, %c0_89] : memref<6x64x1xf32, #tpu.memory_space<vmem>>, vector<1x64x1xf32>
    %146 = vector.shape_cast %145 : vector<1x64x1xf32> to vector<64x1xf32>
    %147 = vector.broadcast %146 : vector<64x1xf32> to vector<64x512xf32>
    %148 = arith.addf %144, %147 : vector<64x512xf32>
    %cst_90 = arith.constant 0.000000e+00 : f32
    %149 = vector.broadcast %cst_90 : f32 to vector<64x512xf32>
    %150 = arith.maximumf %148, %149 : vector<64x512xf32>
    %151 = arith.addf %107, %150 : vector<64x512xf32>
    %152 = arith.addf %150, %110 : vector<64x512xf32>
    %cst_91 = arith.constant 0.000000e+00 : f32
    %153 = vector.broadcast %cst_91 : f32 to vector<64x512xf32>
    %154 = arith.maximumf %152, %153 : vector<64x512xf32>
    %c32_i32 = arith.constant 32 : i32
    %155 = vector.broadcast %c32_i32 : i32 to vector<1x512xi32>
    %156 = arith.cmpi sge, %22, %155 : vector<1x512xi32>
    %157 = arith.extui %156 : vector<1x512xi1> to vector<1x512xi32>
    %158 = arith.sitofp %157 : vector<1x512xi32> to vector<1x512xf32>
    %c3 = arith.constant 3 : index
    %c0_92 = arith.constant 0 : index
    %c0_93 = arith.constant 0 : index
    %159 = vector.load %arg6[%c3, %c0_92, %c0_93] : memref<6x64x64xbf16, #tpu.memory_space<vmem>>, vector<1x64x64xbf16>
    %160 = vector.shape_cast %159 : vector<1x64x64xbf16> to vector<64x64xbf16>
    %161 = arith.truncf %154 : vector<64x512xf32> to vector<64x512xbf16>
    %cst_94 = arith.constant dense<0.000000e+00> : vector<64x512xf32>
    %162 = tpu.matmul %160, %161, %cst_94 {dimension_numbers = #tpu.dot_dimension_numbers<[1], [0], [0], [1], [0, 0, 1, 1], [], []>} : vector<64x64xbf16>, vector<64x512xbf16>, vector<64x512xf32> -> vector<64x512xf32>
    %c3_95 = arith.constant 3 : index
    %c0_96 = arith.constant 0 : index
    %c0_97 = arith.constant 0 : index
    %163 = vector.load %arg7[%c3_95, %c0_96, %c0_97] : memref<6x64x64xbf16, #tpu.memory_space<vmem>>, vector<1x64x64xbf16>
    %164 = vector.shape_cast %163 : vector<1x64x64xbf16> to vector<64x64xbf16>
    %c32_i32_98 = arith.constant 32 : i32
    %165 = tpu.dynamic_rotate %154 by %c32_i32_98 dim 1 : vector<64x512xf32>, i32 -> vector<64x512xf32>
    %166 = vector.broadcast %158 : vector<1x512xf32> to vector<64x512xf32>
    %167 = arith.mulf %165, %166 : vector<64x512xf32>
    %168 = arith.truncf %167 : vector<64x512xf32> to vector<64x512xbf16>
    %cst_99 = arith.constant dense<0.000000e+00> : vector<64x512xf32>
    %169 = tpu.matmul %164, %168, %cst_99 {dimension_numbers = #tpu.dot_dimension_numbers<[1], [0], [0], [1], [0, 0, 1, 1], [], []>} : vector<64x64xbf16>, vector<64x512xbf16>, vector<64x512xf32> -> vector<64x512xf32>
    %170 = arith.addf %162, %169 : vector<64x512xf32>
    %c3_100 = arith.constant 3 : index
    %c0_101 = arith.constant 0 : index
    %c0_102 = arith.constant 0 : index
    %171 = vector.load %arg8[%c3_100, %c0_101, %c0_102] : memref<6x64x1xf32, #tpu.memory_space<vmem>>, vector<1x64x1xf32>
    %172 = vector.shape_cast %171 : vector<1x64x1xf32> to vector<64x1xf32>
    %173 = vector.broadcast %172 : vector<64x1xf32> to vector<64x512xf32>
    %174 = arith.addf %170, %173 : vector<64x512xf32>
    %cst_103 = arith.constant 0.000000e+00 : f32
    %175 = vector.broadcast %cst_103 : f32 to vector<64x512xf32>
    %176 = arith.maximumf %174, %175 : vector<64x512xf32>
    %c3_104 = arith.constant 3 : index
    %c0_105 = arith.constant 0 : index
    %c0_106 = arith.constant 0 : index
    %177 = vector.load %arg9[%c3_104, %c0_105, %c0_106] : memref<6x64x64xbf16, #tpu.memory_space<vmem>>, vector<1x64x64xbf16>
    %178 = vector.shape_cast %177 : vector<1x64x64xbf16> to vector<64x64xbf16>
    %179 = arith.truncf %176 : vector<64x512xf32> to vector<64x512xbf16>
    %cst_107 = arith.constant dense<0.000000e+00> : vector<64x512xf32>
    %180 = tpu.matmul %178, %179, %cst_107 {dimension_numbers = #tpu.dot_dimension_numbers<[1], [0], [0], [1], [0, 0, 1, 1], [], []>} : vector<64x64xbf16>, vector<64x512xbf16>, vector<64x512xf32> -> vector<64x512xf32>
    %c3_108 = arith.constant 3 : index
    %c0_109 = arith.constant 0 : index
    %c0_110 = arith.constant 0 : index
    %181 = vector.load %arg10[%c3_108, %c0_109, %c0_110] : memref<6x64x64xbf16, #tpu.memory_space<vmem>>, vector<1x64x64xbf16>
    %182 = vector.shape_cast %181 : vector<1x64x64xbf16> to vector<64x64xbf16>
    %c32_i32_111 = arith.constant 32 : i32
    %183 = tpu.dynamic_rotate %176 by %c32_i32_111 dim 1 : vector<64x512xf32>, i32 -> vector<64x512xf32>
    %184 = vector.broadcast %158 : vector<1x512xf32> to vector<64x512xf32>
    %185 = arith.mulf %183, %184 : vector<64x512xf32>
    %186 = arith.truncf %185 : vector<64x512xf32> to vector<64x512xbf16>
    %cst_112 = arith.constant dense<0.000000e+00> : vector<64x512xf32>
    %187 = tpu.matmul %182, %186, %cst_112 {dimension_numbers = #tpu.dot_dimension_numbers<[1], [0], [0], [1], [0, 0, 1, 1], [], []>} : vector<64x64xbf16>, vector<64x512xbf16>, vector<64x512xf32> -> vector<64x512xf32>
    %188 = arith.addf %180, %187 : vector<64x512xf32>
    %c3_113 = arith.constant 3 : index
    %c0_114 = arith.constant 0 : index
    %c0_115 = arith.constant 0 : index
    %189 = vector.load %arg11[%c3_113, %c0_114, %c0_115] : memref<6x64x1xf32, #tpu.memory_space<vmem>>, vector<1x64x1xf32>
    %190 = vector.shape_cast %189 : vector<1x64x1xf32> to vector<64x1xf32>
    %191 = vector.broadcast %190 : vector<64x1xf32> to vector<64x512xf32>
    %192 = arith.addf %188, %191 : vector<64x512xf32>
    %cst_116 = arith.constant 0.000000e+00 : f32
    %193 = vector.broadcast %cst_116 : f32 to vector<64x512xf32>
    %194 = arith.maximumf %192, %193 : vector<64x512xf32>
    %195 = arith.addf %151, %194 : vector<64x512xf32>
    %196 = arith.addf %194, %154 : vector<64x512xf32>
    %cst_117 = arith.constant 0.000000e+00 : f32
    %197 = vector.broadcast %cst_117 : f32 to vector<64x512xf32>
    %198 = arith.maximumf %196, %197 : vector<64x512xf32>
    %c64_i32 = arith.constant 64 : i32
    %199 = vector.broadcast %c64_i32 : i32 to vector<1x512xi32>
    %200 = arith.cmpi sge, %22, %199 : vector<1x512xi32>
    %201 = arith.extui %200 : vector<1x512xi1> to vector<1x512xi32>
    %202 = arith.sitofp %201 : vector<1x512xi32> to vector<1x512xf32>
    %c4 = arith.constant 4 : index
    %c0_118 = arith.constant 0 : index
    %c0_119 = arith.constant 0 : index
    %203 = vector.load %arg6[%c4, %c0_118, %c0_119] : memref<6x64x64xbf16, #tpu.memory_space<vmem>>, vector<1x64x64xbf16>
    %204 = vector.shape_cast %203 : vector<1x64x64xbf16> to vector<64x64xbf16>
    %205 = arith.truncf %198 : vector<64x512xf32> to vector<64x512xbf16>
    %cst_120 = arith.constant dense<0.000000e+00> : vector<64x512xf32>
    %206 = tpu.matmul %204, %205, %cst_120 {dimension_numbers = #tpu.dot_dimension_numbers<[1], [0], [0], [1], [0, 0, 1, 1], [], []>} : vector<64x64xbf16>, vector<64x512xbf16>, vector<64x512xf32> -> vector<64x512xf32>
    %c4_121 = arith.constant 4 : index
    %c0_122 = arith.constant 0 : index
    %c0_123 = arith.constant 0 : index
    %207 = vector.load %arg7[%c4_121, %c0_122, %c0_123] : memref<6x64x64xbf16, #tpu.memory_space<vmem>>, vector<1x64x64xbf16>
    %208 = vector.shape_cast %207 : vector<1x64x64xbf16> to vector<64x64xbf16>
    %c64_i32_124 = arith.constant 64 : i32
    %209 = tpu.dynamic_rotate %198 by %c64_i32_124 dim 1 : vector<64x512xf32>, i32 -> vector<64x512xf32>
    %210 = vector.broadcast %202 : vector<1x512xf32> to vector<64x512xf32>
    %211 = arith.mulf %209, %210 : vector<64x512xf32>
    %212 = arith.truncf %211 : vector<64x512xf32> to vector<64x512xbf16>
    %cst_125 = arith.constant dense<0.000000e+00> : vector<64x512xf32>
    %213 = tpu.matmul %208, %212, %cst_125 {dimension_numbers = #tpu.dot_dimension_numbers<[1], [0], [0], [1], [0, 0, 1, 1], [], []>} : vector<64x64xbf16>, vector<64x512xbf16>, vector<64x512xf32> -> vector<64x512xf32>
    %214 = arith.addf %206, %213 : vector<64x512xf32>
    %c4_126 = arith.constant 4 : index
    %c0_127 = arith.constant 0 : index
    %c0_128 = arith.constant 0 : index
    %215 = vector.load %arg8[%c4_126, %c0_127, %c0_128] : memref<6x64x1xf32, #tpu.memory_space<vmem>>, vector<1x64x1xf32>
    %216 = vector.shape_cast %215 : vector<1x64x1xf32> to vector<64x1xf32>
    %217 = vector.broadcast %216 : vector<64x1xf32> to vector<64x512xf32>
    %218 = arith.addf %214, %217 : vector<64x512xf32>
    %cst_129 = arith.constant 0.000000e+00 : f32
    %219 = vector.broadcast %cst_129 : f32 to vector<64x512xf32>
    %220 = arith.maximumf %218, %219 : vector<64x512xf32>
    %c4_130 = arith.constant 4 : index
    %c0_131 = arith.constant 0 : index
    %c0_132 = arith.constant 0 : index
    %221 = vector.load %arg9[%c4_130, %c0_131, %c0_132] : memref<6x64x64xbf16, #tpu.memory_space<vmem>>, vector<1x64x64xbf16>
    %222 = vector.shape_cast %221 : vector<1x64x64xbf16> to vector<64x64xbf16>
    %223 = arith.truncf %220 : vector<64x512xf32> to vector<64x512xbf16>
    %cst_133 = arith.constant dense<0.000000e+00> : vector<64x512xf32>
    %224 = tpu.matmul %222, %223, %cst_133 {dimension_numbers = #tpu.dot_dimension_numbers<[1], [0], [0], [1], [0, 0, 1, 1], [], []>} : vector<64x64xbf16>, vector<64x512xbf16>, vector<64x512xf32> -> vector<64x512xf32>
    %c4_134 = arith.constant 4 : index
    %c0_135 = arith.constant 0 : index
    %c0_136 = arith.constant 0 : index
    %225 = vector.load %arg10[%c4_134, %c0_135, %c0_136] : memref<6x64x64xbf16, #tpu.memory_space<vmem>>, vector<1x64x64xbf16>
    %226 = vector.shape_cast %225 : vector<1x64x64xbf16> to vector<64x64xbf16>
    %c64_i32_137 = arith.constant 64 : i32
    %227 = tpu.dynamic_rotate %220 by %c64_i32_137 dim 1 : vector<64x512xf32>, i32 -> vector<64x512xf32>
    %228 = vector.broadcast %202 : vector<1x512xf32> to vector<64x512xf32>
    %229 = arith.mulf %227, %228 : vector<64x512xf32>
    %230 = arith.truncf %229 : vector<64x512xf32> to vector<64x512xbf16>
    %cst_138 = arith.constant dense<0.000000e+00> : vector<64x512xf32>
    %231 = tpu.matmul %226, %230, %cst_138 {dimension_numbers = #tpu.dot_dimension_numbers<[1], [0], [0], [1], [0, 0, 1, 1], [], []>} : vector<64x64xbf16>, vector<64x512xbf16>, vector<64x512xf32> -> vector<64x512xf32>
    %232 = arith.addf %224, %231 : vector<64x512xf32>
    %c4_139 = arith.constant 4 : index
    %c0_140 = arith.constant 0 : index
    %c0_141 = arith.constant 0 : index
    %233 = vector.load %arg11[%c4_139, %c0_140, %c0_141] : memref<6x64x1xf32, #tpu.memory_space<vmem>>, vector<1x64x1xf32>
    %234 = vector.shape_cast %233 : vector<1x64x1xf32> to vector<64x1xf32>
    %235 = vector.broadcast %234 : vector<64x1xf32> to vector<64x512xf32>
    %236 = arith.addf %232, %235 : vector<64x512xf32>
    %cst_142 = arith.constant 0.000000e+00 : f32
    %237 = vector.broadcast %cst_142 : f32 to vector<64x512xf32>
    %238 = arith.maximumf %236, %237 : vector<64x512xf32>
    %239 = arith.addf %195, %238 : vector<64x512xf32>
    %240 = arith.addf %238, %198 : vector<64x512xf32>
    %cst_143 = arith.constant 0.000000e+00 : f32
    %241 = vector.broadcast %cst_143 : f32 to vector<64x512xf32>
    %242 = arith.maximumf %240, %241 : vector<64x512xf32>
    %c128_i32 = arith.constant 128 : i32
    %243 = vector.broadcast %c128_i32 : i32 to vector<1x512xi32>
    %244 = arith.cmpi sge, %22, %243 : vector<1x512xi32>
    %245 = arith.extui %244 : vector<1x512xi1> to vector<1x512xi32>
    %246 = arith.sitofp %245 : vector<1x512xi32> to vector<1x512xf32>
    %c5 = arith.constant 5 : index
    %c0_144 = arith.constant 0 : index
    %c0_145 = arith.constant 0 : index
    %247 = vector.load %arg6[%c5, %c0_144, %c0_145] : memref<6x64x64xbf16, #tpu.memory_space<vmem>>, vector<1x64x64xbf16>
    %248 = vector.shape_cast %247 : vector<1x64x64xbf16> to vector<64x64xbf16>
    %249 = arith.truncf %242 : vector<64x512xf32> to vector<64x512xbf16>
    %cst_146 = arith.constant dense<0.000000e+00> : vector<64x512xf32>
    %250 = tpu.matmul %248, %249, %cst_146 {dimension_numbers = #tpu.dot_dimension_numbers<[1], [0], [0], [1], [0, 0, 1, 1], [], []>} : vector<64x64xbf16>, vector<64x512xbf16>, vector<64x512xf32> -> vector<64x512xf32>
    %c5_147 = arith.constant 5 : index
    %c0_148 = arith.constant 0 : index
    %c0_149 = arith.constant 0 : index
    %251 = vector.load %arg7[%c5_147, %c0_148, %c0_149] : memref<6x64x64xbf16, #tpu.memory_space<vmem>>, vector<1x64x64xbf16>
    %252 = vector.shape_cast %251 : vector<1x64x64xbf16> to vector<64x64xbf16>
    %c128_i32_150 = arith.constant 128 : i32
    %253 = tpu.dynamic_rotate %242 by %c128_i32_150 dim 1 : vector<64x512xf32>, i32 -> vector<64x512xf32>
    %254 = vector.broadcast %246 : vector<1x512xf32> to vector<64x512xf32>
    %255 = arith.mulf %253, %254 : vector<64x512xf32>
    %256 = arith.truncf %255 : vector<64x512xf32> to vector<64x512xbf16>
    %cst_151 = arith.constant dense<0.000000e+00> : vector<64x512xf32>
    %257 = tpu.matmul %252, %256, %cst_151 {dimension_numbers = #tpu.dot_dimension_numbers<[1], [0], [0], [1], [0, 0, 1, 1], [], []>} : vector<64x64xbf16>, vector<64x512xbf16>, vector<64x512xf32> -> vector<64x512xf32>
    %258 = arith.addf %250, %257 : vector<64x512xf32>
    %c5_152 = arith.constant 5 : index
    %c0_153 = arith.constant 0 : index
    %c0_154 = arith.constant 0 : index
    %259 = vector.load %arg8[%c5_152, %c0_153, %c0_154] : memref<6x64x1xf32, #tpu.memory_space<vmem>>, vector<1x64x1xf32>
    %260 = vector.shape_cast %259 : vector<1x64x1xf32> to vector<64x1xf32>
    %261 = vector.broadcast %260 : vector<64x1xf32> to vector<64x512xf32>
    %262 = arith.addf %258, %261 : vector<64x512xf32>
    %cst_155 = arith.constant 0.000000e+00 : f32
    %263 = vector.broadcast %cst_155 : f32 to vector<64x512xf32>
    %264 = arith.maximumf %262, %263 : vector<64x512xf32>
    %c5_156 = arith.constant 5 : index
    %c0_157 = arith.constant 0 : index
    %c0_158 = arith.constant 0 : index
    %265 = vector.load %arg9[%c5_156, %c0_157, %c0_158] : memref<6x64x64xbf16, #tpu.memory_space<vmem>>, vector<1x64x64xbf16>
    %266 = vector.shape_cast %265 : vector<1x64x64xbf16> to vector<64x64xbf16>
    %267 = arith.truncf %264 : vector<64x512xf32> to vector<64x512xbf16>
    %cst_159 = arith.constant dense<0.000000e+00> : vector<64x512xf32>
    %268 = tpu.matmul %266, %267, %cst_159 {dimension_numbers = #tpu.dot_dimension_numbers<[1], [0], [0], [1], [0, 0, 1, 1], [], []>} : vector<64x64xbf16>, vector<64x512xbf16>, vector<64x512xf32> -> vector<64x512xf32>
    %c5_160 = arith.constant 5 : index
    %c0_161 = arith.constant 0 : index
    %c0_162 = arith.constant 0 : index
    %269 = vector.load %arg10[%c5_160, %c0_161, %c0_162] : memref<6x64x64xbf16, #tpu.memory_space<vmem>>, vector<1x64x64xbf16>
    %270 = vector.shape_cast %269 : vector<1x64x64xbf16> to vector<64x64xbf16>
    %c128_i32_163 = arith.constant 128 : i32
    %271 = tpu.dynamic_rotate %264 by %c128_i32_163 dim 1 : vector<64x512xf32>, i32 -> vector<64x512xf32>
    %272 = vector.broadcast %246 : vector<1x512xf32> to vector<64x512xf32>
    %273 = arith.mulf %271, %272 : vector<64x512xf32>
    %274 = arith.truncf %273 : vector<64x512xf32> to vector<64x512xbf16>
    %cst_164 = arith.constant dense<0.000000e+00> : vector<64x512xf32>
    %275 = tpu.matmul %270, %274, %cst_164 {dimension_numbers = #tpu.dot_dimension_numbers<[1], [0], [0], [1], [0, 0, 1, 1], [], []>} : vector<64x64xbf16>, vector<64x512xbf16>, vector<64x512xf32> -> vector<64x512xf32>
    %276 = arith.addf %268, %275 : vector<64x512xf32>
    %c5_165 = arith.constant 5 : index
    %c0_166 = arith.constant 0 : index
    %c0_167 = arith.constant 0 : index
    %277 = vector.load %arg11[%c5_165, %c0_166, %c0_167] : memref<6x64x1xf32, #tpu.memory_space<vmem>>, vector<1x64x1xf32>
    %278 = vector.shape_cast %277 : vector<1x64x1xf32> to vector<64x1xf32>
    %279 = vector.broadcast %278 : vector<64x1xf32> to vector<64x512xf32>
    %280 = arith.addf %276, %279 : vector<64x512xf32>
    %cst_168 = arith.constant 0.000000e+00 : f32
    %281 = vector.broadcast %cst_168 : f32 to vector<64x512xf32>
    %282 = arith.maximumf %280, %281 : vector<64x512xf32>
    %283 = arith.addf %239, %282 : vector<64x512xf32>
    %284 = arith.addf %282, %242 : vector<64x512xf32>
    %cst_169 = arith.constant 0.000000e+00 : f32
    %285 = vector.broadcast %cst_169 : f32 to vector<64x512xf32>
    %286 = arith.maximumf %284, %285 : vector<64x512xf32>
    %287 = arith.addf %283, %286 : vector<64x512xf32>
    %c0_170 = arith.constant 0 : index
    %c0_171 = arith.constant 0 : index
    %288 = vector.load %arg12[%c0_170, %c0_171] : memref<64x1xf32, #tpu.memory_space<vmem>>, vector<64x1xf32>
    %289 = vector.broadcast %288 : vector<64x1xf32> to vector<64x512xf32>
    %290 = arith.mulf %287, %289 : vector<64x512xf32>
    %cst_172 = arith.constant dense<0.000000e+00> : vector<512xf32>
    %291 = vector.multi_reduction <add>, %290, %cst_172 [0] : vector<64x512xf32> to vector<512xf32>
    %292 = vector.shape_cast %291 : vector<512xf32> to vector<1x512xf32>
    %c0_173 = arith.constant 0 : index
    %c0_174 = arith.constant 0 : index
    %293 = vector.load %arg13[%c0_173, %c0_174] : memref<1x1xf32, #tpu.memory_space<vmem>>, vector<1x1xf32>
    %294 = vector.broadcast %293 : vector<1x1xf32> to vector<1x512xf32>
    %295 = arith.addf %292, %294 : vector<1x512xf32>
    %c0_175 = arith.constant 0 : index
    %c0_176 = arith.constant 0 : index
    %296 = vector.load %arg14[%c0_175, %c0_176] : memref<1x512xf32, #tpu.memory_space<vmem>>, vector<1x512xf32>
    tpu.vector_store %arg14[%c0_175, %c0_176], %295 {strides = array<i32>} : memref<1x512xf32, #tpu.memory_space<vmem>>, vector<1x512xf32>,
    return
  }
  func.func @transform_0(%arg0: i32) -> (i32, i32) {
    %c0_i32 = arith.constant 0 : i32
    %c0_i32_0 = arith.constant 0 : i32
    %c0_i32_1 = arith.constant 0 : i32
    return %c0_i32, %c0_i32_0 : i32, i32
  }
  func.func @transform_1(%arg0: i32) -> (i32, i32) {
    %c0_i32 = arith.constant 0 : i32
    %c0_i32_0 = arith.constant 0 : i32
    %c0_i32_1 = arith.constant 0 : i32
    return %c0_i32, %c0_i32_0 : i32, i32
  }
  func.func @transform_2(%arg0: i32) -> (i32, i32) {
    %c0_i32 = arith.constant 0 : i32
    %c0_i32_0 = arith.constant 0 : i32
    %c0_i32_1 = arith.constant 0 : i32
    return %c0_i32, %c0_i32_0 : i32, i32
  }
  func.func @transform_3(%arg0: i32) -> (i32, i32) {
    %c0_i32 = arith.constant 0 : i32
    %c0_i32_0 = arith.constant 0 : i32
    %c0_i32_1 = arith.constant 0 : i32
    return %c0_i32, %c0_i32_0 : i32, i32
  }
  func.func @transform_4(%arg0: i32) -> (i32, i32) {
    %c0_i32 = arith.constant 0 : i32
    %c0_i32_0 = arith.constant 0 : i32
    %c0_i32_1 = arith.constant 0 : i32
    return %c0_i32, %c0_i32_0 : i32, i32
  }
  func.func @transform_5(%arg0: i32) -> (i32, i32, i32) {
    %c0_i32 = arith.constant 0 : i32
    %c0_i32_0 = arith.constant 0 : i32
    %c0_i32_1 = arith.constant 0 : i32
    %c0_i32_2 = arith.constant 0 : i32
    return %c0_i32, %c0_i32_0, %c0_i32_1 : i32, i32, i32
  }
  func.func @transform_6(%arg0: i32) -> (i32, i32, i32) {
    %c0_i32 = arith.constant 0 : i32
    %c0_i32_0 = arith.constant 0 : i32
    %c0_i32_1 = arith.constant 0 : i32
    %c0_i32_2 = arith.constant 0 : i32
    return %c0_i32, %c0_i32_0, %c0_i32_1 : i32, i32, i32
  }
  func.func @transform_7(%arg0: i32) -> (i32, i32, i32) {
    %c0_i32 = arith.constant 0 : i32
    %c0_i32_0 = arith.constant 0 : i32
    %c0_i32_1 = arith.constant 0 : i32
    %c0_i32_2 = arith.constant 0 : i32
    return %c0_i32, %c0_i32_0, %c0_i32_1 : i32, i32, i32
  }
  func.func @transform_8(%arg0: i32) -> (i32, i32, i32) {
    %c0_i32 = arith.constant 0 : i32
    %c0_i32_0 = arith.constant 0 : i32
    %c0_i32_1 = arith.constant 0 : i32
    %c0_i32_2 = arith.constant 0 : i32
    return %c0_i32, %c0_i32_0, %c0_i32_1 : i32, i32, i32
  }
  func.func @transform_9(%arg0: i32) -> (i32, i32, i32) {
    %c0_i32 = arith.constant 0 : i32
    %c0_i32_0 = arith.constant 0 : i32
    %c0_i32_1 = arith.constant 0 : i32
    %c0_i32_2 = arith.constant 0 : i32
    return %c0_i32, %c0_i32_0, %c0_i32_1 : i32, i32, i32
  }
  func.func @transform_10(%arg0: i32) -> (i32, i32, i32) {
    %c0_i32 = arith.constant 0 : i32
    %c0_i32_0 = arith.constant 0 : i32
    %c0_i32_1 = arith.constant 0 : i32
    %c0_i32_2 = arith.constant 0 : i32
    return %c0_i32, %c0_i32_0, %c0_i32_1 : i32, i32, i32
  }
  func.func @transform_11(%arg0: i32) -> (i32, i32) {
    %c0_i32 = arith.constant 0 : i32
    %c0_i32_0 = arith.constant 0 : i32
    %c0_i32_1 = arith.constant 0 : i32
    return %c0_i32, %c0_i32_0 : i32, i32
  }
  func.func @transform_12(%arg0: i32) -> (i32, i32) {
    %c0_i32 = arith.constant 0 : i32
    %c0_i32_0 = arith.constant 0 : i32
    %c0_i32_1 = arith.constant 0 : i32
    return %c0_i32, %c0_i32_0 : i32, i32
  }
  func.func @transform_13(%arg0: i32) -> (i32, i32) {
    %c0_i32 = arith.constant 0 : i32
    %c0_i32_0 = arith.constant 0 : i32
    %c0_i32_1 = arith.constant 0 : i32
    return %c0_i32, %c0_i32_0 : i32, i32
  }
}

</mosaic_0001>

<bundles_post_ra>
// kernel: generator_forward.1
= control target key start
LH: loop header
LB: loop body
LE: loop exit
PB: predicated region body
PF: predicated region fallthrough
CT: control target
= control target key end

     0   :  { %vm236_vm0 = vcmask 1040384   ;;  %vm237_vm1 = vcmask 1041408   ;;  %v10771_v1 = vmov 65535   ;;  %v15642_v4 = vmov 0   ;;  %s10775_s26 = smov 8   ;;  %s10776_s25 = smov 16   ;;  %s15624_s0 = inlined_call_operand.vmem [shape: f32[3,512], index: 0, kind: input, shape index: {}]   ;;  %s15625_s1 = inlined_call_operand.vmem [shape: bf16[128,3], index: 1, kind: input, shape index: {}]   ;;  %s15626_s2 = inlined_call_operand.vmem [shape: f32[128,1], index: 2, kind: input, shape index: {}]   ;;  %s15627_s4 = inlined_call_operand.vmem [shape: f32[64,1], index: 4, kind: input, shape index: {}]   ;;  %s15628_s3 = inlined_call_operand.vmem [shape: bf16[64,64], index: 3, kind: input, shape index: {}]   ;;  %s15629_s6 = inlined_call_operand.vmem [shape: bf16[6,64,64], index: 6, kind: input, shape index: {}]   ;;  %s15630_s7 = inlined_call_operand.vmem [shape: f32[6,64,1], index: 7, kind: input, shape index: {}]   ;;  %s15631_s5 = inlined_call_operand.vmem [shape: bf16[6,64,64], index: 5, kind: input, shape index: {}]   ;;  %s15632_s9 = inlined_call_operand.vmem [shape: bf16[6,64,64], index: 9, kind: input, shape index: {}]   ;;  %s15633_s10 = inlined_call_operand.vmem [shape: f32[6,64,1], index: 10, kind: input, shape index: {}]   ;;  %s15634_s8 = inlined_call_operand.vmem [shape: bf16[6,64,64], index: 8, kind: input, shape index: {}]   ;;  %s15635_s12 = inlined_call_operand.<no memory space> [shape: f32[1,1], index: 12, kind: input, shape index: {}]   ;;  %s15636_s11 = inlined_call_operand.vmem [shape: f32[64,1], index: 11, kind: input, shape index: {}]   ;;  %s15637_s13 = inlined_call_operand.vmem [shape: f32[1,512], index: 13, kind: output, shape index: {}]  }
   0x1   :  { %v47_v0 = vld [vmem:[%s15624_s0] sm:$0x77]  ;;  %v238_v2 = vsel %vm236_vm0, 4294967295, %v10771_v1  ;;  %v48_v3 = vld [vmem:[%s15624_s0 + $0x8] sm:$0x77]  ;;  %284 = vmatprep.mubr.bf16.mxu0 %v15642_v4  ;;  %397 = vmatprep.mubr.bf16.mxu1 %v15642_v4  ;;  %vm211_vm2 = vcmask 23552  }
   0x2   :  { %v67_v5 = vcombine.high %v47_v0, %v47_v0  ;;  %v239_v6 = vsel %vm237_vm1, %v238_v2, 0  ;;  %v68_v7 = vcombine.high %v48_v3, %v48_v3  ;;  %v71_v8 = vpack.c.bf16 %v47_v0, %v47_v0  ;;  %10259 = vset.pattern.permute.xlu0 %v15642_v4  ;;  %10260 = vset.pattern.permute.xlu1 %v15642_v4  ;;  %v75_v16 = vld [vmem:[%s15626_s2] sm:$0xff]  ;;  %v76_v18 = vld [vmem:[%s15626_s2 + $0x8] sm:$0xff]  ;;  %v77_v19 = vld [vmem:[%s15626_s2 + $0x10] sm:$0xff]  ;;  %s10777_s24 = smov 32  }
   0x3   :  { %v73_v9 = vpack.c.bf16 %v48_v3, %v48_v3  ;;  %93 = vperm.xlu0 %10259, %v75_v16   ;;  %v10663_v17 = vld [vmem:[%s15625_s1] sm:$0xff]   ;;  %103 = vperm.xlu1 %10260, %v77_v19   ;;  %v78_v21 = vld [vmem:[%s15626_s2 + $0x18] sm:$0xff]  ;;  %v10664_v22 = vld [vmem:[%s15625_s1 + $0x8] sm:$0xff]   ;;  %vm602_vm3 = vcmask 523264  }
   0x4   :  { %v72_v10 = vpack.c.bf16 %v67_v5, %v67_v5  ;;  %v74_v11 = vpack.c.bf16 %v68_v7, %v68_v7  ;;  %v241_v12 = vand.u32 %v239_v6, %v71_v8  ;;  %v79_v20 = vld [vmem:[%s15626_s2 + $0x20] sm:$0xff]  ;;  %v81_v23 = vld [vmem:[%s15626_s2 + $0x30] sm:$0xff]  ;;  %v80_v24 = vld [vmem:[%s15626_s2 + $0x28] sm:$0xff] }
   0x5   :  { %v247_v13 = vand.u32 %v239_v6, %v73_v9  ;;  %v534_v25 = vld [vmem:[%s15627_s4] sm:$0xff]  ;;  %v82_v26 = vld [vmem:[%s15626_s2 + $0x38] sm:$0xff]  ;;  %v10665_v27 = vld [vmem:[%s15625_s1 + $0x10] sm:$0xff]  }
   0x6   :  { %v244_v14 = vand.u32 %v239_v6, %v72_v10  ;;  %v250_v15 = vand.u32 %v239_v6, %v74_v11  ;;  %v83_v28 = vld [vmem:[%s15626_s2 + $0x40] sm:$0xff]  ;;  %v535_v29 = vld [vmem:[%s15627_s4 + $0x8] sm:$0xff]  ;;  %v536_v30 = vld [vmem:[%s15627_s4 + $0x10] sm:$0xff] }
   0x7   :  { %98 = vperm.xlu0 %10259, %v76_v18   ;;  %108 = vperm.xlu1 %10260, %v78_v21   ;;  %v84_v31 = vld [vmem:[%s15626_s2 + $0x48] sm:$0xff]  ;;  %v10666_v32 = vld [vmem:[%s15625_s1 + $0x18] sm:$0xff]   ;;  %v85_v33 = vld [vmem:[%s15626_s2 + $0x50] sm:$0xff] }
   0x8   :  { %252 = vmatprep.subr.bf16.mxu0 %v244_v14  ;;  %365 = vmatprep.subr.bf16.mxu1 %v250_v15  ;;  %v537_v34 = vld [vmem:[%s15627_s4 + $0x18] sm:$0xff]  ;;  %v538_v35 = vld [vmem:[%s15627_s4 + $0x20] sm:$0xff]  ;;  %v539_v39 = vld [vmem:[%s15627_s4 + $0x28] sm:$0xff] }
   0x9   :  { %253 = vmatpush1.bf16.msra.mxu0 %v241_v12  ;;  %366 = vmatpush1.bf16.msra.mxu1 %v247_v13  ;;  %v86_v36 = vld [vmem:[%s15626_s2 + $0x58] sm:$0xff]  ;;  %v10667_v37 = vld [vmem:[%s15625_s1 + $0x20] sm:$0xff]   ;;  %v540_v40 = vld [vmem:[%s15627_s4 + $0x30] sm:$0xff] }
   0xa   :  { %v87_v38 = vld [vmem:[%s15626_s2 + $0x60] sm:$0xff]  ;;  %v88_v41 = vld [vmem:[%s15626_s2 + $0x68] sm:$0xff]  ;;  %v89_v43 = vld [vmem:[%s15626_s2 + $0x70] sm:$0xff] }
   0xb   :  { %113 = vperm.xlu0 %10259, %v79_v20   ;;  %118 = vperm.xlu1 %10260, %v80_v24   ;;  %v10668_v42 = vld [vmem:[%s15625_s1 + $0x28] sm:$0xff]   ;;  %v541_v44 = vld [vmem:[%s15627_s4 + $0x38] sm:$0xff]  ;;  %v10669_v46 = vld [vmem:[%s15625_s1 + $0x30] sm:$0xff]  }
   0xc   :  { %9305 = vmatmul.mubr.msk.bf16.vlgmr.msra.gmra.mrb[0].mxu0 %vm211_vm2, %v10663_v17  ;;  %9313 = vmatmul.mubr.msk.bf16.vlgmr.msra.gmra.mrb[0].mxu1 %vm211_vm2, %v10663_v17  ;;  %v90_v45 = vld [vmem:[%s15626_s2 + $0x78] sm:$0xff] }
   0xd   :  { %294 = vmatprep.mubr.bf16.mxu0 %v15642_v4  ;;  %407 = vmatprep.mubr.bf16.mxu1 %v15642_v4  ;;  %v10670_v47 = vld [vmem:[%s15625_s1 + $0x38] sm:$0xff]  }
   0xf   :  { %123 = vperm.xlu0 %10259, %v81_v23   ;;  %128 = vperm.xlu1 %10260, %v82_v26  }
  0x13   :  { %544 = vperm.xlu0 %10259, %v534_v25   ;;  %549 = vperm.xlu1 %10260, %v535_v29  }
  0x14   :  { %9306 = vmatmul.mubr.msk.bf16.gmra.mrb[4].mxu0 %vm211_vm2, %v10664_v22  ;;  %9314 = vmatmul.mubr.msk.bf16.gmra.mrb[4].mxu1 %vm211_vm2, %v10664_v22 }
  0x15   :  { %304 = vmatprep.mubr.bf16.mxu0 %v15642_v4  ;;  %417 = vmatprep.mubr.bf16.mxu1 %v15642_v4 }
  0x17   :  { %133 = vperm.xlu0 %10259, %v83_v28   ;;  %138 = vperm.xlu1 %10260, %v84_v31  }
  0x1b   :  { %554 = vperm.xlu0 %10259, %v536_v30   ;;  %559 = vperm.xlu1 %10260, %v537_v34  }
  0x1c   :  { %9307 = vmatmul.mubr.msk.bf16.gmra.mrb[8].mxu0 %vm211_vm2, %v10665_v27  ;;  %9315 = vmatmul.mubr.msk.bf16.gmra.mrb[8].mxu1 %vm211_vm2, %v10665_v27 }
  0x1d   :  { %314 = vmatprep.mubr.bf16.mxu0 %v15642_v4  ;;  %427 = vmatprep.mubr.bf16.mxu1 %v15642_v4 }
  0x1f   :  { %143 = vperm.xlu0 %10259, %v85_v33   ;;  %148 = vperm.xlu1 %10260, %v86_v36  }
  0x23   :  { %564 = vperm.xlu0 %10259, %v538_v35   ;;  %569 = vperm.xlu1 %10260, %v539_v39  }
  0x24   :  { %9308 = vmatmul.mubr.msk.bf16.gmra.mrb[12].mxu0 %vm211_vm2, %v10666_v32  ;;  %9316 = vmatmul.mubr.msk.bf16.gmra.mrb[12].mxu1 %vm211_vm2, %v10666_v32 }
  0x25   :  { %324 = vmatprep.mubr.bf16.mxu0 %v15642_v4  ;;  %437 = vmatprep.mubr.bf16.mxu1 %v15642_v4 }
  0x27   :  { %153 = vperm.xlu0 %10259, %v87_v38   ;;  %158 = vperm.xlu1 %10260, %v88_v41  }
  0x2b   :  { %574 = vperm.xlu0 %10259, %v540_v40   ;;  %579 = vperm.xlu1 %10260, %v541_v44  }
  0x2c   :  { %9309 = vmatmul.mubr.msk.bf16.gmra.mrb[16].mxu0 %vm211_vm2, %v10667_v37  ;;  %9317 = vmatmul.mubr.msk.bf16.gmra.mrb[16].mxu1 %vm211_vm2, %v10667_v37 }
  0x2d   :  { %334 = vmatprep.mubr.bf16.mxu0 %v15642_v4  ;;  %447 = vmatprep.mubr.bf16.mxu1 %v15642_v4 }
  0x2f   :  { %163 = vperm.xlu0 %10259, %v89_v43   ;;  %168 = vperm.xlu1 %10260, %v90_v45  }
  0x34   :  { %9310 = vmatmul.mubr.msk.bf16.gmra.mrb[20].mxu0 %vm211_vm2, %v10668_v42  ;;  %9318 = vmatmul.mubr.msk.bf16.gmra.mrb[20].mxu1 %vm211_vm2, %v10668_v42 }
  0x35   :  { %344 = vmatprep.mubr.bf16.mxu0 %v15642_v4  ;;  %457 = vmatprep.mubr.bf16.mxu1 %v15642_v4 }
  0x3c   :  { %9311 = vmatmul.mubr.msk.bf16.gmra.mrb[24].mxu0 %vm211_vm2, %v10669_v46  ;;  %9319 = vmatmul.mubr.msk.bf16.gmra.mrb[24].mxu1 %vm211_vm2, %v10669_v46 }
  0x3d   :  { %354 = vmatprep.mubr.bf16.mxu0 %v15642_v4  ;;  %467 = vmatprep.mubr.bf16.mxu1 %v15642_v4 }
  0x44   :  { %9312 = vmatmul.mubr.msk.bf16.gmra.mrb[28].mxu0 %vm211_vm2, %v10670_v47  ;;  %9320 = vmatmul.mubr.msk.bf16.gmra.mrb[28].mxu1 %vm211_vm2, %v10670_v47 }
  0x45   :  { %647 = vmatprep.mubr.bf16.mxu0 %v15642_v4  ;;  %720 = vmatprep.mubr.bf16.mxu1 %v15642_v4 }
  0x82   :  { %v94_v48 = vpop.permute.xlu0 %93  ;;  %v104_v50 = vpop.permute.xlu1 %103 }
  0x86   :  { %v99_v49 = vpop.permute.xlu0 %98  ;;  %v109_v12 = vpop.permute.xlu1 %108 }
  0x8a   :  { %v114_v41 = vpop.permute.xlu0 %113  ;;  %v119_v42 = vpop.permute.xlu1 %118 }
  0xdf   :  { %v286_v51 = vpop.f32.mrb[0].mxu0  ;;  %v399_v52 = vpop.f32.mrb[0].mxu1 }
  0xe0   :  { %v287_v53 = vadd.f32 %v286_v51, %v94_v48  ;;  %v400_v54 = vadd.f32 %v399_v52, %v94_v48  ;;  %v288_v55 = vpop.f32.mrb[1].mxu0  ;;  %v401_v56 = vpop.f32.mrb[1].mxu1 }
  0xe1   :  { %v289_v57 = vadd.f32 %v288_v55, %v94_v48  ;;  %v402_v58 = vadd.f32 %v401_v56, %v94_v48  ;;  %v290_v59 = vpop.f32.mrb[2].mxu0  ;;  %v403_v60 = vpop.f32.mrb[2].mxu1 }
  0xe2   :  { %v478_v61 = vmax.f32 %v287_v53, 0.0  ;;  %v291_v62 = vadd.f32 %v290_v59, %v99_v49  ;;  %v404_v63 = vadd.f32 %v403_v60, %v99_v49  ;;  %v292_v0 = vpop.f32.mrb[3].mxu0  ;;  %v405_v1 = vpop.f32.mrb[3].mxu1  ;;  %v480_v6 = vmax.f32 %v400_v54, 0.0 }
  0xe3   :  { %v479_v2 = vmax.f32 %v289_v57, 0.0  ;;  %v293_v3 = vadd.f32 %v292_v0, %v99_v49  ;;  %v406_v5 = vadd.f32 %v405_v1, %v99_v49  ;;  %v481_v9 = vmax.f32 %v402_v58, 0.0 }
  0xe4   :  { %v482_v7 = vmax.f32 %v291_v62, 0.0  ;;  %v484_v8 = vmax.f32 %v404_v63, 0.0 }
  0xe5   :  { %v483_v10 = vmax.f32 %v293_v3, 0.0  ;;  %v485_v11 = vmax.f32 %v406_v5, 0.0 }
  0xe6   :  { %v518_v13 = vpack.c.bf16 %v482_v7, %v478_v61  ;;  %v520_v14 = vpack.c.bf16 %v484_v8, %v480_v6  ;;  %v124_v8 = vpop.permute.xlu0 %123 }
  0xe7   :  { %v519_v15 = vpack.c.bf16 %v483_v10, %v479_v2  ;;  %v521_v16 = vpack.c.bf16 %v485_v11, %v481_v9  ;;  %v296_v17 = vpop.f32.mrb[4].mxu0  ;;  %v409_v18 = vpop.f32.mrb[4].mxu1 }
  0xe8   :  { %v297_v19 = vadd.f32 %v296_v17, %v104_v50  ;;  %v410_v20 = vadd.f32 %v409_v18, %v104_v50  ;;  %v298_v21 = vpop.f32.mrb[5].mxu0  ;;  %v411_v22 = vpop.f32.mrb[5].mxu1 }
  0xe9   :  { %615 = vmatprep.subr.bf16.mxu0 %v519_v15  ;;  %688 = vmatprep.subr.bf16.mxu1 %v521_v16  ;;  %v299_v23 = vadd.f32 %v298_v21, %v104_v50  ;;  %v412_v24 = vadd.f32 %v411_v22, %v104_v50  ;;  %v300_v25 = vpop.f32.mrb[6].mxu0  ;;  %v413_v26 = vpop.f32.mrb[6].mxu1 }
  0xea   :  { %v486_v27 = vmax.f32 %v297_v19, 0.0  ;;  %616 = vmatpush1.bf16.msra.mxu0 %v518_v13  ;;  %689 = vmatpush1.bf16.msra.mxu1 %v520_v14  ;;  %v301_v28 = vadd.f32 %v300_v25, %v109_v12  ;;  %v414_v29 = vadd.f32 %v413_v26, %v109_v12  ;;  %v302_v30 = vpop.f32.mrb[7].mxu0  ;;  %v415_v31 = vpop.f32.mrb[7].mxu1  ;;  %v488_v35 = vmax.f32 %v410_v20, 0.0 }
  0xeb   :  { %v487_v32 = vmax.f32 %v299_v23, 0.0  ;;  %v303_v33 = vadd.f32 %v302_v30, %v109_v12  ;;  %v416_v34 = vadd.f32 %v415_v31, %v109_v12  ;;  %v489_v38 = vmax.f32 %v412_v24, 0.0  ;;  %v129_v9 = vpop.permute.xlu1 %128 }
  0xec   :  { %v490_v36 = vmax.f32 %v301_v28, 0.0  ;;  %v492_v37 = vmax.f32 %v414_v29, 0.0 }
  0xed   :  { %v491_v39 = vmax.f32 %v303_v33, 0.0  ;;  %v493_v40 = vmax.f32 %v416_v34, 0.0 }
  0xee   :  { %v522_v43 = vpack.c.bf16 %v490_v36, %v486_v27  ;;  %v524_v44 = vpack.c.bf16 %v492_v37, %v488_v35 }
  0xef   :  { %v523_v45 = vpack.c.bf16 %v491_v39, %v487_v32  ;;  %v525_v46 = vpack.c.bf16 %v493_v40, %v489_v38  ;;  %v306_v47 = vpop.f32.mrb[8].mxu0  ;;  %v419_v48 = vpop.f32.mrb[8].mxu1 }
  0xf0   :  { %v307_v49 = vadd.f32 %v306_v47, %v114_v41  ;;  %v420_v50 = vadd.f32 %v419_v48, %v114_v41  ;;  %v308_v51 = vpop.f32.mrb[9].mxu0  ;;  %v421_v52 = vpop.f32.mrb[9].mxu1  ;;  %v10671_v48 = vld [vmem:[%s15628_s3] sm:$0xff]  }
  0xf1   :  { %v309_v53 = vadd.f32 %v308_v51, %v114_v41  ;;  %v422_v54 = vadd.f32 %v421_v52, %v114_v41  ;;  %v310_v55 = vpop.f32.mrb[10].mxu0  ;;  %v423_v56 = vpop.f32.mrb[10].mxu1  ;;  %617 = vmatprep.subr.bf16.mxu0 %v523_v45  ;;  %690 = vmatprep.subr.bf16.mxu1 %v525_v46 }
  0xf2   :  { %v311_v57 = vadd.f32 %v310_v55, %v119_v42  ;;  %v424_v58 = vadd.f32 %v423_v56, %v119_v42  ;;  %v312_v59 = vpop.f32.mrb[11].mxu0  ;;  %v425_v60 = vpop.f32.mrb[11].mxu1  ;;  %618 = vmatpush1.bf16.msra.mxu0 %v522_v43  ;;  %691 = vmatpush1.bf16.msra.mxu1 %v524_v44  ;;  %v494_v63 = vmax.f32 %v307_v49, 0.0  ;;  %v496_v0 = vmax.f32 %v420_v50, 0.0 }
  0xf3   :  { %v313_v61 = vadd.f32 %v312_v59, %v119_v42  ;;  %v426_v62 = vadd.f32 %v425_v60, %v119_v42  ;;  %v495_v3 = vmax.f32 %v309_v53, 0.0  ;;  %v497_v5 = vmax.f32 %v422_v54, 0.0 }
  0xf4   :  { %v498_v1 = vmax.f32 %v311_v57, 0.0  ;;  %v500_v2 = vmax.f32 %v424_v58, 0.0  ;;  %v10672_v57 = vld [vmem:[%s15628_s3 + $0x8] sm:$0xff]  }
  0xf5   :  { %v499_v6 = vmax.f32 %v313_v61, 0.0  ;;  %v501_v7 = vmax.f32 %v426_v62, 0.0 }
  0xf6   :  { %v526_v10 = vpack.c.bf16 %v498_v1, %v494_v63  ;;  %v528_v11 = vpack.c.bf16 %v500_v2, %v496_v0  ;;  %v10673_v2 = vld [vmem:[%s15628_s3 + $0x10] sm:$0xff]  }
  0xf7   :  { %v527_v12 = vpack.c.bf16 %v499_v6, %v495_v3  ;;  %v529_v13 = vpack.c.bf16 %v501_v7, %v497_v5  ;;  %v316_v14 = vpop.f32.mrb[12].mxu0  ;;  %v429_v15 = vpop.f32.mrb[12].mxu1 }
  0xf8   :  { %v317_v16 = vadd.f32 %v316_v14, %v124_v8  ;;  %v430_v17 = vadd.f32 %v429_v15, %v124_v8  ;;  %v318_v18 = vpop.f32.mrb[13].mxu0  ;;  %v431_v19 = vpop.f32.mrb[13].mxu1 }
  0xf9   :  { %v319_v20 = vadd.f32 %v318_v18, %v124_v8  ;;  %v432_v21 = vadd.f32 %v431_v19, %v124_v8  ;;  %v320_v22 = vpop.f32.mrb[14].mxu0  ;;  %v433_v23 = vpop.f32.mrb[14].mxu1  ;;  %619 = vmatprep.subr.bf16.mxu0 %v527_v12  ;;  %692 = vmatprep.subr.bf16.mxu1 %v529_v13  ;;  %v10674_v12 = vld [vmem:[%s15628_s3 + $0x18] sm:$0xff]   ;;  %s10773_s3 = smov 4  }
  0xfa   :  { %v321_v24 = vadd.f32 %v320_v22, %v129_v9  ;;  %v434_v25 = vadd.f32 %v433_v23, %v129_v9  ;;  %v322_v26 = vpop.f32.mrb[15].mxu0  ;;  %v435_v27 = vpop.f32.mrb[15].mxu1  ;;  %620 = vmatpush1.bf16.msra.mxu0 %v526_v10  ;;  %693 = vmatpush1.bf16.msra.mxu1 %v528_v11  ;;  %v502_v30 = vmax.f32 %v317_v16, 0.0  ;;  %v504_v31 = vmax.f32 %v430_v17, 0.0 }
  0xfb   :  { %v323_v28 = vadd.f32 %v322_v26, %v129_v9  ;;  %v436_v29 = vadd.f32 %v435_v27, %v129_v9  ;;  %v503_v34 = vmax.f32 %v319_v20, 0.0  ;;  %v505_v35 = vmax.f32 %v432_v21, 0.0  ;;  %v545_v15 = vpop.permute.xlu0 %544  ;;  %v550_v16 = vpop.permute.xlu1 %549 }
  0xfc   :  { %v506_v32 = vmax.f32 %v321_v24, 0.0  ;;  %v508_v33 = vmax.f32 %v434_v25, 0.0 }
  0xfd   :  { %v507_v36 = vmax.f32 %v323_v28, 0.0  ;;  %v509_v37 = vmax.f32 %v436_v29, 0.0 }
  0xfe   :  { %v530_v38 = vpack.c.bf16 %v506_v32, %v502_v30  ;;  %v532_v39 = vpack.c.bf16 %v508_v33, %v504_v31 }
  0xff   :  { %v531_v40 = vpack.c.bf16 %v507_v36, %v503_v34  ;;  %v533_v41 = vpack.c.bf16 %v509_v37, %v505_v35  ;;  %v10988_v42 = vpop.f32.mrb[16].mxu0  ;;  %v10990_v43 = vpop.f32.mrb[16].mxu1 }
 0x100   :  { %v10992_v44 = vpop.f32.mrb[17].mxu0  ;;  %v10994_v45 = vpop.f32.mrb[17].mxu1 }
 0x101   :  { %v10996_v46 = vpop.f32.mrb[18].mxu0  ;;  %v10998_v47 = vpop.f32.mrb[18].mxu1  ;;  %621 = vmatprep.subr.bf16.mxu0 %v531_v40  ;;  %694 = vmatprep.subr.bf16.mxu1 %v533_v41 }
 0x102   :  { %v11003_v49 = vpop.f32.mrb[19].mxu0  ;;  %v11005_v50 = vpop.f32.mrb[19].mxu1  ;;  %622 = vmatpush1.bf16.msra.mxu0 %v530_v38  ;;  %695 = vmatpush1.bf16.msra.mxu1 %v532_v39 }
 0x103   :  { %v134_v17 = vpop.permute.xlu0 %133  ;;  %v139_v18 = vpop.permute.xlu1 %138 }
 0x104   :  { %v327_v24 = vadd.f32 %v10988_v42, %v134_v17  ;;  %v442_v34 = vadd.f32 %v10994_v45, %v134_v17  ;;  %v331_v40 = vadd.f32 %v10996_v46, %v139_v18 }
 0x105   :  { %9325 = vmatmul.mubr.msk.bf16.vlgmr.msra.gmra.mrb[32].mxu0 %vm602_vm3, %v10671_v48  ;;  %9329 = vmatmul.mubr.msk.bf16.vlgmr.msra.gmra.mrb[32].mxu1 %vm602_vm3, %v10671_v48 }
 0x106   :  { %657 = vmatprep.mubr.bf16.mxu0 %v15642_v4  ;;  %730 = vmatprep.mubr.bf16.mxu1 %v15642_v4 }
 0x107   :  { %v11011_v51 = vpop.f32.mrb[20].mxu0  ;;  %v11013_v52 = vpop.f32.mrb[20].mxu1 }
 0x108   :  { %v11015_v53 = vpop.f32.mrb[21].mxu0  ;;  %v11017_v54 = vpop.f32.mrb[21].mxu1 }
 0x109   :  { %v11019_v55 = vpop.f32.mrb[22].mxu0  ;;  %v11021_v56 = vpop.f32.mrb[22].mxu1 }
 0x10a   :  { %v11026_v58 = vpop.f32.mrb[23].mxu0  ;;  %v11028_v59 = vpop.f32.mrb[23].mxu1 }
 0x10b   :  { %v555_v48 = vpop.permute.xlu0 %554  ;;  %v560_v45 = vpop.permute.xlu1 %559 }
 0x10d   :  { %9326 = vmatmul.mubr.msk.bf16.gmra.mrb[36].mxu0 %vm602_vm3, %v10672_v57  ;;  %9330 = vmatmul.mubr.msk.bf16.gmra.mrb[36].mxu1 %vm602_vm3, %v10672_v57  ;;  %v444_v57 = vadd.f32 %v10998_v47, %v139_v18 }
 0x10e   :  { %667 = vmatprep.mubr.bf16.mxu0 %v15642_v4  ;;  %740 = vmatprep.mubr.bf16.mxu1 %v15642_v4 }
 0x10f   :  { %v11034_v60 = vpop.f32.mrb[24].mxu0  ;;  %v11036_v61 = vpop.f32.mrb[24].mxu1 }
 0x110   :  { %v11038_v62 = vpop.f32.mrb[25].mxu0  ;;  %v11040_v63 = vpop.f32.mrb[25].mxu1 }
 0x111   :  { %v11042_v0 = vpop.f32.mrb[26].mxu0  ;;  %v11044_v1 = vpop.f32.mrb[26].mxu1 }
 0x112   :  { %v11049_v3 = vpop.f32.mrb[27].mxu0  ;;  %v11051_v5 = vpop.f32.mrb[27].mxu1 }
 0x115   :  { %9327 = vmatmul.mubr.msk.bf16.gmra.mrb[40].mxu0 %vm602_vm3, %v10673_v2  ;;  %9331 = vmatmul.mubr.msk.bf16.gmra.mrb[40].mxu1 %vm602_vm3, %v10673_v2 }
 0x116   :  { %677 = vmatprep.mubr.bf16.mxu0 %v15642_v4  ;;  %750 = vmatprep.mubr.bf16.mxu1 %v15642_v4 }
 0x117   :  { %v11057_v6 = vpop.f32.mrb[28].mxu0  ;;  %v11059_v7 = vpop.f32.mrb[28].mxu1 }
 0x118   :  { %v11061_v8 = vpop.f32.mrb[29].mxu0  ;;  %v11063_v9 = vpop.f32.mrb[29].mxu1 }
 0x119   :  { %v11065_v10 = vpop.f32.mrb[30].mxu0  ;;  %v11067_v11 = vpop.f32.mrb[30].mxu1 }
 0x11a   :  { %v11072_v13 = vpop.f32.mrb[31].mxu0  ;;  %v11074_v14 = vpop.f32.mrb[31].mxu1 }
 0x11d   :  { %9328 = vmatmul.mubr.msk.bf16.gmra.mrb[44].mxu0 %vm602_vm3, %v10674_v12  ;;  %9332 = vmatmul.mubr.msk.bf16.gmra.mrb[44].mxu1 %vm602_vm3, %v10674_v12 }
 0x11e   :  { %1188 = vmatprep.mubr.bf16.mxu1 %v15642_v4  ;;  %1115 = vmatprep.mubr.bf16.mxu0 %v15642_v4 }
 0x1d8   :  { %v649_v19 = vpop.f32.mrb[32].mxu0  ;;  %v722_v20 = vpop.f32.mrb[32].mxu1 }
 0x1d9   :  { %v11080_v21 = vadd.f32 %v649_v19, %v545_v15  ;;  %v651_v22 = vpop.f32.mrb[33].mxu0  ;;  %v724_v23 = vpop.f32.mrb[33].mxu1  ;;  %v11086_v29 = vadd.f32 %v722_v20, %v545_v15 }
 0x1da   :  { %v11083_v25 = vadd.f32 %v724_v23, %v545_v15  ;;  %v653_v26 = vpop.f32.mrb[34].mxu0  ;;  %v726_v27 = vpop.f32.mrb[34].mxu1  ;;  %v11101_v41 = vadd.f32 %v651_v22, %v545_v15  ;;  %v440_v23 = vadd.f32 %v10990_v43, %v134_v17 }
 0x1db   :  { %15878 = vst [vmem:[#allocation3_spill] sm:$0xff] %v11080_v21  ;;  %v15641_v28 = vmax.f32 %v11080_v21, 0.0  ;;  %15880 = vst [vmem:[#allocation5_spill] sm:$0xff] %v11086_v29  ;;  %v11088_v30 = vadd.f32 %v653_v26, %v550_v16  ;;  %v11090_v31 = vadd.f32 %v726_v27, %v550_v16  ;;  %v655_v32 = vpop.f32.mrb[35].mxu0  ;;  %v728_v33 = vpop.f32.mrb[35].mxu1  ;;  %v15646_v12 = vmax.f32 %v11086_v29, 0.0 }
 0x1dc   :  { %15879 = vst [vmem:[#allocation4_spill] sm:$0xff] %v11083_v25  ;;  %v15640_v35 = vmax.f32 %v11083_v25, 0.0  ;;  %v11094_v36 = vadd.f32 %v655_v32, %v550_v16  ;;  %15884 = vst [vmem:[#allocation9_spill] sm:$0xff] %v11101_v41  ;;  %v11117_v26 = vadd.f32 %v728_v33, %v550_v16  ;;  %v333_v32 = vadd.f32 %v11003_v49, %v139_v18 }
 0x1dd   :  { %15881 = vst [vmem:[#allocation6_spill] sm:$0xff] %v11088_v30  ;;  %15882 = vst [vmem:[#allocation7_spill] sm:$0xff] %v11090_v31  ;;  %v793_v37 = vadd.f32 %v15641_v28, %v327_v24  ;;  %v15638_v38 = vmax.f32 %v11088_v30, 0.0  ;;  %v15639_v39 = vmax.f32 %v11090_v31, 0.0  ;;  %v795_v16 = vadd.f32 %v15646_v12, %v440_v23 }
 0x1de   :  { %15883 = vst [vmem:[#allocation8_spill] sm:$0xff] %v11094_v36  ;;  %v796_v42 = vadd.f32 %v15640_v35, %v442_v34  ;;  %v15644_v46 = vmax.f32 %v11094_v36, 0.0  ;;  %15885 = vst [vmem:[#allocation10_spill] sm:$0xff] %v11117_v26  ;;  %v15645_v34 = vmax.f32 %v11101_v41, 0.0  ;;  %v15649_v28 = vmax.f32 %v11117_v26, 0.0 }
 0x1df   :  { %v11106_v2 = vmax.f32 %v793_v37, 0.0  ;;  %v797_v20 = vadd.f32 %v15638_v38, %v331_v40  ;;  %v799_v24 = vadd.f32 %v15639_v39, %v444_v57  ;;  %v329_v40 = vadd.f32 %v10992_v44, %v134_v17  ;;  %v144_v17 = vpop.permute.xlu0 %143 }
 0x1e0   :  { %v11109_v19 = vmax.f32 %v796_v42, 0.0  ;;  %v659_v15 = vpop.f32.mrb[36].mxu0  ;;  %v732_v22 = vpop.f32.mrb[36].mxu1  ;;  %v798_v38 = vadd.f32 %v15644_v46, %v333_v32  ;;  %v446_v23 = vadd.f32 %v11005_v50, %v139_v18 }
 0x1e1   :  { %v661_v47 = vpop.f32.mrb[37].mxu0  ;;  %v734_v27 = vpop.f32.mrb[37].mxu1  ;;  %906 = vrot.lane.b32.xlu0 %v11106_v2, %s10773_s3  ;;  %v11128_v57 = vmax.f32 %v797_v20, 0.0  ;;  %v11132_v49 = vadd.f32 %v659_v15, %v555_v48  ;;  %v11136_v35 = vmax.f32 %v799_v24, 0.0  ;;  %v794_v44 = vadd.f32 %v15645_v34, %v329_v40 }
 0x1e2   :  { %v736_v37 = vpop.f32.mrb[38].mxu1  ;;  %954 = vrot.lane.b32.xlu1 %v11109_v19, %s10773_s3  ;;  %v663_v43 = vpop.f32.mrb[38].mxu0  ;;  %v11134_v39 = vadd.f32 %v734_v27, %v555_v48  ;;  %v11146_v15 = vmax.f32 %v795_v16, 0.0  ;;  %v11148_v27 = vadd.f32 %v732_v22, %v555_v48  ;;  %v11150_v24 = vmax.f32 %v798_v38, 0.0 }
 0x1e3   :  { %v665_v33 = vpop.f32.mrb[39].mxu0  ;;  %v738_v42 = vpop.f32.mrb[39].mxu1  ;;  %15886 = vst [vmem:[#allocation11_spill] sm:$0xff] %v11132_v49  ;;  %v11139_v4 = vadd.f32 %v736_v37, %v560_v45  ;;  %v11154_v46 = vadd.f32 %v663_v43, %v560_v45  ;;  %v800_v12 = vadd.f32 %v15649_v28, %v446_v23  ;;  %v337_v16 = vadd.f32 %v11011_v51, %v144_v17 }
 0x1e4   :  { %15887 = vst [vmem:[#allocation12_spill] sm:$0xff] %v11134_v39  ;;  %v149_v20 = vpop.permute.xlu1 %148  ;;  %15889 = vst [vmem:[#allocation14_spill] sm:$0xff] %v11148_v27  ;;  %v11159_v50 = vadd.f32 %v665_v33, %v560_v45  ;;  %v10261_v18 = vpack.i.bf16 %v11136_v35, %v11146_v15  ;;  %v452_v43 = vadd.f32 %v11017_v54, %v144_v17  ;;  %v11167_v37 = vmax.f32 %v794_v44, 0.0 }
 0x1e5   :  { %15888 = vst [vmem:[#allocation13_spill] sm:$0xff] %v11139_v4  ;;  %15890 = vst [vmem:[#allocation15_spill] sm:$0xff] %v11154_v46  ;;  %v454_v23 = vadd.f32 %v11021_v56, %v149_v20  ;;  %v11171_v33 = vadd.f32 %v661_v47, %v555_v48  ;;  %v11173_v36 = vadd.f32 %v738_v42, %v560_v45  ;;  %v15894_v51 = vmax.f32 %v11132_v49, 0.0 }
 0x1e6   :  { %908 = vrot.lane.b32.xlu1 %v11128_v57, %s10773_s3  ;;  %15891 = vst [vmem:[#allocation16_spill] sm:$0xff] %v11159_v50  ;;  %10262 = vrot.lane.b32.xlu0 %v10261_v18, %s10773_s3  ;;  %v15895_v44 = vmax.f32 %v11134_v39, 0.0  ;;  %v10266_v56 = vpack.i.bf16 %v11150_v24, %v11167_v37  ;;  %v450_v48 = vadd.f32 %v11013_v52, %v144_v17  ;;  %v11186_v45 = vmax.f32 %v800_v12, 0.0 }
 0x1e7   :  { %15892 = vst [vmem:[#allocation17_spill] sm:$0xff] %v11171_v33  ;;  %15893 = vst [vmem:[#allocation18_spill] sm:$0xff] %v11173_v36  ;;  %v801_v54 = vadd.f32 %v15894_v51, %v337_v16  ;;  %v15896_v47 = vmax.f32 %v11139_v4, 0.0  ;;  %v15656_v18 = vmax.f32 %v11159_v50, 0.0  ;;  %v339_v28 = vadd.f32 %v11015_v53, %v144_v17 }
 0x1e8   :  { %v669_v40 = vpop.f32.mrb[40].mxu0  ;;  %v742_v34 = vpop.f32.mrb[40].mxu1  ;;  %v804_v41 = vadd.f32 %v15895_v44, %v452_v43  ;;  %v341_v16 = vadd.f32 %v11019_v55, %v149_v20  ;;  %v343_v44 = vadd.f32 %v11026_v58, %v149_v20  ;;  %v15897_v25 = vmax.f32 %v11148_v27, 0.0 }
 0x1e9   :  { %v11163_v38 = vpop.f32.mrb[41].mxu0  ;;  %v744_v22 = vpop.f32.mrb[41].mxu1  ;;  %v807_v42 = vadd.f32 %v15896_v47, %v454_v23  ;;  %v11201_v23 = vmax.f32 %v801_v54, 0.0  ;;  %v15898_v55 = vmax.f32 %v11154_v46, 0.0  ;;  %v456_v46 = vadd.f32 %v11028_v59, %v149_v20 }
 0x1ea   :  { %v673_v32 = vpop.f32.mrb[42].mxu0  ;;  %v746_v30 = vpop.f32.mrb[42].mxu1  ;;  %10267 = vrot.lane.b32.xlu1 %v10266_v56, %s10773_s3  ;;  %v803_v52 = vadd.f32 %v15897_v25, %v450_v48  ;;  %956 = vrot.lane.b32.xlu0 %v11186_v45, %s10773_s3  ;;  %v11203_v53 = vmax.f32 %v804_v41, 0.0  ;;  %v806_v48 = vadd.f32 %v15656_v18, %v343_v44  ;;  %v15905_v50 = vmax.f32 %v11173_v36, 0.0 }
 0x1eb   :  { %v675_v26 = vpop.f32.mrb[43].mxu0  ;;  %v11176_v31 = vpop.f32.mrb[43].mxu1  ;;  %v805_v17 = vadd.f32 %v15898_v55, %v341_v16  ;;  %v11211_v25 = vmax.f32 %v807_v42, 0.0  ;;  %v15902_v55 = vmax.f32 %v11171_v33, 0.0 }
 0x1ec   :  { %v565_v43 = vpop.permute.xlu0 %564  ;;  %v570_v51 = vpop.permute.xlu1 %569  ;;  %v11226_v42 = vmax.f32 %v803_v52, 0.0  ;;  %v808_v39 = vadd.f32 %v15905_v50, %v456_v46 }
 0x1ed   :  { %v11207_v56 = vadd.f32 %v669_v40, %v565_v43  ;;  %v11215_v4 = vadd.f32 %v744_v22, %v565_v43  ;;  %v11217_v12 = vadd.f32 %v746_v30, %v570_v51  ;;  %v802_v44 = vadd.f32 %v15902_v55, %v339_v28 }
 0x1ee   :  { %958 = vrot.lane.b32.xlu1 %v11203_v53, %s10773_s3  ;;  %v11230_v22 = vadd.f32 %v742_v34, %v565_v43  ;;  %v11232_v30 = vadd.f32 %v673_v32, %v570_v51  ;;  %910 = vrot.lane.b32.xlu0 %v11201_v23, %s10773_s3  ;;  %v11238_v20 = vmax.f32 %v805_v17, 0.0  ;;  %v11243_v49 = vadd.f32 %v675_v26, %v570_v51 }
 0x1ef   :  { %15899 = vst [vmem:[#allocation19_spill] sm:$0xff] %v11207_v56  ;;  %15900 = vst [vmem:[#allocation20_spill] sm:$0xff] %v11215_v4  ;;  %v15664_v52 = vmax.f32 %v11207_v56, 0.0  ;;  %v11245_v55 = vmax.f32 %v806_v48, 0.0  ;;  %v10271_v27 = vpack.i.bf16 %v11211_v25, %v11226_v42  ;;  %v11257_v50 = vmax.f32 %v802_v44, 0.0 }
 0x1f0   :  { %v679_v58 = vpop.f32.mrb[44].mxu0  ;;  %v11209_v47 = vpop.f32.mrb[44].mxu1  ;;  %15901 = vst [vmem:[#allocation21_spill] sm:$0xff] %v11217_v12  ;;  %15903 = vst [vmem:[#allocation22_spill] sm:$0xff] %v11230_v22  ;;  %v11261_v33 = vadd.f32 %v11163_v38, %v565_v43  ;;  %v11272_v44 = vmax.f32 %v808_v39, 0.0  ;;  %v15909_v48 = vmax.f32 %v11215_v4, 0.0 }
 0x1f1   :  { %v11219_v54 = vpop.f32.mrb[45].mxu0  ;;  %v754_v41 = vpop.f32.mrb[45].mxu1  ;;  %15904 = vst [vmem:[#allocation23_spill] sm:$0xff] %v11232_v30  ;;  %15906 = vst [vmem:[#allocation24_spill] sm:$0xff] %v11243_v49  ;;  %v15910_v43 = vmax.f32 %v11217_v12, 0.0 }
 0x1f2   :  { %v11224_v40 = vpop.f32.mrb[46].mxu0  ;;  %v756_v16 = vpop.f32.mrb[46].mxu1  ;;  %912 = vrot.lane.b32.xlu1 %v11238_v20, %s10773_s3  ;;  %15907 = vst [vmem:[#allocation25_spill] sm:$0xff] %v11261_v33  ;;  %10272 = vrot.lane.b32.xlu0 %v10271_v27, %s10773_s3  ;;  %v10276_v27 = vpack.i.bf16 %v11245_v55, %v11257_v50  ;;  %v15666_v39 = vmax.f32 %v11261_v33, 0.0 }
 0x1f3   :  { %v685_v18 = vpop.f32.mrb[47].mxu0  ;;  %v11236_v59 = vpop.f32.mrb[47].mxu1 }
 0x1f4   :  { %v154_v28 = vpop.permute.xlu0 %153  ;;  %v159_v34 = vpop.permute.xlu1 %158 }
 0x1f5   :  { %v347_v17 = vadd.f32 %v11034_v60, %v154_v28  ;;  %v460_v36 = vadd.f32 %v11036_v61, %v154_v28  ;;  %v462_v46 = vadd.f32 %v11040_v63, %v154_v28  ;;  %v464_v26 = vadd.f32 %v11044_v1, %v159_v34 }
 0x1f6   :  { %v351_v60 = vadd.f32 %v11042_v0, %v159_v34  ;;  %v11270_v1 = vadd.f32 %v11176_v31, %v570_v51  ;;  %v353_v0 = vadd.f32 %v11049_v3, %v159_v34  ;;  %v15911_v31 = vmax.f32 %v11230_v22, 0.0  ;;  %960 = vrot.lane.b32.xlu0 %v11272_v44, %s10773_s3  ;;  %10277 = vrot.lane.b32.xlu1 %v10276_v27, %s10773_s3 }
 0x1f7   :  { %v809_v61 = vadd.f32 %v15664_v52, %v347_v17  ;;  %v812_v38 = vadd.f32 %v15909_v48, %v462_v46  ;;  %v815_v32 = vadd.f32 %v15910_v43, %v464_v26  ;;  %v349_v52 = vadd.f32 %v11038_v62, %v154_v28 }
 0x1f8   :  { %15908 = vst [vmem:[#allocation26_spill] sm:$0xff] %v11270_v1  ;;  %v575_v56 = vpop.permute.xlu0 %574  ;;  %v580_v17 = vpop.permute.xlu1 %579  ;;  %v811_v51 = vadd.f32 %v15911_v31, %v460_v36  ;;  %v15912_v63 = vmax.f32 %v11232_v30, 0.0  ;;  %v15913_v3 = vmax.f32 %v11243_v49, 0.0  ;;  %v15665_v62 = vmax.f32 %v11270_v1, 0.0 }
 0x1f9   :  { %v11290_v26 = vmax.f32 %v809_v61, 0.0  ;;  %v11295_v28 = vadd.f32 %v679_v58, %v575_v56  ;;  %v11297_v36 = vmax.f32 %v812_v38, 0.0  ;;  %v11299_v43 = vmax.f32 %v815_v32, 0.0 }
 0x1fa   :  { %v813_v46 = vadd.f32 %v15912_v63, %v351_v60  ;;  %v814_v48 = vadd.f32 %v15913_v3, %v353_v0  ;;  %v11301_v31 = vadd.f32 %v754_v41, %v575_v56  ;;  %v11303_v60 = vadd.f32 %v756_v16, %v580_v17 }
 0x1fb   :  { %15914 = vst [vmem:[#allocation27_spill] sm:$0xff] %v11295_v28  ;;  %v466_v63 = vadd.f32 %v11051_v5, %v159_v34  ;;  %v11306_v27 = vmax.f32 %v811_v51, 0.0  ;;  %v810_v61 = vadd.f32 %v15666_v39, %v349_v52  ;;  %v11313_v58 = vadd.f32 %v11209_v47, %v575_v56  ;;  %914 = vrot.lane.b32.xlu0 %v11290_v26, %s10773_s3 }
 0x1fc   :  { %15915 = vst [vmem:[#allocation28_spill] sm:$0xff] %v11301_v31  ;;  %15916 = vst [vmem:[#allocation29_spill] sm:$0xff] %v11303_v60  ;;  %v11310_v0 = vmax.f32 %v813_v46, 0.0  ;;  %962 = vrot.lane.b32.xlu1 %v11297_v36, %s10773_s3  ;;  %v11319_v41 = vmax.f32 %v814_v48, 0.0  ;;  %v15667_v16 = vmax.f32 %v11295_v28, 0.0  ;;  %v11325_v52 = vadd.f32 %v11224_v40, %v580_v17  ;;  %v164_v34 = vpop.permute.xlu0 %163  ;;  %v169_v32 = vpop.permute.xlu1 %168 }
 0x1fd   :  { %15918 = vst [vmem:[#allocation31_spill] sm:$0xff] %v11313_v58  ;;  %v816_v5 = vadd.f32 %v15665_v62, %v466_v63  ;;  %v15668_v47 = vmax.f32 %v11301_v31, 0.0  ;;  %v11329_v51 = vadd.f32 %v685_v18, %v580_v17  ;;  %v10281_v46 = vpack.i.bf16 %v11299_v43, %v11306_v27 }
 0x1fe   :  { %15917 = vst [vmem:[#allocation30_spill] sm:$0xff] %v11310_v0  ;;  %15919 = vst [vmem:[#allocation32_spill] sm:$0xff] %v11319_v41  ;;  %v357_v3 = vadd.f32 %v11057_v6, %v164_v34  ;;  %v472_v48 = vadd.f32 %v11063_v9, %v164_v34  ;;  %v474_v63 = vadd.f32 %v11067_v11, %v169_v32  ;;  %v11336_v62 = vmax.f32 %v810_v61, 0.0 }
 0x1ff   :  { %15920 = vst [vmem:[#allocation33_spill] sm:$0xff] %v11325_v52  ;;  %15921 = vst [vmem:[#allocation34_spill] sm:$0xff] %v11329_v51  ;;  %v15669_v40 = vmax.f32 %v11313_v58, 0.0  ;;  %v11340_v39 = vadd.f32 %v11219_v54, %v575_v56  ;;  %v11343_v38 = vadd.f32 %v11236_v59, %v580_v17  ;;  %10282 = vrot.lane.b32.xlu0 %v10281_v46, %s10773_s3  ;;  %v11349_v9 = vmax.f32 %v816_v5, 0.0 }
 0x200   :  { %15922 = vst [vmem:[#allocation35_spill] sm:$0xff] %v11336_v62  ;;  %916 = vrot.lane.b32.xlu1 %v11310_v0, %s10773_s3  ;;  %v470_v6 = vadd.f32 %v11059_v7, %v164_v34  ;;  %v817_v11 = vadd.f32 %v15667_v16, %v357_v3  ;;  %v15672_v18 = vmax.f32 %v11325_v52, 0.0  ;;  %v820_v56 = vadd.f32 %v15668_v47, %v472_v48 }
 0x201   :  { %15923 = vst [vmem:[#allocation36_spill] sm:$0xff] %v11340_v39  ;;  %15924 = vst [vmem:[#allocation37_spill] sm:$0xff] %v11343_v38  ;;  %v15926_v54 = vmax.f32 %v11303_v60, 0.0  ;;  %v15670_v17 = vmax.f32 %v11329_v51, 0.0  ;;  %v10286_v61 = vpack.i.bf16 %v11319_v41, %v11336_v62  ;;  %v361_v7 = vadd.f32 %v11065_v10, %v169_v32 }
 0x202   :  { %15925 = vst [vmem:[#allocation38_spill] sm:$0xff] %v11349_v9  ;;  %v363_v5 = vadd.f32 %v11072_v13, %v169_v32  ;;  %v819_v46 = vadd.f32 %v15669_v40, %v470_v6  ;;  %v15675_v3 = vmax.f32 %v11340_v39, 0.0  ;;  %v15671_v16 = vmax.f32 %v11343_v38, 0.0 }
 0x203   :  { %v823_v59 = vadd.f32 %v15926_v54, %v474_v63  ;;  %964 = vrot.lane.b32.xlu0 %v11349_v9, %s10773_s3  ;;  %v359_v48 = vadd.f32 %v11061_v8, %v164_v34  ;;  %v476_v63 = vadd.f32 %v11074_v14, %v169_v32  ;;  %v11372_v54 = vmax.f32 %v817_v11, 0.0 }
 0x204   :  { %10287 = vrot.lane.b32.xlu1 %v10286_v61, %s10773_s3  ;;  %v11374_v10 = vmax.f32 %v820_v56, 0.0  ;;  %v821_v13 = vadd.f32 %v15672_v18, %v361_v7  ;;  %v822_v47 = vadd.f32 %v15670_v17, %v363_v5  ;;  %v11382_v40 = vmax.f32 %v819_v46, 0.0  ;;  %v1408_v7 = vld [vmem:[%s15630_s7 + $0x8] sm:$0xff]  ;;  %v1409_v5 = vld [vmem:[%s15630_s7 + $0x10] sm:$0xff]  ;;  %v1410_v46 = vld [vmem:[%s15630_s7 + $0x18] sm:$0xff] }
 0x205   :  { %15927 = vst [vmem:[#allocation39_spill] sm:$0xff] %v11372_v54  ;;  %v11378_v6 = vmax.f32 %v823_v59, 0.0  ;;  %v818_v61 = vadd.f32 %v15675_v3, %v359_v48  ;;  %v824_v8 = vadd.f32 %v15671_v16, %v476_v63  ;;  %v1411_v48 = vld [vmem:[%s15630_s7 + $0x20] sm:$0xff]  ;;  %v1412_v63 = vld [vmem:[%s15630_s7 + $0x28] sm:$0xff]  ;;  %v15678_v17 = vmov 0.0  }
 0x206   :  { %15928 = vst [vmem:[#allocation40_spill] sm:$0xff] %v11374_v10  ;;  %15930 = vst [vmem:[#allocation42_spill] sm:$0xff] %v11382_v40  ;;  %v11392_v14 = vmax.f32 %v821_v13, 0.0  ;;  %v11394_v34 = vmax.f32 %v822_v47, 0.0  ;;  %v1407_v47 = vld [vmem:[%s15630_s7] sm:$0xff]  ;;  %v1413_v13 = vld [vmem:[%s15630_s7 + $0x30] sm:$0xff] }
 0x207   :  { %15929 = vst [vmem:[#allocation41_spill] sm:$0xff] %v11378_v6  ;;  %918 = vrot.lane.b32.xlu0 %v11372_v54, %s10773_s3  ;;  %v10291_v32 = vpack.i.bf16 %v11378_v6, %v11382_v40  ;;  %v11398_v11 = vmax.f32 %v818_v61, 0.0  ;;  %v11400_v56 = vmax.f32 %v824_v8, 0.0  ;;  %v1414_v61 = vld [vmem:[%s15630_s7 + $0x38] sm:$0xff] }
 0x208   :  { %966 = vrot.lane.b32.xlu1 %v11374_v10, %s10773_s3  ;;  %15931 = vst [vmem:[#allocation43_spill] sm:$0xff] %v11392_v14  ;;  %15932 = vst [vmem:[#allocation44_spill] sm:$0xff] %v11394_v34 }
 0x209   :  { %15933 = vst [vmem:[#allocation45_spill] sm:$0xff] %v11398_v11  ;;  %15934 = vst [vmem:[#allocation46_spill] sm:$0xff] %v11400_v56  ;;  %v10296_v59 = vpack.i.bf16 %v11394_v34, %v11398_v11 }
 0x20b   :  { %10292 = vrot.lane.b32.xlu0 %v10291_v32, %s10773_s3  ;;  %v15673_v32 = vlaneseq }
 0x20c   :  { %920 = vrot.lane.b32.xlu1 %v11392_v14, %s10773_s3 }
 0x20f   :  { %968 = vrot.lane.b32.xlu0 %v11400_v56, %s10773_s3 }
 0x210   :  { %10297 = vrot.lane.b32.xlu1 %v10296_v59, %s10773_s3 }
 0x213   :  { %1417 = vperm.xlu0 %10259, %v1407_v47   ;;  %v11435_v47 = vand.u32 127, %v15673_v32 }
 0x214   :  { %1422 = vperm.xlu1 %10260, %v1408_v7  }
 0x215   :  { %vm862_vm4 = vcmp.ge.s32.totalorder %v11435_v47, 4  ;;  %vm970_vm5 = vcmp.lt.s32.totalorder %v11435_v47, 4  ;;  %vm2369_vm6 = vcmp.lt.s32.totalorder %v11435_v47, 8  ;;  %vm2259_vm7 = vcmp.ge.s32.totalorder %v11435_v47, 8 }
 0x216   :  { %v11440_v16 = vsel %vm862_vm4, 1.0, %v15678_v17  ;;  %vm3772_vm8 = vcmp.lt.s32.totalorder %v11435_v47, 16  ;;  %vm3662_vm9 = vcmp.ge.s32.totalorder %v11435_v47, 16  ;;  %vm5175_vm10 = vcmp.lt.s32.totalorder %v11435_v47, 32 }
 0x217   :  { %1427 = vperm.xlu0 %10259, %v1409_v5   ;;  %vm5065_vm11 = vcmp.ge.s32.totalorder %v11435_v47, 32  ;;  %vm6578_vm12 = vcmp.lt.s32.totalorder %v11435_v47, 64  ;;  %vm6468_vm13 = vcmp.ge.s32.totalorder %v11435_v47, 64  ;;  %v10748_v47 = vld [vmem:[%s15632_s9 + $0x88] sm:$0xff]  }
 0x218   :  { %1432 = vperm.xlu1 %10260, %v1410_v46  }
 0x21b   :  { %1437 = vperm.xlu0 %10259, %v1411_v48  }
 0x21c   :  { %1442 = vperm.xlu1 %10260, %v1412_v63  }
 0x21f   :  { %1447 = vperm.xlu0 %10259, %v1413_v13  }
 0x220   :  { %1452 = vperm.xlu1 %10260, %v1414_v61  }
 0x253   :  { %v907_v59 = vpop.permute.xlu0 %906 }
 0x254   :  { %v955_v8 = vpop.permute.xlu1 %954 }
 0x255   :  { %v995_v13 = vsel %vm970_vm5, %v955_v8, %v907_v59 }
 0x258   :  { %v909_v7 = vpop.permute.xlu1 %908  ;;  %v10263_v5 = vpop.permute.xlu0 %10262 }
 0x259   :  { %v10264_v46 = vunpack.i.l.bf16 %v10263_v5  ;;  %v10265_v48 = vunpack.i.h.bf16 %v10263_v5 }
 0x25b   :  { %v971_v5 = vsel %vm970_vm5, %v10264_v46, %v955_v8 }
 0x25c   :  { %v10268_v63 = vpop.permute.xlu1 %10267  ;;  %v957_v61 = vpop.permute.xlu0 %956 }
 0x25d   :  { %v10270_v18 = vunpack.i.h.bf16 %v10268_v63  ;;  %v10269_v32 = vunpack.i.l.bf16 %v10268_v63  ;;  %v972_v3 = vsel %vm970_vm5, %v10265_v48, %v957_v61  ;;  %v996_v51 = vsel %vm970_vm5, %v957_v61, %v909_v7 }
 0x25e   :  { %v1007_v38 = vmul.f32 %v11440_v16, %v996_v51  ;;  %v1038_v39 = vpack.c.bf16 %v972_v3, %v971_v5  ;;  %v1003_v63 = vmul.f32 %v11440_v16, %v995_v13 }
 0x25f   :  { %v979_v17 = vsel %vm970_vm5, %v10269_v32, %v10264_v46  ;;  %v980_v52 = vsel %vm970_vm5, %v10270_v18, %v10265_v48  ;;  %v987_v31 = vsel %vm970_vm5, %v907_v59, %v10269_v32  ;;  %v988_v61 = vsel %vm970_vm5, %v909_v7, %v10270_v18 }
 0x260   :  { %v959_v60 = vpop.permute.xlu1 %958  ;;  %v1037_v28 = vpack.c.bf16 %v980_v52, %v979_v17  ;;  %v911_v8 = vpop.permute.xlu0 %910  ;;  %1156 = vmatprep.subr.bf16.mxu1 %v1038_v39  ;;  %v1036_v51 = vpack.c.bf16 %v988_v61, %v987_v31  ;;  %v1035_v58 = vpack.c.bf16 %v1007_v38, %v1003_v63 }
 0x261   :  { %v997_v13 = vsel %vm970_vm5, %v959_v60, %v911_v8 }
 0x262   :  { %1157 = vmatpush1.bf16.msra.mxu1 %v1037_v28  ;;  %1083 = vmatprep.subr.bf16.mxu0 %v1036_v51  ;;  %v1011_v52 = vmul.f32 %v11440_v16, %v997_v13 }
 0x263   :  { %1084 = vmatpush1.bf16.msra.mxu0 %v1035_v58 }
 0x264   :  { %v913_v46 = vpop.permute.xlu1 %912  ;;  %v10273_v48 = vpop.permute.xlu0 %10272 }
 0x265   :  { %v10274_v3 = vunpack.i.l.bf16 %v10273_v48  ;;  %v10275_v5 = vunpack.i.h.bf16 %v10273_v48 }
 0x267   :  { %v973_v18 = vsel %vm970_vm5, %v10274_v3, %v959_v60 }
 0x268   :  { %v961_v49 = vpop.permute.xlu0 %960  ;;  %v10278_v32 = vpop.permute.xlu1 %10277 }
 0x269   :  { %v974_v39 = vsel %vm970_vm5, %v10275_v5, %v961_v49  ;;  %v998_v28 = vsel %vm970_vm5, %v961_v49, %v913_v46  ;;  %v10280_v31 = vunpack.i.h.bf16 %v10278_v32  ;;  %v10279_v58 = vunpack.i.l.bf16 %v10278_v32 }
 0x26a   :  { %v1015_v38 = vmul.f32 %v11440_v16, %v998_v28  ;;  %v1042_v17 = vpack.c.bf16 %v974_v39, %v973_v18 }
 0x26b   :  { %v981_v59 = vsel %vm970_vm5, %v10279_v58, %v10274_v3  ;;  %v982_v7 = vsel %vm970_vm5, %v10280_v31, %v10275_v5  ;;  %v989_v60 = vsel %vm970_vm5, %v911_v8, %v10279_v58  ;;  %v990_v63 = vsel %vm970_vm5, %v913_v46, %v10280_v31 }
 0x26c   :  { %1158 = vmatprep.subr.bf16.mxu1 %v1042_v17  ;;  %v1040_v51 = vpack.c.bf16 %v990_v63, %v989_v60  ;;  %v1041_v48 = vpack.c.bf16 %v982_v7, %v981_v59  ;;  %v1039_v13 = vpack.c.bf16 %v1015_v38, %v1011_v52 }
 0x26d   :  { %v915_v49 = vpop.permute.xlu0 %914 }
 0x26e   :  { %v963_v61 = vpop.permute.xlu1 %962  ;;  %1085 = vmatprep.subr.bf16.mxu0 %v1040_v51  ;;  %1159 = vmatpush1.bf16.msra.mxu1 %v1041_v48 }
 0x26f   :  { %1086 = vmatpush1.bf16.msra.mxu0 %v1039_v13  ;;  %v999_v5 = vsel %vm970_vm5, %v963_v61, %v915_v49 }
 0x270   :  { %v1019_v17 = vmul.f32 %v11440_v16, %v999_v5 }
 0x271   :  { %v10283_v32 = vpop.permute.xlu0 %10282 }
 0x272   :  { %v917_v3 = vpop.permute.xlu1 %916  ;;  %v10284_v18 = vunpack.i.l.bf16 %v10283_v32  ;;  %v10285_v39 = vunpack.i.h.bf16 %v10283_v32 }
 0x274   :  { %v975_v46 = vsel %vm970_vm5, %v10284_v18, %v963_v61 }
 0x275   :  { %v965_v8 = vpop.permute.xlu0 %964 }
 0x276   :  { %v10288_v28 = vpop.permute.xlu1 %10287  ;;  %v976_v31 = vsel %vm970_vm5, %v10285_v39, %v965_v8  ;;  %v1000_v58 = vsel %vm970_vm5, %v965_v8, %v917_v3 }
 0x277   :  { %v10290_v52 = vunpack.i.h.bf16 %v10288_v28  ;;  %v10289_v38 = vunpack.i.l.bf16 %v10288_v28  ;;  %v1023_v59 = vmul.f32 %v11440_v16, %v1000_v58  ;;  %v1046_v7 = vpack.c.bf16 %v976_v31, %v975_v46 }
 0x279   :  { %v983_v60 = vsel %vm970_vm5, %v10289_v38, %v10284_v18  ;;  %v984_v63 = vsel %vm970_vm5, %v10290_v52, %v10285_v39  ;;  %v991_v61 = vsel %vm970_vm5, %v915_v49, %v10289_v38  ;;  %v992_v51 = vsel %vm970_vm5, %v917_v3, %v10290_v52  ;;  %v919_v48 = vpop.permute.xlu0 %918  ;;  %1160 = vmatprep.subr.bf16.mxu1 %v1046_v7 }
 0x27a   :  { %v967_v13 = vpop.permute.xlu1 %966  ;;  %v1044_v32 = vpack.c.bf16 %v992_v51, %v991_v61  ;;  %v1045_v5 = vpack.c.bf16 %v984_v63, %v983_v60  ;;  %v1043_v8 = vpack.c.bf16 %v1023_v59, %v1019_v17 }
 0x27b   :  { %v1001_v39 = vsel %vm970_vm5, %v967_v13, %v919_v48 }
 0x27c   :  { %1087 = vmatprep.subr.bf16.mxu0 %v1044_v32  ;;  %1161 = vmatpush1.bf16.msra.mxu1 %v1045_v5  ;;  %v1027_v7 = vmul.f32 %v11440_v16, %v1001_v39  ;;  %v885_v39 = vpack.c.bf16 %v11186_v45, %v11109_v19 }
 0x27d   :  { %1088 = vmatpush1.bf16.msra.mxu0 %v1043_v8  ;;  %v10293_v28 = vpop.permute.xlu0 %10292 }
 0x27e   :  { %v921_v18 = vpop.permute.xlu1 %920  ;;  %v10294_v46 = vunpack.i.l.bf16 %v10293_v28  ;;  %v10295_v31 = vunpack.i.h.bf16 %v10293_v28 }
 0x280   :  { %v977_v3 = vsel %vm970_vm5, %v10294_v46, %v967_v13 }
 0x281   :  { %v969_v49 = vpop.permute.xlu0 %968 }
 0x282   :  { %v10298_v58 = vpop.permute.xlu1 %10297  ;;  %v978_v52 = vsel %vm970_vm5, %v10295_v31, %v969_v49  ;;  %v1002_v38 = vsel %vm970_vm5, %v969_v49, %v921_v18  ;;  %v889_v49 = vpack.c.bf16 %v11272_v44, %v11203_v53 }
 0x283   :  { %v10300_v17 = vunpack.i.h.bf16 %v10298_v58  ;;  %v10299_v59 = vunpack.i.l.bf16 %v10298_v58  ;;  %v1031_v60 = vmul.f32 %v11440_v16, %v1002_v38  ;;  %v1050_v63 = vpack.c.bf16 %v978_v52, %v977_v3 }
 0x284   :  { %v887_v58 = vpack.c.bf16 %v11245_v55, %v11257_v50  ;;  %v888_v3 = vpack.c.bf16 %v11211_v25, %v11226_v42  ;;  %v15935_v52 = vmov 0   ;;  %v886_v38 = vpack.c.bf16 %v11238_v20, %v11201_v23 }
 0x285   :  { %v985_v61 = vsel %vm970_vm5, %v10299_v59, %v10294_v46  ;;  %v986_v51 = vsel %vm970_vm5, %v10300_v17, %v10295_v31  ;;  %v993_v13 = vsel %vm970_vm5, %v919_v48, %v10299_v59  ;;  %v994_v32 = vsel %vm970_vm5, %v921_v18, %v10300_v17  ;;  %1162 = vmatprep.subr.bf16.mxu1 %v1050_v63  ;;  %v10675_v46 = vld [vmem:[%s15629_s6] sm:$0xff]   ;;  %v10676_v59 = vld [vmem:[%s15629_s6 + $0x8] sm:$0xff]  }
 0x286   :  { %v1048_v5 = vpack.c.bf16 %v994_v32, %v993_v13  ;;  %v1049_v8 = vpack.c.bf16 %v986_v51, %v985_v61  ;;  %v1047_v28 = vpack.c.bf16 %v1031_v60, %v1027_v7  ;;  %v883_v31 = vpack.c.bf16 %v11150_v24, %v11167_v37 }
 0x287   :  { %v884_v48 = vpack.c.bf16 %v11136_v35, %v11146_v15  ;;  %v882_v18 = vpack.c.bf16 %v11128_v57, %v11106_v2  ;;  %v893_v17 = vpack.c.bf16 %v11349_v9, %v11297_v36  ;;  %v891_v7 = vpack.c.bf16 %v11319_v41, %v11336_v62 }
 0x288   :  { %1089 = vmatprep.subr.bf16.mxu0 %v1048_v5  ;;  %1163 = vmatpush1.bf16.msra.mxu1 %v1049_v8  ;;  %v892_v60 = vpack.c.bf16 %v11299_v43, %v11306_v27  ;;  %v890_v63 = vpack.c.bf16 %v11310_v0, %v11290_v26  ;;  %v897_v61 = vpack.c.bf16 %v11400_v56, %v11374_v10  ;;  %v10677_v5 = vld [vmem:[%s15629_s6 + $0x10] sm:$0xff]   ;;  %v10678_v8 = vld [vmem:[%s15629_s6 + $0x18] sm:$0xff]  }
 0x289   :  { %1090 = vmatpush1.bf16.msra.mxu0 %v1047_v28  ;;  %1334 = vmatprep.subr.bf16.mxu1 %v885_v39  ;;  %v895_v51 = vpack.c.bf16 %v11394_v34, %v11398_v11  ;;  %v896_v13 = vpack.c.bf16 %v11378_v6, %v11382_v40  ;;  %v894_v32 = vpack.c.bf16 %v11392_v14, %v11372_v54  ;;  %v10679_v28 = vld [vmem:[%s15631_s5] sm:$0xff]   ;;  %v10680_v39 = vld [vmem:[%s15631_s5 + $0x8] sm:$0xff]  }
 0x28a   :  { %1261 = vmatprep.subr.bf16.mxu0 %v883_v31  ;;  %v10682_v31 = vld [vmem:[%s15631_s5 + $0x18] sm:$0xff]  }
 0x28b   :  { %9342 = vmatmul.mubr.msk.bf16.vlgmr.msra.gmra.mrb[48].mxu1 %vm602_vm3, %v10675_v46 }
 0x28c   :  { %9338 = vmatmul.mubr.msk.bf16.vlgmr.msra.gmra.mrb[48].mxu0 %vm602_vm3, %v10675_v46  ;;  %1335 = vmatpush1.bf16.msra.mxu1 %v884_v48  ;;  %v10681_v46 = vld [vmem:[%s15631_s5 + $0x10] sm:$0xff]  }
 0x28d   :  { %1262 = vmatpush1.bf16.msra.mxu0 %v882_v18  ;;  %1336 = vmatprep.subr.bf16.mxu1 %v889_v49 }
 0x28e   :  { %1263 = vmatprep.subr.bf16.mxu0 %v887_v58  ;;  %1198 = vmatprep.mubr.bf16.mxu1 %v15935_v52 }
 0x28f   :  { %1125 = vmatprep.mubr.bf16.mxu0 %v15935_v52 }
 0x290   :  { %1337 = vmatpush1.bf16.msra.mxu1 %v888_v3 }
 0x291   :  { %1264 = vmatpush1.bf16.msra.mxu0 %v886_v38  ;;  %1338 = vmatprep.subr.bf16.mxu1 %v893_v17 }
 0x292   :  { %1265 = vmatprep.subr.bf16.mxu0 %v891_v7  ;;  %v1418_v48 = vpop.permute.xlu0 %1417 }
 0x293   :  { %9343 = vmatmul.mubr.msk.bf16.gmra.mrb[52].mxu1 %vm602_vm3, %v10676_v59  ;;  %v1423_v18 = vpop.permute.xlu1 %1422 }
 0x294   :  { %9339 = vmatmul.mubr.msk.bf16.gmra.mrb[52].mxu0 %vm602_vm3, %v10676_v59  ;;  %1339 = vmatpush1.bf16.msra.mxu1 %v892_v60 }
 0x295   :  { %1266 = vmatpush1.bf16.msra.mxu0 %v890_v63  ;;  %1340 = vmatprep.subr.bf16.mxu1 %v897_v61 }
 0x296   :  { %1267 = vmatprep.subr.bf16.mxu0 %v895_v51  ;;  %1208 = vmatprep.mubr.bf16.mxu1 %v15935_v52 }
 0x297   :  { %1135 = vmatprep.mubr.bf16.mxu0 %v15935_v52 }
 0x298   :  { %1341 = vmatpush1.bf16.msra.mxu1 %v896_v13 }
 0x299   :  { %1268 = vmatpush1.bf16.msra.mxu0 %v894_v32 }
 0x29b   :  { %9344 = vmatmul.mubr.msk.bf16.gmra.mrb[56].mxu1 %vm602_vm3, %v10677_v5 }
 0x29c   :  { %9340 = vmatmul.mubr.msk.bf16.gmra.mrb[56].mxu0 %vm602_vm3, %v10677_v5  ;;  %1218 = vmatprep.mubr.bf16.mxu1 %v15935_v52 }
 0x29d   :  { %1145 = vmatprep.mubr.bf16.mxu0 %v15935_v52 }
 0x2a3   :  { %9345 = vmatmul.mubr.msk.bf16.gmra.mrb[60].mxu1 %vm602_vm3, %v10678_v8 }
 0x2a4   :  { %9341 = vmatmul.mubr.msk.bf16.gmra.mrb[60].mxu0 %vm602_vm3, %v10678_v8  ;;  %1366 = vmatprep.mubr.bf16.mxu1 %v15935_v52 }
 0x2a5   :  { %1293 = vmatprep.mubr.bf16.mxu0 %v15935_v52 }
 0x2ab   :  { %9354 = vmatmul.mubr.msk.bf16.vlgmr.msra.gmra.mrb[48].mxu1 %vm602_vm3, %v10679_v28 }
 0x2ac   :  { %9350 = vmatmul.mubr.msk.bf16.vlgmr.msra.gmra.mrb[48].mxu0 %vm602_vm3, %v10679_v28  ;;  %1376 = vmatprep.mubr.bf16.mxu1 %v15935_v52 }
 0x2ad   :  { %1303 = vmatprep.mubr.bf16.mxu0 %v15935_v52 }
 0x2b3   :  { %9355 = vmatmul.mubr.msk.bf16.gmra.mrb[52].mxu1 %vm602_vm3, %v10680_v39 }
 0x2b4   :  { %9351 = vmatmul.mubr.msk.bf16.gmra.mrb[52].mxu0 %vm602_vm3, %v10680_v39  ;;  %1386 = vmatprep.mubr.bf16.mxu1 %v15935_v52 }
 0x2b5   :  { %1313 = vmatprep.mubr.bf16.mxu0 %v15935_v52 }
 0x2bb   :  { %9356 = vmatmul.mubr.msk.bf16.gmra.mrb[56].mxu1 %vm602_vm3, %v10681_v46 }
 0x2bc   :  { %9352 = vmatmul.mubr.msk.bf16.gmra.mrb[56].mxu0 %vm602_vm3, %v10681_v46  ;;  %1396 = vmatprep.mubr.bf16.mxu1 %v15935_v52 }
 0x2bd   :  { %1323 = vmatprep.mubr.bf16.mxu0 %v15935_v52 }
 0x2c3   :  { %9357 = vmatmul.mubr.msk.bf16.gmra.mrb[60].mxu1 %vm602_vm3, %v10682_v31 }
 0x2c4   :  { %9353 = vmatmul.mubr.msk.bf16.gmra.mrb[60].mxu0 %vm602_vm3, %v10682_v31  ;;  %1832 = vmatprep.mubr.bf16.mxu1 %v15935_v52 }
 0x2c5   :  { %1759 = vmatprep.mubr.bf16.mxu0 %v15935_v52 }
 0x37e   :  { %v1368_v49 = vpop.f32.mrb[48].mxu1 }
 0x37f   :  { %v1457_v58 = vadd.f32 %v1418_v48, %v1368_v49  ;;  %v1295_v3 = vpop.f32.mrb[48].mxu0  ;;  %v1370_v38 = vpop.f32.mrb[49].mxu1 }
 0x380   :  { %v1455_v17 = vadd.f32 %v1418_v48, %v1295_v3  ;;  %v1458_v59 = vadd.f32 %v1418_v48, %v1370_v38  ;;  %v1297_v7 = vpop.f32.mrb[49].mxu0  ;;  %v1372_v60 = vpop.f32.mrb[50].mxu1 }
 0x381   :  { %v1456_v63 = vadd.f32 %v1418_v48, %v1297_v7  ;;  %v1461_v61 = vadd.f32 %v1423_v18, %v1372_v60  ;;  %v1299_v51 = vpop.f32.mrb[50].mxu0  ;;  %v1374_v13 = vpop.f32.mrb[51].mxu1  ;;  %v1489_v46 = vmax.f32 %v1457_v58, 0.0 }
 0x382   :  { %v1487_v32 = vmax.f32 %v1455_v17, 0.0  ;;  %v1490_v5 = vmax.f32 %v1458_v59, 0.0  ;;  %v1459_v8 = vadd.f32 %v1423_v18, %v1299_v51  ;;  %v1462_v28 = vadd.f32 %v1423_v18, %v1374_v13  ;;  %v1301_v39 = vpop.f32.mrb[51].mxu0  ;;  %v1428_v3 = vpop.permute.xlu0 %1427 }
 0x383   :  { %v1493_v31 = vmax.f32 %v1461_v61, 0.0  ;;  %v1460_v1 = vadd.f32 %v1423_v18, %v1301_v39  ;;  %v1488_v38 = vmax.f32 %v1456_v63, 0.0  ;;  %v1433_v17 = vpop.permute.xlu1 %1432 }
 0x384   :  { %v1491_v30 = vmax.f32 %v1459_v8, 0.0  ;;  %v1494_v49 = vmax.f32 %v1462_v28, 0.0  ;;  %1599 = vrot.lane.b32.xlu1 %v1490_v5, %s10773_s3  ;;  %1551 = vrot.lane.b32.xlu0 %v1487_v32, %s10773_s3 }
 0x385   :  { %v10301_v48 = vpack.i.bf16 %v1493_v31, %v1489_v46  ;;  %v11604_v7 = vpack.c.bf16 %v1493_v31, %v1489_v46  ;;  %v1492_v60 = vmax.f32 %v1460_v1, 0.0 }
 0x386   :  { %v11606_v59 = vpack.c.bf16 %v1491_v30, %v1487_v32  ;;  %v11608_v51 = vpack.c.bf16 %v1494_v49, %v1490_v5  ;;  %v1378_v58 = vpop.f32.mrb[52].mxu1 }
 0x387   :  { %v10306_v61 = vpack.i.bf16 %v1492_v60, %v1488_v38  ;;  %v11610_v18 = vpack.c.bf16 %v1492_v60, %v1488_v38  ;;  %v1465_v13 = vadd.f32 %v1428_v3, %v1378_v58  ;;  %v1305_v8 = vpop.f32.mrb[52].mxu0  ;;  %v1380_v28 = vpop.f32.mrb[53].mxu1 }
 0x388   :  { %v1463_v39 = vadd.f32 %v1428_v3, %v1305_v8  ;;  %v1466_v33 = vadd.f32 %v1428_v3, %v1380_v28  ;;  %v1382_v12 = vpop.f32.mrb[54].mxu1  ;;  %10302 = vrot.lane.b32.xlu0 %v10301_v48, %s10773_s3  ;;  %1553 = vrot.lane.b32.xlu1 %v1491_v30, %s10773_s3  ;;  %v1307_v1 = vpop.f32.mrb[53].mxu0 }
 0x389   :  { %v1469_v63 = vadd.f32 %v1433_v17, %v1382_v12  ;;  %v1464_v32 = vadd.f32 %v1428_v3, %v1307_v1  ;;  %v1309_v46 = vpop.f32.mrb[54].mxu0  ;;  %v1384_v5 = vpop.f32.mrb[55].mxu1  ;;  %v1497_v60 = vmax.f32 %v1465_v13, 0.0 }
 0x38a   :  { %v1467_v31 = vadd.f32 %v1433_v17, %v1309_v46  ;;  %v11614_v4 = vadd.f32 %v1433_v17, %v1384_v5  ;;  %v1311_v38 = vpop.f32.mrb[55].mxu0  ;;  %v1495_v21 = vmax.f32 %v1463_v39, 0.0  ;;  %v1498_v8 = vmax.f32 %v1466_v33, 0.0  ;;  %v1438_v12 = vpop.permute.xlu0 %1437 }
 0x38b   :  { %v1501_v58 = vmax.f32 %v1469_v63, 0.0  ;;  %v1468_v22 = vadd.f32 %v1433_v17, %v1311_v38  ;;  %v1496_v48 = vmax.f32 %v1464_v32, 0.0  ;;  %v1443_v46 = vpop.permute.xlu1 %1442 }
 0x38c   :  { %v1499_v28 = vmax.f32 %v1467_v31, 0.0  ;;  %v1502_v29 = vmax.f32 %v11614_v4, 0.0  ;;  %1601 = vrot.lane.b32.xlu0 %v1494_v49, %s10773_s3  ;;  %10307 = vrot.lane.b32.xlu1 %v10306_v61, %s10773_s3 }
 0x38d   :  { %v10311_v30 = vpack.i.bf16 %v1501_v58, %v1497_v60  ;;  %v11619_v3 = vpack.c.bf16 %v1501_v58, %v1497_v60  ;;  %v1500_v1 = vmax.f32 %v1468_v22, 0.0 }
 0x38e   :  { %v11621_v5 = vpack.c.bf16 %v1499_v28, %v1495_v21  ;;  %v11623_v13 = vpack.c.bf16 %v1502_v29, %v1498_v8  ;;  %v1388_v17 = vpop.f32.mrb[56].mxu1 }
 0x38f   :  { %v10316_v33 = vpack.i.bf16 %v1500_v1, %v1496_v48  ;;  %v11625_v39 = vpack.c.bf16 %v1500_v1, %v1496_v48  ;;  %v1473_v4 = vadd.f32 %v1438_v12, %v1388_v17  ;;  %v1315_v63 = vpop.f32.mrb[56].mxu0  ;;  %v1390_v49 = vpop.f32.mrb[57].mxu1 }
 0x390   :  { %v1471_v31 = vadd.f32 %v1438_v12, %v1315_v63  ;;  %v1474_v61 = vadd.f32 %v1438_v12, %v1390_v49  ;;  %v1392_v38 = vpop.f32.mrb[58].mxu1  ;;  %1603 = vrot.lane.b32.xlu1 %v1498_v8, %s10773_s3  ;;  %1555 = vrot.lane.b32.xlu0 %v1495_v21, %s10773_s3  ;;  %v1317_v22 = vpop.f32.mrb[57].mxu0 }
 0x391   :  { %v1477_v32 = vadd.f32 %v1443_v46, %v1392_v38  ;;  %v1472_v60 = vadd.f32 %v1438_v12, %v1317_v22  ;;  %v1319_v58 = vpop.f32.mrb[58].mxu0  ;;  %v1394_v56 = vpop.f32.mrb[59].mxu1  ;;  %v1505_v48 = vmax.f32 %v1473_v4, 0.0 }
 0x392   :  { %v1475_v11 = vadd.f32 %v1443_v46, %v1319_v58  ;;  %v1478_v34 = vadd.f32 %v1443_v46, %v1394_v56  ;;  %v1321_v14 = vpop.f32.mrb[59].mxu0  ;;  %v1503_v40 = vmax.f32 %v1471_v31, 0.0  ;;  %v1506_v10 = vmax.f32 %v1474_v61, 0.0  ;;  %v1448_v21 = vpop.permute.xlu0 %1447 }
 0x393   :  { %v1509_v1 = vmax.f32 %v1477_v32, 0.0  ;;  %v1476_v17 = vadd.f32 %v1443_v46, %v1321_v14  ;;  %v1504_v12 = vmax.f32 %v1472_v60, 0.0  ;;  %v1453_v58 = vpop.permute.xlu1 %1452 }
 0x394   :  { %v1507_v63 = vmax.f32 %v1475_v11, 0.0  ;;  %v1510_v49 = vmax.f32 %v1478_v34, 0.0  ;;  %10312 = vrot.lane.b32.xlu0 %v10311_v30, %s10773_s3  ;;  %1557 = vrot.lane.b32.xlu1 %v1499_v28, %s10773_s3 }
 0x395   :  { %v10321_v8 = vpack.i.bf16 %v1509_v1, %v1505_v48  ;;  %v11631_v38 = vpack.c.bf16 %v1509_v1, %v1505_v48  ;;  %v1508_v22 = vmax.f32 %v1476_v17, 0.0 }
 0x396   :  { %v11633_v56 = vpack.c.bf16 %v1507_v63, %v1503_v40  ;;  %v11635_v4 = vpack.c.bf16 %v1510_v49, %v1506_v10  ;;  %v1398_v14 = vpop.f32.mrb[60].mxu1 }
 0x397   :  { %v10326_v46 = vpack.i.bf16 %v1508_v22, %v1504_v12  ;;  %v11637_v31 = vpack.c.bf16 %v1508_v22, %v1504_v12  ;;  %v1481_v34 = vadd.f32 %v1448_v21, %v1398_v14  ;;  %v1325_v11 = vpop.f32.mrb[60].mxu0  ;;  %v1400_v30 = vpop.f32.mrb[61].mxu1 }
 0x398   :  { %v1479_v61 = vadd.f32 %v1448_v21, %v1325_v11  ;;  %v1482_v28 = vadd.f32 %v1448_v21, %v1400_v30  ;;  %v1402_v32 = vpop.f32.mrb[62].mxu1  ;;  %1605 = vrot.lane.b32.xlu0 %v1502_v29, %s10773_s3  ;;  %10317 = vrot.lane.b32.xlu1 %v10316_v33, %s10773_s3  ;;  %v1327_v60 = vpop.f32.mrb[61].mxu0 }
 0x399   :  { %v1485_v48 = vadd.f32 %v1453_v58, %v1402_v32  ;;  %v1480_v1 = vadd.f32 %v1448_v21, %v1327_v60  ;;  %v1329_v17 = vpop.f32.mrb[62].mxu0  ;;  %v1404_v6 = vpop.f32.mrb[63].mxu1  ;;  %v1513_v12 = vmax.f32 %v1481_v34, 0.0 }
 0x39a   :  { %v1483_v54 = vadd.f32 %v1453_v58, %v1329_v17  ;;  %v1486_v9 = vadd.f32 %v1453_v58, %v1404_v6  ;;  %v1331_v62 = vpop.f32.mrb[63].mxu0  ;;  %v1511_v41 = vmax.f32 %v1479_v61, 0.0  ;;  %v1514_v0 = vmax.f32 %v1482_v28, 0.0 }
 0x39b   :  { %v1517_v22 = vmax.f32 %v1485_v48, 0.0  ;;  %v1484_v14 = vadd.f32 %v1453_v58, %v1331_v62  ;;  %v1512_v21 = vmax.f32 %v1480_v1, 0.0  ;;  %v2051_v62 = vld [vmem:[%s15633_s10] sm:$0xff] }
 0x39c   :  { %v1515_v11 = vmax.f32 %v1483_v54, 0.0  ;;  %v1518_v30 = vmax.f32 %v1486_v9, 0.0  ;;  %1607 = vrot.lane.b32.xlu1 %v1506_v10, %s10773_s3  ;;  %1559 = vrot.lane.b32.xlu0 %v1503_v40, %s10773_s3  ;;  %v2052_v40 = vld [vmem:[%s15633_s10 + $0x8] sm:$0xff]  ;;  %v2055_v9 = vld [vmem:[%s15633_s10 + $0x20] sm:$0xff] }
 0x39d   :  { %v10331_v29 = vpack.i.bf16 %v1517_v22, %v1513_v12  ;;  %v11643_v33 = vpack.c.bf16 %v1517_v22, %v1513_v12  ;;  %v1516_v32 = vmax.f32 %v1484_v14, 0.0  ;;  %v2056_v54 = vld [vmem:[%s15633_s10 + $0x28] sm:$0xff]  ;;  %v2057_v10 = vld [vmem:[%s15633_s10 + $0x30] sm:$0xff] }
 0x39e   :  { %v11645_v60 = vpack.c.bf16 %v1515_v11, %v1511_v41  ;;  %v11647_v6 = vpack.c.bf16 %v1518_v30, %v1514_v0 }
 0x39f   :  { %v10336_v34 = vpack.i.bf16 %v1516_v32, %v1512_v21  ;;  %v11649_v48 = vpack.c.bf16 %v1516_v32, %v1512_v21 }
 0x3a0   :  { %10322 = vrot.lane.b32.xlu0 %v10321_v8, %s10773_s3  ;;  %1561 = vrot.lane.b32.xlu1 %v1507_v63, %s10773_s3  ;;  %v2058_v63 = vld [vmem:[%s15633_s10 + $0x38] sm:$0xff] }
 0x3a4   :  { %1609 = vrot.lane.b32.xlu0 %v1510_v49, %s10773_s3  ;;  %10327 = vrot.lane.b32.xlu1 %v10326_v46, %s10773_s3 }
 0x3a8   :  { %1611 = vrot.lane.b32.xlu1 %v1514_v0, %s10773_s3  ;;  %1563 = vrot.lane.b32.xlu0 %v1511_v41, %s10773_s3  ;;  %v2053_v0 = vld [vmem:[%s15633_s10 + $0x10] sm:$0xff]  ;;  %v2054_v41 = vld [vmem:[%s15633_s10 + $0x18] sm:$0xff] }
 0x3ac   :  { %10332 = vrot.lane.b32.xlu0 %v10331_v29, %s10773_s3  ;;  %1565 = vrot.lane.b32.xlu1 %v1515_v11, %s10773_s3 }
 0x3b0   :  { %1613 = vrot.lane.b32.xlu0 %v1518_v30, %s10773_s3  ;;  %10337 = vrot.lane.b32.xlu1 %v10336_v34, %s10773_s3 }
 0x3b4   :  { %2061 = vperm.xlu0 %10259, %v2051_v62   ;;  %2066 = vperm.xlu1 %10260, %v2052_v40  }
 0x3b8   :  { %2071 = vperm.xlu0 %10259, %v2053_v0   ;;  %2076 = vperm.xlu1 %10260, %v2054_v41  }
 0x3bc   :  { %2081 = vperm.xlu0 %10259, %v2055_v9   ;;  %2086 = vperm.xlu1 %10260, %v2056_v54  }
 0x3c0   :  { %2091 = vperm.xlu0 %10259, %v2057_v10   ;;  %2096 = vperm.xlu1 %10260, %v2058_v63  }
 0x3f6   :  { %v1600_v49 = vpop.permute.xlu1 %1599  ;;  %v1552_v8 = vpop.permute.xlu0 %1551 }
 0x3f7   :  { %v1639_v28 = vsel %vm970_vm5, %v1600_v49, %v1552_v8 }
 0x3f8   :  { %v1647_v21 = vmul.f32 %v11440_v16, %v1639_v28 }
 0x3fa   :  { %v10303_v58 = vpop.permute.xlu0 %10302  ;;  %v1554_v46 = vpop.permute.xlu1 %1553 }
 0x3fb   :  { %v10304_v61 = vunpack.i.l.bf16 %v10303_v58  ;;  %v10305_v1 = vunpack.i.h.bf16 %v10303_v58 }
 0x3fd   :  { %v1615_v22 = vsel %vm970_vm5, %v10304_v61, %v1600_v49 }
 0x3fe   :  { %v1602_v17 = vpop.permute.xlu0 %1601  ;;  %v10308_v12 = vpop.permute.xlu1 %10307 }
 0x3ff   :  { %v1616_v14 = vsel %vm970_vm5, %v10305_v1, %v1602_v17  ;;  %v1640_v11 = vsel %vm970_vm5, %v1602_v17, %v1554_v46  ;;  %v10310_v30 = vunpack.i.h.bf16 %v10308_v12  ;;  %v10309_v29 = vunpack.i.l.bf16 %v10308_v12 }
 0x400   :  { %v1651_v32 = vmul.f32 %v11440_v16, %v1640_v11  ;;  %v1682_v34 = vpack.c.bf16 %v1616_v14, %v1615_v22 }
 0x401   :  { %v1624_v62 = vsel %vm970_vm5, %v10310_v30, %v10305_v1  ;;  %v1623_v40 = vsel %vm970_vm5, %v10309_v29, %v10304_v61  ;;  %v1631_v0 = vsel %vm970_vm5, %v1552_v8, %v10309_v29  ;;  %v1632_v41 = vsel %vm970_vm5, %v1554_v46, %v10310_v30 }
 0x402   :  { %v1679_v9 = vpack.c.bf16 %v1651_v32, %v1647_v21  ;;  %1800 = vmatprep.subr.bf16.mxu1 %v1682_v34  ;;  %v1604_v54 = vpop.permute.xlu1 %1603  ;;  %v1556_v10 = vpop.permute.xlu0 %1555  ;;  %v1680_v63 = vpack.c.bf16 %v1632_v41, %v1631_v0  ;;  %v1681_v49 = vpack.c.bf16 %v1624_v62, %v1623_v40 }
 0x403   :  { %v1641_v61 = vsel %vm970_vm5, %v1604_v54, %v1556_v10 }
 0x404   :  { %1727 = vmatprep.subr.bf16.mxu0 %v1680_v63  ;;  %1801 = vmatpush1.bf16.msra.mxu1 %v1681_v49  ;;  %v1655_v29 = vmul.f32 %v11440_v16, %v1641_v61 }
 0x405   :  { %1728 = vmatpush1.bf16.msra.mxu0 %v1679_v9 }
 0x406   :  { %v10313_v58 = vpop.permute.xlu0 %10312  ;;  %v1558_v28 = vpop.permute.xlu1 %1557 }
 0x407   :  { %v10314_v1 = vunpack.i.l.bf16 %v10313_v58  ;;  %v10315_v17 = vunpack.i.h.bf16 %v10313_v58 }
 0x409   :  { %v1617_v46 = vsel %vm970_vm5, %v10314_v1, %v1604_v54 }
 0x40a   :  { %v1606_v8 = vpop.permute.xlu0 %1605  ;;  %v10318_v12 = vpop.permute.xlu1 %10317 }
 0x40b   :  { %v1618_v22 = vsel %vm970_vm5, %v10315_v17, %v1606_v8  ;;  %v1642_v14 = vsel %vm970_vm5, %v1606_v8, %v1558_v28  ;;  %v10320_v11 = vunpack.i.h.bf16 %v10318_v12  ;;  %v10319_v30 = vunpack.i.l.bf16 %v10318_v12 }
 0x40c   :  { %v1659_v21 = vmul.f32 %v11440_v16, %v1642_v14  ;;  %v1686_v32 = vpack.c.bf16 %v1618_v22, %v1617_v46 }
 0x40d   :  { %v1626_v34 = vsel %vm970_vm5, %v10320_v11, %v10315_v17  ;;  %v1625_v62 = vsel %vm970_vm5, %v10319_v30, %v10314_v1  ;;  %v1633_v40 = vsel %vm970_vm5, %v1556_v10, %v10319_v30  ;;  %v1634_v0 = vsel %vm970_vm5, %v1558_v28, %v10320_v11 }
 0x40e   :  { %v1683_v41 = vpack.c.bf16 %v1659_v21, %v1655_v29  ;;  %1802 = vmatprep.subr.bf16.mxu1 %v1686_v32  ;;  %v1608_v9 = vpop.permute.xlu1 %1607  ;;  %v1560_v54 = vpop.permute.xlu0 %1559  ;;  %v1684_v63 = vpack.c.bf16 %v1634_v0, %v1633_v40  ;;  %v1685_v49 = vpack.c.bf16 %v1626_v34, %v1625_v62 }
 0x40f   :  { %v1643_v1 = vsel %vm970_vm5, %v1608_v9, %v1560_v54 }
 0x410   :  { %1729 = vmatprep.subr.bf16.mxu0 %v1684_v63  ;;  %1803 = vmatpush1.bf16.msra.mxu1 %v1685_v49  ;;  %v1663_v30 = vmul.f32 %v11440_v16, %v1643_v1 }
 0x411   :  { %1730 = vmatpush1.bf16.msra.mxu0 %v1683_v41 }
 0x412   :  { %v10323_v58 = vpop.permute.xlu0 %10322  ;;  %v1562_v61 = vpop.permute.xlu1 %1561 }
 0x413   :  { %v10324_v17 = vunpack.i.l.bf16 %v10323_v58  ;;  %v10325_v8 = vunpack.i.h.bf16 %v10323_v58 }
 0x415   :  { %v1619_v28 = vsel %vm970_vm5, %v10324_v17, %v1608_v9 }
 0x416   :  { %v1610_v10 = vpop.permute.xlu0 %1609  ;;  %v10328_v12 = vpop.permute.xlu1 %10327 }
 0x417   :  { %v1620_v46 = vsel %vm970_vm5, %v10325_v8, %v1610_v10  ;;  %v1644_v22 = vsel %vm970_vm5, %v1610_v10, %v1562_v61  ;;  %v10330_v14 = vunpack.i.h.bf16 %v10328_v12  ;;  %v10329_v11 = vunpack.i.l.bf16 %v10328_v12 }
 0x418   :  { %v1667_v29 = vmul.f32 %v11440_v16, %v1644_v22  ;;  %v1690_v21 = vpack.c.bf16 %v1620_v46, %v1619_v28 }
 0x419   :  { %v1628_v32 = vsel %vm970_vm5, %v10330_v14, %v10325_v8  ;;  %v1627_v34 = vsel %vm970_vm5, %v10329_v11, %v10324_v17  ;;  %v1635_v62 = vsel %vm970_vm5, %v1560_v54, %v10329_v11  ;;  %v1636_v40 = vsel %vm970_vm5, %v1562_v61, %v10330_v14 }
 0x41a   :  { %v1687_v0 = vpack.c.bf16 %v1667_v29, %v1663_v30  ;;  %1804 = vmatprep.subr.bf16.mxu1 %v1690_v21  ;;  %v1612_v41 = vpop.permute.xlu1 %1611  ;;  %v1564_v9 = vpop.permute.xlu0 %1563  ;;  %v1688_v63 = vpack.c.bf16 %v1636_v40, %v1635_v62  ;;  %v1689_v49 = vpack.c.bf16 %v1628_v32, %v1627_v34 }
 0x41b   :  { %v1645_v17 = vsel %vm970_vm5, %v1612_v41, %v1564_v9 }
 0x41c   :  { %1731 = vmatprep.subr.bf16.mxu0 %v1688_v63  ;;  %1805 = vmatpush1.bf16.msra.mxu1 %v1689_v49  ;;  %v1671_v11 = vmul.f32 %v11440_v16, %v1645_v17 }
 0x41d   :  { %1732 = vmatpush1.bf16.msra.mxu0 %v1687_v0 }
 0x41e   :  { %v10333_v58 = vpop.permute.xlu0 %10332  ;;  %v1566_v1 = vpop.permute.xlu1 %1565 }
 0x41f   :  { %v10334_v8 = vunpack.i.l.bf16 %v10333_v58  ;;  %v10335_v10 = vunpack.i.h.bf16 %v10333_v58 }
 0x421   :  { %v1621_v61 = vsel %vm970_vm5, %v10334_v8, %v1612_v41 }
 0x422   :  { %v1614_v54 = vpop.permute.xlu0 %1613  ;;  %v10338_v12 = vpop.permute.xlu1 %10337 }
 0x423   :  { %v1622_v28 = vsel %vm970_vm5, %v10335_v10, %v1614_v54  ;;  %v1646_v46 = vsel %vm970_vm5, %v1614_v54, %v1566_v1  ;;  %v10340_v22 = vunpack.i.h.bf16 %v10338_v12  ;;  %v10339_v14 = vunpack.i.l.bf16 %v10338_v12 }
 0x424   :  { %v1675_v30 = vmul.f32 %v11440_v16, %v1646_v46  ;;  %v1694_v29 = vpack.c.bf16 %v1622_v28, %v1621_v61  ;;  %v10683_v16 = vld [vmem:[%s15632_s9] sm:$0xff]  }
 0x425   :  { %v1630_v21 = vsel %vm970_vm5, %v10340_v22, %v10335_v10  ;;  %v1629_v32 = vsel %vm970_vm5, %v10339_v14, %v10334_v8  ;;  %v1637_v34 = vsel %vm970_vm5, %v1564_v9, %v10339_v14  ;;  %v1638_v62 = vsel %vm970_vm5, %v1566_v1, %v10340_v22 }
 0x426   :  { %v1691_v40 = vpack.c.bf16 %v1675_v30, %v1671_v11  ;;  %1806 = vmatprep.subr.bf16.mxu1 %v1694_v29  ;;  %v1692_v0 = vpack.c.bf16 %v1638_v62, %v1637_v34  ;;  %v1693_v41 = vpack.c.bf16 %v1630_v21, %v1629_v32 }
 0x428   :  { %1733 = vmatprep.subr.bf16.mxu0 %v1692_v0  ;;  %1807 = vmatpush1.bf16.msra.mxu1 %v1693_v41 }
 0x429   :  { %1734 = vmatpush1.bf16.msra.mxu0 %v1691_v40  ;;  %1978 = vmatprep.subr.bf16.mxu1 %v11608_v51  ;;  %v10684_v51 = vld [vmem:[%s15632_s9 + $0x8] sm:$0xff]  }
 0x42a   :  { %1905 = vmatprep.subr.bf16.mxu0 %v11610_v18  ;;  %v10687_v18 = vld [vmem:[%s15634_s8] sm:$0xff]  }
 0x42b   :  { %9366 = vmatmul.mubr.msk.bf16.vlgmr.msra.gmra.mrb[64].mxu1 %vm602_vm3, %v10683_v16 }
 0x42c   :  { %9362 = vmatmul.mubr.msk.bf16.vlgmr.msra.gmra.mrb[64].mxu0 %vm602_vm3, %v10683_v16  ;;  %1979 = vmatpush1.bf16.msra.mxu1 %v11604_v7  ;;  %v10685_v7 = vld [vmem:[%s15632_s9 + $0x10] sm:$0xff]  }
 0x42d   :  { %1906 = vmatpush1.bf16.msra.mxu0 %v11606_v59  ;;  %1980 = vmatprep.subr.bf16.mxu1 %v11623_v13  ;;  %v10686_v59 = vld [vmem:[%s15632_s9 + $0x18] sm:$0xff]  }
 0x42e   :  { %1907 = vmatprep.subr.bf16.mxu0 %v11625_v39  ;;  %1842 = vmatprep.mubr.bf16.mxu1 %v15935_v52  ;;  %v10690_v13 = vld [vmem:[%s15634_s8 + $0x18] sm:$0xff]  }
 0x42f   :  { %1769 = vmatprep.mubr.bf16.mxu0 %v15935_v52 }
 0x430   :  { %1981 = vmatpush1.bf16.msra.mxu1 %v11619_v3  ;;  %v10688_v3 = vld [vmem:[%s15634_s8 + $0x8] sm:$0xff]  }
 0x431   :  { %1908 = vmatpush1.bf16.msra.mxu0 %v11621_v5  ;;  %1982 = vmatprep.subr.bf16.mxu1 %v11635_v4  ;;  %v10689_v5 = vld [vmem:[%s15634_s8 + $0x10] sm:$0xff]  }
 0x432   :  { %1909 = vmatprep.subr.bf16.mxu0 %v11637_v31 }
 0x433   :  { %9367 = vmatmul.mubr.msk.bf16.gmra.mrb[68].mxu1 %vm602_vm3, %v10684_v51  ;;  %v2062_v39 = vpop.permute.xlu0 %2061 }
 0x434   :  { %9363 = vmatmul.mubr.msk.bf16.gmra.mrb[68].mxu0 %vm602_vm3, %v10684_v51  ;;  %1983 = vmatpush1.bf16.msra.mxu1 %v11631_v38  ;;  %v2067_v38 = vpop.permute.xlu1 %2066 }
 0x435   :  { %1910 = vmatpush1.bf16.msra.mxu0 %v11633_v56  ;;  %1984 = vmatprep.subr.bf16.mxu1 %v11647_v6 }
 0x436   :  { %1911 = vmatprep.subr.bf16.mxu0 %v11649_v48  ;;  %1852 = vmatprep.mubr.bf16.mxu1 %v15935_v52 }
 0x437   :  { %1779 = vmatprep.mubr.bf16.mxu0 %v15935_v52 }
 0x438   :  { %1985 = vmatpush1.bf16.msra.mxu1 %v11643_v33 }
 0x439   :  { %1912 = vmatpush1.bf16.msra.mxu0 %v11645_v60 }
 0x43b   :  { %9368 = vmatmul.mubr.msk.bf16.gmra.mrb[72].mxu1 %vm602_vm3, %v10685_v7 }
 0x43c   :  { %9364 = vmatmul.mubr.msk.bf16.gmra.mrb[72].mxu0 %vm602_vm3, %v10685_v7  ;;  %1862 = vmatprep.mubr.bf16.mxu1 %v15935_v52  ;;  %v2072_v7 = vpop.permute.xlu0 %2071 }
 0x43d   :  { %1789 = vmatprep.mubr.bf16.mxu0 %v15935_v52 }
 0x443   :  { %9369 = vmatmul.mubr.msk.bf16.gmra.mrb[76].mxu1 %vm602_vm3, %v10686_v59 }
 0x444   :  { %9365 = vmatmul.mubr.msk.bf16.gmra.mrb[76].mxu0 %vm602_vm3, %v10686_v59  ;;  %2010 = vmatprep.mubr.bf16.mxu1 %v15935_v52 }
 0x445   :  { %1937 = vmatprep.mubr.bf16.mxu0 %v15935_v52 }
 0x44b   :  { %9378 = vmatmul.mubr.msk.bf16.vlgmr.msra.gmra.mrb[64].mxu1 %vm602_vm3, %v10687_v18 }
 0x44c   :  { %9374 = vmatmul.mubr.msk.bf16.vlgmr.msra.gmra.mrb[64].mxu0 %vm602_vm3, %v10687_v18  ;;  %2020 = vmatprep.mubr.bf16.mxu1 %v15935_v52 }
 0x44d   :  { %1947 = vmatprep.mubr.bf16.mxu0 %v15935_v52 }
 0x453   :  { %9379 = vmatmul.mubr.msk.bf16.gmra.mrb[68].mxu1 %vm602_vm3, %v10688_v3 }
 0x454   :  { %9375 = vmatmul.mubr.msk.bf16.gmra.mrb[68].mxu0 %vm602_vm3, %v10688_v3  ;;  %2030 = vmatprep.mubr.bf16.mxu1 %v15935_v52 }
 0x455   :  { %1957 = vmatprep.mubr.bf16.mxu0 %v15935_v52 }
 0x45b   :  { %9380 = vmatmul.mubr.msk.bf16.gmra.mrb[72].mxu1 %vm602_vm3, %v10689_v5 }
 0x45c   :  { %9376 = vmatmul.mubr.msk.bf16.gmra.mrb[72].mxu0 %vm602_vm3, %v10689_v5  ;;  %2040 = vmatprep.mubr.bf16.mxu1 %v15935_v52 }
 0x45d   :  { %1967 = vmatprep.mubr.bf16.mxu0 %v15935_v52 }
 0x463   :  { %9381 = vmatmul.mubr.msk.bf16.gmra.mrb[76].mxu1 %vm602_vm3, %v10690_v13 }
 0x464   :  { %9377 = vmatmul.mubr.msk.bf16.gmra.mrb[76].mxu0 %vm602_vm3, %v10690_v13  ;;  %2587 = vmatprep.mubr.bf16.mxu1 %v15935_v52  ;;  %v2077_v13 = vpop.permute.xlu1 %2076 }
 0x465   :  { %2514 = vmatprep.mubr.bf16.mxu0 %v15935_v52 }
 0x51e   :  { %v2012_v56 = vpop.f32.mrb[64].mxu1 }
 0x51f   :  { %v1939_v4 = vpop.f32.mrb[64].mxu0  ;;  %v2014_v31 = vpop.f32.mrb[65].mxu1  ;;  %v11835_v58 = vadd.f32 %v2062_v39, %v2012_v56 }
 0x520   :  { %v11829_v33 = vadd.f32 %v2062_v39, %v1939_v4  ;;  %v11831_v60 = vadd.f32 %v2062_v39, %v2014_v31  ;;  %v1941_v6 = vpop.f32.mrb[65].mxu0  ;;  %v2016_v48 = vpop.f32.mrb[66].mxu1 }
 0x521   :  { %v11833_v9 = vadd.f32 %v2067_v38, %v2016_v48  ;;  %v1943_v63 = vpop.f32.mrb[66].mxu0  ;;  %v2018_v49 = vpop.f32.mrb[67].mxu1  ;;  %v15716_v28 = vmax.f32 %v11835_v58, 0.0  ;;  %v11854_v30 = vadd.f32 %v2062_v39, %v1941_v6 }
 0x522   :  { %v15715_v1 = vmax.f32 %v11829_v33, 0.0  ;;  %v15714_v8 = vmax.f32 %v11831_v60, 0.0  ;;  %v11839_v17 = vadd.f32 %v2067_v38, %v1943_v63  ;;  %v1945_v10 = vpop.f32.mrb[67].mxu0  ;;  %v11864_v34 = vadd.f32 %v2067_v38, %v2018_v49 }
 0x523   :  { %v15712_v61 = vmax.f32 %v11833_v9, 0.0  ;;  %v11856_v29 = vadd.f32 %v2067_v38, %v1945_v10  ;;  %v15713_v59 = vmax.f32 %v11854_v30, 0.0 }
 0x524   :  { %v2195_v54 = vadd.f32 %v15715_v1, %v11106_v2  ;;  %v2198_v12 = vadd.f32 %v15714_v8, %v11109_v19  ;;  %v15710_v14 = vmax.f32 %v11839_v17, 0.0  ;;  %v15708_v3 = vmax.f32 %v11864_v34, 0.0  ;;  %v2082_v1 = vpop.permute.xlu0 %2081 }
 0x525   :  { %v2201_v19 = vadd.f32 %v15712_v61, %v11136_v35  ;;  %v2197_v35 = vadd.f32 %v15716_v28, %v11146_v15  ;;  %v2196_v4 = vadd.f32 %v15713_v59, %v11167_v37 }
 0x526   :  { %v11849_v46 = vmax.f32 %v2195_v54, 0.0  ;;  %v11851_v22 = vmax.f32 %v2198_v12, 0.0  ;;  %v2022_v11 = vpop.f32.mrb[68].mxu1  ;;  %v2199_v32 = vadd.f32 %v15710_v14, %v11128_v57  ;;  %v15707_v57 = vmax.f32 %v11856_v29, 0.0 }
 0x527   :  { %v1949_v2 = vpop.f32.mrb[68].mxu0  ;;  %v2024_v21 = vpop.f32.mrb[69].mxu1  ;;  %v11877_v18 = vmax.f32 %v2201_v19, 0.0  ;;  %v11884_v39 = vmax.f32 %v2197_v35, 0.0  ;;  %v2202_v48 = vadd.f32 %v15708_v3, %v11186_v45 }
 0x528   :  { %2353 = vrot.lane.b32.xlu1 %v11851_v22, %s10775_s26  ;;  %v2026_v62 = vpop.f32.mrb[70].mxu1  ;;  %2305 = vrot.lane.b32.xlu0 %v11849_v46, %s10775_s26  ;;  %v1951_v40 = vpop.f32.mrb[69].mxu0  ;;  %v11873_v16 = vmax.f32 %v2199_v32, 0.0  ;;  %v11880_v5 = vadd.f32 %v2072_v7, %v1949_v2  ;;  %v2200_v15 = vadd.f32 %v15707_v57, %v11150_v24  ;;  %v11889_v38 = vadd.f32 %v2072_v7, %v2024_v21 }
 0x529   :  { %v1953_v0 = vpop.f32.mrb[70].mxu0  ;;  %v2028_v41 = vpop.f32.mrb[71].mxu1  ;;  %v11898_v49 = vadd.f32 %v2077_v13, %v2026_v62  ;;  %v10341_v24 = vpack.i.bf16 %v11877_v18, %v11884_v39  ;;  %v11908_v21 = vadd.f32 %v2072_v7, %v2022_v11  ;;  %v11914_v62 = vmax.f32 %v2196_v4, 0.0 }
 0x52a   :  { %v1955_v51 = vpop.f32.mrb[71].mxu0  ;;  %15936 = vst [vmem:[#allocation47_spill] sm:$0xff] %v11880_v5  ;;  %15937 = vst [vmem:[#allocation48_spill] sm:$0xff] %v11889_v38  ;;  %v15709_v63 = vmax.f32 %v11880_v5, 0.0  ;;  %v11906_v37 = vmax.f32 %v2200_v15, 0.0  ;;  %v15711_v19 = vmax.f32 %v11889_v38, 0.0  ;;  %v11911_v45 = vadd.f32 %v2077_v13, %v1953_v0 }
 0x52b   :  { %15938 = vst [vmem:[#allocation49_spill] sm:$0xff] %v11898_v49  ;;  %15939 = vst [vmem:[#allocation50_spill] sm:$0xff] %v11908_v21  ;;  %v11916_v35 = vmax.f32 %v2202_v48, 0.0  ;;  %v15717_v15 = vmax.f32 %v11898_v49, 0.0  ;;  %v11922_v3 = vadd.f32 %v2077_v13, %v1955_v51  ;;  %v15719_v11 = vmax.f32 %v11908_v21, 0.0 }
 0x52c   :  { %2307 = vrot.lane.b32.xlu1 %v11873_v16, %s10775_s26  ;;  %15940 = vst [vmem:[#allocation51_spill] sm:$0xff] %v11911_v45  ;;  %10342 = vrot.lane.b32.xlu0 %v10341_v24, %s10775_s26  ;;  %v2203_v57 = vadd.f32 %v15709_v63, %v11201_v23  ;;  %v2206_v0 = vadd.f32 %v15711_v19, %v11203_v53  ;;  %v15718_v24 = vmax.f32 %v11911_v45, 0.0 }
 0x52d   :  { %15941 = vst [vmem:[#allocation52_spill] sm:$0xff] %v11922_v3  ;;  %v10346_v4 = vpack.i.bf16 %v11906_v37, %v11914_v62  ;;  %v11935_v23 = vadd.f32 %v2072_v7, %v1951_v40  ;;  %v2209_v53 = vadd.f32 %v15717_v15, %v11211_v25  ;;  %v11944_v19 = vadd.f32 %v2077_v13, %v2028_v41  ;;  %v2087_v13 = vpop.permute.xlu1 %2086 }
 0x52e   :  { %v2032_v56 = vpop.f32.mrb[72].mxu1  ;;  %v11939_v14 = vmax.f32 %v2203_v57, 0.0  ;;  %v2205_v57 = vadd.f32 %v15719_v11, %v11226_v42  ;;  %v11957_v28 = vmax.f32 %v2206_v0, 0.0  ;;  %v2207_v25 = vadd.f32 %v15718_v24, %v11238_v20 }
 0x52f   :  { %v1959_v31 = vpop.f32.mrb[72].mxu0  ;;  %v2034_v6 = vpop.f32.mrb[73].mxu1  ;;  %15942 = vst [vmem:[#allocation53_spill] sm:$0xff] %v11935_v23  ;;  %15943 = vst [vmem:[#allocation54_spill] sm:$0xff] %v11944_v19  ;;  %v11969_v8 = vmax.f32 %v2209_v53, 0.0  ;;  %v15946_v20 = vmax.f32 %v11922_v3, 0.0 }
 0x530   :  { %v2036_v10 = vpop.f32.mrb[74].mxu1  ;;  %v11902_v54 = vpop.f32.mrb[73].mxu0  ;;  %2355 = vrot.lane.b32.xlu0 %v11916_v35, %s10775_s26  ;;  %10347 = vrot.lane.b32.xlu1 %v10346_v4, %s10775_s26  ;;  %v11967_v15 = vadd.f32 %v2082_v1, %v1959_v31  ;;  %v11979_v11 = vadd.f32 %v2082_v1, %v2034_v6  ;;  %v11981_v45 = vmax.f32 %v2205_v57, 0.0  ;;  %v11983_v4 = vmax.f32 %v2207_v25, 0.0 }
 0x531   :  { %v1963_v12 = vpop.f32.mrb[74].mxu0  ;;  %v11904_v2 = vpop.f32.mrb[75].mxu1  ;;  %v11972_v0 = vadd.f32 %v2087_v13, %v2036_v10  ;;  %v2208_v24 = vadd.f32 %v15946_v20, %v11245_v55  ;;  %v11985_v31 = vadd.f32 %v2082_v1, %v2032_v56  ;;  %v15950_v53 = vmax.f32 %v11935_v23, 0.0 }
 0x532   :  { %v1965_v32 = vpop.f32.mrb[75].mxu0  ;;  %15944 = vst [vmem:[#allocation55_spill] sm:$0xff] %v11967_v15  ;;  %15947 = vst [vmem:[#allocation57_spill] sm:$0xff] %v11979_v11  ;;  %v15725_v42 = vmax.f32 %v11967_v15, 0.0  ;;  %v15951_v49 = vmax.f32 %v11944_v19, 0.0  ;;  %v11995_v6 = vadd.f32 %v2087_v13, %v1963_v12  ;;  %v10351_v57 = vpack.i.bf16 %v11969_v8, %v11981_v45 }
 0x533   :  { %15945 = vst [vmem:[#allocation56_spill] sm:$0xff] %v11972_v0  ;;  %15948 = vst [vmem:[#allocation58_spill] sm:$0xff] %v11981_v45  ;;  %v2204_v10 = vadd.f32 %v15950_v53, %v11257_v50  ;;  %v15723_v55 = vmax.f32 %v11972_v0, 0.0  ;;  %v12001_v56 = vmax.f32 %v2208_v24, 0.0  ;;  %v15724_v50 = vmax.f32 %v11979_v11, 0.0 }
 0x534   :  { %2309 = vrot.lane.b32.xlu0 %v11939_v14, %s10775_s26  ;;  %2357 = vrot.lane.b32.xlu1 %v11957_v28, %s10775_s26  ;;  %15949 = vst [vmem:[#allocation59_spill] sm:$0xff] %v11985_v31  ;;  %v2210_v38 = vadd.f32 %v15951_v49, %v11272_v44  ;;  %15952 = vst [vmem:[#allocation60_spill] sm:$0xff] %v11995_v6  ;;  %v12004_v25 = vadd.f32 %v2087_v13, %v1965_v32  ;;  %v15726_v20 = vmax.f32 %v11985_v31, 0.0 }
 0x535   :  { %15953 = vst [vmem:[#allocation61_spill] sm:$0xff] %v12001_v56  ;;  %v12008_v44 = vmax.f32 %v2204_v10, 0.0  ;;  %v2211_v49 = vadd.f32 %v15725_v42, %v11290_v26  ;;  %v12014_v12 = vadd.f32 %v2082_v1, %v11902_v54  ;;  %v12017_v24 = vadd.f32 %v2087_v13, %v11904_v2  ;;  %v2092_v54 = vpop.permute.xlu0 %2091 }
 0x536   :  { %v11933_v48 = vpop.f32.mrb[76].mxu1  ;;  %15954 = vst [vmem:[#allocation62_spill] sm:$0xff] %v12004_v25  ;;  %v12019_v53 = vmax.f32 %v2210_v38, 0.0  ;;  %v2217_v32 = vadd.f32 %v15723_v55, %v11299_v43  ;;  %v2214_v10 = vadd.f32 %v15724_v50, %v11297_v36  ;;  %v2213_v38 = vadd.f32 %v15726_v20, %v11306_v27  ;;  %v2097_v43 = vpop.permute.xlu1 %2096  ;;  %v15961_v50 = vld [vmem:[#allocation30_spill] sm:$0xff] }
 0x537   :  { %v1969_v51 = vpop.f32.mrb[76].mxu0  ;;  %v11937_v63 = vpop.f32.mrb[77].mxu1  ;;  %15955 = vst [vmem:[#allocation63_spill] sm:$0xff] %v12008_v44  ;;  %15956 = vst [vmem:[#allocation64_spill] sm:$0xff] %v12014_v12  ;;  %v10356_v1 = vpack.i.bf16 %v12001_v56, %v12008_v44  ;;  %v12036_v2 = vmax.f32 %v2211_v49, 0.0  ;;  %v15965_v49 = vld [vmem:[#allocation32_spill] sm:$0xff] }
 0x538   :  { %v2046_v61 = vpop.f32.mrb[78].mxu1  ;;  %v11947_v59 = vpop.f32.mrb[77].mxu0  ;;  %2311 = vrot.lane.b32.xlu1 %v11983_v4, %s10775_s26  ;;  %10352 = vrot.lane.b32.xlu0 %v10351_v57, %s10775_s26  ;;  %15957 = vst [vmem:[#allocation65_spill] sm:$0xff] %v12017_v24  ;;  %15958 = vst [vmem:[#allocation66_spill] sm:$0xff] %v12019_v53  ;;  %v15728_v57 = vmax.f32 %v11995_v6, 0.0  ;;  %v12041_v55 = vmax.f32 %v2217_v32, 0.0  ;;  %v12046_v27 = vadd.f32 %v2092_v54, %v1969_v51 }
 0x539   :  { %v11950_v40 = vpop.f32.mrb[78].mxu0  ;;  %v11952_v7 = vpop.f32.mrb[79].mxu1  ;;  %15959 = vst [vmem:[#allocation67_spill] sm:$0xff] %v12036_v2  ;;  %v12048_v20 = vadd.f32 %v2097_v43, %v2046_v61  ;;  %v12050_v26 = vmax.f32 %v2214_v10, 0.0  ;;  %v15966_v0 = vmax.f32 %v12004_v25, 0.0  ;;  %v12056_v36 = vadd.f32 %v2092_v54, %v11937_v63  ;;  %v15970_v51 = vld [vmem:[#allocation35_spill] sm:$0xff] }
 0x53a   :  { %v11964_v41 = vpop.f32.mrb[79].mxu0  ;;  %15960 = vst [vmem:[#allocation68_spill] sm:$0xff] %v12041_v55  ;;  %v2215_v42 = vadd.f32 %v15728_v57, %v15961_v50  ;;  %15962 = vst [vmem:[#allocation30_spill] sm:$0xff] %v12046_v27  ;;  %v12061_v32 = vadd.f32 %v2092_v54, %v11933_v48  ;;  %v15971_v61 = vmax.f32 %v12014_v12, 0.0  ;;  %v15972_v10 = vld [vmem:[#allocation38_spill] sm:$0xff]  ;;  %v15973_v57 = vmax.f32 %v12017_v24, 0.0 }
 0x53b   :  { %15963 = vst [vmem:[#allocation69_spill] sm:$0xff] %v12048_v20  ;;  %15964 = vst [vmem:[#allocation70_spill] sm:$0xff] %v12050_v26  ;;  %v2216_v13 = vadd.f32 %v15966_v0, %v15965_v49  ;;  %v15734_v0 = vmax.f32 %v12046_v27, 0.0  ;;  %v12093_v48 = vadd.f32 %v2092_v54, %v11947_v59  ;;  %v15983_v24 = vmax.f32 %v12048_v20, 0.0  ;;  %v15987_v27 = vld [vmem:[#allocation42_spill] sm:$0xff] }
 0x53c   :  { %2359 = vrot.lane.b32.xlu0 %v12019_v53, %s10775_s26  ;;  %10357 = vrot.lane.b32.xlu1 %v10356_v1, %s10775_s26  ;;  %15967 = vst [vmem:[#allocation32_spill] sm:$0xff] %v12056_v36  ;;  %v12058_v1 = vmax.f32 %v2213_v38, 0.0  ;;  %15969 = vst [vmem:[#allocation72_spill] sm:$0xff] %v12061_v32  ;;  %v2212_v50 = vadd.f32 %v15971_v61, %v15970_v51  ;;  %v2218_v25 = vadd.f32 %v15973_v57, %v15972_v10  ;;  %v15981_v51 = vld [vmem:[#allocation39_spill] sm:$0xff] }
 0x53d   :  { %v12073_v63 = vmax.f32 %v2215_v42, 0.0  ;;  %v12079_v49 = vmax.f32 %v2216_v13, 0.0  ;;  %v12083_v61 = vadd.f32 %v2097_v43, %v11950_v40  ;;  %v12086_v57 = vadd.f32 %v2097_v43, %v11964_v41  ;;  %15979 = vst [vmem:[#allocation76_spill] sm:$0xff] %v12093_v48  ;;  %v15982_v41 = vld [vmem:[#allocation41_spill] sm:$0xff] }
 0x53e   :  { %15968 = vst [vmem:[#allocation71_spill] sm:$0xff] %v12058_v1  ;;  %v10361_v38 = vpack.i.bf16 %v12041_v55, %v12058_v1  ;;  %v12090_v10 = vmax.f32 %v2212_v50, 0.0  ;;  %v12097_v13 = vmax.f32 %v2218_v25, 0.0  ;;  %v2219_v40 = vadd.f32 %v15734_v0, %v15981_v51  ;;  %v15985_v50 = vld [vmem:[#allocation40_spill] sm:$0xff] }
 0x53f   :  { %15974 = vst [vmem:[#allocation35_spill] sm:$0xff] %v12073_v63  ;;  %15975 = vst [vmem:[#allocation38_spill] sm:$0xff] %v12079_v49  ;;  %v2225_v42 = vadd.f32 %v15983_v24, %v15982_v41  ;;  %v15986_v59 = vmax.f32 %v12056_v36, 0.0  ;;  %v15737_v6 = vmax.f32 %v12083_v61, 0.0  ;;  %v15988_v51 = vmax.f32 %v12061_v32, 0.0 }
 0x540   :  { %2313 = vrot.lane.b32.xlu0 %v12036_v2, %s10775_s26  ;;  %2361 = vrot.lane.b32.xlu1 %v12050_v26, %s10775_s26  ;;  %15976 = vst [vmem:[#allocation73_spill] sm:$0xff] %v12083_v61  ;;  %15977 = vst [vmem:[#allocation74_spill] sm:$0xff] %v12086_v57  ;;  %v10366_v12 = vpack.i.bf16 %v12079_v49, %v12090_v10  ;;  %v12122_v24 = vmax.f32 %v2219_v40, 0.0  ;;  %v15997_v40 = vld [vmem:[#allocation46_spill] sm:$0xff] }
 0x541   :  { %15978 = vst [vmem:[#allocation75_spill] sm:$0xff] %v12090_v10  ;;  %15980 = vst [vmem:[#allocation77_spill] sm:$0xff] %v12097_v13  ;;  %v2222_v54 = vadd.f32 %v15986_v59, %v15985_v50  ;;  %v2221_v0 = vadd.f32 %v15988_v51, %v15987_v27  ;;  %v15992_v59 = vld [vmem:[#allocation43_spill] sm:$0xff]  ;;  %v15993_v27 = vld [vmem:[#allocation44_spill] sm:$0xff]  ;;  %v15994_v51 = vmax.f32 %v12086_v57, 0.0 }
 0x542   :  { %15989 = vst [vmem:[#allocation41_spill] sm:$0xff] %v12122_v24  ;;  %v2223_v25 = vadd.f32 %v15737_v6, %v15992_v59 }
 0x543   :  { %v12127_v50 = vmax.f32 %v2222_v54, 0.0  ;;  %v2224_v20 = vadd.f32 %v15994_v51, %v15993_v27  ;;  %v12135_v36 = vmax.f32 %v2221_v0, 0.0 }
 0x544   :  { %10362 = vrot.lane.b32.xlu0 %v10361_v38, %s10775_s26  ;;  %2315 = vrot.lane.b32.xlu1 %v12073_v63, %s10775_s26  ;;  %v12106_v38 = vadd.f32 %v2097_v43, %v11952_v7  ;;  %v15739_v7 = vmax.f32 %v12093_v48, 0.0  ;;  %v12124_v43 = vmax.f32 %v2225_v42, 0.0  ;;  %v12149_v27 = vmax.f32 %v2223_v25, 0.0  ;;  %v9424_v25 = vld [vmem:[%s15630_s7 + $0x48] sm:$0xff] }
 0x545   :  { %15991 = vst [vmem:[#allocation42_spill] sm:$0xff] %v12127_v50  ;;  %15995 = vst [vmem:[#allocation43_spill] sm:$0xff] %v12135_v36  ;;  %v12151_v0 = vmax.f32 %v2224_v20, 0.0  ;;  %v9423_v20 = vld [vmem:[%s15630_s7 + $0x40] sm:$0xff] }
 0x546   :  { %15984 = vst [vmem:[#allocation39_spill] sm:$0xff] %v12106_v38  ;;  %15990 = vst [vmem:[#allocation40_spill] sm:$0xff] %v12124_v43  ;;  %v15738_v41 = vmax.f32 %v12106_v38, 0.0  ;;  %v10371_v59 = vpack.i.bf16 %v12124_v43, %v12135_v36 }
 0x547   :  { %15998 = vst [vmem:[#allocation44_spill] sm:$0xff] %v12149_v27 }
 0x548   :  { %2363 = vrot.lane.b32.xlu0 %v12097_v13, %s10775_s26  ;;  %10367 = vrot.lane.b32.xlu1 %v10366_v12, %s10775_s26  ;;  %v15996_v12 = vld [vmem:[#allocation45_spill] sm:$0xff]  ;;  %v2226_v54 = vadd.f32 %v15738_v41, %v15997_v40 }
 0x549   :  { %v2220_v42 = vadd.f32 %v15739_v7, %v15996_v12  ;;  %15999 = vst [vmem:[#allocation45_spill] sm:$0xff] %v12151_v0  ;;  %v9426_v40 = vld [vmem:[%s15630_s7 + $0x58] sm:$0xff] }
 0x54a   :  { %v12158_v12 = vmax.f32 %v2226_v54, 0.0  ;;  %v9428_v54 = vld [vmem:[%s15630_s7 + $0x68] sm:$0xff] }
 0x54b   :  { %v12154_v51 = vmax.f32 %v2220_v42, 0.0  ;;  %v9425_v42 = vld [vmem:[%s15630_s7 + $0x50] sm:$0xff] }
 0x54c   :  { %2317 = vrot.lane.b32.xlu0 %v12122_v24, %s10775_s26  ;;  %2365 = vrot.lane.b32.xlu1 %v12127_v50, %s10775_s26  ;;  %16001 = vst [vmem:[#allocation78_spill] sm:$0xff] %v12158_v12 }
 0x54d   :  { %16000 = vst [vmem:[#allocation46_spill] sm:$0xff] %v12154_v51  ;;  %v10376_v6 = vpack.i.bf16 %v12151_v0, %v12154_v51 }
 0x550   :  { %10372 = vrot.lane.b32.xlu0 %v10371_v59, %s10775_s26  ;;  %2319 = vrot.lane.b32.xlu1 %v12149_v27, %s10775_s26  ;;  %v9429_v59 = vld [vmem:[%s15630_s7 + $0x70] sm:$0xff] }
 0x554   :  { %2367 = vrot.lane.b32.xlu0 %v12158_v12, %s10775_s26  ;;  %10377 = vrot.lane.b32.xlu1 %v10376_v6, %s10775_s26  ;;  %v9427_v6 = vld [vmem:[%s15630_s7 + $0x60] sm:$0xff] }
 0x558   :  { %2817 = vperm.xlu0 %10259, %v9423_v20   ;;  %2822 = vperm.xlu1 %10260, %v9424_v25   ;;  %v9430_v20 = vld [vmem:[%s15630_s7 + $0x78] sm:$0xff] }
 0x55c   :  { %2827 = vperm.xlu0 %10259, %v9425_v42   ;;  %2832 = vperm.xlu1 %10260, %v9426_v40  }
 0x560   :  { %2837 = vperm.xlu0 %10259, %v9427_v6   ;;  %2842 = vperm.xlu1 %10260, %v9428_v54   ;;  %v16002_v54 = vmov 0.0  }
 0x561   :  { %v12192_v7 = vsel %vm2259_vm7, 1.0, %v16002_v54 }
 0x564   :  { %2847 = vperm.xlu0 %10259, %v9429_v59   ;;  %2852 = vperm.xlu1 %10260, %v9430_v20  }
 0x59a   :  { %v2354_v25 = vpop.permute.xlu1 %2353  ;;  %v2306_v42 = vpop.permute.xlu0 %2305 }
 0x59b   :  { %v2394_v57 = vsel %vm2369_vm6, %v2354_v25, %v2306_v42 }
 0x59c   :  { %v2402_v32 = vmul.f32 %v12192_v7, %v2394_v57 }
 0x59e   :  { %v10343_v40 = vpop.permute.xlu0 %10342  ;;  %v2308_v41 = vpop.permute.xlu1 %2307 }
 0x59f   :  { %v10344_v6 = vunpack.i.l.bf16 %v10343_v40  ;;  %v10345_v38 = vunpack.i.h.bf16 %v10343_v40 }
 0x5a1   :  { %v2370_v48 = vsel %vm2369_vm6, %v10344_v6, %v2354_v25 }
 0x5a2   :  { %v2356_v61 = vpop.permute.xlu0 %2355  ;;  %v10348_v54 = vpop.permute.xlu1 %10347 }
 0x5a3   :  { %v2371_v59 = vsel %vm2369_vm6, %v10345_v38, %v2356_v61  ;;  %v2395_v20 = vsel %vm2369_vm6, %v2356_v61, %v2308_v41  ;;  %v10350_v31 = vunpack.i.h.bf16 %v10348_v54  ;;  %v10349_v3 = vunpack.i.l.bf16 %v10348_v54 }
 0x5a4   :  { %v2406_v11 = vmul.f32 %v12192_v7, %v2395_v20  ;;  %v2437_v15 = vpack.c.bf16 %v2371_v59, %v2370_v48 }
 0x5a5   :  { %v2379_v40 = vsel %vm2369_vm6, %v10350_v31, %v10345_v38  ;;  %v2378_v23 = vsel %vm2369_vm6, %v10349_v3, %v10344_v6  ;;  %v2386_v61 = vsel %vm2369_vm6, %v2306_v42, %v10349_v3  ;;  %v2387_v57 = vsel %vm2369_vm6, %v2308_v41, %v10350_v31 }
 0x5a6   :  { %v2434_v19 = vpack.c.bf16 %v2406_v11, %v2402_v32  ;;  %2555 = vmatprep.subr.bf16.mxu1 %v2437_v15  ;;  %v2358_v25 = vpop.permute.xlu1 %2357  ;;  %v2310_v20 = vpop.permute.xlu0 %2309  ;;  %v2435_v5 = vpack.c.bf16 %v2387_v57, %v2386_v61  ;;  %v2436_v48 = vpack.c.bf16 %v2379_v40, %v2378_v23 }
 0x5a7   :  { %v2396_v6 = vsel %vm2369_vm6, %v2358_v25, %v2310_v20 }
 0x5a8   :  { %2482 = vmatprep.subr.bf16.mxu0 %v2435_v5  ;;  %2556 = vmatpush1.bf16.msra.mxu1 %v2436_v48  ;;  %v2410_v40 = vmul.f32 %v12192_v7, %v2396_v6 }
 0x5a9   :  { %2483 = vmatpush1.bf16.msra.mxu0 %v2434_v19 }
 0x5aa   :  { %v2312_v15 = vpop.permute.xlu1 %2311  ;;  %v10353_v11 = vpop.permute.xlu0 %10352 }
 0x5ab   :  { %v10354_v32 = vunpack.i.l.bf16 %v10353_v11  ;;  %v10355_v38 = vunpack.i.h.bf16 %v10353_v11 }
 0x5ad   :  { %v2372_v5 = vsel %vm2369_vm6, %v10354_v32, %v2358_v25 }
 0x5ae   :  { %v2360_v54 = vpop.permute.xlu0 %2359  ;;  %v10358_v41 = vpop.permute.xlu1 %10357 }
 0x5af   :  { %v2373_v3 = vsel %vm2369_vm6, %v10355_v38, %v2360_v54  ;;  %v2397_v31 = vsel %vm2369_vm6, %v2360_v54, %v2312_v15  ;;  %v10360_v23 = vunpack.i.h.bf16 %v10358_v41  ;;  %v10359_v42 = vunpack.i.l.bf16 %v10358_v41 }
 0x5b0   :  { %v2414_v19 = vmul.f32 %v12192_v7, %v2397_v31  ;;  %v2441_v59 = vpack.c.bf16 %v2373_v3, %v2372_v5 }
 0x5b1   :  { %v2381_v61 = vsel %vm2369_vm6, %v10360_v23, %v10355_v38  ;;  %v2380_v57 = vsel %vm2369_vm6, %v10359_v42, %v10354_v32  ;;  %v2388_v11 = vsel %vm2369_vm6, %v2310_v20, %v10359_v42  ;;  %v2389_v31 = vsel %vm2369_vm6, %v2312_v15, %v10360_v23 }
 0x5b2   :  { %2557 = vmatprep.subr.bf16.mxu1 %v2441_v59  ;;  %v2314_v48 = vpop.permute.xlu0 %2313  ;;  %v2438_v54 = vpack.c.bf16 %v2414_v19, %v2410_v40  ;;  %v2362_v25 = vpop.permute.xlu1 %2361  ;;  %v2440_v41 = vpack.c.bf16 %v2381_v61, %v2380_v57  ;;  %v2439_v3 = vpack.c.bf16 %v2389_v31, %v2388_v11 }
 0x5b3   :  { %v2398_v32 = vsel %vm2369_vm6, %v2362_v25, %v2314_v48 }
 0x5b4   :  { %2558 = vmatpush1.bf16.msra.mxu1 %v2440_v41  ;;  %2484 = vmatprep.subr.bf16.mxu0 %v2439_v3  ;;  %v2418_v11 = vmul.f32 %v12192_v7, %v2398_v32 }
 0x5b5   :  { %2485 = vmatpush1.bf16.msra.mxu0 %v2438_v54 }
 0x5b6   :  { %v10363_v6 = vpop.permute.xlu0 %10362  ;;  %v2316_v5 = vpop.permute.xlu1 %2315 }
 0x5b7   :  { %v10364_v38 = vunpack.i.l.bf16 %v10363_v6  ;;  %v10365_v21 = vunpack.i.h.bf16 %v10363_v6 }
 0x5b9   :  { %v2374_v23 = vsel %vm2369_vm6, %v10364_v38, %v2362_v25 }
 0x5ba   :  { %v2364_v59 = vpop.permute.xlu0 %2363  ;;  %v10368_v15 = vpop.permute.xlu1 %10367 }
 0x5bb   :  { %v2375_v20 = vsel %vm2369_vm6, %v10365_v21, %v2364_v59  ;;  %v2399_v19 = vsel %vm2369_vm6, %v2364_v59, %v2316_v5  ;;  %v10370_v40 = vunpack.i.h.bf16 %v10368_v15  ;;  %v10369_v61 = vunpack.i.l.bf16 %v10368_v15 }
 0x5bc   :  { %v2422_v42 = vmul.f32 %v12192_v7, %v2399_v19  ;;  %v2445_v57 = vpack.c.bf16 %v2375_v20, %v2374_v23 }
 0x5bd   :  { %v2383_v54 = vsel %vm2369_vm6, %v10370_v40, %v10365_v21  ;;  %v2382_v31 = vsel %vm2369_vm6, %v10369_v61, %v10364_v38  ;;  %v2390_v3 = vsel %vm2369_vm6, %v2314_v48, %v10369_v61  ;;  %v2391_v59 = vsel %vm2369_vm6, %v2316_v5, %v10370_v40 }
 0x5be   :  { %2559 = vmatprep.subr.bf16.mxu1 %v2445_v57  ;;  %v2318_v41 = vpop.permute.xlu0 %2317  ;;  %v2442_v6 = vpack.c.bf16 %v2422_v42, %v2418_v11  ;;  %v2366_v25 = vpop.permute.xlu1 %2365  ;;  %v2444_v19 = vpack.c.bf16 %v2383_v54, %v2382_v31  ;;  %v2443_v20 = vpack.c.bf16 %v2391_v59, %v2390_v3 }
 0x5bf   :  { %v2400_v38 = vsel %vm2369_vm6, %v2366_v25, %v2318_v41 }
 0x5c0   :  { %2560 = vmatpush1.bf16.msra.mxu1 %v2444_v19  ;;  %2486 = vmatprep.subr.bf16.mxu0 %v2443_v20  ;;  %v2426_v3 = vmul.f32 %v12192_v7, %v2400_v38  ;;  %v2280_v38 = vpack.c.bf16 %v11873_v16, %v11849_v46 }
 0x5c1   :  { %2487 = vmatpush1.bf16.msra.mxu0 %v2442_v6 }
 0x5c2   :  { %v10373_v32 = vpop.permute.xlu0 %10372  ;;  %v2320_v15 = vpop.permute.xlu1 %2319 }
 0x5c3   :  { %v10374_v21 = vunpack.i.l.bf16 %v10373_v32  ;;  %v10375_v23 = vunpack.i.h.bf16 %v10373_v32 }
 0x5c5   :  { %v2376_v40 = vsel %vm2369_vm6, %v10374_v21, %v2366_v25 }
 0x5c6   :  { %v2368_v57 = vpop.permute.xlu0 %2367  ;;  %v10378_v5 = vpop.permute.xlu1 %10377 }
 0x5c7   :  { %v2377_v48 = vsel %vm2369_vm6, %v10375_v23, %v2368_v57  ;;  %v2401_v42 = vsel %vm2369_vm6, %v2368_v57, %v2320_v15  ;;  %v10380_v11 = vunpack.i.h.bf16 %v10378_v5  ;;  %v10379_v54 = vunpack.i.l.bf16 %v10378_v5 }
 0x5c8   :  { %v2430_v61 = vmul.f32 %v12192_v7, %v2401_v42  ;;  %v2449_v31 = vpack.c.bf16 %v2377_v48, %v2376_v40  ;;  %v2283_v48 = vpack.c.bf16 %v11916_v35, %v11851_v22  ;;  %v2285_v42 = vpack.c.bf16 %v12001_v56, %v12008_v44 }
 0x5c9   :  { %v2385_v6 = vsel %vm2369_vm6, %v10380_v11, %v10375_v23  ;;  %v2384_v59 = vsel %vm2369_vm6, %v10379_v54, %v10374_v21  ;;  %v2392_v19 = vsel %vm2369_vm6, %v2318_v41, %v10379_v54  ;;  %v2393_v25 = vsel %vm2369_vm6, %v2320_v15, %v10380_v11  ;;  %v10691_v23 = vld [vmem:[%s15629_s6 + $0x20] sm:$0xff]  }
 0x5ca   :  { %2561 = vmatprep.subr.bf16.mxu1 %v2449_v31  ;;  %v2446_v20 = vpack.c.bf16 %v2430_v61, %v2426_v3  ;;  %v2448_v32 = vpack.c.bf16 %v2385_v6, %v2384_v59  ;;  %v2447_v57 = vpack.c.bf16 %v2393_v25, %v2392_v19  ;;  %v2281_v21 = vpack.c.bf16 %v11906_v37, %v11914_v62  ;;  %v10692_v61 = vld [vmem:[%s15629_s6 + $0x28] sm:$0xff]  }
 0x5cb   :  { %v2282_v41 = vpack.c.bf16 %v11877_v18, %v11884_v39  ;;  %v2287_v15 = vpack.c.bf16 %v12019_v53, %v11957_v28  ;;  %v2286_v5 = vpack.c.bf16 %v11969_v8, %v11981_v45  ;;  %v2291_v40 = vpack.c.bf16 %v12097_v13, %v12050_v26 }
 0x5cc   :  { %2562 = vmatpush1.bf16.msra.mxu1 %v2448_v32  ;;  %2488 = vmatprep.subr.bf16.mxu0 %v2447_v57  ;;  %v2284_v11 = vpack.c.bf16 %v11983_v4, %v11939_v14  ;;  %v2289_v54 = vpack.c.bf16 %v12079_v49, %v12090_v10  ;;  %v2290_v31 = vpack.c.bf16 %v12041_v55, %v12058_v1  ;;  %v10694_v32 = vld [vmem:[%s15629_s6 + $0x38] sm:$0xff]   ;;  %v10695_v57 = vld [vmem:[%s15631_s5 + $0x20] sm:$0xff]  }
 0x5cd   :  { %2733 = vmatprep.subr.bf16.mxu1 %v2283_v48  ;;  %2489 = vmatpush1.bf16.msra.mxu0 %v2446_v20  ;;  %v2295_v3 = vpack.c.bf16 %v12158_v12, %v12127_v50  ;;  %v2288_v6 = vpack.c.bf16 %v12073_v63, %v12036_v2  ;;  %v2293_v59 = vpack.c.bf16 %v12151_v0, %v12154_v51  ;;  %v10693_v20 = vld [vmem:[%s15629_s6 + $0x30] sm:$0xff]   ;;  %v10696_v48 = vld [vmem:[%s15631_s5 + $0x28] sm:$0xff]  }
 0x5ce   :  { %2660 = vmatprep.subr.bf16.mxu0 %v2281_v21  ;;  %v2294_v19 = vpack.c.bf16 %v12124_v43, %v12135_v36  ;;  %v2292_v25 = vpack.c.bf16 %v12149_v27, %v12122_v24  ;;  %v10698_v21 = vld [vmem:[%s15631_s5 + $0x38] sm:$0xff]  }
 0x5cf   :  { %9407 = vmatmul.mubr.msk.bf16.vlgmr.msra.gmra.mrb[80].mxu1 %vm602_vm3, %v10691_v23 }
 0x5d0   :  { %2734 = vmatpush1.bf16.msra.mxu1 %v2282_v41  ;;  %2597 = vmatprep.mubr.bf16.mxu1 %v15935_v52 }
 0x5d1   :  { %9403 = vmatmul.mubr.msk.bf16.vlgmr.msra.gmra.mrb[80].mxu0 %vm602_vm3, %v10691_v23  ;;  %2735 = vmatprep.subr.bf16.mxu1 %v2287_v15  ;;  %v10697_v23 = vld [vmem:[%s15631_s5 + $0x30] sm:$0xff]  }
 0x5d2   :  { %2661 = vmatpush1.bf16.msra.mxu0 %v2280_v38  ;;  %2524 = vmatprep.mubr.bf16.mxu0 %v15935_v52 }
 0x5d3   :  { %2662 = vmatprep.subr.bf16.mxu0 %v2285_v42 }
 0x5d4   :  { %2736 = vmatpush1.bf16.msra.mxu1 %v2286_v5 }
 0x5d5   :  { %2737 = vmatprep.subr.bf16.mxu1 %v2291_v40 }
 0x5d6   :  { %2663 = vmatpush1.bf16.msra.mxu0 %v2284_v11 }
 0x5d7   :  { %2664 = vmatprep.subr.bf16.mxu0 %v2289_v54  ;;  %9408 = vmatmul.mubr.msk.bf16.gmra.mrb[84].mxu1 %vm602_vm3, %v10692_v61  ;;  %v2818_v41 = vpop.permute.xlu0 %2817  ;;  %v2823_v38 = vpop.permute.xlu1 %2822 }
 0x5d8   :  { %2738 = vmatpush1.bf16.msra.mxu1 %v2290_v31  ;;  %2607 = vmatprep.mubr.bf16.mxu1 %v15935_v52 }
 0x5d9   :  { %9404 = vmatmul.mubr.msk.bf16.gmra.mrb[84].mxu0 %vm602_vm3, %v10692_v61  ;;  %2739 = vmatprep.subr.bf16.mxu1 %v2295_v3 }
 0x5da   :  { %2665 = vmatpush1.bf16.msra.mxu0 %v2288_v6  ;;  %2534 = vmatprep.mubr.bf16.mxu0 %v15935_v52 }
 0x5db   :  { %2666 = vmatprep.subr.bf16.mxu0 %v2293_v59 }
 0x5dc   :  { %2740 = vmatpush1.bf16.msra.mxu1 %v2294_v19 }
 0x5de   :  { %2667 = vmatpush1.bf16.msra.mxu0 %v2292_v25 }
 0x5df   :  { %9409 = vmatmul.mubr.msk.bf16.gmra.mrb[88].mxu1 %vm602_vm3, %v10693_v20 }
 0x5e0   :  { %2617 = vmatprep.mubr.bf16.mxu1 %v15935_v52 }
 0x5e1   :  { %9405 = vmatmul.mubr.msk.bf16.gmra.mrb[88].mxu0 %vm602_vm3, %v10693_v20 }
 0x5e2   :  { %2544 = vmatprep.mubr.bf16.mxu0 %v15935_v52 }
 0x5e7   :  { %9410 = vmatmul.mubr.msk.bf16.gmra.mrb[92].mxu1 %vm602_vm3, %v10694_v32 }
 0x5e8   :  { %2765 = vmatprep.mubr.bf16.mxu1 %v15935_v52 }
 0x5e9   :  { %9406 = vmatmul.mubr.msk.bf16.gmra.mrb[92].mxu0 %vm602_vm3, %v10694_v32 }
 0x5ea   :  { %2692 = vmatprep.mubr.bf16.mxu0 %v15935_v52 }
 0x5ef   :  { %9419 = vmatmul.mubr.msk.bf16.vlgmr.msra.gmra.mrb[80].mxu1 %vm602_vm3, %v10695_v57 }
 0x5f0   :  { %2775 = vmatprep.mubr.bf16.mxu1 %v15935_v52 }
 0x5f1   :  { %9415 = vmatmul.mubr.msk.bf16.vlgmr.msra.gmra.mrb[80].mxu0 %vm602_vm3, %v10695_v57 }
 0x5f2   :  { %2702 = vmatprep.mubr.bf16.mxu0 %v15935_v52 }
 0x5f7   :  { %9420 = vmatmul.mubr.msk.bf16.gmra.mrb[84].mxu1 %vm602_vm3, %v10696_v48 }
 0x5f8   :  { %2785 = vmatprep.mubr.bf16.mxu1 %v15935_v52 }
 0x5f9   :  { %9416 = vmatmul.mubr.msk.bf16.gmra.mrb[84].mxu0 %vm602_vm3, %v10696_v48 }
 0x5fa   :  { %2712 = vmatprep.mubr.bf16.mxu0 %v15935_v52 }
 0x5ff   :  { %9421 = vmatmul.mubr.msk.bf16.gmra.mrb[88].mxu1 %vm602_vm3, %v10697_v23 }
 0x600   :  { %2795 = vmatprep.mubr.bf16.mxu1 %v15935_v52 }
 0x601   :  { %9417 = vmatmul.mubr.msk.bf16.gmra.mrb[88].mxu0 %vm602_vm3, %v10697_v23 }
 0x602   :  { %2722 = vmatprep.mubr.bf16.mxu0 %v15935_v52 }
 0x607   :  { %9422 = vmatmul.mubr.msk.bf16.gmra.mrb[92].mxu1 %vm602_vm3, %v10698_v21 }
 0x608   :  { %3234 = vmatprep.mubr.bf16.mxu1 %v15935_v52 }
 0x609   :  { %9418 = vmatmul.mubr.msk.bf16.gmra.mrb[92].mxu0 %vm602_vm3, %v10698_v21 }
 0x60a   :  { %3161 = vmatprep.mubr.bf16.mxu0 %v15935_v52 }
 0x6c2   :  { %v2767_v15 = vpop.f32.mrb[80].mxu1 }
 0x6c3   :  { %v2857_v42 = vadd.f32 %v2818_v41, %v2767_v15  ;;  %v2769_v5 = vpop.f32.mrb[81].mxu1 }
 0x6c4   :  { %v2694_v40 = vpop.f32.mrb[80].mxu0  ;;  %v2858_v61 = vadd.f32 %v2818_v41, %v2769_v5  ;;  %v2771_v11 = vpop.f32.mrb[82].mxu1 }
 0x6c5   :  { %v2855_v54 = vadd.f32 %v2818_v41, %v2694_v40  ;;  %v2696_v31 = vpop.f32.mrb[81].mxu0  ;;  %v2861_v3 = vadd.f32 %v2823_v38, %v2771_v11  ;;  %v2773_v6 = vpop.f32.mrb[83].mxu1  ;;  %v2889_v32 = vmax.f32 %v2857_v42, 0.0 }
 0x6c6   :  { %v2890_v59 = vmax.f32 %v2858_v61, 0.0  ;;  %v2856_v19 = vadd.f32 %v2818_v41, %v2696_v31  ;;  %v2698_v20 = vpop.f32.mrb[82].mxu0  ;;  %v2862_v25 = vadd.f32 %v2823_v38, %v2773_v6  ;;  %v2828_v11 = vpop.permute.xlu0 %2827 }
 0x6c7   :  { %v2887_v57 = vmax.f32 %v2855_v54, 0.0  ;;  %v2893_v48 = vmax.f32 %v2861_v3, 0.0  ;;  %v2859_v23 = vadd.f32 %v2823_v38, %v2698_v20  ;;  %v2700_v21 = vpop.f32.mrb[83].mxu0  ;;  %v2833_v54 = vpop.permute.xlu1 %2832 }
 0x6c8   :  { %v2894_v12 = vmax.f32 %v2862_v25, 0.0  ;;  %v2860_v51 = vadd.f32 %v2823_v38, %v2700_v21  ;;  %3001 = vrot.lane.b32.xlu1 %v2890_v59, %s10775_s26  ;;  %v2888_v61 = vmax.f32 %v2856_v19, 0.0 }
 0x6c9   :  { %v10381_v15 = vpack.i.bf16 %v2893_v48, %v2889_v32  ;;  %v12355_v5 = vpack.c.bf16 %v2893_v48, %v2889_v32  ;;  %v2891_v40 = vmax.f32 %v2859_v23, 0.0  ;;  %2953 = vrot.lane.b32.xlu0 %v2887_v57, %s10775_s26 }
 0x6ca   :  { %v12358_v41 = vpack.c.bf16 %v2894_v12, %v2890_v59  ;;  %v2892_v31 = vmax.f32 %v2860_v51, 0.0  ;;  %v2777_v42 = vpop.f32.mrb[84].mxu1 }
 0x6cb   :  { %v12360_v3 = vpack.c.bf16 %v2891_v40, %v2887_v57  ;;  %v2865_v6 = vadd.f32 %v2828_v11, %v2777_v42  ;;  %v2779_v20 = vpop.f32.mrb[85].mxu1 }
 0x6cc   :  { %v10386_v38 = vpack.i.bf16 %v2892_v31, %v2888_v61  ;;  %v12362_v25 = vpack.c.bf16 %v2892_v31, %v2888_v61  ;;  %v2704_v21 = vpop.f32.mrb[84].mxu0  ;;  %v2866_v32 = vadd.f32 %v2828_v11, %v2779_v20  ;;  %v2781_v48 = vpop.f32.mrb[86].mxu1  ;;  %2955 = vrot.lane.b32.xlu1 %v2891_v40, %s10775_s26 }
 0x6cd   :  { %v2863_v23 = vadd.f32 %v2828_v11, %v2704_v21  ;;  %v2869_v0 = vadd.f32 %v2833_v54, %v2781_v48  ;;  %10382 = vrot.lane.b32.xlu0 %v10381_v15, %s10775_s26  ;;  %v2706_v59 = vpop.f32.mrb[85].mxu0  ;;  %v2783_v51 = vpop.f32.mrb[87].mxu1  ;;  %v2897_v42 = vmax.f32 %v2865_v6, 0.0 }
 0x6ce   :  { %v2864_v19 = vadd.f32 %v2828_v11, %v2706_v59  ;;  %v2708_v27 = vpop.f32.mrb[86].mxu0  ;;  %v12366_v57 = vadd.f32 %v2833_v54, %v2783_v51  ;;  %v2898_v31 = vmax.f32 %v2866_v32, 0.0  ;;  %v2838_v11 = vpop.permute.xlu0 %2837 }
 0x6cf   :  { %v2901_v36 = vmax.f32 %v2869_v0, 0.0  ;;  %v2867_v50 = vadd.f32 %v2833_v54, %v2708_v27  ;;  %v2710_v61 = vpop.f32.mrb[87].mxu0  ;;  %v2895_v40 = vmax.f32 %v2863_v23, 0.0  ;;  %v2843_v6 = vpop.permute.xlu1 %2842 }
 0x6d0   :  { %v2902_v20 = vmax.f32 %v12366_v57, 0.0  ;;  %v2868_v43 = vadd.f32 %v2833_v54, %v2710_v61  ;;  %10387 = vrot.lane.b32.xlu1 %v10386_v38, %s10775_s26  ;;  %v2896_v59 = vmax.f32 %v2864_v19, 0.0 }
 0x6d1   :  { %v10391_v21 = vpack.i.bf16 %v2901_v36, %v2897_v42  ;;  %v12370_v48 = vpack.c.bf16 %v2901_v36, %v2897_v42  ;;  %v2899_v15 = vmax.f32 %v2867_v50, 0.0  ;;  %3003 = vrot.lane.b32.xlu0 %v2894_v12, %s10775_s26 }
 0x6d2   :  { %v12373_v51 = vpack.c.bf16 %v2902_v20, %v2898_v31  ;;  %v2900_v0 = vmax.f32 %v2868_v43, 0.0  ;;  %v2787_v27 = vpop.f32.mrb[88].mxu1 }
 0x6d3   :  { %v12375_v32 = vpack.c.bf16 %v2899_v15, %v2895_v40  ;;  %v2873_v57 = vadd.f32 %v2838_v11, %v2787_v27  ;;  %v2789_v54 = vpop.f32.mrb[89].mxu1 }
 0x6d4   :  { %v10396_v61 = vpack.i.bf16 %v2900_v0, %v2896_v59  ;;  %v12377_v38 = vpack.c.bf16 %v2900_v0, %v2896_v59  ;;  %v2714_v23 = vpop.f32.mrb[88].mxu0  ;;  %v2874_v36 = vadd.f32 %v2838_v11, %v2789_v54  ;;  %v2791_v42 = vpop.f32.mrb[90].mxu1  ;;  %3005 = vrot.lane.b32.xlu1 %v2898_v31, %s10775_s26 }
 0x6d5   :  { %v2871_v50 = vadd.f32 %v2838_v11, %v2714_v23  ;;  %v2877_v12 = vadd.f32 %v2843_v6, %v2791_v42  ;;  %2957 = vrot.lane.b32.xlu0 %v2895_v40, %s10775_s26  ;;  %v2716_v19 = vpop.f32.mrb[89].mxu0  ;;  %v2793_v43 = vpop.f32.mrb[91].mxu1  ;;  %v2905_v49 = vmax.f32 %v2873_v57, 0.0 }
 0x6d6   :  { %v2872_v24 = vadd.f32 %v2838_v11, %v2716_v19  ;;  %v2718_v13 = vpop.f32.mrb[90].mxu0  ;;  %v2878_v10 = vadd.f32 %v2843_v6, %v2793_v43  ;;  %v2906_v59 = vmax.f32 %v2874_v36, 0.0  ;;  %v2848_v40 = vpop.permute.xlu0 %2847 }
 0x6d7   :  { %v2909_v27 = vmax.f32 %v2877_v12, 0.0  ;;  %v2875_v63 = vadd.f32 %v2843_v6, %v2718_v13  ;;  %v2720_v1 = vpop.f32.mrb[91].mxu0  ;;  %v2903_v54 = vmax.f32 %v2871_v50, 0.0  ;;  %v2853_v13 = vpop.permute.xlu1 %2852 }
 0x6d8   :  { %v2910_v0 = vmax.f32 %v2878_v10, 0.0  ;;  %v2876_v26 = vadd.f32 %v2843_v6, %v2720_v1  ;;  %2959 = vrot.lane.b32.xlu1 %v2899_v15, %s10775_s26  ;;  %v2904_v11 = vmax.f32 %v2872_v24, 0.0 }
 0x6d9   :  { %v10401_v31 = vpack.i.bf16 %v2909_v27, %v2905_v49  ;;  %v12382_v23 = vpack.c.bf16 %v2909_v27, %v2905_v49  ;;  %v2907_v42 = vmax.f32 %v2875_v63, 0.0  ;;  %10392 = vrot.lane.b32.xlu0 %v10391_v21, %s10775_s26 }
 0x6da   :  { %v12385_v19 = vpack.c.bf16 %v2910_v0, %v2906_v59  ;;  %v2908_v57 = vmax.f32 %v2876_v26, 0.0  ;;  %v2797_v12 = vpop.f32.mrb[92].mxu1 }
 0x6db   :  { %v12387_v43 = vpack.c.bf16 %v2907_v42, %v2903_v54  ;;  %v2881_v10 = vadd.f32 %v2848_v40, %v2797_v12  ;;  %v2799_v1 = vpop.f32.mrb[93].mxu1 }
 0x6dc   :  { %v10406_v6 = vpack.i.bf16 %v2908_v57, %v2904_v11  ;;  %v12389_v15 = vpack.c.bf16 %v2908_v57, %v2904_v11  ;;  %v2724_v36 = vpop.f32.mrb[92].mxu0  ;;  %v2882_v49 = vadd.f32 %v2848_v40, %v2799_v1  ;;  %v2801_v50 = vpop.f32.mrb[94].mxu1  ;;  %10397 = vrot.lane.b32.xlu1 %v10396_v61, %s10775_s26 }
 0x6dd   :  { %v2879_v63 = vadd.f32 %v2848_v40, %v2724_v36  ;;  %v2885_v21 = vadd.f32 %v2853_v13, %v2801_v50  ;;  %3007 = vrot.lane.b32.xlu0 %v2902_v20, %s10775_s26  ;;  %v2726_v24 = vpop.f32.mrb[93].mxu0  ;;  %v2803_v26 = vpop.f32.mrb[95].mxu1  ;;  %v2913_v53 = vmax.f32 %v2881_v10, 0.0 }
 0x6de   :  { %v2880_v27 = vadd.f32 %v2848_v40, %v2726_v24  ;;  %v2728_v55 = vpop.f32.mrb[94].mxu0  ;;  %v2886_v2 = vadd.f32 %v2853_v13, %v2803_v26  ;;  %v2914_v11 = vmax.f32 %v2882_v49, 0.0 }
 0x6df   :  { %v2917_v12 = vmax.f32 %v2885_v21, 0.0  ;;  %v2883_v44 = vadd.f32 %v2853_v13, %v2728_v55  ;;  %v2730_v56 = vpop.f32.mrb[95].mxu0  ;;  %v2911_v1 = vmax.f32 %v2879_v63, 0.0 }
 0x6e0   :  { %v2918_v57 = vmax.f32 %v2886_v2, 0.0  ;;  %v2884_v45 = vadd.f32 %v2853_v13, %v2730_v56  ;;  %3009 = vrot.lane.b32.xlu1 %v2906_v59, %s10775_s26  ;;  %v2912_v20 = vmax.f32 %v2880_v27, 0.0  ;;  %v9471_v56 = vld [vmem:[%s15633_s10 + $0x40] sm:$0xff]  ;;  %v9476_v2 = vld [vmem:[%s15633_s10 + $0x68] sm:$0xff] }
 0x6e1   :  { %v10411_v61 = vpack.i.bf16 %v2917_v12, %v2913_v53  ;;  %v12394_v36 = vpack.c.bf16 %v2917_v12, %v2913_v53  ;;  %v2915_v50 = vmax.f32 %v2883_v44, 0.0  ;;  %2961 = vrot.lane.b32.xlu0 %v2903_v54, %s10775_s26  ;;  %v9474_v44 = vld [vmem:[%s15633_s10 + $0x58] sm:$0xff]  ;;  %v9473_v53 = vld [vmem:[%s15633_s10 + $0x50] sm:$0xff]  ;;  %v9475_v59 = vld [vmem:[%s15633_s10 + $0x60] sm:$0xff] }
 0x6e2   :  { %v12397_v40 = vpack.c.bf16 %v2918_v57, %v2914_v11  ;;  %v2916_v24 = vmax.f32 %v2884_v45, 0.0  ;;  %v9472_v45 = vld [vmem:[%s15633_s10 + $0x48] sm:$0xff]  ;;  %v9477_v54 = vld [vmem:[%s15633_s10 + $0x70] sm:$0xff] }
 0x6e3   :  { %v12399_v10 = vpack.c.bf16 %v2915_v50, %v2911_v1 }
 0x6e4   :  { %v10416_v55 = vpack.i.bf16 %v2916_v24, %v2912_v20  ;;  %v12401_v21 = vpack.c.bf16 %v2916_v24, %v2912_v20  ;;  %2963 = vrot.lane.b32.xlu1 %v2907_v42, %s10775_s26 }
 0x6e5   :  { %10402 = vrot.lane.b32.xlu0 %v10401_v31, %s10775_s26 }
 0x6e8   :  { %10407 = vrot.lane.b32.xlu1 %v10406_v6, %s10775_s26 }
 0x6e9   :  { %3011 = vrot.lane.b32.xlu0 %v2910_v0, %s10775_s26  ;;  %v9478_v0 = vld [vmem:[%s15633_s10 + $0x78] sm:$0xff] }
 0x6ec   :  { %3013 = vrot.lane.b32.xlu1 %v2914_v11, %s10775_s26 }
 0x6ed   :  { %2965 = vrot.lane.b32.xlu0 %v2911_v1, %s10775_s26 }
 0x6f0   :  { %2967 = vrot.lane.b32.xlu1 %v2915_v50, %s10775_s26 }
 0x6f1   :  { %10412 = vrot.lane.b32.xlu0 %v10411_v61, %s10775_s26 }
 0x6f4   :  { %10417 = vrot.lane.b32.xlu1 %v10416_v55, %s10775_s26 }
 0x6f5   :  { %3015 = vrot.lane.b32.xlu0 %v2918_v57, %s10775_s26  ;;  %s10778_s26 = smov 64  }
 0x6f8   :  { %3469 = vperm.xlu1 %10260, %v9472_v45  }
 0x6f9   :  { %3464 = vperm.xlu0 %10259, %v9471_v56  }
 0x6fc   :  { %3479 = vperm.xlu1 %10260, %v9474_v44  }
 0x6fd   :  { %3474 = vperm.xlu0 %10259, %v9473_v53  }
 0x700   :  { %3489 = vperm.xlu1 %10260, %v9476_v2  }
 0x701   :  { %3484 = vperm.xlu0 %10259, %v9475_v59  }
 0x704   :  { %3499 = vperm.xlu1 %10260, %v9478_v0  }
 0x705   :  { %3494 = vperm.xlu0 %10259, %v9477_v54  }
 0x73a   :  { %v3002_v31 = vpop.permute.xlu1 %3001 }
 0x73b   :  { %v2954_v42 = vpop.permute.xlu0 %2953 }
 0x73c   :  { %v3041_v63 = vsel %vm2369_vm6, %v3002_v31, %v2954_v42 }
 0x73d   :  { %v3049_v1 = vmul.f32 %v12192_v7, %v3041_v63 }
 0x73e   :  { %v2956_v13 = vpop.permute.xlu1 %2955 }
 0x73f   :  { %v10383_v6 = vpop.permute.xlu0 %10382 }
 0x740   :  { %v10384_v49 = vunpack.i.l.bf16 %v10383_v6  ;;  %v10385_v26 = vunpack.i.h.bf16 %v10383_v6 }
 0x742   :  { %v10388_v27 = vpop.permute.xlu1 %10387  ;;  %v3017_v20 = vsel %vm2369_vm6, %v10384_v49, %v3002_v31 }
 0x743   :  { %v3004_v12 = vpop.permute.xlu0 %3003  ;;  %v10390_v11 = vunpack.i.h.bf16 %v10388_v27  ;;  %v10389_v57 = vunpack.i.l.bf16 %v10388_v27 }
 0x744   :  { %v3018_v61 = vsel %vm2369_vm6, %v10385_v26, %v3004_v12  ;;  %v3042_v50 = vsel %vm2369_vm6, %v3004_v12, %v2956_v13 }
 0x745   :  { %v3053_v24 = vmul.f32 %v12192_v7, %v3042_v50  ;;  %v3026_v55 = vsel %vm2369_vm6, %v10390_v11, %v10385_v26  ;;  %v3025_v45 = vsel %vm2369_vm6, %v10389_v57, %v10384_v49  ;;  %v3084_v56 = vpack.c.bf16 %v3018_v61, %v3017_v20 }
 0x746   :  { %v3006_v44 = vpop.permute.xlu1 %3005  ;;  %v3033_v53 = vsel %vm2369_vm6, %v2954_v42, %v10389_v57  ;;  %v3034_v2 = vsel %vm2369_vm6, %v2956_v13, %v10390_v11  ;;  %v3083_v59 = vpack.c.bf16 %v3026_v55, %v3025_v45 }
 0x747   :  { %v3081_v0 = vpack.c.bf16 %v3053_v24, %v3049_v1  ;;  %3202 = vmatprep.subr.bf16.mxu1 %v3084_v56  ;;  %v2958_v54 = vpop.permute.xlu0 %2957  ;;  %v3082_v31 = vpack.c.bf16 %v3034_v2, %v3033_v53 }
 0x748   :  { %3203 = vmatpush1.bf16.msra.mxu1 %v3083_v59  ;;  %v3043_v49 = vsel %vm2369_vm6, %v3006_v44, %v2958_v54 }
 0x749   :  { %3129 = vmatprep.subr.bf16.mxu0 %v3082_v31  ;;  %v3057_v13 = vmul.f32 %v12192_v7, %v3043_v49 }
 0x74a   :  { %3130 = vmatpush1.bf16.msra.mxu0 %v3081_v0  ;;  %v2960_v6 = vpop.permute.xlu1 %2959 }
 0x74b   :  { %v10393_v63 = vpop.permute.xlu0 %10392 }
 0x74c   :  { %v10394_v26 = vunpack.i.l.bf16 %v10393_v63  ;;  %v10395_v27 = vunpack.i.h.bf16 %v10393_v63 }
 0x74e   :  { %v10398_v12 = vpop.permute.xlu1 %10397  ;;  %v3019_v50 = vsel %vm2369_vm6, %v10394_v26, %v3006_v44 }
 0x74f   :  { %v3008_v42 = vpop.permute.xlu0 %3007  ;;  %v10400_v57 = vunpack.i.h.bf16 %v10398_v12  ;;  %v10399_v61 = vunpack.i.l.bf16 %v10398_v12 }
 0x750   :  { %v3020_v11 = vsel %vm2369_vm6, %v10395_v27, %v3008_v42  ;;  %v3044_v1 = vsel %vm2369_vm6, %v3008_v42, %v2960_v6 }
 0x751   :  { %v3061_v20 = vmul.f32 %v12192_v7, %v3044_v1  ;;  %v3028_v24 = vsel %vm2369_vm6, %v10400_v57, %v10395_v27  ;;  %v3027_v55 = vsel %vm2369_vm6, %v10399_v61, %v10394_v26  ;;  %v3088_v45 = vpack.c.bf16 %v3020_v11, %v3019_v50 }
 0x752   :  { %v3010_v56 = vpop.permute.xlu1 %3009  ;;  %v3035_v53 = vsel %vm2369_vm6, %v2958_v54, %v10399_v61  ;;  %v3036_v2 = vsel %vm2369_vm6, %v2960_v6, %v10400_v57  ;;  %v3087_v59 = vpack.c.bf16 %v3028_v24, %v3027_v55 }
 0x753   :  { %v3085_v0 = vpack.c.bf16 %v3061_v20, %v3057_v13  ;;  %3204 = vmatprep.subr.bf16.mxu1 %v3088_v45  ;;  %v2962_v44 = vpop.permute.xlu0 %2961  ;;  %v3086_v31 = vpack.c.bf16 %v3036_v2, %v3035_v53 }
 0x754   :  { %3205 = vmatpush1.bf16.msra.mxu1 %v3087_v59  ;;  %v3045_v26 = vsel %vm2369_vm6, %v3010_v56, %v2962_v44 }
 0x755   :  { %3131 = vmatprep.subr.bf16.mxu0 %v3086_v31  ;;  %v3065_v6 = vmul.f32 %v12192_v7, %v3045_v26 }
 0x756   :  { %3132 = vmatpush1.bf16.msra.mxu0 %v3085_v0  ;;  %v2964_v63 = vpop.permute.xlu1 %2963 }
 0x757   :  { %v10403_v49 = vpop.permute.xlu0 %10402 }
 0x758   :  { %v10404_v27 = vunpack.i.l.bf16 %v10403_v49  ;;  %v10405_v12 = vunpack.i.h.bf16 %v10403_v49 }
 0x75a   :  { %v10408_v42 = vpop.permute.xlu1 %10407  ;;  %v3021_v1 = vsel %vm2369_vm6, %v10404_v27, %v3010_v56 }
 0x75b   :  { %v3012_v54 = vpop.permute.xlu0 %3011  ;;  %v10410_v61 = vunpack.i.h.bf16 %v10408_v42  ;;  %v10409_v11 = vunpack.i.l.bf16 %v10408_v42 }
 0x75c   :  { %v3022_v57 = vsel %vm2369_vm6, %v10405_v12, %v3012_v54  ;;  %v3046_v13 = vsel %vm2369_vm6, %v3012_v54, %v2964_v63 }
 0x75d   :  { %v3069_v50 = vmul.f32 %v12192_v7, %v3046_v13  ;;  %v3030_v20 = vsel %vm2369_vm6, %v10410_v61, %v10405_v12  ;;  %v3029_v24 = vsel %vm2369_vm6, %v10409_v11, %v10404_v27  ;;  %v3092_v55 = vpack.c.bf16 %v3022_v57, %v3021_v1 }
 0x75e   :  { %v3014_v45 = vpop.permute.xlu1 %3013  ;;  %v3037_v53 = vsel %vm2369_vm6, %v2962_v44, %v10409_v11  ;;  %v3038_v2 = vsel %vm2369_vm6, %v2964_v63, %v10410_v61  ;;  %v3091_v59 = vpack.c.bf16 %v3030_v20, %v3029_v24 }
 0x75f   :  { %v3089_v0 = vpack.c.bf16 %v3069_v50, %v3065_v6  ;;  %3206 = vmatprep.subr.bf16.mxu1 %v3092_v55  ;;  %v2966_v56 = vpop.permute.xlu0 %2965  ;;  %v3090_v31 = vpack.c.bf16 %v3038_v2, %v3037_v53 }
 0x760   :  { %3207 = vmatpush1.bf16.msra.mxu1 %v3091_v59  ;;  %v3047_v27 = vsel %vm2369_vm6, %v3014_v45, %v2966_v56 }
 0x761   :  { %3133 = vmatprep.subr.bf16.mxu0 %v3090_v31  ;;  %v3073_v63 = vmul.f32 %v12192_v7, %v3047_v27 }
 0x762   :  { %3134 = vmatpush1.bf16.msra.mxu0 %v3089_v0  ;;  %v2968_v49 = vpop.permute.xlu1 %2967 }
 0x763   :  { %v10413_v26 = vpop.permute.xlu0 %10412 }
 0x764   :  { %v10414_v12 = vunpack.i.l.bf16 %v10413_v26  ;;  %v10415_v42 = vunpack.i.h.bf16 %v10413_v26 }
 0x766   :  { %v10418_v54 = vpop.permute.xlu1 %10417  ;;  %v3023_v13 = vsel %vm2369_vm6, %v10414_v12, %v3014_v45 }
 0x767   :  { %v3016_v44 = vpop.permute.xlu0 %3015  ;;  %v10420_v11 = vunpack.i.h.bf16 %v10418_v54  ;;  %v10419_v57 = vunpack.i.l.bf16 %v10418_v54 }
 0x768   :  { %v3024_v61 = vsel %vm2369_vm6, %v10415_v42, %v3016_v44  ;;  %v3048_v6 = vsel %vm2369_vm6, %v3016_v44, %v2968_v49 }
 0x769   :  { %v3077_v1 = vmul.f32 %v12192_v7, %v3048_v6  ;;  %v3032_v50 = vsel %vm2369_vm6, %v10420_v11, %v10415_v42  ;;  %v3031_v20 = vsel %vm2369_vm6, %v10419_v57, %v10414_v12  ;;  %v3096_v24 = vpack.c.bf16 %v3024_v61, %v3023_v13  ;;  %v10699_v7 = vld [vmem:[%s15632_s9 + $0x20] sm:$0xff]   ;;  %v16012_v12 = vld [vmem:[#allocation9_spill] sm:$0xff] }
 0x76a   :  { %v3039_v55 = vsel %vm2369_vm6, %v2966_v56, %v10419_v57  ;;  %v3040_v53 = vsel %vm2369_vm6, %v2968_v49, %v10420_v11  ;;  %v3095_v2 = vpack.c.bf16 %v3032_v50, %v3031_v20  ;;  %v16009_v56 = vld [vmem:[#allocation4_spill] sm:$0xff]  ;;  %v16011_v49 = vmax.f32 %v11831_v60, 0.0  ;;  %v16015_v57 = vld [vmem:[#allocation7_spill] sm:$0xff]  ;;  %v16018_v6 = vld [vmem:[#allocation6_spill] sm:$0xff] }
 0x76b   :  { %v3093_v59 = vpack.c.bf16 %v3077_v1, %v3073_v63  ;;  %3208 = vmatprep.subr.bf16.mxu1 %v3096_v24  ;;  %v3094_v0 = vpack.c.bf16 %v3040_v53, %v3039_v55  ;;  %v16010_v31 = vmax.f32 %v16009_v56, 0.0  ;;  %v16013_v27 = vmax.f32 %v16012_v12, 0.0  ;;  %v16021_v50 = vld [vmem:[#allocation10_spill] sm:$0xff] }
 0x76c   :  { %3209 = vmatpush1.bf16.msra.mxu1 %v3095_v2  ;;  %v16014_v42 = vmax.f32 %v11854_v30, 0.0  ;;  %v16016_v63 = vmax.f32 %v16015_v57, 0.0  ;;  %v16017_v61 = vmax.f32 %v11833_v9, 0.0  ;;  %v16019_v13 = vmax.f32 %v16018_v6, 0.0 }
 0x76d   :  { %3135 = vmatprep.subr.bf16.mxu0 %v3094_v0  ;;  %3380 = vmatprep.subr.bf16.mxu1 %v12358_v41  ;;  %v10700_v41 = vld [vmem:[%s15632_s9 + $0x28] sm:$0xff]   ;;  %v2166_v26 = vadd.f32 %v16011_v49, %v16010_v31  ;;  %v16020_v1 = vmax.f32 %v11839_v17, 0.0  ;;  %v16022_v20 = vmax.f32 %v16021_v50, 0.0  ;;  %v16023_v24 = vmax.f32 %v11864_v34, 0.0 }
 0x76e   :  { %3136 = vmatpush1.bf16.msra.mxu0 %v3093_v59  ;;  %v2164_v54 = vadd.f32 %v16014_v42, %v16013_v27  ;;  %v16024_v59 = vld [vmem:[#allocation8_spill] sm:$0xff] }
 0x76f   :  { %3307 = vmatprep.subr.bf16.mxu0 %v12362_v25  ;;  %9455 = vmatmul.mubr.msk.bf16.vlgmr.msra.gmra.mrb[96].mxu1 %vm602_vm3, %v10699_v7  ;;  %v10703_v25 = vld [vmem:[%s15634_s8 + $0x20] sm:$0xff]   ;;  %v2167_v60 = vadd.f32 %v16020_v1, %v16019_v13  ;;  %v2170_v30 = vadd.f32 %v16023_v24, %v16022_v20  ;;  %v16025_v0 = vmax.f32 %v16024_v59, 0.0  ;;  %v16037_v13 = vld [vmem:[#allocation48_spill] sm:$0xff]  ;;  %v16039_v24 = vld [vmem:[#allocation13_spill] sm:$0xff] }
 0x770   :  { %3381 = vmatpush1.bf16.msra.mxu1 %v12355_v5  ;;  %3244 = vmatprep.mubr.bf16.mxu1 %v15935_v52  ;;  %v10701_v5 = vld [vmem:[%s15632_s9 + $0x30] sm:$0xff]  }
 0x771   :  { %9451 = vmatmul.mubr.msk.bf16.vlgmr.msra.gmra.mrb[96].mxu0 %vm602_vm3, %v10699_v7  ;;  %3382 = vmatprep.subr.bf16.mxu1 %v12373_v51  ;;  %v10705_v51 = vld [vmem:[%s15634_s8 + $0x30] sm:$0xff]   ;;  %v16026_v7 = vmax.f32 %v11856_v29, 0.0 }
 0x772   :  { %3308 = vmatpush1.bf16.msra.mxu0 %v12360_v3  ;;  %3171 = vmatprep.mubr.bf16.mxu0 %v15935_v52  ;;  %v10702_v3 = vld [vmem:[%s15632_s9 + $0x38] sm:$0xff]  }
 0x773   :  { %3309 = vmatprep.subr.bf16.mxu0 %v12377_v38  ;;  %v16003_v38 = vld [vmem:[#allocation5_spill] sm:$0xff] }
 0x774   :  { %3383 = vmatpush1.bf16.msra.mxu1 %v12370_v48  ;;  %v10704_v48 = vld [vmem:[%s15634_s8 + $0x28] sm:$0xff]  }
 0x775   :  { %3384 = vmatprep.subr.bf16.mxu1 %v12385_v19  ;;  %v16005_v19 = vmax.f32 %v11835_v58, 0.0 }
 0x776   :  { %3310 = vmatpush1.bf16.msra.mxu0 %v12375_v32  ;;  %v10706_v32 = vld [vmem:[%s15634_s8 + $0x38] sm:$0xff]  }
 0x777   :  { %3311 = vmatprep.subr.bf16.mxu0 %v12389_v15  ;;  %9456 = vmatmul.mubr.msk.bf16.gmra.mrb[100].mxu1 %vm602_vm3, %v10700_v41  ;;  %v3470_v44 = vpop.permute.xlu1 %3469 }
 0x778   :  { %3385 = vmatpush1.bf16.msra.mxu1 %v12382_v23  ;;  %3254 = vmatprep.mubr.bf16.mxu1 %v15935_v52  ;;  %v16004_v23 = vmax.f32 %v16003_v38, 0.0  ;;  %v3465_v15 = vpop.permute.xlu0 %3464 }
 0x779   :  { %9452 = vmatmul.mubr.msk.bf16.gmra.mrb[100].mxu0 %vm602_vm3, %v10700_v41  ;;  %3386 = vmatprep.subr.bf16.mxu1 %v12397_v40  ;;  %v16006_v40 = vld [vmem:[#allocation3_spill] sm:$0xff]  ;;  %v2168_v41 = vadd.f32 %v16026_v7, %v16025_v0  ;;  %v16045_v0 = vld [vmem:[#allocation53_spill] sm:$0xff] }
 0x77a   :  { %3312 = vmatpush1.bf16.msra.mxu0 %v12387_v43  ;;  %3181 = vmatprep.mubr.bf16.mxu0 %v15935_v52  ;;  %v2165_v43 = vadd.f32 %v16005_v19, %v16004_v23  ;;  %v16031_v23 = vld [vmem:[#allocation11_spill] sm:$0xff]  ;;  %v16046_v7 = vmax.f32 %v16045_v0, 0.0  ;;  %v16056_v0 = vld [vmem:[#allocation16_spill] sm:$0xff] }
 0x77b   :  { %3313 = vmatprep.subr.bf16.mxu0 %v12401_v21  ;;  %v16008_v21 = vmax.f32 %v11829_v33, 0.0  ;;  %v2169_v33 = vadd.f32 %v16017_v61, %v16016_v63  ;;  %v16032_v19 = vmax.f32 %v16031_v23, 0.0  ;;  %v16035_v61 = vld [vmem:[#allocation12_spill] sm:$0xff] }
 0x77c   :  { %3387 = vmatpush1.bf16.msra.mxu1 %v12394_v36  ;;  %v16036_v6 = vmax.f32 %v16035_v61, 0.0 }
 0x77e   :  { %3314 = vmatpush1.bf16.msra.mxu0 %v12399_v10  ;;  %v16007_v10 = vmax.f32 %v16006_v40, 0.0 }
 0x77f   :  { %9457 = vmatmul.mubr.msk.bf16.gmra.mrb[104].mxu1 %vm602_vm3, %v10701_v5 }
 0x780   :  { %3264 = vmatprep.mubr.bf16.mxu1 %v15935_v52  ;;  %v2163_v45 = vadd.f32 %v16008_v21, %v16007_v10 }
 0x781   :  { %9453 = vmatmul.mubr.msk.bf16.gmra.mrb[104].mxu0 %vm602_vm3, %v10701_v5 }
 0x782   :  { %3191 = vmatprep.mubr.bf16.mxu0 %v15935_v52 }
 0x787   :  { %9458 = vmatmul.mubr.msk.bf16.gmra.mrb[108].mxu1 %vm602_vm3, %v10702_v3 }
 0x788   :  { %3412 = vmatprep.mubr.bf16.mxu1 %v15935_v52 }
 0x789   :  { %9454 = vmatmul.mubr.msk.bf16.gmra.mrb[108].mxu0 %vm602_vm3, %v10702_v3 }
 0x78a   :  { %3339 = vmatprep.mubr.bf16.mxu0 %v15935_v52 }
 0x78f   :  { %9467 = vmatmul.mubr.msk.bf16.vlgmr.msra.gmra.mrb[96].mxu1 %vm602_vm3, %v10703_v25 }
 0x790   :  { %3422 = vmatprep.mubr.bf16.mxu1 %v15935_v52 }
 0x791   :  { %9463 = vmatmul.mubr.msk.bf16.vlgmr.msra.gmra.mrb[96].mxu0 %vm602_vm3, %v10703_v25 }
 0x792   :  { %3349 = vmatprep.mubr.bf16.mxu0 %v15935_v52 }
 0x797   :  { %9468 = vmatmul.mubr.msk.bf16.gmra.mrb[100].mxu1 %vm602_vm3, %v10704_v48 }
 0x798   :  { %3432 = vmatprep.mubr.bf16.mxu1 %v15935_v52 }
 0x799   :  { %9464 = vmatmul.mubr.msk.bf16.gmra.mrb[100].mxu0 %vm602_vm3, %v10704_v48  ;;  %v16027_v48 = vld [vmem:[#allocation14_spill] sm:$0xff] }
 0x79a   :  { %3359 = vmatprep.mubr.bf16.mxu0 %v15935_v52 }
 0x79f   :  { %9469 = vmatmul.mubr.msk.bf16.gmra.mrb[104].mxu1 %vm602_vm3, %v10705_v51 }
 0x7a0   :  { %3442 = vmatprep.mubr.bf16.mxu1 %v15935_v52 }
 0x7a1   :  { %9465 = vmatmul.mubr.msk.bf16.gmra.mrb[104].mxu0 %vm602_vm3, %v10705_v51  ;;  %v16028_v51 = vmax.f32 %v16027_v48, 0.0 }
 0x7a2   :  { %3369 = vmatprep.mubr.bf16.mxu0 %v15935_v52 }
 0x7a7   :  { %9470 = vmatmul.mubr.msk.bf16.gmra.mrb[108].mxu1 %vm602_vm3, %v10706_v32 }
 0x7a8   :  { %3990 = vmatprep.mubr.bf16.mxu1 %v15935_v52 }
 0x7a9   :  { %9466 = vmatmul.mubr.msk.bf16.gmra.mrb[108].mxu0 %vm602_vm3, %v10706_v32  ;;  %v16029_v32 = vld [vmem:[#allocation50_spill] sm:$0xff] }
 0x7aa   :  { %3917 = vmatprep.mubr.bf16.mxu0 %v15935_v52  ;;  %v16030_v38 = vmax.f32 %v16029_v32, 0.0 }
 0x7ac   :  { %v2173_v34 = vadd.f32 %v16030_v38, %v16028_v51  ;;  %v16047_v38 = vld [vmem:[#allocation15_spill] sm:$0xff] }
 0x7ad   :  { %v16048_v23 = vmax.f32 %v16047_v38, 0.0 }
 0x862   :  { %v3414_v36 = vpop.f32.mrb[96].mxu1 }
 0x863   :  { %v12597_v58 = vadd.f32 %v3465_v15, %v3414_v36  ;;  %v3416_v11 = vpop.f32.mrb[97].mxu1  ;;  %v16033_v36 = vld [vmem:[#allocation47_spill] sm:$0xff] }
 0x864   :  { %v3341_v55 = vpop.f32.mrb[96].mxu0  ;;  %v3505_v53 = vadd.f32 %v3465_v15, %v3416_v11  ;;  %v3418_v2 = vpop.f32.mrb[98].mxu1  ;;  %v16034_v40 = vmax.f32 %v16033_v36, 0.0 }
 0x865   :  { %v3536_v9 = vmax.f32 %v12597_v58, 0.0  ;;  %v3502_v5 = vadd.f32 %v3465_v15, %v3341_v55  ;;  %v3343_v3 = vpop.f32.mrb[97].mxu0  ;;  %v3508_v25 = vadd.f32 %v3470_v44, %v3418_v2  ;;  %v3420_v17 = vpop.f32.mrb[99].mxu1  ;;  %v16040_v55 = vmax.f32 %v16039_v24, 0.0 }
 0x866   :  { %v12624_v10 = vadd.f32 %v16034_v40, %v16032_v19  ;;  %v3537_v21 = vmax.f32 %v3505_v53, 0.0  ;;  %v12626_v29 = vadd.f32 %v3465_v15, %v3343_v3  ;;  %v3345_v56 = vpop.f32.mrb[98].mxu0  ;;  %v12630_v27 = vadd.f32 %v3470_v44, %v3420_v17  ;;  %v3475_v17 = vpop.permute.xlu0 %3474  ;;  %v16049_v19 = vld [vmem:[#allocation51_spill] sm:$0xff] }
 0x867   :  { %v12628_v31 = vadd.f32 %v3536_v9, %v2165_v43  ;;  %v3534_v49 = vmax.f32 %v3502_v5, 0.0  ;;  %v3540_v12 = vmax.f32 %v3508_v25, 0.0  ;;  %v3347_v42 = vpop.f32.mrb[99].mxu0  ;;  %v3506_v63 = vadd.f32 %v3470_v44, %v3345_v56  ;;  %v16053_v56 = vld [vmem:[#allocation54_spill] sm:$0xff]  ;;  %v3480_v24 = vpop.permute.xlu1 %3479 }
 0x868   :  { %v12632_v58 = vadd.f32 %v3537_v21, %v2166_v26  ;;  %v3601_v11 = vadd.f32 %v3537_v21, %v11851_v22  ;;  %v3535_v57 = vmax.f32 %v12626_v29, 0.0  ;;  %v16038_v15 = vmax.f32 %v16037_v13, 0.0  ;;  %v16041_v26 = vld [vmem:[#allocation49_spill] sm:$0xff]  ;;  %v16051_v21 = vld [vmem:[#allocation18_spill] sm:$0xff] }
 0x869   :  { %v12640_v50 = vadd.f32 %v3534_v49, %v2163_v45  ;;  %v3598_v43 = vadd.f32 %v3534_v49, %v11849_v46  ;;  %v12643_v20 = vadd.f32 %v3540_v12, %v2169_v33  ;;  %v16042_v53 = vmax.f32 %v16041_v26, 0.0  ;;  %v16043_v22 = vld [vmem:[#allocation17_spill] sm:$0xff] }
 0x86a   :  { %v2174_v1 = vadd.f32 %v16038_v15, %v16036_v6  ;;  %v16044_v59 = vmax.f32 %v16043_v22, 0.0  ;;  %v12653_v3 = vmax.f32 %v3601_v11, 0.0  ;;  %v12655_v25 = vadd.f32 %v3535_v57, %v2164_v54  ;;  %v3424_v45 = vpop.f32.mrb[100].mxu1 }
 0x86b   :  { %v2177_v2 = vadd.f32 %v16042_v53, %v16040_v55  ;;  %v12657_v48 = vmax.f32 %v3598_v43, 0.0  ;;  %v3538_v46 = vmax.f32 %v3506_v63, 0.0  ;;  %v3541_v33 = vmax.f32 %v12630_v27, 0.0  ;;  %v3426_v32 = vpop.f32.mrb[101].mxu1 }
 0x86c   :  { %v2172_v5 = vadd.f32 %v16046_v7, %v16044_v59  ;;  %v3507_v51 = vadd.f32 %v3470_v44, %v3347_v42  ;;  %v16050_v36 = vmax.f32 %v16049_v19, 0.0  ;;  %v16052_v29 = vmax.f32 %v16051_v21, 0.0  ;;  %v3351_v61 = vpop.f32.mrb[100].mxu0  ;;  %3756 = vrot.lane.b32.xlu1 %v12653_v3, %s10776_s25  ;;  %v3428_v44 = vpop.f32.mrb[102].mxu1 }
 0x86d   :  { %v16054_v49 = vmax.f32 %v16053_v56, 0.0  ;;  %v12670_v11 = vadd.f32 %v3475_v17, %v3424_v45  ;;  %v3513_v6 = vadd.f32 %v3475_v17, %v3426_v32  ;;  %v3604_v27 = vadd.f32 %v3540_v12, %v11877_v18  ;;  %3708 = vrot.lane.b32.xlu0 %v12657_v48, %s10776_s25  ;;  %v3353_v15 = vpop.f32.mrb[101].mxu0  ;;  %v3430_v43 = vpop.f32.mrb[103].mxu1  ;;  %v16058_v45 = vld [vmem:[#allocation52_spill] sm:$0xff] }
 0x86e   :  { %v2175_v40 = vadd.f32 %v16050_v36, %v16048_v23  ;;  %v12675_v42 = vadd.f32 %v3538_v46, %v2167_v60  ;;  %v3602_v63 = vadd.f32 %v3538_v46, %v11873_v16  ;;  %v12678_v13 = vadd.f32 %v3541_v33, %v2170_v30  ;;  %v3355_v59 = vpop.f32.mrb[102].mxu0  ;;  %v16063_v36 = vld [vmem:[#allocation22_spill] sm:$0xff] }
 0x86f   :  { %v12668_v54 = vadd.f32 %v16054_v49, %v16052_v29  ;;  %v3539_v55 = vmax.f32 %v3507_v51, 0.0  ;;  %v15774_v26 = vmax.f32 %v12670_v11, 0.0  ;;  %v3510_v53 = vadd.f32 %v3475_v17, %v3351_v61  ;;  %v3357_v30 = vpop.f32.mrb[103].mxu0 }
 0x870   :  { %16055 = vst [vmem:[#allocation5_spill] sm:$0xff] %v12678_v13  ;;  %v3545_v22 = vmax.f32 %v3513_v6, 0.0  ;;  %v3600_v18 = vadd.f32 %v3536_v9, %v11884_v39  ;;  %v12684_v60 = vmax.f32 %v3602_v63, 0.0  ;;  %v12686_v12 = vadd.f32 %v3480_v24, %v3428_v44  ;;  %v16067_v6 = vld [vmem:[#allocation19_spill] sm:$0xff] }
 0x871   :  { %v12688_v16 = vadd.f32 %v3475_v17, %v3353_v15  ;;  %v16057_v7 = vmax.f32 %v16056_v0, 0.0  ;;  %v16059_v46 = vmax.f32 %v16058_v45, 0.0  ;;  %v12694_v51 = vadd.f32 %v3539_v55, %v2168_v41  ;;  %v16065_v41 = vld [vmem:[#allocation59_spill] sm:$0xff]  ;;  %v16073_v0 = vld [vmem:[#allocation20_spill] sm:$0xff] }
 0x872   :  { %v3603_v38 = vadd.f32 %v3539_v55, %v11906_v37  ;;  %v12699_v23 = vadd.f32 %v15774_v26, %v2173_v34  ;;  %v12701_v39 = vmax.f32 %v3604_v27, 0.0  ;;  %v3542_v9 = vmax.f32 %v3510_v53, 0.0  ;;  %3710 = vrot.lane.b32.xlu1 %v12684_v60, %s10776_s25  ;;  %v3434_v61 = vpop.f32.mrb[104].mxu1 }
 0x873   :  { %v2176_v32 = vadd.f32 %v16059_v46, %v16057_v7  ;;  %16060 = vst [vmem:[#allocation3_spill] sm:$0xff] %v12694_v51  ;;  %v12703_v19 = vadd.f32 %v3545_v22, %v2174_v1  ;;  %v3548_v17 = vmax.f32 %v12686_v12, 0.0  ;;  %v16064_v21 = vmax.f32 %v16063_v36, 0.0  ;;  %v16069_v1 = vld [vmem:[#allocation55_spill] sm:$0xff]  ;;  %v3436_v12 = vpop.f32.mrb[105].mxu1 }
 0x874   :  { %16061 = vst [vmem:[#allocation4_spill] sm:$0xff] %v12699_v23  ;;  %v16066_v29 = vmax.f32 %v16065_v41, 0.0  ;;  %v3599_v37 = vadd.f32 %v3535_v57, %v11914_v62  ;;  %v15773_v34 = vmax.f32 %v12688_v16, 0.0  ;;  %v3514_v49 = vadd.f32 %v3480_v24, %v3355_v59  ;;  %v16075_v62 = vld [vmem:[#allocation57_spill] sm:$0xff] }
 0x875   :  { %16062 = vst [vmem:[#allocation9_spill] sm:$0xff] %v12703_v19  ;;  %v16068_v44 = vmax.f32 %v16067_v6, 0.0  ;;  %v16070_v27 = vmax.f32 %v16069_v1, 0.0  ;;  %v12718_v15 = vmax.f32 %v3600_v18, 0.0  ;;  %v12721_v55 = vadd.f32 %v3542_v9, %v12624_v10  ;;  %v3361_v18 = vpop.f32.mrb[104].mxu0  ;;  %v16132_v19 = vld [vmem:[#allocation29_spill] sm:$0xff] }
 0x876   :  { %v2181_v56 = vadd.f32 %v16066_v29, %v16064_v21  ;;  %v12723_v53 = vadd.f32 %v3548_v17, %v2177_v2  ;;  %v16074_v7 = vmax.f32 %v16073_v0, 0.0  ;;  %v16076_v57 = vmax.f32 %v16075_v62, 0.0  ;;  %v3438_v21 = vpop.f32.mrb[106].mxu1  ;;  %v3363_v6 = vpop.f32.mrb[105].mxu0 }
 0x877   :  { %v2179_v63 = vadd.f32 %v16070_v27, %v16068_v44  ;;  %16071 = vst [vmem:[#allocation7_spill] sm:$0xff] %v12721_v55  ;;  %v12729_v59 = vmax.f32 %v3603_v38, 0.0  ;;  %v12733_v46 = vadd.f32 %v15773_v34, %v2172_v5  ;;  %v3546_v36 = vmax.f32 %v3514_v49, 0.0  ;;  %v3440_v44 = vpop.f32.mrb[107].mxu1  ;;  %v16078_v38 = vld [vmem:[#allocation21_spill] sm:$0xff]  ;;  %v16080_v27 = vld [vmem:[#allocation56_spill] sm:$0xff] }
 0x878   :  { %16072 = vst [vmem:[#allocation6_spill] sm:$0xff] %v12723_v53  ;;  %v2182_v45 = vadd.f32 %v16076_v57, %v16074_v7  ;;  %v3605_v10 = vadd.f32 %v3541_v33, %v11916_v35  ;;  %v12736_v41 = vadd.f32 %v3480_v24, %v3430_v43  ;;  %v12738_v2 = vadd.f32 %v3480_v24, %v3357_v30  ;;  %v3485_v7 = vpop.permute.xlu0 %3484  ;;  %v3365_v33 = vpop.f32.mrb[106].mxu0 }
 0x879   :  { %16077 = vst [vmem:[#allocation10_spill] sm:$0xff] %v12733_v46  ;;  %v10421_v29 = vpack.i.bf16 %v12701_v39, %v12718_v15  ;;  %v16079_v1 = vmax.f32 %v16078_v38, 0.0  ;;  %v16081_v0 = vmax.f32 %v16080_v27, 0.0  ;;  %v12746_v49 = vmax.f32 %v3599_v37, 0.0  ;;  %v3490_v43 = vpop.permute.xlu1 %3489  ;;  %v16083_v27 = vld [vmem:[#allocation25_spill] sm:$0xff]  ;;  %v16107_v46 = vld [vmem:[#allocation58_spill] sm:$0xff] }
 0x87a   :  { %v3609_v62 = vadd.f32 %v3545_v22, %v11957_v28  ;;  %v12749_v35 = vadd.f32 %v3546_v36, %v2175_v40  ;;  %v15775_v24 = vmax.f32 %v12736_v41, 0.0  ;;  %v3547_v30 = vmax.f32 %v12738_v2, 0.0 }
 0x87b   :  { %v2185_v5 = vadd.f32 %v16081_v0, %v16079_v1  ;;  %10422 = vrot.lane.b32.xlu0 %v10421_v29, %s10776_s25  ;;  %v12754_v57 = vadd.f32 %v3485_v7, %v3434_v61  ;;  %v12756_v38 = vadd.f32 %v3485_v7, %v3361_v18  ;;  %v3367_v1 = vpop.f32.mrb[107].mxu0  ;;  %v16084_v37 = vmax.f32 %v16083_v27, 0.0  ;;  %v16085_v0 = vld [vmem:[#allocation64_spill] sm:$0xff] }
 0x87c   :  { %16082 = vst [vmem:[#allocation8_spill] sm:$0xff] %v12749_v35  ;;  %v16086_v34 = vmax.f32 %v16085_v0, 0.0  ;;  %v12762_v40 = vadd.f32 %v3485_v7, %v3436_v12  ;;  %v12764_v22 = vadd.f32 %v3490_v43, %v3438_v21  ;;  %v10426_v26 = vpack.i.bf16 %v12729_v59, %v12746_v49 }
 0x87d   :  { %v12768_v2 = vmax.f32 %v3605_v10, 0.0  ;;  %v3606_v61 = vadd.f32 %v3542_v9, %v11939_v14  ;;  %v12774_v18 = vadd.f32 %v15775_v24, %v12668_v54  ;;  %v12776_v29 = vadd.f32 %v3547_v30, %v2176_v32  ;;  %v3444_v10 = vpop.f32.mrb[108].mxu1  ;;  %v16091_v9 = vld [vmem:[#allocation60_spill] sm:$0xff] }
 0x87e   :  { %v2180_v28 = vadd.f32 %v16086_v34, %v16084_v37  ;;  %v15776_v34 = vmax.f32 %v12754_v57, 0.0  ;;  %v15777_v12 = vmax.f32 %v12756_v38, 0.0  ;;  %10427 = vrot.lane.b32.xlu1 %v10426_v26, %s10776_s25  ;;  %v16089_v37 = vld [vmem:[#allocation23_spill] sm:$0xff]  ;;  %v16092_v0 = vmax.f32 %v16091_v9, 0.0  ;;  %v3446_v21 = vpop.f32.mrb[109].mxu1 }
 0x87f   :  { %16087 = vst [vmem:[#allocation14_spill] sm:$0xff] %v12774_v18  ;;  %16088 = vst [vmem:[#allocation50_spill] sm:$0xff] %v12776_v29  ;;  %v16090_v14 = vmax.f32 %v16089_v37, 0.0  ;;  %v12787_v54 = vmax.f32 %v3609_v62, 0.0  ;;  %3758 = vrot.lane.b32.xlu0 %v12768_v2, %s10776_s25  ;;  %v12791_v32 = vadd.f32 %v3485_v7, %v3363_v6  ;;  %v12793_v24 = vadd.f32 %v3490_v43, %v3365_v33  ;;  %v3448_v9 = vpop.f32.mrb[110].mxu1  ;;  %v16097_v7 = vld [vmem:[#allocation65_spill] sm:$0xff] }
 0x880   :  { %v3612_v27 = vadd.f32 %v3548_v17, %v11969_v8  ;;  %v3610_v26 = vadd.f32 %v3546_v36, %v11983_v4  ;;  %v12799_v37 = vadd.f32 %v15776_v34, %v2181_v56  ;;  %v12803_v62 = vadd.f32 %v15777_v12, %v2179_v63  ;;  %v3450_v63 = vpop.f32.mrb[111].mxu1  ;;  %v16103_v34 = vld [vmem:[#allocation24_spill] sm:$0xff] }
 0x881   :  { %v2183_v35 = vadd.f32 %v16092_v0, %v16090_v14  ;;  %v3371_v14 = vpop.f32.mrb[108].mxu0  ;;  %v16095_v0 = vld [vmem:[#allocation26_spill] sm:$0xff]  ;;  %v16098_v33 = vmax.f32 %v16097_v7, 0.0  ;;  %v12809_v18 = vmax.f32 %v3606_v61, 0.0  ;;  %v16099_v8 = vmax.f32 %v12762_v40, 0.0 }
 0x882   :  { %16093 = vst [vmem:[#allocation11_spill] sm:$0xff] %v12799_v37  ;;  %16094 = vst [vmem:[#allocation47_spill] sm:$0xff] %v12803_v62  ;;  %v16096_v6 = vmax.f32 %v16095_v0, 0.0  ;;  %v16101_v17 = vmax.f32 %v12764_v22, 0.0  ;;  %v3373_v36 = vpop.f32.mrb[109].mxu0  ;;  %v16104_v12 = vmax.f32 %v16103_v34, 0.0  ;;  %3760 = vrot.lane.b32.xlu1 %v12787_v54, %s10776_s25 }
 0x883   :  { %v12813_v4 = vadd.f32 %v16099_v8, %v2182_v45  ;;  %v16105_v62 = vld [vmem:[#allocation62_spill] sm:$0xff]  ;;  %3712 = vrot.lane.b32.xlu0 %v12809_v18, %s10776_s25  ;;  %v3495_v45 = vpop.permute.xlu0 %3494  ;;  %v12844_v7 = vmax.f32 %v3612_v27, 0.0 }
 0x884   :  { %v2186_v29 = vadd.f32 %v16098_v33, %v16096_v6  ;;  %v12817_v56 = vadd.f32 %v16101_v17, %v2185_v5  ;;  %v16106_v37 = vmax.f32 %v16105_v62, 0.0  ;;  %v16108_v6 = vmax.f32 %v12670_v11, 0.0  ;;  %v3375_v5 = vpop.f32.mrb[110].mxu0  ;;  %v16109_v33 = vld [vmem:[#allocation31_spill] sm:$0xff]  ;;  %v16111_v17 = vld [vmem:[#allocation72_spill] sm:$0xff] }
 0x885   :  { %16100 = vst [vmem:[#allocation12_spill] sm:$0xff] %v12813_v4  ;;  %v16110_v8 = vmax.f32 %v16109_v33, 0.0  ;;  %v16113_v4 = vld [vmem:[#allocation27_spill] sm:$0xff]  ;;  %v12838_v11 = vadd.f32 %v3490_v43, %v3440_v44  ;;  %v12846_v33 = vmax.f32 %v3610_v26, 0.0  ;;  %v3500_v44 = vpop.permute.xlu1 %3499  ;;  %v16121_v26 = vld [vmem:[#allocation61_spill] sm:$0xff]  ;;  %v12865_v55 = vadd.f32 %v3495_v45, %v3446_v21 }
 0x886   :  { %16102 = vst [vmem:[#allocation48_spill] sm:$0xff] %v12817_v56  ;;  %v2184_v0 = vadd.f32 %v16106_v37, %v16104_v12  ;;  %v3608_v61 = vadd.f32 %v16108_v6, %v16107_v46  ;;  %v16112_v56 = vmax.f32 %v16111_v17, 0.0  ;;  %v16114_v62 = vmax.f32 %v16113_v4, 0.0  ;;  %v16115_v12 = vld [vmem:[#allocation30_spill] sm:$0xff]  ;;  %v3377_v6 = vpop.f32.mrb[111].mxu0 }
 0x887   :  { %v16116_v37 = vmax.f32 %v16115_v12, 0.0  ;;  %v12840_v46 = vadd.f32 %v3490_v43, %v3367_v1  ;;  %v16119_v4 = vmax.f32 %v12793_v24, 0.0  ;;  %v3557_v43 = vmax.f32 %v12838_v11, 0.0  ;;  %3714 = vrot.lane.b32.xlu1 %v12846_v33, %s10776_s25 }
 0x888   :  { %v2189_v34 = vadd.f32 %v16112_v56, %v16110_v8  ;;  %v16117_v56 = vmax.f32 %v12791_v32, 0.0  ;;  %v12860_v12 = vadd.f32 %v3495_v45, %v3371_v14  ;;  %v12862_v27 = vmax.f32 %v3608_v61, 0.0 }
 0x889   :  { %v2187_v53 = vadd.f32 %v16116_v37, %v16114_v62  ;;  %v12854_v17 = vadd.f32 %v16119_v4, %v2183_v35  ;;  %v3555_v1 = vmax.f32 %v12840_v46, 0.0  ;;  %v12858_v62 = vadd.f32 %v3495_v45, %v3444_v10  ;;  %v16122_v35 = vld [vmem:[#allocation63_spill] sm:$0xff]  ;;  %v16124_v46 = vld [vmem:[#allocation66_spill] sm:$0xff] }
 0x88a   :  { %v12850_v8 = vadd.f32 %v16117_v56, %v2180_v28  ;;  %v3611_v37 = vadd.f32 %v3547_v30, %v16121_v26  ;;  %v12867_v28 = vadd.f32 %v3500_v44, %v3448_v9  ;;  %v16123_v11 = vmax.f32 %v12688_v16, 0.0  ;;  %v16130_v16 = vld [vmem:[#allocation32_spill] sm:$0xff] }
 0x88b   :  { %16120 = vst [vmem:[#allocation49_spill] sm:$0xff] %v12854_v17  ;;  %v16125_v10 = vmax.f32 %v12736_v41, 0.0  ;;  %v12877_v4 = vadd.f32 %v3557_v43, %v2186_v29  ;;  %v12879_v61 = vadd.f32 %v3555_v1, %v2184_v0  ;;  %v3560_v30 = vmax.f32 %v12858_v62, 0.0  ;;  %v16128_v17 = vld [vmem:[#allocation28_spill] sm:$0xff] }
 0x88c   :  { %16118 = vst [vmem:[#allocation13_spill] sm:$0xff] %v12850_v8  ;;  %v3607_v56 = vadd.f32 %v16123_v11, %v16122_v35  ;;  %v3558_v21 = vmax.f32 %v12860_v12, 0.0  ;;  %v3561_v9 = vmax.f32 %v12865_v55, 0.0  ;;  %v3564_v26 = vmax.f32 %v12867_v28, 0.0  ;;  %v16136_v12 = vld [vmem:[#allocation36_spill] sm:$0xff] }
 0x88d   :  { %v3613_v14 = vadd.f32 %v16125_v10, %v16124_v46  ;;  %16126 = vst [vmem:[#allocation17_spill] sm:$0xff] %v12877_v4  ;;  %16127 = vst [vmem:[#allocation53_spill] sm:$0xff] %v12879_v61  ;;  %v16129_v8 = vmax.f32 %v16128_v17, 0.0  ;;  %v16131_v35 = vmax.f32 %v16130_v16, 0.0  ;;  %v16133_v41 = vmax.f32 %v16132_v19, 0.0  ;;  %v16134_v46 = vld [vmem:[#allocation69_spill] sm:$0xff] }
 0x88e   :  { %v16135_v29 = vmax.f32 %v16134_v46, 0.0  ;;  %v10431_v0 = vpack.i.bf16 %v12844_v7, %v12862_v27  ;;  %v12895_v62 = vadd.f32 %v3495_v45, %v3373_v36  ;;  %v16137_v61 = vmax.f32 %v16136_v12, 0.0  ;;  %v16138_v55 = vld [vmem:[#allocation76_spill] sm:$0xff]  ;;  %v16142_v19 = vld [vmem:[#allocation33_spill] sm:$0xff]  ;;  %v16148_v36 = vld [vmem:[#allocation39_spill] sm:$0xff] }
 0x88f   :  { %v2190_v11 = vadd.f32 %v16131_v35, %v16129_v8  ;;  %v16139_v4 = vmax.f32 %v16138_v55, 0.0  ;;  %v12901_v23 = vmax.f32 %v3611_v37, 0.0  ;;  %v12903_v17 = vadd.f32 %v3560_v30, %v2189_v34  ;;  %v16144_v35 = vld [vmem:[#allocation73_spill] sm:$0xff] }
 0x890   :  { %v2193_v10 = vadd.f32 %v16135_v29, %v16133_v41  ;;  %v12905_v8 = vadd.f32 %v3558_v21, %v2187_v53  ;;  %v16143_v16 = vmax.f32 %v16142_v19, 0.0  ;;  %v16145_v41 = vmax.f32 %v16144_v35, 0.0  ;;  %v16146_v29 = vld [vmem:[#allocation37_spill] sm:$0xff]  ;;  %10432 = vrot.lane.b32.xlu0 %v10431_v0, %s10776_s25  ;;  %v16156_v35 = vld [vmem:[#allocation68_spill] sm:$0xff] }
 0x891   :  { %v2188_v28 = vadd.f32 %v16139_v4, %v16137_v61  ;;  %16140 = vst [vmem:[#allocation15_spill] sm:$0xff] %v12903_v17  ;;  %v16147_v51 = vmax.f32 %v16146_v29, 0.0  ;;  %v16149_v45 = vmax.f32 %v16148_v36, 0.0  ;;  %v12915_v12 = vadd.f32 %v3561_v9, %v2190_v11  ;;  %v16154_v61 = vld [vmem:[#allocation67_spill] sm:$0xff]  ;;  %v16158_v29 = vld [vmem:[#allocation70_spill] sm:$0xff] }
 0x892   :  { %16141 = vst [vmem:[#allocation51_spill] sm:$0xff] %v12905_v8  ;;  %v2191_v46 = vadd.f32 %v16145_v41, %v16143_v16  ;;  %v12917_v55 = vadd.f32 %v3564_v26, %v2193_v10  ;;  %v12920_v34 = vmax.f32 %v3607_v56, 0.0  ;;  %v12922_v53 = vmax.f32 %v3613_v14, 0.0 }
 0x893   :  { %v2194_v13 = vadd.f32 %v16149_v45, %v16147_v51  ;;  %16150 = vst [vmem:[#allocation18_spill] sm:$0xff] %v12915_v12  ;;  %v3559_v37 = vmax.f32 %v12895_v62, 0.0  ;;  %v3530_v4 = vadd.f32 %v3500_v44, %v3375_v5  ;;  %v16155_v19 = vmax.f32 %v12756_v38, 0.0  ;;  %v16161_v62 = vld [vmem:[#allocation34_spill] sm:$0xff] }
 0x894   :  { %16151 = vst [vmem:[#allocation54_spill] sm:$0xff] %v12917_v55  ;;  %16152 = vst [vmem:[#allocation16_spill] sm:$0xff] %v12920_v34  ;;  %v16157_v51 = vmax.f32 %v12764_v22, 0.0  ;;  %v3533_v41 = vadd.f32 %v3500_v44, %v3450_v63  ;;  %v3531_v10 = vadd.f32 %v3500_v44, %v3377_v6  ;;  %v16159_v0 = vmax.f32 %v12762_v40, 0.0  ;;  %v16163_v38 = vld [vmem:[#allocation74_spill] sm:$0xff]  ;;  %v16165_v55 = vld [vmem:[#allocation71_spill] sm:$0xff]  ;;  %3762 = vrot.lane.b32.xlu0 %v12922_v53, %s10776_s25 }
 0x895   :  { %16153 = vst [vmem:[#allocation52_spill] sm:$0xff] %v12922_v53  ;;  %v3614_v16 = vadd.f32 %v16155_v19, %v16154_v61  ;;  %v12934_v36 = vadd.f32 %v3559_v37, %v2188_v28  ;;  %v3562_v14 = vmax.f32 %v3530_v4, 0.0  ;;  %v10436_v5 = vpack.i.bf16 %v12901_v23, %v12920_v34 }
 0x896   :  { %v3620_v11 = vadd.f32 %v16157_v51, %v16156_v35  ;;  %v3617_v56 = vadd.f32 %v16159_v0, %v16158_v29  ;;  %v16162_v45 = vmax.f32 %v16161_v62, 0.0  ;;  %v16164_v61 = vmax.f32 %v16163_v38, 0.0  ;;  %v16184_v38 = vld [vmem:[#allocation41_spill] sm:$0xff] }
 0x897   :  { %16160 = vst [vmem:[#allocation22_spill] sm:$0xff] %v12934_v36  ;;  %v16166_v22 = vmax.f32 %v12754_v57, 0.0  ;;  %v3565_v6 = vmax.f32 %v3533_v41, 0.0  ;;  %v3563_v44 = vmax.f32 %v3531_v10, 0.0  ;;  %v12947_v40 = vadd.f32 %v3562_v14, %v2191_v46  ;;  %10437 = vrot.lane.b32.xlu1 %v10436_v5, %s10776_s25  ;;  %v16173_v57 = vld [vmem:[#allocation35_spill] sm:$0xff]  ;;  %v16175_v10 = vld [vmem:[#allocation38_spill] sm:$0xff] }
 0x898   :  { %v2192_v19 = vadd.f32 %v16164_v61, %v16162_v45  ;;  %v12950_v28 = vmax.f32 %v3614_v16, 0.0  ;;  %v12952_v4 = vmax.f32 %v3620_v11, 0.0  ;;  %v12958_v29 = vmax.f32 %v3617_v56, 0.0  ;;  %v16177_v16 = vld [vmem:[#allocation75_spill] sm:$0xff]  ;;  %v16179_v56 = vld [vmem:[#allocation77_spill] sm:$0xff] }
 0x899   :  { %v3616_v63 = vadd.f32 %v16166_v22, %v16165_v55  ;;  %16167 = vst [vmem:[#allocation59_spill] sm:$0xff] %v12947_v40  ;;  %v12954_v35 = vadd.f32 %v3565_v6, %v2194_v13  ;;  %v16174_v55 = vmax.f32 %v12793_v24, 0.0  ;;  %v3619_v0 = vadd.f32 %v3555_v1, %v16175_v10  ;;  %v16186_v22 = vld [vmem:[#allocation42_spill] sm:$0xff] }
 0x89a   :  { %16168 = vst [vmem:[#allocation19_spill] sm:$0xff] %v12950_v28  ;;  %16169 = vst [vmem:[#allocation55_spill] sm:$0xff] %v12952_v4  ;;  %v12956_v51 = vadd.f32 %v3563_v44, %v2192_v19  ;;  %3716 = vrot.lane.b32.xlu0 %v12950_v28, %s10776_s25  ;;  %v16178_v11 = vmax.f32 %v12791_v32, 0.0  ;;  %v3621_v5 = vadd.f32 %v3557_v43, %v16179_v56  ;;  %v16185_v19 = vld [vmem:[#allocation40_spill] sm:$0xff] }
 0x89b   :  { %16170 = vst [vmem:[#allocation20_spill] sm:$0xff] %v12954_v35  ;;  %16172 = vst [vmem:[#allocation21_spill] sm:$0xff] %v12958_v29  ;;  %v3618_v41 = vadd.f32 %v16174_v55, %v16173_v57  ;;  %v12964_v46 = vmax.f32 %v3616_v63, 0.0  ;;  %3764 = vrot.lane.b32.xlu1 %v12958_v29, %s10776_s25  ;;  %v12978_v1 = vmax.f32 %v3619_v0, 0.0  ;;  %v3622_v61 = vadd.f32 %v3558_v21, %v16184_v38  ;;  %v16187_v55 = vld [vmem:[#allocation43_spill] sm:$0xff]  ;;  %v16191_v21 = vld [vmem:[#allocation44_spill] sm:$0xff] }
 0x89c   :  { %16171 = vst [vmem:[#allocation57_spill] sm:$0xff] %v12956_v51  ;;  %v3615_v13 = vadd.f32 %v16178_v11, %v16177_v16  ;;  %v12985_v32 = vmax.f32 %v3621_v5, 0.0  ;;  %v3628_v43 = vadd.f32 %v3564_v26, %v16185_v19  ;;  %v3625_v63 = vadd.f32 %v3561_v9, %v16186_v22  ;;  %v16192_v11 = vld [vmem:[#allocation45_spill] sm:$0xff]  ;;  %v16195_v5 = vld [vmem:[#allocation78_spill] sm:$0xff] }
 0x89d   :  { %16176 = vst [vmem:[#allocation56_spill] sm:$0xff] %v12964_v46  ;;  %v10441_v24 = vpack.i.bf16 %v12952_v4, %v12964_v46  ;;  %v12976_v62 = vmax.f32 %v3618_v41, 0.0  ;;  %16181 = vst [vmem:[#allocation64_spill] sm:$0xff] %v12978_v1  ;;  %v3624_v41 = vadd.f32 %v3560_v30, %v16187_v55  ;;  %v12996_v10 = vmax.f32 %v3622_v61, 0.0  ;;  %v16194_v30 = vld [vmem:[#allocation46_spill] sm:$0xff]  ;;  %v9522_v22 = vld [vmem:[%s15630_s7 + $0x90] sm:$0xff] }
 0x89e   :  { %v12981_v45 = vmax.f32 %v3615_v13, 0.0  ;;  %16183 = vst [vmem:[#allocation60_spill] sm:$0xff] %v12985_v32  ;;  %v12998_v0 = vmax.f32 %v3628_v43, 0.0  ;;  %v13000_v16 = vmax.f32 %v3625_v63, 0.0  ;;  %v3626_v26 = vadd.f32 %v3562_v14, %v16191_v21  ;;  %v9521_v43 = vld [vmem:[%s15630_s7 + $0x88] sm:$0xff]  ;;  %v9523_v63 = vld [vmem:[%s15630_s7 + $0x98] sm:$0xff] }
 0x89f   :  { %16180 = vst [vmem:[#allocation25_spill] sm:$0xff] %v12976_v62  ;;  %10442 = vrot.lane.b32.xlu0 %v10441_v24, %s10776_s25  ;;  %3718 = vrot.lane.b32.xlu1 %v12976_v62, %s10776_s25  ;;  %16188 = vst [vmem:[#allocation26_spill] sm:$0xff] %v12996_v10  ;;  %v3627_v9 = vadd.f32 %v3563_v44, %v16192_v11  ;;  %v13004_v13 = vmax.f32 %v3624_v41, 0.0  ;;  %v3623_v56 = vadd.f32 %v3559_v37, %v16194_v30  ;;  %v9525_v55 = vld [vmem:[%s15630_s7 + $0xa8] sm:$0xff]  ;;  %v9526_v41 = vld [vmem:[%s15630_s7 + $0xb0] sm:$0xff] }
 0x8a0   :  { %16182 = vst [vmem:[#allocation23_spill] sm:$0xff] %v12981_v45  ;;  %v10446_v57 = vpack.i.bf16 %v12978_v1, %v12981_v45  ;;  %16189 = vst [vmem:[#allocation65_spill] sm:$0xff] %v12998_v0  ;;  %v3629_v24 = vadd.f32 %v3565_v6, %v16195_v5  ;;  %v13014_v61 = vmax.f32 %v3626_v26, 0.0  ;;  %v9520_v6 = vld [vmem:[%s15630_s7 + $0x80] sm:$0xff]  ;;  %v9527_v21 = vld [vmem:[%s15630_s7 + $0xb8] sm:$0xff]  ;;  %v16200_v5 = vmov 0.0  }
 0x8a1   :  { %16190 = vst [vmem:[#allocation24_spill] sm:$0xff] %v13000_v16  ;;  %16193 = vst [vmem:[#allocation62_spill] sm:$0xff] %v13004_v13  ;;  %v10451_v38 = vpack.i.bf16 %v12998_v0, %v13004_v13  ;;  %v13016_v14 = vmax.f32 %v3627_v9, 0.0  ;;  %v13019_v44 = vmax.f32 %v3623_v56, 0.0 }
 0x8a2   :  { %16196 = vst [vmem:[#allocation58_spill] sm:$0xff] %v13014_v61  ;;  %v13023_v37 = vmax.f32 %v3629_v24, 0.0  ;;  %v13057_v24 = vsel %vm3662_vm9, 1.0, %v16200_v5 }
 0x8a3   :  { %3766 = vrot.lane.b32.xlu0 %v12985_v32, %s10776_s25  ;;  %10447 = vrot.lane.b32.xlu1 %v10446_v57, %s10776_s25  ;;  %16197 = vst [vmem:[#allocation31_spill] sm:$0xff] %v13016_v14  ;;  %16198 = vst [vmem:[#allocation72_spill] sm:$0xff] %v13019_v44  ;;  %v10456_v19 = vpack.i.bf16 %v13016_v14, %v13019_v44  ;;  %v9524_v57 = vld [vmem:[%s15630_s7 + $0xa0] sm:$0xff] }
 0x8a4   :  { %16199 = vst [vmem:[#allocation27_spill] sm:$0xff] %v13023_v37 }
 0x8a7   :  { %3720 = vrot.lane.b32.xlu0 %v12996_v10, %s10776_s25  ;;  %3768 = vrot.lane.b32.xlu1 %v13000_v16, %s10776_s25 }
 0x8ab   :  { %10452 = vrot.lane.b32.xlu0 %v10451_v38, %s10776_s25  ;;  %3722 = vrot.lane.b32.xlu1 %v13014_v61, %s10776_s25 }
 0x8af   :  { %3770 = vrot.lane.b32.xlu0 %v13023_v37, %s10776_s25  ;;  %10457 = vrot.lane.b32.xlu1 %v10456_v19, %s10776_s25 }
 0x8b3   :  { %4220 = vperm.xlu0 %10259, %v9520_v6   ;;  %4225 = vperm.xlu1 %10260, %v9521_v43  }
 0x8b7   :  { %4230 = vperm.xlu0 %10259, %v9522_v22   ;;  %4235 = vperm.xlu1 %10260, %v9523_v63  }
 0x8bb   :  { %4240 = vperm.xlu0 %10259, %v9524_v57   ;;  %4245 = vperm.xlu1 %10260, %v9525_v55  }
 0x8bf   :  { %4250 = vperm.xlu0 %10259, %v9526_v41   ;;  %4255 = vperm.xlu1 %10260, %v9527_v21  }
 0x8de   :  { %v3757_v26 = vpop.permute.xlu1 %3756 }
 0x8df   :  { %v3709_v11 = vpop.permute.xlu0 %3708 }
 0x8e0   :  { %v3797_v38 = vsel %vm3772_vm8, %v3757_v26, %v3709_v11 }
 0x8e1   :  { %v3805_v57 = vmul.f32 %v13057_v24, %v3797_v38 }
 0x8e4   :  { %v3711_v9 = vpop.permute.xlu1 %3710 }
 0x8ed   :  { %v10423_v30 = vpop.permute.xlu0 %10422 }
 0x8ee   :  { %v10424_v56 = vunpack.i.l.bf16 %v10423_v30  ;;  %v10425_v19 = vunpack.i.h.bf16 %v10423_v30 }
 0x8f0   :  { %v10428_v6 = vpop.permute.xlu1 %10427  ;;  %v3773_v21 = vsel %vm3772_vm8, %v10424_v56, %v3757_v26 }
 0x8f1   :  { %v3759_v43 = vpop.permute.xlu0 %3758  ;;  %v10430_v22 = vunpack.i.h.bf16 %v10428_v6  ;;  %v10429_v63 = vunpack.i.l.bf16 %v10428_v6 }
 0x8f2   :  { %v3774_v55 = vsel %vm3772_vm8, %v10425_v19, %v3759_v43  ;;  %v3798_v41 = vsel %vm3772_vm8, %v3759_v43, %v3711_v9 }
 0x8f3   :  { %v3809_v5 = vmul.f32 %v13057_v24, %v3798_v41  ;;  %v3782_v30 = vsel %vm3772_vm8, %v10430_v22, %v10425_v19  ;;  %v3781_v51 = vsel %vm3772_vm8, %v10429_v63, %v10424_v56  ;;  %v3840_v6 = vpack.c.bf16 %v3774_v55, %v3773_v21 }
 0x8f4   :  { %v3789_v38 = vsel %vm3772_vm8, %v3709_v11, %v10429_v63  ;;  %v3790_v35 = vsel %vm3772_vm8, %v3711_v9, %v10430_v22  ;;  %v3839_v40 = vpack.c.bf16 %v3782_v30, %v3781_v51  ;;  %v3761_v26 = vpop.permute.xlu1 %3760 }
 0x8f5   :  { %v3837_v43 = vpack.c.bf16 %v3809_v5, %v3805_v57  ;;  %3958 = vmatprep.subr.bf16.mxu1 %v3840_v6  ;;  %v3838_v36 = vpack.c.bf16 %v3790_v35, %v3789_v38  ;;  %v3713_v41 = vpop.permute.xlu0 %3712 }
 0x8f6   :  { %3959 = vmatpush1.bf16.msra.mxu1 %v3839_v40  ;;  %v3799_v55 = vsel %vm3772_vm8, %v3761_v26, %v3713_v41 }
 0x8f7   :  { %3885 = vmatprep.subr.bf16.mxu0 %v3838_v36 }
 0x8f8   :  { %3886 = vmatpush1.bf16.msra.mxu0 %v3837_v43 }
 0x8f9   :  { %v3715_v19 = vpop.permute.xlu1 %3714 }
 0x902   :  { %v10433_v12 = vpop.permute.xlu0 %10432 }
 0x903   :  { %v10434_v8 = vunpack.i.l.bf16 %v10433_v12  ;;  %v10435_v56 = vunpack.i.h.bf16 %v10433_v12  ;;  %v3813_v12 = vmul.f32 %v13057_v24, %v3799_v55 }
 0x905   :  { %v3775_v40 = vsel %vm3772_vm8, %v10434_v8, %v3761_v26 }
 0x906   :  { %v3763_v11 = vpop.permute.xlu0 %3762 }
 0x907   :  { %v3776_v9 = vsel %vm3772_vm8, %v10435_v56, %v3763_v11  ;;  %v3800_v51 = vsel %vm3772_vm8, %v3763_v11, %v3715_v19 }
 0x908   :  { %v3817_v36 = vmul.f32 %v13057_v24, %v3800_v51  ;;  %v3844_v63 = vpack.c.bf16 %v3776_v9, %v3775_v40 }
 0x909   :  { %v10438_v35 = vpop.permute.xlu1 %10437 }
 0x90a   :  { %v10440_v5 = vunpack.i.h.bf16 %v10438_v35  ;;  %v10439_v22 = vunpack.i.l.bf16 %v10438_v35  ;;  %3960 = vmatprep.subr.bf16.mxu1 %v3844_v63  ;;  %v3841_v38 = vpack.c.bf16 %v3817_v36, %v3813_v12 }
 0x90c   :  { %v3784_v57 = vsel %vm3772_vm8, %v10440_v5, %v10435_v56  ;;  %v3783_v21 = vsel %vm3772_vm8, %v10439_v22, %v10434_v8  ;;  %v3717_v30 = vpop.permute.xlu0 %3716  ;;  %v3791_v6 = vsel %vm3772_vm8, %v3713_v41, %v10439_v22  ;;  %v3792_v26 = vsel %vm3772_vm8, %v3715_v19, %v10440_v5 }
 0x90d   :  { %v3765_v43 = vpop.permute.xlu1 %3764  ;;  %v3843_v11 = vpack.c.bf16 %v3784_v57, %v3783_v21  ;;  %v3842_v9 = vpack.c.bf16 %v3792_v26, %v3791_v6 }
 0x90e   :  { %v3801_v8 = vsel %vm3772_vm8, %v3765_v43, %v3717_v30 }
 0x90f   :  { %3961 = vmatpush1.bf16.msra.mxu1 %v3843_v11  ;;  %3887 = vmatprep.subr.bf16.mxu0 %v3842_v9  ;;  %v3821_v21 = vmul.f32 %v13057_v24, %v3801_v8 }
 0x910   :  { %3888 = vmatpush1.bf16.msra.mxu0 %v3841_v38 }
 0x911   :  { %v10443_v55 = vpop.permute.xlu0 %10442  ;;  %v3719_v51 = vpop.permute.xlu1 %3718 }
 0x912   :  { %v10444_v56 = vunpack.i.l.bf16 %v10443_v55  ;;  %v10445_v35 = vunpack.i.h.bf16 %v10443_v55 }
 0x914   :  { %v3777_v5 = vsel %vm3772_vm8, %v10444_v56, %v3765_v43 }
 0x915   :  { %v3767_v40 = vpop.permute.xlu0 %3766  ;;  %v10448_v19 = vpop.permute.xlu1 %10447 }
 0x916   :  { %v3778_v41 = vsel %vm3772_vm8, %v10445_v35, %v3767_v40  ;;  %v3802_v36 = vsel %vm3772_vm8, %v3767_v40, %v3719_v51  ;;  %v10450_v63 = vunpack.i.h.bf16 %v10448_v19  ;;  %v10449_v12 = vunpack.i.l.bf16 %v10448_v19 }
 0x917   :  { %v3825_v22 = vmul.f32 %v13057_v24, %v3802_v36  ;;  %v3848_v57 = vpack.c.bf16 %v3778_v41, %v3777_v5 }
 0x918   :  { %v3786_v6 = vsel %vm3772_vm8, %v10450_v63, %v10445_v35  ;;  %v3785_v38 = vsel %vm3772_vm8, %v10449_v12, %v10444_v56  ;;  %v3793_v11 = vsel %vm3772_vm8, %v3717_v30, %v10449_v12  ;;  %v3794_v55 = vsel %vm3772_vm8, %v3719_v51, %v10450_v63 }
 0x919   :  { %3962 = vmatprep.subr.bf16.mxu1 %v3848_v57  ;;  %v3721_v26 = vpop.permute.xlu0 %3720  ;;  %v3845_v9 = vpack.c.bf16 %v3825_v22, %v3821_v21  ;;  %v3769_v43 = vpop.permute.xlu1 %3768  ;;  %v3847_v40 = vpack.c.bf16 %v3786_v6, %v3785_v38  ;;  %v3846_v41 = vpack.c.bf16 %v3794_v55, %v3793_v11 }
 0x91a   :  { %v3803_v56 = vsel %vm3772_vm8, %v3769_v43, %v3721_v26 }
 0x91b   :  { %3963 = vmatpush1.bf16.msra.mxu1 %v3847_v40  ;;  %3889 = vmatprep.subr.bf16.mxu0 %v3846_v41  ;;  %v3829_v38 = vmul.f32 %v13057_v24, %v3803_v56  ;;  %v3683_v56 = vpack.c.bf16 %v12684_v60, %v12657_v48 }
 0x91c   :  { %3890 = vmatpush1.bf16.msra.mxu0 %v3845_v9 }
 0x91d   :  { %v10453_v8 = vpop.permute.xlu0 %10452  ;;  %v3723_v36 = vpop.permute.xlu1 %3722 }
 0x91e   :  { %v10454_v35 = vunpack.i.l.bf16 %v10453_v8  ;;  %v10455_v19 = vunpack.i.h.bf16 %v10453_v8 }
 0x920   :  { %v3779_v63 = vsel %vm3772_vm8, %v10454_v35, %v3769_v43 }
 0x921   :  { %v3771_v5 = vpop.permute.xlu0 %3770  ;;  %v10458_v51 = vpop.permute.xlu1 %10457 }
 0x922   :  { %v3780_v30 = vsel %vm3772_vm8, %v10455_v19, %v3771_v5  ;;  %v3804_v22 = vsel %vm3772_vm8, %v3771_v5, %v3723_v36  ;;  %v10460_v57 = vunpack.i.h.bf16 %v10458_v51  ;;  %v10459_v21 = vunpack.i.l.bf16 %v10458_v51 }
 0x923   :  { %v3833_v12 = vmul.f32 %v13057_v24, %v3804_v22  ;;  %v3852_v6 = vpack.c.bf16 %v3780_v30, %v3779_v63  ;;  %v3686_v5 = vpack.c.bf16 %v12768_v2, %v12653_v3  ;;  %v3688_v30 = vpack.c.bf16 %v12901_v23, %v12920_v34  ;;  %v10708_v63 = vld [vmem:[%s15629_s6 + $0x48] sm:$0xff]  }
 0x924   :  { %v3788_v11 = vsel %vm3772_vm8, %v10460_v57, %v10455_v19  ;;  %v3787_v9 = vsel %vm3772_vm8, %v10459_v21, %v10454_v35  ;;  %v3795_v55 = vsel %vm3772_vm8, %v3721_v26, %v10459_v21  ;;  %v3796_v43 = vsel %vm3772_vm8, %v3723_v36, %v10460_v57  ;;  %v10707_v19 = vld [vmem:[%s15629_s6 + $0x40] sm:$0xff]  }
 0x925   :  { %3964 = vmatprep.subr.bf16.mxu1 %v3852_v6  ;;  %v3849_v40 = vpack.c.bf16 %v3833_v12, %v3829_v38  ;;  %v3851_v41 = vpack.c.bf16 %v3788_v11, %v3787_v9  ;;  %v3850_v8 = vpack.c.bf16 %v3796_v43, %v3795_v55  ;;  %v3684_v35 = vpack.c.bf16 %v12729_v59, %v12746_v49  ;;  %v10709_v55 = vld [vmem:[%s15629_s6 + $0x50] sm:$0xff]   ;;  %v10710_v43 = vld [vmem:[%s15629_s6 + $0x58] sm:$0xff]  }
 0x926   :  { %v3685_v26 = vpack.c.bf16 %v12701_v39, %v12718_v15  ;;  %v3690_v36 = vpack.c.bf16 %v12922_v53, %v12787_v54  ;;  %v3689_v22 = vpack.c.bf16 %v12844_v7, %v12862_v27  ;;  %v3694_v51 = vpack.c.bf16 %v12985_v32, %v12958_v29 }
 0x927   :  { %3965 = vmatpush1.bf16.msra.mxu1 %v3851_v41  ;;  %3891 = vmatprep.subr.bf16.mxu0 %v3850_v8  ;;  %v3687_v12 = vpack.c.bf16 %v12846_v33, %v12809_v18  ;;  %v3692_v57 = vpack.c.bf16 %v12978_v1, %v12981_v45  ;;  %v3693_v21 = vpack.c.bf16 %v12952_v4, %v12964_v46  ;;  %v10711_v41 = vld [vmem:[%s15631_s5 + $0x40] sm:$0xff]   ;;  %v10712_v8 = vld [vmem:[%s15631_s5 + $0x48] sm:$0xff]  }
 0x928   :  { %4136 = vmatprep.subr.bf16.mxu1 %v3686_v5  ;;  %3892 = vmatpush1.bf16.msra.mxu0 %v3849_v40  ;;  %v3698_v6 = vpack.c.bf16 %v13023_v37, %v13000_v16  ;;  %v3691_v38 = vpack.c.bf16 %v12976_v62, %v12950_v28  ;;  %v3696_v11 = vpack.c.bf16 %v13016_v14, %v13019_v44  ;;  %v10713_v5 = vld [vmem:[%s15631_s5 + $0x50] sm:$0xff]  }
 0x929   :  { %4063 = vmatprep.subr.bf16.mxu0 %v3684_v35  ;;  %v3697_v9 = vpack.c.bf16 %v12998_v0, %v13004_v13  ;;  %v3695_v40 = vpack.c.bf16 %v13014_v61, %v12996_v10 }
 0x92a   :  { %9504 = vmatmul.mubr.msk.bf16.vlgmr.msra.gmra.mrb[112].mxu1 %vm602_vm3, %v10707_v19 }
 0x92b   :  { %4137 = vmatpush1.bf16.msra.mxu1 %v3685_v26  ;;  %4000 = vmatprep.mubr.bf16.mxu1 %v15935_v52 }
 0x92c   :  { %9500 = vmatmul.mubr.msk.bf16.vlgmr.msra.gmra.mrb[112].mxu0 %vm602_vm3, %v10707_v19  ;;  %4138 = vmatprep.subr.bf16.mxu1 %v3690_v36  ;;  %v10714_v19 = vld [vmem:[%s15631_s5 + $0x58] sm:$0xff]  }
 0x92d   :  { %4064 = vmatpush1.bf16.msra.mxu0 %v3683_v56  ;;  %3927 = vmatprep.mubr.bf16.mxu0 %v15935_v52 }
 0x92e   :  { %4065 = vmatprep.subr.bf16.mxu0 %v3688_v30 }
 0x92f   :  { %4139 = vmatpush1.bf16.msra.mxu1 %v3689_v22 }
 0x930   :  { %4140 = vmatprep.subr.bf16.mxu1 %v3694_v51 }
 0x931   :  { %4066 = vmatpush1.bf16.msra.mxu0 %v3687_v12 }
 0x932   :  { %4067 = vmatprep.subr.bf16.mxu0 %v3692_v57  ;;  %9505 = vmatmul.mubr.msk.bf16.gmra.mrb[116].mxu1 %vm602_vm3, %v10708_v63  ;;  %v4221_v35 = vpop.permute.xlu0 %4220  ;;  %v4226_v36 = vpop.permute.xlu1 %4225 }
 0x933   :  { %4141 = vmatpush1.bf16.msra.mxu1 %v3693_v21  ;;  %4010 = vmatprep.mubr.bf16.mxu1 %v15935_v52 }
 0x934   :  { %9501 = vmatmul.mubr.msk.bf16.gmra.mrb[116].mxu0 %vm602_vm3, %v10708_v63  ;;  %4142 = vmatprep.subr.bf16.mxu1 %v3698_v6 }
 0x935   :  { %4068 = vmatpush1.bf16.msra.mxu0 %v3691_v38  ;;  %3937 = vmatprep.mubr.bf16.mxu0 %v15935_v52 }
 0x936   :  { %4069 = vmatprep.subr.bf16.mxu0 %v3696_v11 }
 0x937   :  { %4143 = vmatpush1.bf16.msra.mxu1 %v3697_v9 }
 0x939   :  { %4070 = vmatpush1.bf16.msra.mxu0 %v3695_v40 }
 0x93a   :  { %9506 = vmatmul.mubr.msk.bf16.gmra.mrb[120].mxu1 %vm602_vm3, %v10709_v55 }
 0x93b   :  { %4020 = vmatprep.mubr.bf16.mxu1 %v15935_v52 }
 0x93c   :  { %9502 = vmatmul.mubr.msk.bf16.gmra.mrb[120].mxu0 %vm602_vm3, %v10709_v55 }
 0x93d   :  { %3947 = vmatprep.mubr.bf16.mxu0 %v15935_v52 }
 0x942   :  { %9507 = vmatmul.mubr.msk.bf16.gmra.mrb[124].mxu1 %vm602_vm3, %v10710_v43 }
 0x943   :  { %4168 = vmatprep.mubr.bf16.mxu1 %v15935_v52 }
 0x944   :  { %9503 = vmatmul.mubr.msk.bf16.gmra.mrb[124].mxu0 %vm602_vm3, %v10710_v43 }
 0x945   :  { %4095 = vmatprep.mubr.bf16.mxu0 %v15935_v52 }
 0x94a   :  { %9516 = vmatmul.mubr.msk.bf16.vlgmr.msra.gmra.mrb[112].mxu1 %vm602_vm3, %v10711_v41 }
 0x94b   :  { %4178 = vmatprep.mubr.bf16.mxu1 %v15935_v52 }
 0x94c   :  { %9512 = vmatmul.mubr.msk.bf16.vlgmr.msra.gmra.mrb[112].mxu0 %vm602_vm3, %v10711_v41 }
 0x94d   :  { %4105 = vmatprep.mubr.bf16.mxu0 %v15935_v52 }
 0x952   :  { %9517 = vmatmul.mubr.msk.bf16.gmra.mrb[116].mxu1 %vm602_vm3, %v10712_v8 }
 0x953   :  { %4188 = vmatprep.mubr.bf16.mxu1 %v15935_v52 }
 0x954   :  { %9513 = vmatmul.mubr.msk.bf16.gmra.mrb[116].mxu0 %vm602_vm3, %v10712_v8 }
 0x955   :  { %4115 = vmatprep.mubr.bf16.mxu0 %v15935_v52 }
 0x95a   :  { %9518 = vmatmul.mubr.msk.bf16.gmra.mrb[120].mxu1 %vm602_vm3, %v10713_v5 }
 0x95b   :  { %4198 = vmatprep.mubr.bf16.mxu1 %v15935_v52 }
 0x95c   :  { %9514 = vmatmul.mubr.msk.bf16.gmra.mrb[120].mxu0 %vm602_vm3, %v10713_v5 }
 0x95d   :  { %4125 = vmatprep.mubr.bf16.mxu0 %v15935_v52 }
 0x962   :  { %9519 = vmatmul.mubr.msk.bf16.gmra.mrb[124].mxu1 %vm602_vm3, %v10714_v19 }
 0x963   :  { %4637 = vmatprep.mubr.bf16.mxu1 %v15935_v52 }
 0x964   :  { %9515 = vmatmul.mubr.msk.bf16.gmra.mrb[124].mxu0 %vm602_vm3, %v10714_v19 }
 0x965   :  { %4564 = vmatprep.mubr.bf16.mxu0 %v15935_v52 }
 0xa1d   :  { %v4170_v26 = vpop.f32.mrb[112].mxu1 }
 0xa1e   :  { %v4260_v56 = vadd.f32 %v4221_v35, %v4170_v26  ;;  %v4172_v30 = vpop.f32.mrb[113].mxu1 }
 0xa1f   :  { %v4097_v22 = vpop.f32.mrb[112].mxu0  ;;  %v4261_v51 = vadd.f32 %v4221_v35, %v4172_v30  ;;  %v4174_v63 = vpop.f32.mrb[114].mxu1 }
 0xa20   :  { %v4258_v12 = vadd.f32 %v4221_v35, %v4097_v22  ;;  %v4099_v57 = vpop.f32.mrb[113].mxu0  ;;  %v4264_v21 = vadd.f32 %v4226_v36, %v4174_v63  ;;  %v4176_v6 = vpop.f32.mrb[115].mxu1  ;;  %v4292_v40 = vmax.f32 %v4260_v56, 0.0 }
 0xa21   :  { %v4293_v38 = vmax.f32 %v4261_v51, 0.0  ;;  %v4259_v11 = vadd.f32 %v4221_v35, %v4099_v57  ;;  %v4101_v9 = vpop.f32.mrb[114].mxu0  ;;  %v4265_v55 = vadd.f32 %v4226_v36, %v4176_v6  ;;  %v4231_v63 = vpop.permute.xlu0 %4230 }
 0xa22   :  { %v4290_v43 = vmax.f32 %v4258_v12, 0.0  ;;  %v4296_v41 = vmax.f32 %v4264_v21, 0.0  ;;  %v4262_v8 = vadd.f32 %v4226_v36, %v4101_v9  ;;  %v4103_v5 = vpop.f32.mrb[115].mxu0  ;;  %v4236_v12 = vpop.permute.xlu1 %4235 }
 0xa23   :  { %v4297_v19 = vmax.f32 %v4265_v55, 0.0  ;;  %v4263_v37 = vadd.f32 %v4226_v36, %v4103_v5  ;;  %4404 = vrot.lane.b32.xlu1 %v4293_v38, %s10776_s25  ;;  %v4291_v51 = vmax.f32 %v4259_v11, 0.0 }
 0xa24   :  { %v10461_v26 = vpack.i.bf16 %v4296_v41, %v4292_v40  ;;  %v13220_v30 = vpack.c.bf16 %v4296_v41, %v4292_v40  ;;  %v4294_v22 = vmax.f32 %v4262_v8, 0.0  ;;  %4356 = vrot.lane.b32.xlu0 %v4290_v43, %s10776_s25 }
 0xa25   :  { %v13223_v35 = vpack.c.bf16 %v4297_v19, %v4293_v38  ;;  %v4295_v57 = vmax.f32 %v4263_v37, 0.0  ;;  %v4180_v56 = vpop.f32.mrb[116].mxu1 }
 0xa26   :  { %v13225_v21 = vpack.c.bf16 %v4294_v22, %v4290_v43  ;;  %v4268_v6 = vadd.f32 %v4231_v63, %v4180_v56  ;;  %v4182_v9 = vpop.f32.mrb[117].mxu1 }
 0xa27   :  { %v10466_v36 = vpack.i.bf16 %v4295_v57, %v4291_v51  ;;  %v13227_v55 = vpack.c.bf16 %v4295_v57, %v4291_v51  ;;  %v4107_v5 = vpop.f32.mrb[116].mxu0  ;;  %v4269_v40 = vadd.f32 %v4231_v63, %v4182_v9  ;;  %v4184_v41 = vpop.f32.mrb[118].mxu1  ;;  %4358 = vrot.lane.b32.xlu1 %v4294_v22, %s10776_s25 }
 0xa28   :  { %v4266_v8 = vadd.f32 %v4231_v63, %v4107_v5  ;;  %v4272_v44 = vadd.f32 %v4236_v12, %v4184_v41  ;;  %10462 = vrot.lane.b32.xlu0 %v10461_v26, %s10776_s25  ;;  %v4109_v38 = vpop.f32.mrb[117].mxu0  ;;  %v4186_v37 = vpop.f32.mrb[119].mxu1  ;;  %v4300_v56 = vmax.f32 %v4268_v6, 0.0 }
 0xa29   :  { %v4267_v11 = vadd.f32 %v4231_v63, %v4109_v38  ;;  %v4111_v14 = vpop.f32.mrb[118].mxu0  ;;  %v13231_v43 = vadd.f32 %v4236_v12, %v4186_v37  ;;  %v4301_v57 = vmax.f32 %v4269_v40, 0.0  ;;  %v4241_v63 = vpop.permute.xlu0 %4240 }
 0xa2a   :  { %v4304_v61 = vmax.f32 %v4272_v44, 0.0  ;;  %v4270_v13 = vadd.f32 %v4236_v12, %v4111_v14  ;;  %v4113_v51 = vpop.f32.mrb[119].mxu0  ;;  %v4298_v22 = vmax.f32 %v4266_v8, 0.0  ;;  %v4246_v6 = vpop.permute.xlu1 %4245 }
 0xa2b   :  { %v4305_v9 = vmax.f32 %v13231_v43, 0.0  ;;  %v4271_v16 = vadd.f32 %v4236_v12, %v4113_v51  ;;  %10467 = vrot.lane.b32.xlu1 %v10466_v36, %s10776_s25  ;;  %v4299_v38 = vmax.f32 %v4267_v11, 0.0 }
 0xa2c   :  { %v10471_v5 = vpack.i.bf16 %v4304_v61, %v4300_v56  ;;  %v13235_v41 = vpack.c.bf16 %v4304_v61, %v4300_v56  ;;  %v4302_v26 = vmax.f32 %v4270_v13, 0.0  ;;  %4406 = vrot.lane.b32.xlu0 %v4297_v19, %s10776_s25 }
 0xa2d   :  { %v13238_v37 = vpack.c.bf16 %v4305_v9, %v4301_v57  ;;  %v4303_v44 = vmax.f32 %v4271_v16, 0.0  ;;  %v4190_v14 = vpop.f32.mrb[120].mxu1 }
 0xa2e   :  { %v13240_v40 = vpack.c.bf16 %v4302_v26, %v4298_v22  ;;  %v4276_v43 = vadd.f32 %v4241_v63, %v4190_v14  ;;  %v4192_v12 = vpop.f32.mrb[121].mxu1 }
 0xa2f   :  { %v10476_v51 = vpack.i.bf16 %v4303_v44, %v4299_v38  ;;  %v13242_v36 = vpack.c.bf16 %v4303_v44, %v4299_v38  ;;  %v4117_v8 = vpop.f32.mrb[120].mxu0  ;;  %v4277_v61 = vadd.f32 %v4241_v63, %v4192_v12  ;;  %v4194_v56 = vpop.f32.mrb[122].mxu1  ;;  %4408 = vrot.lane.b32.xlu1 %v4301_v57, %s10776_s25 }
 0xa30   :  { %v4274_v13 = vadd.f32 %v4241_v63, %v4117_v8  ;;  %v4280_v19 = vadd.f32 %v4246_v6, %v4194_v56  ;;  %4360 = vrot.lane.b32.xlu0 %v4298_v22, %s10776_s25  ;;  %v4119_v11 = vpop.f32.mrb[121].mxu0  ;;  %v4196_v16 = vpop.f32.mrb[123].mxu1  ;;  %v4308_v45 = vmax.f32 %v4276_v43, 0.0 }
 0xa31   :  { %v4275_v0 = vadd.f32 %v4241_v63, %v4119_v11  ;;  %v4121_v10 = vpop.f32.mrb[122].mxu0  ;;  %v4281_v32 = vadd.f32 %v4246_v6, %v4196_v16  ;;  %v4309_v38 = vmax.f32 %v4277_v61, 0.0  ;;  %v4251_v22 = vpop.permute.xlu0 %4250 }
 0xa32   :  { %v4312_v14 = vmax.f32 %v4280_v19, 0.0  ;;  %v4278_v1 = vadd.f32 %v4246_v6, %v4121_v10  ;;  %v4123_v62 = vpop.f32.mrb[123].mxu0  ;;  %v4306_v12 = vmax.f32 %v4274_v13, 0.0  ;;  %v4256_v10 = vpop.permute.xlu1 %4255 }
 0xa33   :  { %v4313_v44 = vmax.f32 %v4281_v32, 0.0  ;;  %v4279_v46 = vadd.f32 %v4246_v6, %v4123_v62  ;;  %4362 = vrot.lane.b32.xlu1 %v4302_v26, %s10776_s25  ;;  %v4307_v63 = vmax.f32 %v4275_v0, 0.0 }
 0xa34   :  { %v10481_v57 = vpack.i.bf16 %v4312_v14, %v4308_v45  ;;  %v13247_v8 = vpack.c.bf16 %v4312_v14, %v4308_v45  ;;  %v4310_v56 = vmax.f32 %v4278_v1, 0.0  ;;  %10472 = vrot.lane.b32.xlu0 %v10471_v5, %s10776_s25 }
 0xa35   :  { %v13250_v11 = vpack.c.bf16 %v4313_v44, %v4309_v38  ;;  %v4311_v43 = vmax.f32 %v4279_v46, 0.0  ;;  %v4200_v19 = vpop.f32.mrb[124].mxu1 }
 0xa36   :  { %v13252_v16 = vpack.c.bf16 %v4310_v56, %v4306_v12  ;;  %v4284_v32 = vadd.f32 %v4251_v22, %v4200_v19  ;;  %v4202_v62 = vpop.f32.mrb[125].mxu1 }
 0xa37   :  { %v10486_v6 = vpack.i.bf16 %v4311_v43, %v4307_v63  ;;  %v13254_v26 = vpack.c.bf16 %v4311_v43, %v4307_v63  ;;  %v4127_v61 = vpop.f32.mrb[124].mxu0  ;;  %v4285_v45 = vadd.f32 %v4251_v22, %v4202_v62  ;;  %v4204_v13 = vpop.f32.mrb[126].mxu1  ;;  %10477 = vrot.lane.b32.xlu1 %v10476_v51, %s10776_s25 }
 0xa38   :  { %v4282_v1 = vadd.f32 %v4251_v22, %v4127_v61  ;;  %v4288_v5 = vadd.f32 %v4256_v10, %v4204_v13  ;;  %4410 = vrot.lane.b32.xlu0 %v4305_v9, %s10776_s25  ;;  %v4129_v0 = vpop.f32.mrb[125].mxu0  ;;  %v4206_v46 = vpop.f32.mrb[127].mxu1  ;;  %v4316_v28 = vmax.f32 %v4284_v32, 0.0 }
 0xa39   :  { %v4283_v14 = vadd.f32 %v4251_v22, %v4129_v0  ;;  %v4131_v29 = vpop.f32.mrb[126].mxu0  ;;  %v4289_v4 = vadd.f32 %v4256_v10, %v4206_v46  ;;  %v4317_v63 = vmax.f32 %v4285_v45, 0.0 }
 0xa3a   :  { %v4320_v19 = vmax.f32 %v4288_v5, 0.0  ;;  %v4286_v17 = vadd.f32 %v4256_v10, %v4131_v29  ;;  %v4133_v53 = vpop.f32.mrb[127].mxu0  ;;  %v4314_v62 = vmax.f32 %v4282_v1, 0.0 }
 0xa3b   :  { %v4321_v43 = vmax.f32 %v4289_v4, 0.0  ;;  %v4287_v34 = vadd.f32 %v4256_v10, %v4133_v53  ;;  %4412 = vrot.lane.b32.xlu1 %v4309_v38, %s10776_s25  ;;  %v4315_v9 = vmax.f32 %v4283_v14, 0.0  ;;  %v9571_v53 = vld [vmem:[%s15633_s10 + $0x98] sm:$0xff]  ;;  %v9573_v4 = vld [vmem:[%s15633_s10 + $0xa8] sm:$0xff]  ;;  %v9572_v38 = vld [vmem:[%s15633_s10 + $0xa0] sm:$0xff] }
 0xa3c   :  { %v10491_v51 = vpack.i.bf16 %v4320_v19, %v4316_v28  ;;  %v13259_v61 = vpack.c.bf16 %v4320_v19, %v4316_v28  ;;  %v4318_v13 = vmax.f32 %v4286_v17, 0.0  ;;  %4364 = vrot.lane.b32.xlu0 %v4306_v12, %s10776_s25  ;;  %v9569_v17 = vld [vmem:[%s15633_s10 + $0x88] sm:$0xff]  ;;  %v9570_v28 = vld [vmem:[%s15633_s10 + $0x90] sm:$0xff] }
 0xa3d   :  { %v13262_v22 = vpack.c.bf16 %v4321_v43, %v4317_v63  ;;  %v4319_v0 = vmax.f32 %v4287_v34, 0.0  ;;  %v9568_v34 = vld [vmem:[%s15633_s10 + $0x80] sm:$0xff]  ;;  %v9574_v12 = vld [vmem:[%s15633_s10 + $0xb0] sm:$0xff] }
 0xa3e   :  { %v13264_v32 = vpack.c.bf16 %v4318_v13, %v4314_v62 }
 0xa3f   :  { %v10496_v29 = vpack.i.bf16 %v4319_v0, %v4315_v9  ;;  %v13266_v5 = vpack.c.bf16 %v4319_v0, %v4315_v9  ;;  %4366 = vrot.lane.b32.xlu1 %v4310_v56, %s10776_s25 }
 0xa40   :  { %10482 = vrot.lane.b32.xlu0 %v10481_v57, %s10776_s25 }
 0xa43   :  { %10487 = vrot.lane.b32.xlu1 %v10486_v6, %s10776_s25 }
 0xa44   :  { %4414 = vrot.lane.b32.xlu0 %v4313_v44, %s10776_s25  ;;  %v9575_v44 = vld [vmem:[%s15633_s10 + $0xb8] sm:$0xff] }
 0xa47   :  { %4416 = vrot.lane.b32.xlu1 %v4317_v63, %s10776_s25 }
 0xa48   :  { %4368 = vrot.lane.b32.xlu0 %v4314_v62, %s10776_s25 }
 0xa4b   :  { %4370 = vrot.lane.b32.xlu1 %v4318_v13, %s10776_s25 }
 0xa4c   :  { %10492 = vrot.lane.b32.xlu0 %v10491_v51, %s10776_s25 }
 0xa4f   :  { %10497 = vrot.lane.b32.xlu1 %v10496_v29, %s10776_s25 }
 0xa50   :  { %4418 = vrot.lane.b32.xlu0 %v4321_v43, %s10776_s25 }
 0xa53   :  { %4872 = vperm.xlu1 %10260, %v9569_v17  }
 0xa54   :  { %4867 = vperm.xlu0 %10259, %v9568_v34  }
 0xa57   :  { %4882 = vperm.xlu1 %10260, %v9571_v53  }
 0xa58   :  { %4877 = vperm.xlu0 %10259, %v9570_v28  }
 0xa5b   :  { %4892 = vperm.xlu1 %10260, %v9573_v4  }
 0xa5c   :  { %4887 = vperm.xlu0 %10259, %v9572_v38  }
 0xa5f   :  { %4902 = vperm.xlu1 %10260, %v9575_v44  }
 0xa60   :  { %4897 = vperm.xlu0 %10259, %v9574_v12  }
 0xa95   :  { %v4405_v57 = vpop.permute.xlu1 %4404 }
 0xa96   :  { %v4357_v56 = vpop.permute.xlu0 %4356 }
 0xa97   :  { %v4444_v1 = vsel %vm3772_vm8, %v4405_v57, %v4357_v56 }
 0xa98   :  { %v4452_v62 = vmul.f32 %v13057_v24, %v4444_v1 }
 0xa99   :  { %v4359_v10 = vpop.permute.xlu1 %4358 }
 0xa9a   :  { %v10463_v6 = vpop.permute.xlu0 %10462 }
 0xa9b   :  { %v10464_v45 = vunpack.i.l.bf16 %v10463_v6  ;;  %v10465_v46 = vunpack.i.h.bf16 %v10463_v6 }
 0xa9d   :  { %v10468_v14 = vpop.permute.xlu1 %10467  ;;  %v4420_v9 = vsel %vm3772_vm8, %v10464_v45, %v4405_v57 }
 0xa9e   :  { %v4407_v19 = vpop.permute.xlu0 %4406  ;;  %v10470_v63 = vunpack.i.h.bf16 %v10468_v14  ;;  %v10469_v43 = vunpack.i.l.bf16 %v10468_v14 }
 0xa9f   :  { %v4421_v51 = vsel %vm3772_vm8, %v10465_v46, %v4407_v19  ;;  %v4445_v13 = vsel %vm3772_vm8, %v4407_v19, %v4359_v10 }
 0xaa0   :  { %v4456_v0 = vmul.f32 %v13057_v24, %v4445_v13  ;;  %v4429_v29 = vsel %vm3772_vm8, %v10470_v63, %v10465_v46  ;;  %v4428_v17 = vsel %vm3772_vm8, %v10469_v43, %v10464_v45  ;;  %v4487_v34 = vpack.c.bf16 %v4421_v51, %v4420_v9 }
 0xaa1   :  { %v4409_v53 = vpop.permute.xlu1 %4408  ;;  %v4436_v28 = vsel %vm3772_vm8, %v4357_v56, %v10469_v43  ;;  %v4437_v4 = vsel %vm3772_vm8, %v4359_v10, %v10470_v63  ;;  %v4486_v38 = vpack.c.bf16 %v4429_v29, %v4428_v17 }
 0xaa2   :  { %v4484_v44 = vpack.c.bf16 %v4456_v0, %v4452_v62  ;;  %4605 = vmatprep.subr.bf16.mxu1 %v4487_v34  ;;  %v4361_v12 = vpop.permute.xlu0 %4360  ;;  %v4485_v57 = vpack.c.bf16 %v4437_v4, %v4436_v28 }
 0xaa3   :  { %4606 = vmatpush1.bf16.msra.mxu1 %v4486_v38  ;;  %v4446_v45 = vsel %vm3772_vm8, %v4409_v53, %v4361_v12 }
 0xaa4   :  { %4532 = vmatprep.subr.bf16.mxu0 %v4485_v57  ;;  %v4460_v10 = vmul.f32 %v13057_v24, %v4446_v45 }
 0xaa5   :  { %4533 = vmatpush1.bf16.msra.mxu0 %v4484_v44  ;;  %v4363_v6 = vpop.permute.xlu1 %4362 }
 0xaa6   :  { %v10473_v1 = vpop.permute.xlu0 %10472 }
 0xaa7   :  { %v10474_v46 = vunpack.i.l.bf16 %v10473_v1  ;;  %v10475_v14 = vunpack.i.h.bf16 %v10473_v1 }
 0xaa9   :  { %v10478_v19 = vpop.permute.xlu1 %10477  ;;  %v4422_v13 = vsel %vm3772_vm8, %v10474_v46, %v4409_v53 }
 0xaaa   :  { %v4411_v56 = vpop.permute.xlu0 %4410  ;;  %v10480_v43 = vunpack.i.h.bf16 %v10478_v19  ;;  %v10479_v51 = vunpack.i.l.bf16 %v10478_v19 }
 0xaab   :  { %v4423_v63 = vsel %vm3772_vm8, %v10475_v14, %v4411_v56  ;;  %v4447_v62 = vsel %vm3772_vm8, %v4411_v56, %v4363_v6 }
 0xaac   :  { %v4464_v9 = vmul.f32 %v13057_v24, %v4447_v62  ;;  %v4431_v0 = vsel %vm3772_vm8, %v10480_v43, %v10475_v14  ;;  %v4430_v29 = vsel %vm3772_vm8, %v10479_v51, %v10474_v46  ;;  %v4491_v17 = vpack.c.bf16 %v4423_v63, %v4422_v13 }
 0xaad   :  { %v4413_v34 = vpop.permute.xlu1 %4412  ;;  %v4438_v28 = vsel %vm3772_vm8, %v4361_v12, %v10479_v51  ;;  %v4439_v4 = vsel %vm3772_vm8, %v4363_v6, %v10480_v43  ;;  %v4490_v38 = vpack.c.bf16 %v4431_v0, %v4430_v29 }
 0xaae   :  { %v4488_v44 = vpack.c.bf16 %v4464_v9, %v4460_v10  ;;  %4607 = vmatprep.subr.bf16.mxu1 %v4491_v17  ;;  %v4365_v53 = vpop.permute.xlu0 %4364  ;;  %v4489_v57 = vpack.c.bf16 %v4439_v4, %v4438_v28 }
 0xaaf   :  { %4608 = vmatpush1.bf16.msra.mxu1 %v4490_v38  ;;  %v4448_v46 = vsel %vm3772_vm8, %v4413_v34, %v4365_v53 }
 0xab0   :  { %4534 = vmatprep.subr.bf16.mxu0 %v4489_v57  ;;  %v4468_v6 = vmul.f32 %v13057_v24, %v4448_v46 }
 0xab1   :  { %4535 = vmatpush1.bf16.msra.mxu0 %v4488_v44  ;;  %v4367_v1 = vpop.permute.xlu1 %4366 }
 0xab2   :  { %v10483_v45 = vpop.permute.xlu0 %10482 }
 0xab3   :  { %v10484_v14 = vunpack.i.l.bf16 %v10483_v45  ;;  %v10485_v19 = vunpack.i.h.bf16 %v10483_v45 }
 0xab5   :  { %v10488_v56 = vpop.permute.xlu1 %10487  ;;  %v4424_v62 = vsel %vm3772_vm8, %v10484_v14, %v4413_v34 }
 0xab6   :  { %v4415_v12 = vpop.permute.xlu0 %4414  ;;  %v10490_v51 = vunpack.i.h.bf16 %v10488_v56  ;;  %v10489_v63 = vunpack.i.l.bf16 %v10488_v56 }
 0xab7   :  { %v4425_v43 = vsel %vm3772_vm8, %v10485_v19, %v4415_v12  ;;  %v4449_v10 = vsel %vm3772_vm8, %v4415_v12, %v4367_v1 }
 0xab8   :  { %v4472_v13 = vmul.f32 %v13057_v24, %v4449_v10  ;;  %v4433_v9 = vsel %vm3772_vm8, %v10490_v51, %v10485_v19  ;;  %v4432_v0 = vsel %vm3772_vm8, %v10489_v63, %v10484_v14  ;;  %v4495_v29 = vpack.c.bf16 %v4425_v43, %v4424_v62 }
 0xab9   :  { %v4417_v17 = vpop.permute.xlu1 %4416  ;;  %v4440_v28 = vsel %vm3772_vm8, %v4365_v53, %v10489_v63  ;;  %v4441_v4 = vsel %vm3772_vm8, %v4367_v1, %v10490_v51  ;;  %v4494_v38 = vpack.c.bf16 %v4433_v9, %v4432_v0 }
 0xaba   :  { %v4492_v44 = vpack.c.bf16 %v4472_v13, %v4468_v6  ;;  %4609 = vmatprep.subr.bf16.mxu1 %v4495_v29  ;;  %v4369_v34 = vpop.permute.xlu0 %4368  ;;  %v4493_v57 = vpack.c.bf16 %v4441_v4, %v4440_v28 }
 0xabb   :  { %4610 = vmatpush1.bf16.msra.mxu1 %v4494_v38  ;;  %v4450_v14 = vsel %vm3772_vm8, %v4417_v17, %v4369_v34 }
 0xabc   :  { %4536 = vmatprep.subr.bf16.mxu0 %v4493_v57  ;;  %v4476_v1 = vmul.f32 %v13057_v24, %v4450_v14 }
 0xabd   :  { %4537 = vmatpush1.bf16.msra.mxu0 %v4492_v44  ;;  %v4371_v45 = vpop.permute.xlu1 %4370 }
 0xabe   :  { %v10493_v46 = vpop.permute.xlu0 %10492 }
 0xabf   :  { %v10494_v19 = vunpack.i.l.bf16 %v10493_v46  ;;  %v10495_v56 = vunpack.i.h.bf16 %v10493_v46 }
 0xac1   :  { %v10498_v12 = vpop.permute.xlu1 %10497  ;;  %v4426_v10 = vsel %vm3772_vm8, %v10494_v19, %v4417_v17 }
 0xac2   :  { %v4419_v53 = vpop.permute.xlu0 %4418  ;;  %v10500_v63 = vunpack.i.h.bf16 %v10498_v12  ;;  %v10499_v43 = vunpack.i.l.bf16 %v10498_v12 }
 0xac3   :  { %v4427_v51 = vsel %vm3772_vm8, %v10495_v56, %v4419_v53  ;;  %v4451_v6 = vsel %vm3772_vm8, %v4419_v53, %v4371_v45 }
 0xac4   :  { %v4480_v62 = vmul.f32 %v13057_v24, %v4451_v6  ;;  %v4435_v13 = vsel %vm3772_vm8, %v10500_v63, %v10495_v56  ;;  %v4434_v9 = vsel %vm3772_vm8, %v10499_v43, %v10494_v19  ;;  %v4499_v0 = vpack.c.bf16 %v4427_v51, %v4426_v10  ;;  %v10715_v24 = vld [vmem:[%s15632_s9 + $0x40] sm:$0xff]  }
 0xac5   :  { %v4442_v29 = vsel %vm3772_vm8, %v4369_v34, %v10499_v43  ;;  %v4443_v28 = vsel %vm3772_vm8, %v4371_v45, %v10500_v63  ;;  %v4498_v4 = vpack.c.bf16 %v4435_v13, %v4434_v9 }
 0xac6   :  { %v4496_v38 = vpack.c.bf16 %v4480_v62, %v4476_v1  ;;  %4611 = vmatprep.subr.bf16.mxu1 %v4499_v0  ;;  %v4497_v44 = vpack.c.bf16 %v4443_v28, %v4442_v29 }
 0xac7   :  { %4612 = vmatpush1.bf16.msra.mxu1 %v4498_v4 }
 0xac8   :  { %4538 = vmatprep.subr.bf16.mxu0 %v4497_v44  ;;  %4783 = vmatprep.subr.bf16.mxu1 %v13223_v35  ;;  %v10716_v35 = vld [vmem:[%s15632_s9 + $0x48] sm:$0xff]  }
 0xac9   :  { %4539 = vmatpush1.bf16.msra.mxu0 %v4496_v38 }
 0xaca   :  { %4710 = vmatprep.subr.bf16.mxu0 %v13227_v55  ;;  %9552 = vmatmul.mubr.msk.bf16.vlgmr.msra.gmra.mrb[128].mxu1 %vm602_vm3, %v10715_v24  ;;  %v10719_v55 = vld [vmem:[%s15634_s8 + $0x40] sm:$0xff]  }
 0xacb   :  { %4784 = vmatpush1.bf16.msra.mxu1 %v13220_v30  ;;  %4647 = vmatprep.mubr.bf16.mxu1 %v15935_v52  ;;  %v10717_v30 = vld [vmem:[%s15632_s9 + $0x50] sm:$0xff]  }
 0xacc   :  { %9548 = vmatmul.mubr.msk.bf16.vlgmr.msra.gmra.mrb[128].mxu0 %vm602_vm3, %v10715_v24  ;;  %4785 = vmatprep.subr.bf16.mxu1 %v13238_v37  ;;  %v10721_v37 = vld [vmem:[%s15634_s8 + $0x50] sm:$0xff]  }
 0xacd   :  { %4711 = vmatpush1.bf16.msra.mxu0 %v13225_v21  ;;  %4574 = vmatprep.mubr.bf16.mxu0 %v15935_v52  ;;  %v10718_v21 = vld [vmem:[%s15632_s9 + $0x58] sm:$0xff]  }
 0xace   :  { %4712 = vmatprep.subr.bf16.mxu0 %v13242_v36 }
 0xacf   :  { %4786 = vmatpush1.bf16.msra.mxu1 %v13235_v41  ;;  %v10720_v41 = vld [vmem:[%s15634_s8 + $0x48] sm:$0xff]  }
 0xad0   :  { %4787 = vmatprep.subr.bf16.mxu1 %v13250_v11 }
 0xad1   :  { %4713 = vmatpush1.bf16.msra.mxu0 %v13240_v40  ;;  %v10722_v40 = vld [vmem:[%s15634_s8 + $0x58] sm:$0xff]  }
 0xad2   :  { %4714 = vmatprep.subr.bf16.mxu0 %v13254_v26  ;;  %9553 = vmatmul.mubr.msk.bf16.gmra.mrb[132].mxu1 %vm602_vm3, %v10716_v35  ;;  %v4873_v11 = vpop.permute.xlu1 %4872 }
 0xad3   :  { %4788 = vmatpush1.bf16.msra.mxu1 %v13247_v8  ;;  %4657 = vmatprep.mubr.bf16.mxu1 %v15935_v52  ;;  %v4868_v36 = vpop.permute.xlu0 %4867 }
 0xad4   :  { %9549 = vmatmul.mubr.msk.bf16.gmra.mrb[132].mxu0 %vm602_vm3, %v10716_v35  ;;  %4789 = vmatprep.subr.bf16.mxu1 %v13262_v22 }
 0xad5   :  { %4715 = vmatpush1.bf16.msra.mxu0 %v13252_v16  ;;  %4584 = vmatprep.mubr.bf16.mxu0 %v15935_v52 }
 0xad6   :  { %4716 = vmatprep.subr.bf16.mxu0 %v13266_v5 }
 0xad7   :  { %4790 = vmatpush1.bf16.msra.mxu1 %v13259_v61 }
 0xad9   :  { %4717 = vmatpush1.bf16.msra.mxu0 %v13264_v32 }
 0xada   :  { %9554 = vmatmul.mubr.msk.bf16.gmra.mrb[136].mxu1 %vm602_vm3, %v10717_v30 }
 0xadb   :  { %4667 = vmatprep.mubr.bf16.mxu1 %v15935_v52 }
 0xadc   :  { %9550 = vmatmul.mubr.msk.bf16.gmra.mrb[136].mxu0 %vm602_vm3, %v10717_v30 }
 0xadd   :  { %4594 = vmatprep.mubr.bf16.mxu0 %v15935_v52 }
 0xae2   :  { %9555 = vmatmul.mubr.msk.bf16.gmra.mrb[140].mxu1 %vm602_vm3, %v10718_v21 }
 0xae3   :  { %4815 = vmatprep.mubr.bf16.mxu1 %v15935_v52 }
 0xae4   :  { %9551 = vmatmul.mubr.msk.bf16.gmra.mrb[140].mxu0 %vm602_vm3, %v10718_v21  ;;  %v16201_v21 = vld [vmem:[#allocation5_spill] sm:$0xff] }
 0xae5   :  { %4742 = vmatprep.mubr.bf16.mxu0 %v15935_v52 }
 0xaea   :  { %9564 = vmatmul.mubr.msk.bf16.vlgmr.msra.gmra.mrb[128].mxu1 %vm602_vm3, %v10719_v55 }
 0xaeb   :  { %4825 = vmatprep.mubr.bf16.mxu1 %v15935_v52 }
 0xaec   :  { %9560 = vmatmul.mubr.msk.bf16.vlgmr.msra.gmra.mrb[128].mxu0 %vm602_vm3, %v10719_v55 }
 0xaed   :  { %4752 = vmatprep.mubr.bf16.mxu0 %v15935_v52 }
 0xaf2   :  { %9565 = vmatmul.mubr.msk.bf16.gmra.mrb[132].mxu1 %vm602_vm3, %v10720_v41 }
 0xaf3   :  { %4835 = vmatprep.mubr.bf16.mxu1 %v15935_v52 }
 0xaf4   :  { %9561 = vmatmul.mubr.msk.bf16.gmra.mrb[132].mxu0 %vm602_vm3, %v10720_v41 }
 0xaf5   :  { %4762 = vmatprep.mubr.bf16.mxu0 %v15935_v52 }
 0xafa   :  { %9566 = vmatmul.mubr.msk.bf16.gmra.mrb[136].mxu1 %vm602_vm3, %v10721_v37 }
 0xafb   :  { %4845 = vmatprep.mubr.bf16.mxu1 %v15935_v52 }
 0xafc   :  { %9562 = vmatmul.mubr.msk.bf16.gmra.mrb[136].mxu0 %vm602_vm3, %v10721_v37 }
 0xafd   :  { %4772 = vmatprep.mubr.bf16.mxu0 %v15935_v52 }
 0xb02   :  { %9567 = vmatmul.mubr.msk.bf16.gmra.mrb[140].mxu1 %vm602_vm3, %v10722_v40 }
 0xb03   :  { %5393 = vmatprep.mubr.bf16.mxu1 %v15935_v52 }
 0xb04   :  { %9563 = vmatmul.mubr.msk.bf16.gmra.mrb[140].mxu0 %vm602_vm3, %v10722_v40  ;;  %v4883_v40 = vpop.permute.xlu1 %4882 }
 0xb05   :  { %5320 = vmatprep.mubr.bf16.mxu0 %v15935_v52 }
 0xbbd   :  { %v4817_v8 = vpop.f32.mrb[128].mxu1 }
 0xbbe   :  { %v4907_v16 = vadd.f32 %v4868_v36, %v4817_v8  ;;  %v4819_v26 = vpop.f32.mrb[129].mxu1 }
 0xbbf   :  { %v4744_v61 = vpop.f32.mrb[128].mxu0  ;;  %v4908_v22 = vadd.f32 %v4868_v36, %v4819_v26  ;;  %v4821_v32 = vpop.f32.mrb[130].mxu1 }
 0xbc0   :  { %v4939_v5 = vmax.f32 %v4907_v16, 0.0  ;;  %v4905_v17 = vadd.f32 %v4868_v36, %v4744_v61  ;;  %v4746_v34 = vpop.f32.mrb[129].mxu0  ;;  %v4911_v57 = vadd.f32 %v4873_v11, %v4821_v32  ;;  %v4823_v45 = vpop.f32.mrb[131].mxu1  ;;  %v16202_v32 = vld [vmem:[#allocation3_spill] sm:$0xff] }
 0xbc1   :  { %v4940_v46 = vmax.f32 %v4908_v22, 0.0  ;;  %v4906_v19 = vadd.f32 %v4868_v36, %v4746_v34  ;;  %v4748_v14 = vpop.f32.mrb[130].mxu0  ;;  %v13449_v63 = vadd.f32 %v4873_v11, %v4823_v45 }
 0xbc2   :  { %v13447_v56 = vadd.f32 %v4939_v5, %v12628_v31  ;;  %v4937_v12 = vmax.f32 %v4905_v17, 0.0  ;;  %v4943_v53 = vmax.f32 %v4911_v57, 0.0  ;;  %v4750_v43 = vpop.f32.mrb[131].mxu0  ;;  %v4909_v10 = vadd.f32 %v4873_v11, %v4748_v14  ;;  %v16204_v57 = vld [vmem:[#allocation4_spill] sm:$0xff] }
 0xbc3   :  { %v13452_v1 = vadd.f32 %v4940_v46, %v12632_v58  ;;  %v5004_v51 = vadd.f32 %v4940_v46, %v12653_v3  ;;  %v4938_v6 = vmax.f32 %v4906_v19, 0.0  ;;  %v4878_v58 = vpop.permute.xlu0 %4877  ;;  %v4944_v4 = vmax.f32 %v13449_v63, 0.0 }
 0xbc4   :  { %v13456_v62 = vadd.f32 %v4937_v12, %v12640_v50  ;;  %v5001_v13 = vadd.f32 %v4937_v12, %v12657_v48  ;;  %v13460_v31 = vadd.f32 %v4943_v53, %v12643_v20  ;;  %v4941_v3 = vmax.f32 %v4909_v10, 0.0 }
 0xbc5   :  { %v13462_v9 = vmax.f32 %v5004_v51, 0.0  ;;  %v13465_v0 = vadd.f32 %v4938_v6, %v12655_v25  ;;  %v4827_v29 = vpop.f32.mrb[132].mxu1  ;;  %v4910_v38 = vadd.f32 %v4873_v11, %v4750_v43  ;;  %v5007_v25 = vadd.f32 %v4943_v53, %v12701_v39  ;;  %v16208_v51 = vld [vmem:[#allocation7_spill] sm:$0xff] }
 0xbc6   :  { %v13467_v28 = vmax.f32 %v5001_v13, 0.0  ;;  %v4829_v50 = vpop.f32.mrb[133].mxu1  ;;  %v13470_v44 = vadd.f32 %v4878_v58, %v4827_v29  ;;  %v13476_v35 = vadd.f32 %v4941_v3, %v12675_v42  ;;  %v5005_v30 = vadd.f32 %v4941_v3, %v12684_v60  ;;  %v16210_v13 = vld [vmem:[#allocation6_spill] sm:$0xff] }
 0xbc7   :  { %v4754_v48 = vpop.f32.mrb[132].mxu0  ;;  %v4916_v24 = vadd.f32 %v4878_v58, %v4829_v50  ;;  %5159 = vrot.lane.b32.xlu1 %v13462_v9, %s10777_s24  ;;  %v4831_v20 = vpop.f32.mrb[134].mxu1  ;;  %v13480_v55 = vadd.f32 %v4944_v4, %v16201_v21  ;;  %v4942_v36 = vmax.f32 %v4910_v38, 0.0  ;;  %v5003_v42 = vadd.f32 %v4939_v5, %v12718_v15  ;;  %v16206_v15 = vld [vmem:[#allocation9_spill] sm:$0xff]  ;;  %v16212_v38 = vld [vmem:[#allocation10_spill] sm:$0xff] }
 0xbc8   :  { %5111 = vrot.lane.b32.xlu0 %v13467_v28, %s10777_s24  ;;  %v4756_v41 = vpop.f32.mrb[133].mxu0  ;;  %v4833_v37 = vpop.f32.mrb[135].mxu1  ;;  %v4947_v8 = vmax.f32 %v13470_v44, 0.0  ;;  %v4913_v11 = vadd.f32 %v4878_v58, %v4754_v48  ;;  %v13486_v26 = vmax.f32 %v5005_v30, 0.0  ;;  %v4919_v60 = vadd.f32 %v4883_v40, %v4831_v20 }
 0xbc9   :  { %v4948_v16 = vmax.f32 %v4916_v24, 0.0  ;;  %v4758_v39 = vpop.f32.mrb[134].mxu0  ;;  %v13488_v61 = vadd.f32 %v4878_v58, %v4756_v41  ;;  %v13491_v17 = vadd.f32 %v4942_v36, %v16202_v32  ;;  %v5006_v34 = vadd.f32 %v4942_v36, %v12729_v59  ;;  %v4888_v36 = vpop.permute.xlu0 %4887 }
 0xbca   :  { %v4760_v22 = vpop.f32.mrb[135].mxu0  ;;  %v13497_v45 = vadd.f32 %v4947_v8, %v16204_v57  ;;  %v13499_v46 = vmax.f32 %v5007_v25, 0.0  ;;  %v4945_v19 = vmax.f32 %v4913_v11, 0.0  ;;  %v4951_v14 = vmax.f32 %v4919_v60, 0.0 }
 0xbcb   :  { %16203 = vst [vmem:[#allocation30_spill] sm:$0xff] %v13491_v17  ;;  %v13502_v5 = vadd.f32 %v4948_v16, %v16206_v15  ;;  %5113 = vrot.lane.b32.xlu1 %v13486_v26, %s10777_s24  ;;  %v5002_v12 = vadd.f32 %v4938_v6, %v12746_v49  ;;  %v15796_v53 = vmax.f32 %v13488_v61, 0.0  ;;  %v4917_v59 = vadd.f32 %v4883_v40, %v4758_v39 }
 0xbcc   :  { %16205 = vst [vmem:[#allocation61_spill] sm:$0xff] %v13497_v45  ;;  %v13508_v43 = vmax.f32 %v5003_v42, 0.0  ;;  %v13511_v10 = vadd.f32 %v4945_v19, %v16208_v51  ;;  %v13514_v29 = vadd.f32 %v4951_v14, %v16210_v13  ;;  %v13516_v3 = vmax.f32 %v5006_v34, 0.0  ;;  %v16214_v42 = vld [vmem:[#allocation8_spill] sm:$0xff]  ;;  %v4893_v34 = vpop.permute.xlu1 %4892  ;;  %v16218_v13 = vld [vmem:[#allocation50_spill] sm:$0xff] }
 0xbcd   :  { %16207 = vst [vmem:[#allocation63_spill] sm:$0xff] %v13502_v5  ;;  %v4837_v63 = vpop.f32.mrb[136].mxu1  ;;  %v13521_v50 = vadd.f32 %v15796_v53, %v16212_v38  ;;  %v4949_v49 = vmax.f32 %v4917_v59, 0.0  ;;  %v5008_v24 = vadd.f32 %v4944_v4, %v12768_v2  ;;  %v13524_v20 = vadd.f32 %v4883_v40, %v4833_v37  ;;  %v16216_v59 = vld [vmem:[#allocation14_spill] sm:$0xff] }
 0xbce   :  { %16209 = vst [vmem:[#allocation66_spill] sm:$0xff] %v13511_v10  ;;  %16211 = vst [vmem:[#allocation28_spill] sm:$0xff] %v13514_v29  ;;  %v4839_v58 = vpop.f32.mrb[137].mxu1  ;;  %v13526_v25 = vadd.f32 %v4883_v40, %v4760_v22  ;;  %v10501_v30 = vpack.i.bf16 %v13499_v46, %v13508_v43  ;;  %v13530_v11 = vmax.f32 %v5002_v12, 0.0  ;;  %v5012_v39 = vadd.f32 %v4948_v16, %v12787_v54 }
 0xbcf   :  { %16213 = vst [vmem:[#allocation32_spill] sm:$0xff] %v13521_v50  ;;  %v4764_v6 = vpop.f32.mrb[136].mxu0  ;;  %v4841_v48 = vpop.f32.mrb[138].mxu1  ;;  %v13534_v60 = vadd.f32 %v4949_v49, %v16214_v42  ;;  %v4952_v2 = vmax.f32 %v13524_v20, 0.0  ;;  %v13539_v37 = vadd.f32 %v4888_v36, %v4837_v63  ;;  %v13543_v57 = vadd.f32 %v4888_v36, %v4839_v58 }
 0xbd0   :  { %v4766_v21 = vpop.f32.mrb[137].mxu0  ;;  %v4843_v41 = vpop.f32.mrb[139].mxu1  ;;  %v4950_v4 = vmax.f32 %v13526_v25, 0.0  ;;  %10502 = vrot.lane.b32.xlu0 %v10501_v30, %s10777_s24  ;;  %v13541_v40 = vadd.f32 %v4888_v36, %v4764_v6  ;;  %v13545_v15 = vadd.f32 %v4893_v34, %v4841_v48  ;;  %v10506_v54 = vpack.i.bf16 %v13516_v3, %v13530_v11 }
 0xbd1   :  { %16215 = vst [vmem:[#allocation29_spill] sm:$0xff] %v13534_v60  ;;  %v4768_v32 = vpop.f32.mrb[138].mxu0  ;;  %v13549_v16 = vmax.f32 %v5008_v24, 0.0  ;;  %v5009_v12 = vadd.f32 %v4945_v19, %v12809_v18  ;;  %v13553_v51 = vadd.f32 %v4952_v2, %v16216_v59  ;;  %v15797_v38 = vmax.f32 %v13539_v37, 0.0  ;;  %v16220_v59 = vld [vmem:[#allocation11_spill] sm:$0xff] }
 0xbd2   :  { %v4770_v22 = vpop.f32.mrb[139].mxu0  ;;  %v13556_v63 = vadd.f32 %v4950_v4, %v16218_v13  ;;  %v15799_v58 = vmax.f32 %v13541_v40, 0.0  ;;  %v15798_v6 = vmax.f32 %v13543_v57, 0.0  ;;  %v15800_v48 = vmax.f32 %v13545_v15, 0.0  ;;  %10507 = vrot.lane.b32.xlu1 %v10506_v54, %s10777_s24  ;;  %v16222_v54 = vld [vmem:[#allocation47_spill] sm:$0xff] }
 0xbd3   :  { %16217 = vst [vmem:[#allocation69_spill] sm:$0xff] %v13553_v51  ;;  %v13563_v20 = vmax.f32 %v5012_v39, 0.0  ;;  %v13567_v18 = vadd.f32 %v4888_v36, %v4766_v21  ;;  %v13569_v19 = vadd.f32 %v4893_v34, %v4768_v32  ;;  %v5015_v30 = vadd.f32 %v4951_v14, %v12844_v7  ;;  %v16224_v32 = vld [vmem:[#allocation12_spill] sm:$0xff] }
 0xbd4   :  { %16219 = vst [vmem:[#allocation36_spill] sm:$0xff] %v13556_v63  ;;  %5161 = vrot.lane.b32.xlu0 %v13549_v16, %s10777_s24  ;;  %v5013_v42 = vadd.f32 %v4949_v49, %v12846_v33  ;;  %v13576_v13 = vadd.f32 %v15797_v38, %v16220_v59  ;;  %v13581_v39 = vadd.f32 %v15799_v58, %v16222_v54  ;;  %v13583_v36 = vmax.f32 %v5009_v12, 0.0  ;;  %v16226_v33 = vld [vmem:[#allocation48_spill] sm:$0xff] }
 0xbd5   :  { %v4847_v24 = vpop.f32.mrb[140].mxu1  ;;  %v13588_v7 = vadd.f32 %v15798_v6, %v16224_v32  ;;  %v13593_v14 = vadd.f32 %v15800_v48, %v16226_v33  ;;  %v5011_v54 = vadd.f32 %v4947_v8, %v12862_v27  ;;  %v15801_v38 = vmax.f32 %v13567_v18, 0.0  ;;  %v4898_v48 = vpop.permute.xlu0 %4897  ;;  %v16228_v27 = vld [vmem:[#allocation13_spill] sm:$0xff] }
 0xbd6   :  { %v4849_v25 = vpop.f32.mrb[141].mxu1  ;;  %16221 = vst [vmem:[#allocation76_spill] sm:$0xff] %v13576_v13  ;;  %16223 = vst [vmem:[#allocation33_spill] sm:$0xff] %v13581_v39  ;;  %v4957_v12 = vmax.f32 %v13569_v19, 0.0  ;;  %5163 = vrot.lane.b32.xlu1 %v13563_v20, %s10777_s24  ;;  %v13602_v6 = vadd.f32 %v4893_v34, %v4843_v41  ;;  %v4926_v58 = vadd.f32 %v4893_v34, %v4770_v22  ;;  %v13608_v44 = vmax.f32 %v5013_v42, 0.0  ;;  %v16230_v19 = vld [vmem:[#allocation49_spill] sm:$0xff]  ;;  %v4903_v41 = vpop.permute.xlu1 %4902 }
 0xbd7   :  { %v4774_v53 = vpop.f32.mrb[140].mxu0  ;;  %v4851_v21 = vpop.f32.mrb[142].mxu1  ;;  %16225 = vst [vmem:[#allocation73_spill] sm:$0xff] %v13588_v7  ;;  %16227 = vst [vmem:[#allocation37_spill] sm:$0xff] %v13593_v14  ;;  %v13606_v14 = vmax.f32 %v5015_v30, 0.0  ;;  %v13613_v8 = vadd.f32 %v15801_v38, %v16228_v27  ;;  %v13619_v39 = vadd.f32 %v4898_v48, %v4847_v24  ;;  %v13621_v63 = vmax.f32 %v5011_v54, 0.0 }
 0xbd8   :  { %v4776_v49 = vpop.f32.mrb[141].mxu0  ;;  %v4853_v59 = vpop.f32.mrb[143].mxu1  ;;  %5115 = vrot.lane.b32.xlu0 %v13583_v36, %s10777_s24  ;;  %v13616_v7 = vadd.f32 %v4957_v12, %v16230_v19  ;;  %v4960_v34 = vmax.f32 %v13602_v6, 0.0  ;;  %v4958_v22 = vmax.f32 %v4926_v58, 0.0  ;;  %v4929_v13 = vadd.f32 %v4898_v48, %v4774_v53  ;;  %v16232_v27 = vld [vmem:[#allocation16_spill] sm:$0xff]  ;;  %v16235_v6 = vld [vmem:[#allocation17_spill] sm:$0xff] }
 0xbd9   :  { %v4778_v32 = vpop.f32.mrb[142].mxu0  ;;  %16229 = vst [vmem:[#allocation39_spill] sm:$0xff] %v13613_v8  ;;  %v5014_v30 = vadd.f32 %v4950_v4, %v12901_v23  ;;  %v4932_v42 = vadd.f32 %v4898_v48, %v4849_v25  ;;  %v4935_v51 = vadd.f32 %v4903_v41, %v4851_v21  ;;  %v16233_v19 = vmax.f32 %v13488_v61, 0.0  ;;  %v16237_v24 = vld [vmem:[#allocation53_spill] sm:$0xff]  ;;  %v16240_v61 = vld [vmem:[#allocation15_spill] sm:$0xff] }
 0xbda   :  { %v4780_v33 = vpop.f32.mrb[143].mxu0  ;;  %16231 = vst [vmem:[#allocation67_spill] sm:$0xff] %v13616_v7  ;;  %5117 = vrot.lane.b32.xlu1 %v13608_v44, %s10777_s24  ;;  %v16234_v7 = vld [vmem:[#allocation52_spill] sm:$0xff]  ;;  %v13631_v58 = vadd.f32 %v4960_v34, %v16235_v6  ;;  %v13634_v53 = vadd.f32 %v4958_v22, %v16237_v24  ;;  %v4963_v54 = vmax.f32 %v13619_v39, 0.0  ;;  %v4961_v23 = vmax.f32 %v4929_v13, 0.0  ;;  %v16246_v24 = vld [vmem:[#allocation54_spill] sm:$0xff] }
 0xbdb   :  { %v5010_v38 = vadd.f32 %v16233_v19, %v16232_v27  ;;  %v5016_v8 = vadd.f32 %v4952_v2, %v16234_v7  ;;  %v4964_v4 = vmax.f32 %v4932_v42, 0.0  ;;  %v4967_v25 = vmax.f32 %v4935_v51, 0.0  ;;  %v16242_v2 = vld [vmem:[#allocation51_spill] sm:$0xff]  ;;  %v16244_v19 = vld [vmem:[#allocation18_spill] sm:$0xff] }
 0xbdc   :  { %16236 = vst [vmem:[#allocation68_spill] sm:$0xff] %v13631_v58  ;;  %16238 = vst [vmem:[#allocation70_spill] sm:$0xff] %v13634_v53  ;;  %v10511_v21 = vpack.i.bf16 %v13606_v14, %v13621_v63  ;;  %v4930_v60 = vadd.f32 %v4898_v48, %v4776_v49  ;;  %v13639_v50 = vmax.f32 %v5014_v30, 0.0  ;;  %v13642_v27 = vadd.f32 %v4963_v54, %v16240_v61  ;;  %v16250_v30 = vld [vmem:[#allocation19_spill] sm:$0xff] }
 0xbdd   :  { %v13645_v7 = vadd.f32 %v4961_v23, %v16242_v2  ;;  %v13648_v6 = vadd.f32 %v4964_v4, %v16244_v19  ;;  %v13651_v39 = vadd.f32 %v4967_v25, %v16246_v24  ;;  %v13654_v51 = vmax.f32 %v5010_v38, 0.0  ;;  %v16252_v2 = vld [vmem:[#allocation55_spill] sm:$0xff]  ;;  %v16254_v24 = vld [vmem:[#allocation21_spill] sm:$0xff]  ;;  %v16256_v38 = vld [vmem:[#allocation22_spill] sm:$0xff] }
 0xbde   :  { %16239 = vst [vmem:[#allocation34_spill] sm:$0xff] %v13639_v50  ;;  %16241 = vst [vmem:[#allocation74_spill] sm:$0xff] %v13642_v27  ;;  %10512 = vrot.lane.b32.xlu0 %v10511_v21, %s10777_s24  ;;  %v13656_v13 = vmax.f32 %v5016_v8, 0.0  ;;  %v4962_v48 = vmax.f32 %v4930_v60, 0.0  ;;  %v4933_v49 = vadd.f32 %v4903_v41, %v4778_v32  ;;  %v16251_v42 = vmax.f32 %v13541_v40, 0.0  ;;  %v16258_v32 = vld [vmem:[#allocation56_spill] sm:$0xff] }
 0xbdf   :  { %16243 = vst [vmem:[#allocation71_spill] sm:$0xff] %v13645_v7  ;;  %16245 = vst [vmem:[#allocation35_spill] sm:$0xff] %v13648_v6  ;;  %v16253_v7 = vmax.f32 %v13545_v15, 0.0  ;;  %v4936_v6 = vadd.f32 %v4903_v41, %v4853_v59  ;;  %v4934_v27 = vadd.f32 %v4903_v41, %v4780_v33  ;;  %v10516_v60 = vpack.i.bf16 %v13639_v50, %v13654_v51  ;;  %v16260_v59 = vld [vmem:[#allocation59_spill] sm:$0xff] }
 0xbe0   :  { %16247 = vst [vmem:[#allocation38_spill] sm:$0xff] %v13651_v39  ;;  %16248 = vst [vmem:[#allocation75_spill] sm:$0xff] %v13654_v51  ;;  %v5017_v61 = vadd.f32 %v16251_v42, %v16250_v30  ;;  %v16255_v39 = vmax.f32 %v13543_v57, 0.0  ;;  %v13668_v53 = vadd.f32 %v4962_v48, %v16256_v38  ;;  %v4965_v8 = vmax.f32 %v4933_v49, 0.0  ;;  %v16266_v49 = vld [vmem:[#allocation57_spill] sm:$0xff] }
 0xbe1   :  { %16249 = vst [vmem:[#allocation77_spill] sm:$0xff] %v13656_v13  ;;  %v5023_v19 = vadd.f32 %v16253_v7, %v16252_v2  ;;  %v16259_v40 = vmax.f32 %v13539_v37, 0.0  ;;  %v4968_v42 = vmax.f32 %v4936_v6, 0.0  ;;  %v4966_v15 = vmax.f32 %v4934_v27, 0.0  ;;  %10517 = vrot.lane.b32.xlu1 %v10516_v60, %s10777_s24  ;;  %v16264_v7 = vld [vmem:[#allocation20_spill] sm:$0xff]  ;;  %v16269_v27 = vld [vmem:[#allocation25_spill] sm:$0xff] }
 0xbe2   :  { %v5020_v21 = vadd.f32 %v16255_v39, %v16254_v24  ;;  %16257 = vst [vmem:[#allocation41_spill] sm:$0xff] %v13668_v53  ;;  %5165 = vrot.lane.b32.xlu0 %v13656_v13, %s10777_s24  ;;  %v13678_v33 = vadd.f32 %v4965_v8, %v16260_v59  ;;  %v13681_v57 = vmax.f32 %v5017_v61, 0.0  ;;  %v5021_v2 = vadd.f32 %v4957_v12, %v16269_v27  ;;  %v16270_v24 = vld [vmem:[#allocation64_spill] sm:$0xff]  ;;  %v16272_v61 = vld [vmem:[#allocation23_spill] sm:$0xff]  ;;  %v16280_v27 = vld [vmem:[#allocation65_spill] sm:$0xff] }
 0xbe3   :  { %v5019_v30 = vadd.f32 %v16259_v40, %v16258_v32  ;;  %v13683_v41 = vmax.f32 %v5023_v19, 0.0  ;;  %v13686_v39 = vadd.f32 %v4968_v42, %v16264_v7  ;;  %v13689_v37 = vadd.f32 %v4966_v15, %v16266_v49  ;;  %v16274_v40 = vld [vmem:[#allocation60_spill] sm:$0xff]  ;;  %v16279_v7 = vld [vmem:[#allocation26_spill] sm:$0xff] }
 0xbe4   :  { %16261 = vst [vmem:[#allocation40_spill] sm:$0xff] %v13678_v33  ;;  %16262 = vst [vmem:[#allocation42_spill] sm:$0xff] %v13681_v57  ;;  %v13691_v6 = vmax.f32 %v5020_v21, 0.0  ;;  %v5022_v38 = vadd.f32 %v4958_v22, %v16270_v24  ;;  %v16273_v19 = vmax.f32 %v13567_v18, 0.0  ;;  %v5024_v59 = vadd.f32 %v4960_v34, %v16274_v40  ;;  %v16281_v24 = vld [vmem:[#allocation24_spill] sm:$0xff] }
 0xbe5   :  { %16263 = vst [vmem:[#allocation43_spill] sm:$0xff] %v13683_v41  ;;  %16265 = vst [vmem:[#allocation44_spill] sm:$0xff] %v13686_v39  ;;  %v13695_v32 = vmax.f32 %v5019_v30, 0.0  ;;  %v13707_v12 = vmax.f32 %v5021_v2, 0.0  ;;  %v5025_v49 = vadd.f32 %v4961_v23, %v16279_v7  ;;  %v5031_v34 = vadd.f32 %v4967_v25, %v16280_v27  ;;  %v16286_v23 = vld [vmem:[#allocation58_spill] sm:$0xff] }
 0xbe6   :  { %16267 = vst [vmem:[#allocation45_spill] sm:$0xff] %v13689_v37  ;;  %16268 = vst [vmem:[#allocation46_spill] sm:$0xff] %v13691_v6  ;;  %5119 = vrot.lane.b32.xlu0 %v13681_v57, %s10777_s24  ;;  %v5018_v60 = vadd.f32 %v16273_v19, %v16272_v61  ;;  %5167 = vrot.lane.b32.xlu1 %v13691_v6, %s10777_s24  ;;  %v13709_v22 = vmax.f32 %v5022_v38, 0.0  ;;  %v13716_v18 = vmax.f32 %v5024_v59, 0.0  ;;  %v16282_v38 = vld [vmem:[#allocation62_spill] sm:$0xff] }
 0xbe7   :  { %16271 = vst [vmem:[#allocation78_spill] sm:$0xff] %v13695_v32  ;;  %v10521_v21 = vpack.i.bf16 %v13683_v41, %v13695_v32  ;;  %16275 = vst [vmem:[#allocation5_spill] sm:$0xff] %v13707_v12  ;;  %v5028_v61 = vadd.f32 %v4964_v4, %v16281_v24  ;;  %v5027_v19 = vadd.f32 %v4963_v54, %v16282_v38  ;;  %v13729_v40 = vmax.f32 %v5031_v34, 0.0  ;;  %v16289_v54 = vld [vmem:[#allocation72_spill] sm:$0xff] }
 0xbe8   :  { %16276 = vst [vmem:[#allocation3_spill] sm:$0xff] %v13709_v22  ;;  %v13712_v30 = vmax.f32 %v5018_v60, 0.0  ;;  %16278 = vst [vmem:[#allocation9_spill] sm:$0xff] %v13716_v18  ;;  %v13727_v60 = vmax.f32 %v5025_v49, 0.0  ;;  %v5029_v25 = vadd.f32 %v4965_v8, %v16286_v23  ;;  %v5026_v27 = vadd.f32 %v4962_v48, %v16289_v54  ;;  %v16290_v49 = vld [vmem:[#allocation27_spill] sm:$0xff]  ;;  %v9620_v23 = vld [vmem:[%s15630_s7 + $0xd8] sm:$0xff] }
 0xbe9   :  { %16284 = vst [vmem:[#allocation6_spill] sm:$0xff] %v13729_v40  ;;  %v13731_v59 = vmax.f32 %v5028_v61, 0.0  ;;  %v13735_v7 = vmax.f32 %v5027_v19, 0.0  ;;  %v5032_v24 = vadd.f32 %v4968_v42, %v16290_v49  ;;  %v9617_v42 = vld [vmem:[%s15630_s7 + $0xc0] sm:$0xff]  ;;  %v9618_v38 = vld [vmem:[%s15630_s7 + $0xc8] sm:$0xff]  ;;  %v9619_v19 = vld [vmem:[%s15630_s7 + $0xd0] sm:$0xff] }
 0xbea   :  { %10522 = vrot.lane.b32.xlu0 %v10521_v21, %s10777_s24  ;;  %16277 = vst [vmem:[#allocation4_spill] sm:$0xff] %v13712_v30  ;;  %5121 = vrot.lane.b32.xlu1 %v13707_v12, %s10777_s24  ;;  %v10526_v2 = vpack.i.bf16 %v13709_v22, %v13712_v30  ;;  %16283 = vst [vmem:[#allocation7_spill] sm:$0xff] %v13727_v60  ;;  %v16287_v21 = vld [vmem:[#allocation31_spill] sm:$0xff]  ;;  %v13745_v61 = vmax.f32 %v5029_v25, 0.0  ;;  %v9624_v54 = vld [vmem:[%s15630_s7 + $0xf8] sm:$0xff] }
 0xbeb   :  { %16285 = vst [vmem:[#allocation10_spill] sm:$0xff] %v13731_v59  ;;  %v5030_v4 = vadd.f32 %v4966_v15, %v16287_v21  ;;  %16288 = vst [vmem:[#allocation8_spill] sm:$0xff] %v13735_v7  ;;  %v10531_v34 = vpack.i.bf16 %v13729_v40, %v13735_v7  ;;  %v13750_v15 = vmax.f32 %v5026_v27, 0.0  ;;  %v13754_v48 = vmax.f32 %v5032_v24, 0.0  ;;  %v9621_v25 = vld [vmem:[%s15630_s7 + $0xe0] sm:$0xff]  ;;  %v9622_v21 = vld [vmem:[%s15630_s7 + $0xe8] sm:$0xff] }
 0xbec   :  { %16291 = vst [vmem:[#allocation14_spill] sm:$0xff] %v13745_v61 }
 0xbed   :  { %v13747_v8 = vmax.f32 %v5030_v4, 0.0  ;;  %16293 = vst [vmem:[#allocation11_spill] sm:$0xff] %v13750_v15  ;;  %16294 = vst [vmem:[#allocation47_spill] sm:$0xff] %v13754_v48  ;;  %v9623_v4 = vld [vmem:[%s15630_s7 + $0xf0] sm:$0xff] }
 0xbee   :  { %5169 = vrot.lane.b32.xlu0 %v13716_v18, %s10777_s24  ;;  %10527 = vrot.lane.b32.xlu1 %v10526_v2, %s10777_s24 }
 0xbef   :  { %16292 = vst [vmem:[#allocation50_spill] sm:$0xff] %v13747_v8  ;;  %v10536_v2 = vpack.i.bf16 %v13747_v8, %v13750_v15 }
 0xbf2   :  { %5123 = vrot.lane.b32.xlu0 %v13727_v60, %s10777_s24  ;;  %5171 = vrot.lane.b32.xlu1 %v13731_v59, %s10777_s24 }
 0xbf6   :  { %10532 = vrot.lane.b32.xlu0 %v10531_v34, %s10777_s24  ;;  %5125 = vrot.lane.b32.xlu1 %v13745_v61, %s10777_s24 }
 0xbfa   :  { %5173 = vrot.lane.b32.xlu0 %v13754_v48, %s10777_s24  ;;  %10537 = vrot.lane.b32.xlu1 %v10536_v2, %s10777_s24 }
 0xbfe   :  { %5623 = vperm.xlu0 %10259, %v9617_v42   ;;  %5628 = vperm.xlu1 %10260, %v9618_v38   ;;  %v16295_v42 = vmov 0.0  }
 0xbff   :  { %v13788_v38 = vsel %vm5065_vm11, 1.0, %v16295_v42 }
 0xc02   :  { %5633 = vperm.xlu0 %10259, %v9619_v19   ;;  %5638 = vperm.xlu1 %10260, %v9620_v23  }
 0xc06   :  { %5643 = vperm.xlu0 %10259, %v9621_v25   ;;  %5648 = vperm.xlu1 %10260, %v9622_v21  }
 0xc0a   :  { %5653 = vperm.xlu0 %10259, %v9623_v4   ;;  %5658 = vperm.xlu1 %10260, %v9624_v54  }
 0xc39   :  { %v5160_v27 = vpop.permute.xlu1 %5159 }
 0xc3a   :  { %v5112_v49 = vpop.permute.xlu0 %5111 }
 0xc3b   :  { %v5200_v19 = vsel %vm5175_vm10, %v5160_v27, %v5112_v49 }
 0xc3c   :  { %v5208_v37 = vmul.f32 %v13788_v38, %v5200_v19 }
 0xc3d   :  { %v5114_v24 = vpop.permute.xlu1 %5113 }
 0xc42   :  { %v10503_v34 = vpop.permute.xlu0 %10502 }
 0xc43   :  { %v10504_v2 = vunpack.i.l.bf16 %v10503_v34  ;;  %v10505_v23 = vunpack.i.h.bf16 %v10503_v34 }
 0xc44   :  { %v10508_v25 = vpop.permute.xlu1 %10507 }
 0xc45   :  { %v10510_v4 = vunpack.i.h.bf16 %v10508_v25  ;;  %v10509_v54 = vunpack.i.l.bf16 %v10508_v25  ;;  %v5176_v42 = vsel %vm5175_vm10, %v10504_v2, %v5160_v27 }
 0xc46   :  { %v5162_v21 = vpop.permute.xlu0 %5161 }
 0xc47   :  { %v5177_v39 = vsel %vm5175_vm10, %v10505_v23, %v5162_v21  ;;  %v5201_v33 = vsel %vm5175_vm10, %v5162_v21, %v5114_v24  ;;  %v5185_v34 = vsel %vm5175_vm10, %v10510_v4, %v10505_v23  ;;  %v5184_v58 = vsel %vm5175_vm10, %v10509_v54, %v10504_v2 }
 0xc48   :  { %v5212_v53 = vmul.f32 %v13788_v38, %v5201_v33  ;;  %v5243_v25 = vpack.c.bf16 %v5177_v39, %v5176_v42  ;;  %v5192_v19 = vsel %vm5175_vm10, %v5112_v49, %v10509_v54  ;;  %v5193_v29 = vsel %vm5175_vm10, %v5114_v24, %v10510_v4  ;;  %v5164_v27 = vpop.permute.xlu1 %5163 }
 0xc49   :  { %v5242_v10 = vpack.c.bf16 %v5185_v34, %v5184_v58  ;;  %v5241_v5 = vpack.c.bf16 %v5193_v29, %v5192_v19 }
 0xc4a   :  { %v5240_v21 = vpack.c.bf16 %v5212_v53, %v5208_v37  ;;  %5361 = vmatprep.subr.bf16.mxu1 %v5243_v25  ;;  %v5116_v33 = vpop.permute.xlu0 %5115 }
 0xc4b   :  { %5362 = vmatpush1.bf16.msra.mxu1 %v5242_v10  ;;  %5288 = vmatprep.subr.bf16.mxu0 %v5241_v5  ;;  %v5202_v39 = vsel %vm5175_vm10, %v5164_v27, %v5116_v33 }
 0xc4c   :  { %5289 = vmatpush1.bf16.msra.mxu0 %v5240_v21  ;;  %v5118_v23 = vpop.permute.xlu1 %5117 }
 0xc50   :  { %v10513_v45 = vpop.permute.xlu0 %10512 }
 0xc51   :  { %v10514_v17 = vunpack.i.l.bf16 %v10513_v45  ;;  %v10515_v2 = vunpack.i.h.bf16 %v10513_v45  ;;  %v5216_v45 = vmul.f32 %v13788_v38, %v5202_v39 }
 0xc53   :  { %v10518_v29 = vpop.permute.xlu1 %10517  ;;  %v5178_v10 = vsel %vm5175_vm10, %v10514_v17, %v5164_v27 }
 0xc54   :  { %v5166_v49 = vpop.permute.xlu0 %5165  ;;  %v10520_v53 = vunpack.i.h.bf16 %v10518_v29  ;;  %v10519_v37 = vunpack.i.l.bf16 %v10518_v29 }
 0xc55   :  { %v5179_v24 = vsel %vm5175_vm10, %v10515_v2, %v5166_v49  ;;  %v5203_v58 = vsel %vm5175_vm10, %v5166_v49, %v5118_v23 }
 0xc56   :  { %v5220_v5 = vmul.f32 %v13788_v38, %v5203_v58  ;;  %v5247_v42 = vpack.c.bf16 %v5179_v24, %v5178_v10  ;;  %v5187_v4 = vsel %vm5175_vm10, %v10520_v53, %v10515_v2  ;;  %v5186_v54 = vsel %vm5175_vm10, %v10519_v37, %v10514_v17 }
 0xc57   :  { %v5194_v25 = vsel %vm5175_vm10, %v5116_v33, %v10519_v37  ;;  %v5195_v27 = vsel %vm5175_vm10, %v5118_v23, %v10520_v53  ;;  %v5246_v49 = vpack.c.bf16 %v5187_v4, %v5186_v54 }
 0xc58   :  { %5363 = vmatprep.subr.bf16.mxu1 %v5247_v42  ;;  %v5120_v34 = vpop.permute.xlu0 %5119  ;;  %v5244_v19 = vpack.c.bf16 %v5220_v5, %v5216_v45  ;;  %v5168_v21 = vpop.permute.xlu1 %5167  ;;  %v5245_v24 = vpack.c.bf16 %v5195_v27, %v5194_v25 }
 0xc59   :  { %5364 = vmatpush1.bf16.msra.mxu1 %v5246_v49  ;;  %v5204_v17 = vsel %vm5175_vm10, %v5168_v21, %v5120_v34 }
 0xc5a   :  { %5290 = vmatprep.subr.bf16.mxu0 %v5245_v24  ;;  %v5224_v54 = vmul.f32 %v13788_v38, %v5204_v17 }
 0xc5b   :  { %5291 = vmatpush1.bf16.msra.mxu0 %v5244_v19 }
 0xc5c   :  { %v10523_v39 = vpop.permute.xlu0 %10522  ;;  %v5122_v58 = vpop.permute.xlu1 %5121 }
 0xc5d   :  { %v10524_v2 = vunpack.i.l.bf16 %v10523_v39  ;;  %v10525_v29 = vunpack.i.h.bf16 %v10523_v39 }
 0xc5f   :  { %v5180_v53 = vsel %vm5175_vm10, %v10524_v2, %v5168_v21 }
 0xc60   :  { %v5170_v10 = vpop.permute.xlu0 %5169  ;;  %v10528_v23 = vpop.permute.xlu1 %10527 }
 0xc61   :  { %v5181_v33 = vsel %vm5175_vm10, %v10525_v29, %v5170_v10  ;;  %v5205_v5 = vsel %vm5175_vm10, %v5170_v10, %v5122_v58  ;;  %v10530_v42 = vunpack.i.h.bf16 %v10528_v23  ;;  %v10529_v45 = vunpack.i.l.bf16 %v10528_v23 }
 0xc62   :  { %v5228_v37 = vmul.f32 %v13788_v38, %v5205_v5  ;;  %v5251_v4 = vpack.c.bf16 %v5181_v33, %v5180_v53 }
 0xc63   :  { %v5189_v25 = vsel %vm5175_vm10, %v10530_v42, %v10525_v29  ;;  %v5188_v19 = vsel %vm5175_vm10, %v10529_v45, %v10524_v2  ;;  %v5196_v49 = vsel %vm5175_vm10, %v5120_v34, %v10529_v45  ;;  %v5197_v39 = vsel %vm5175_vm10, %v5122_v58, %v10530_v42 }
 0xc64   :  { %5365 = vmatprep.subr.bf16.mxu1 %v5251_v4  ;;  %v5124_v27 = vpop.permute.xlu0 %5123  ;;  %v5248_v24 = vpack.c.bf16 %v5228_v37, %v5224_v54  ;;  %v5172_v21 = vpop.permute.xlu1 %5171  ;;  %v5250_v10 = vpack.c.bf16 %v5189_v25, %v5188_v19  ;;  %v5249_v33 = vpack.c.bf16 %v5197_v39, %v5196_v49 }
 0xc65   :  { %v5206_v2 = vsel %vm5175_vm10, %v5172_v21, %v5124_v27 }
 0xc66   :  { %5366 = vmatpush1.bf16.msra.mxu1 %v5250_v10  ;;  %5292 = vmatprep.subr.bf16.mxu0 %v5249_v33  ;;  %v5232_v19 = vmul.f32 %v13788_v38, %v5206_v2  ;;  %v5086_v2 = vpack.c.bf16 %v13486_v26, %v13467_v28 }
 0xc67   :  { %5293 = vmatpush1.bf16.msra.mxu0 %v5248_v24 }
 0xc68   :  { %v10533_v17 = vpop.permute.xlu0 %10532  ;;  %v5126_v5 = vpop.permute.xlu1 %5125 }
 0xc69   :  { %v10534_v29 = vunpack.i.l.bf16 %v10533_v17  ;;  %v10535_v23 = vunpack.i.h.bf16 %v10533_v17 }
 0xc6b   :  { %v5182_v42 = vsel %vm5175_vm10, %v10534_v29, %v5172_v21 }
 0xc6c   :  { %v5174_v53 = vpop.permute.xlu0 %5173  ;;  %v10538_v58 = vpop.permute.xlu1 %10537 }
 0xc6d   :  { %v5183_v34 = vsel %vm5175_vm10, %v10535_v23, %v5174_v53  ;;  %v5207_v37 = vsel %vm5175_vm10, %v5174_v53, %v5126_v5  ;;  %v10540_v4 = vunpack.i.h.bf16 %v10538_v58  ;;  %v10539_v54 = vunpack.i.l.bf16 %v10538_v58 }
 0xc6e   :  { %v5236_v45 = vmul.f32 %v13788_v38, %v5207_v37  ;;  %v5255_v25 = vpack.c.bf16 %v5183_v34, %v5182_v42  ;;  %v5089_v53 = vpack.c.bf16 %v13549_v16, %v13462_v9  ;;  %v5091_v34 = vpack.c.bf16 %v13639_v50, %v13654_v51  ;;  %v10724_v42 = vld [vmem:[%s15629_s6 + $0x68] sm:$0xff]  }
 0xc6f   :  { %v5191_v49 = vsel %vm5175_vm10, %v10540_v4, %v10535_v23  ;;  %v5190_v24 = vsel %vm5175_vm10, %v10539_v54, %v10534_v29  ;;  %v5198_v39 = vsel %vm5175_vm10, %v5124_v27, %v10539_v54  ;;  %v5199_v21 = vsel %vm5175_vm10, %v5126_v5, %v10540_v4  ;;  %v10723_v23 = vld [vmem:[%s15629_s6 + $0x60] sm:$0xff]  }
 0xc70   :  { %5367 = vmatprep.subr.bf16.mxu1 %v5255_v25  ;;  %v5252_v10 = vpack.c.bf16 %v5236_v45, %v5232_v19  ;;  %v5254_v33 = vpack.c.bf16 %v5191_v49, %v5190_v24  ;;  %v5253_v17 = vpack.c.bf16 %v5199_v21, %v5198_v39  ;;  %v5087_v29 = vpack.c.bf16 %v13516_v3, %v13530_v11  ;;  %v10725_v39 = vld [vmem:[%s15629_s6 + $0x70] sm:$0xff]   ;;  %v10726_v21 = vld [vmem:[%s15629_s6 + $0x78] sm:$0xff]  }
 0xc71   :  { %v5088_v27 = vpack.c.bf16 %v13499_v46, %v13508_v43  ;;  %v5093_v5 = vpack.c.bf16 %v13656_v13, %v13563_v20  ;;  %v5092_v37 = vpack.c.bf16 %v13606_v14, %v13621_v63  ;;  %v5097_v58 = vpack.c.bf16 %v13716_v18, %v13691_v6 }
 0xc72   :  { %5368 = vmatpush1.bf16.msra.mxu1 %v5254_v33  ;;  %5294 = vmatprep.subr.bf16.mxu0 %v5253_v17  ;;  %v5090_v45 = vpack.c.bf16 %v13608_v44, %v13583_v36  ;;  %v5095_v4 = vpack.c.bf16 %v13709_v22, %v13712_v30  ;;  %v5096_v54 = vpack.c.bf16 %v13683_v41, %v13695_v32  ;;  %v10727_v33 = vld [vmem:[%s15631_s5 + $0x60] sm:$0xff]   ;;  %v10728_v17 = vld [vmem:[%s15631_s5 + $0x68] sm:$0xff]  }
 0xc73   :  { %5539 = vmatprep.subr.bf16.mxu1 %v5089_v53  ;;  %5295 = vmatpush1.bf16.msra.mxu0 %v5252_v10  ;;  %v5101_v25 = vpack.c.bf16 %v13754_v48, %v13731_v59  ;;  %v5094_v19 = vpack.c.bf16 %v13707_v12, %v13681_v57  ;;  %v5099_v49 = vpack.c.bf16 %v13747_v8, %v13750_v15  ;;  %v10729_v53 = vld [vmem:[%s15631_s5 + $0x70] sm:$0xff]  }
 0xc74   :  { %5466 = vmatprep.subr.bf16.mxu0 %v5087_v29  ;;  %v5100_v24 = vpack.c.bf16 %v13729_v40, %v13735_v7  ;;  %v5098_v10 = vpack.c.bf16 %v13745_v61, %v13727_v60 }
 0xc75   :  { %9601 = vmatmul.mubr.msk.bf16.vlgmr.msra.gmra.mrb[144].mxu1 %vm602_vm3, %v10723_v23 }
 0xc76   :  { %5540 = vmatpush1.bf16.msra.mxu1 %v5088_v27  ;;  %5403 = vmatprep.mubr.bf16.mxu1 %v15935_v52 }
 0xc77   :  { %9597 = vmatmul.mubr.msk.bf16.vlgmr.msra.gmra.mrb[144].mxu0 %vm602_vm3, %v10723_v23  ;;  %5541 = vmatprep.subr.bf16.mxu1 %v5093_v5  ;;  %v10730_v23 = vld [vmem:[%s15631_s5 + $0x78] sm:$0xff]  }
 0xc78   :  { %5467 = vmatpush1.bf16.msra.mxu0 %v5086_v2  ;;  %5330 = vmatprep.mubr.bf16.mxu0 %v15935_v52 }
 0xc79   :  { %5468 = vmatprep.subr.bf16.mxu0 %v5091_v34 }
 0xc7a   :  { %5542 = vmatpush1.bf16.msra.mxu1 %v5092_v37 }
 0xc7b   :  { %5543 = vmatprep.subr.bf16.mxu1 %v5097_v58 }
 0xc7c   :  { %5469 = vmatpush1.bf16.msra.mxu0 %v5090_v45 }
 0xc7d   :  { %5470 = vmatprep.subr.bf16.mxu0 %v5095_v4  ;;  %9602 = vmatmul.mubr.msk.bf16.gmra.mrb[148].mxu1 %vm602_vm3, %v10724_v42  ;;  %v5624_v29 = vpop.permute.xlu0 %5623  ;;  %v5629_v5 = vpop.permute.xlu1 %5628 }
 0xc7e   :  { %5544 = vmatpush1.bf16.msra.mxu1 %v5096_v54  ;;  %5413 = vmatprep.mubr.bf16.mxu1 %v15935_v52 }
 0xc7f   :  { %9598 = vmatmul.mubr.msk.bf16.gmra.mrb[148].mxu0 %vm602_vm3, %v10724_v42  ;;  %5545 = vmatprep.subr.bf16.mxu1 %v5101_v25 }
 0xc80   :  { %5471 = vmatpush1.bf16.msra.mxu0 %v5094_v19  ;;  %5340 = vmatprep.mubr.bf16.mxu0 %v15935_v52 }
 0xc81   :  { %5472 = vmatprep.subr.bf16.mxu0 %v5099_v49 }
 0xc82   :  { %5546 = vmatpush1.bf16.msra.mxu1 %v5100_v24 }
 0xc84   :  { %5473 = vmatpush1.bf16.msra.mxu0 %v5098_v10 }
 0xc85   :  { %9603 = vmatmul.mubr.msk.bf16.gmra.mrb[152].mxu1 %vm602_vm3, %v10725_v39 }
 0xc86   :  { %5423 = vmatprep.mubr.bf16.mxu1 %v15935_v52 }
 0xc87   :  { %9599 = vmatmul.mubr.msk.bf16.gmra.mrb[152].mxu0 %vm602_vm3, %v10725_v39 }
 0xc88   :  { %5350 = vmatprep.mubr.bf16.mxu0 %v15935_v52 }
 0xc8d   :  { %9604 = vmatmul.mubr.msk.bf16.gmra.mrb[156].mxu1 %vm602_vm3, %v10726_v21 }
 0xc8e   :  { %5571 = vmatprep.mubr.bf16.mxu1 %v15935_v52 }
 0xc8f   :  { %9600 = vmatmul.mubr.msk.bf16.gmra.mrb[156].mxu0 %vm602_vm3, %v10726_v21 }
 0xc90   :  { %5498 = vmatprep.mubr.bf16.mxu0 %v15935_v52 }
 0xc95   :  { %9613 = vmatmul.mubr.msk.bf16.vlgmr.msra.gmra.mrb[144].mxu1 %vm602_vm3, %v10727_v33 }
 0xc96   :  { %5581 = vmatprep.mubr.bf16.mxu1 %v15935_v52 }
 0xc97   :  { %9609 = vmatmul.mubr.msk.bf16.vlgmr.msra.gmra.mrb[144].mxu0 %vm602_vm3, %v10727_v33 }
 0xc98   :  { %5508 = vmatprep.mubr.bf16.mxu0 %v15935_v52 }
 0xc9d   :  { %9614 = vmatmul.mubr.msk.bf16.gmra.mrb[148].mxu1 %vm602_vm3, %v10728_v17 }
 0xc9e   :  { %5591 = vmatprep.mubr.bf16.mxu1 %v15935_v52 }
 0xc9f   :  { %9610 = vmatmul.mubr.msk.bf16.gmra.mrb[148].mxu0 %vm602_vm3, %v10728_v17 }
 0xca0   :  { %5518 = vmatprep.mubr.bf16.mxu0 %v15935_v52 }
 0xca5   :  { %9615 = vmatmul.mubr.msk.bf16.gmra.mrb[152].mxu1 %vm602_vm3, %v10729_v53 }
 0xca6   :  { %5601 = vmatprep.mubr.bf16.mxu1 %v15935_v52 }
 0xca7   :  { %9611 = vmatmul.mubr.msk.bf16.gmra.mrb[152].mxu0 %vm602_vm3, %v10729_v53 }
 0xca8   :  { %5528 = vmatprep.mubr.bf16.mxu0 %v15935_v52 }
 0xcad   :  { %9616 = vmatmul.mubr.msk.bf16.gmra.mrb[156].mxu1 %vm602_vm3, %v10730_v23 }
 0xcae   :  { %6040 = vmatprep.mubr.bf16.mxu1 %v15935_v52 }
 0xcaf   :  { %9612 = vmatmul.mubr.msk.bf16.gmra.mrb[156].mxu0 %vm602_vm3, %v10730_v23 }
 0xcb0   :  { %5967 = vmatprep.mubr.bf16.mxu0 %v15935_v52 }
 0xd68   :  { %v5573_v27 = vpop.f32.mrb[144].mxu1 }
 0xd69   :  { %v5663_v2 = vadd.f32 %v5624_v29, %v5573_v27  ;;  %v5575_v34 = vpop.f32.mrb[145].mxu1 }
 0xd6a   :  { %v5500_v37 = vpop.f32.mrb[144].mxu0  ;;  %v5664_v58 = vadd.f32 %v5624_v29, %v5575_v34  ;;  %v5577_v42 = vpop.f32.mrb[146].mxu1 }
 0xd6b   :  { %v5661_v45 = vadd.f32 %v5624_v29, %v5500_v37  ;;  %v5502_v4 = vpop.f32.mrb[145].mxu0  ;;  %v5667_v54 = vadd.f32 %v5629_v5, %v5577_v42  ;;  %v5579_v25 = vpop.f32.mrb[147].mxu1  ;;  %v5695_v10 = vmax.f32 %v5663_v2, 0.0 }
 0xd6c   :  { %v5696_v19 = vmax.f32 %v5664_v58, 0.0  ;;  %v5662_v49 = vadd.f32 %v5624_v29, %v5502_v4  ;;  %v5504_v24 = vpop.f32.mrb[146].mxu0  ;;  %v5668_v39 = vadd.f32 %v5629_v5, %v5579_v25  ;;  %v5634_v42 = vpop.permute.xlu0 %5633 }
 0xd6d   :  { %v5693_v21 = vmax.f32 %v5661_v45, 0.0  ;;  %v5699_v33 = vmax.f32 %v5667_v54, 0.0  ;;  %v5665_v17 = vadd.f32 %v5629_v5, %v5504_v24  ;;  %v5506_v53 = vpop.f32.mrb[147].mxu0  ;;  %v5639_v45 = vpop.permute.xlu1 %5638 }
 0xd6e   :  { %v5700_v23 = vmax.f32 %v5668_v39, 0.0  ;;  %v5666_v48 = vadd.f32 %v5629_v5, %v5506_v53  ;;  %5807 = vrot.lane.b32.xlu1 %v5696_v19, %s10777_s24  ;;  %v5694_v58 = vmax.f32 %v5662_v49, 0.0 }
 0xd6f   :  { %v10541_v27 = vpack.i.bf16 %v5699_v33, %v5695_v10  ;;  %v13951_v34 = vpack.c.bf16 %v5699_v33, %v5695_v10  ;;  %v5697_v37 = vmax.f32 %v5665_v17, 0.0  ;;  %5759 = vrot.lane.b32.xlu0 %v5693_v21, %s10777_s24 }
 0xd70   :  { %v13954_v29 = vpack.c.bf16 %v5700_v23, %v5696_v19  ;;  %v5698_v4 = vmax.f32 %v5666_v48, 0.0  ;;  %v5583_v2 = vpop.f32.mrb[148].mxu1 }
 0xd71   :  { %v13956_v54 = vpack.c.bf16 %v5697_v37, %v5693_v21  ;;  %v5671_v25 = vadd.f32 %v5634_v42, %v5583_v2  ;;  %v5585_v24 = vpop.f32.mrb[149].mxu1 }
 0xd72   :  { %v10546_v5 = vpack.i.bf16 %v5698_v4, %v5694_v58  ;;  %v13958_v39 = vpack.c.bf16 %v5698_v4, %v5694_v58  ;;  %v5510_v53 = vpop.f32.mrb[148].mxu0  ;;  %v5672_v10 = vadd.f32 %v5634_v42, %v5585_v24  ;;  %v5587_v33 = vpop.f32.mrb[150].mxu1  ;;  %5761 = vrot.lane.b32.xlu1 %v5697_v37, %s10777_s24 }
 0xd73   :  { %v5669_v17 = vadd.f32 %v5634_v42, %v5510_v53  ;;  %v5675_v15 = vadd.f32 %v5639_v45, %v5587_v33  ;;  %10542 = vrot.lane.b32.xlu0 %v10541_v27, %s10777_s24  ;;  %v5512_v19 = vpop.f32.mrb[149].mxu0  ;;  %v5589_v48 = vpop.f32.mrb[151].mxu1  ;;  %v5703_v2 = vmax.f32 %v5671_v25, 0.0 }
 0xd74   :  { %v5670_v49 = vadd.f32 %v5634_v42, %v5512_v19  ;;  %v5514_v8 = vpop.f32.mrb[150].mxu0  ;;  %v13962_v21 = vadd.f32 %v5639_v45, %v5589_v48  ;;  %v5704_v4 = vmax.f32 %v5672_v10, 0.0  ;;  %v5644_v42 = vpop.permute.xlu0 %5643 }
 0xd75   :  { %v5707_v61 = vmax.f32 %v5675_v15, 0.0  ;;  %v5673_v7 = vadd.f32 %v5639_v45, %v5514_v8  ;;  %v5516_v58 = vpop.f32.mrb[151].mxu0  ;;  %v5701_v37 = vmax.f32 %v5669_v17, 0.0  ;;  %v5649_v25 = vpop.permute.xlu1 %5648 }
 0xd76   :  { %v5708_v24 = vmax.f32 %v13962_v21, 0.0  ;;  %v5674_v59 = vadd.f32 %v5639_v45, %v5516_v58  ;;  %10547 = vrot.lane.b32.xlu1 %v10546_v5, %s10777_s24  ;;  %v5702_v19 = vmax.f32 %v5670_v49, 0.0 }
 0xd77   :  { %v10551_v53 = vpack.i.bf16 %v5707_v61, %v5703_v2  ;;  %v13966_v33 = vpack.c.bf16 %v5707_v61, %v5703_v2  ;;  %v5705_v27 = vmax.f32 %v5673_v7, 0.0  ;;  %5809 = vrot.lane.b32.xlu0 %v5700_v23, %s10777_s24 }
 0xd78   :  { %v13969_v48 = vpack.c.bf16 %v5708_v24, %v5704_v4  ;;  %v5706_v15 = vmax.f32 %v5674_v59, 0.0  ;;  %v5593_v8 = vpop.f32.mrb[152].mxu1 }
 0xd79   :  { %v13971_v10 = vpack.c.bf16 %v5705_v27, %v5701_v37  ;;  %v5679_v21 = vadd.f32 %v5644_v42, %v5593_v8  ;;  %v5595_v45 = vpop.f32.mrb[153].mxu1 }
 0xd7a   :  { %v10556_v58 = vpack.i.bf16 %v5706_v15, %v5702_v19  ;;  %v13973_v5 = vpack.c.bf16 %v5706_v15, %v5702_v19  ;;  %v5520_v17 = vpop.f32.mrb[152].mxu0  ;;  %v5680_v61 = vadd.f32 %v5644_v42, %v5595_v45  ;;  %v5597_v2 = vpop.f32.mrb[154].mxu1  ;;  %5811 = vrot.lane.b32.xlu1 %v5704_v4, %s10777_s24 }
 0xd7b   :  { %v5677_v7 = vadd.f32 %v5644_v42, %v5520_v17  ;;  %v5683_v23 = vadd.f32 %v5649_v25, %v5597_v2  ;;  %5763 = vrot.lane.b32.xlu0 %v5701_v37, %s10777_s24  ;;  %v5522_v49 = vpop.f32.mrb[153].mxu0  ;;  %v5599_v59 = vpop.f32.mrb[155].mxu1  ;;  %v5711_v30 = vmax.f32 %v5679_v21, 0.0 }
 0xd7c   :  { %v5678_v40 = vadd.f32 %v5644_v42, %v5522_v49  ;;  %v5524_v60 = vpop.f32.mrb[154].mxu0  ;;  %v5684_v18 = vadd.f32 %v5649_v25, %v5599_v59  ;;  %v5712_v19 = vmax.f32 %v5680_v61, 0.0  ;;  %v5654_v37 = vpop.permute.xlu0 %5653 }
 0xd7d   :  { %v5715_v8 = vmax.f32 %v5683_v23, 0.0  ;;  %v5681_v22 = vadd.f32 %v5649_v25, %v5524_v60  ;;  %v5526_v12 = vpop.f32.mrb[155].mxu0  ;;  %v5709_v45 = vmax.f32 %v5677_v7, 0.0  ;;  %v5659_v60 = vpop.permute.xlu1 %5658 }
 0xd7e   :  { %v5716_v15 = vmax.f32 %v5684_v18, 0.0  ;;  %v5682_v32 = vadd.f32 %v5649_v25, %v5526_v12  ;;  %5765 = vrot.lane.b32.xlu1 %v5705_v27, %s10777_s24  ;;  %v5710_v42 = vmax.f32 %v5678_v40, 0.0 }
 0xd7f   :  { %v10561_v4 = vpack.i.bf16 %v5715_v8, %v5711_v30  ;;  %v13978_v17 = vpack.c.bf16 %v5715_v8, %v5711_v30  ;;  %v5713_v2 = vmax.f32 %v5681_v22, 0.0  ;;  %10552 = vrot.lane.b32.xlu0 %v10551_v53, %s10777_s24 }
 0xd80   :  { %v13981_v49 = vpack.c.bf16 %v5716_v15, %v5712_v19  ;;  %v5714_v21 = vmax.f32 %v5682_v32, 0.0  ;;  %v5603_v23 = vpop.f32.mrb[156].mxu1 }
 0xd81   :  { %v13983_v59 = vpack.c.bf16 %v5713_v2, %v5709_v45  ;;  %v5687_v18 = vadd.f32 %v5654_v37, %v5603_v23  ;;  %v5605_v12 = vpop.f32.mrb[157].mxu1 }
 0xd82   :  { %v10566_v25 = vpack.i.bf16 %v5714_v21, %v5710_v42  ;;  %v13985_v27 = vpack.c.bf16 %v5714_v21, %v5710_v42  ;;  %v5530_v61 = vpop.f32.mrb[156].mxu0  ;;  %v5688_v30 = vadd.f32 %v5654_v37, %v5605_v12  ;;  %v5607_v7 = vpop.f32.mrb[158].mxu1  ;;  %10557 = vrot.lane.b32.xlu1 %v10556_v58, %s10777_s24 }
 0xd83   :  { %v5685_v22 = vadd.f32 %v5654_v37, %v5530_v61  ;;  %v5691_v53 = vadd.f32 %v5659_v60, %v5607_v7  ;;  %5813 = vrot.lane.b32.xlu0 %v5708_v24, %s10777_s24  ;;  %v5532_v40 = vpop.f32.mrb[157].mxu0  ;;  %v5609_v32 = vpop.f32.mrb[159].mxu1  ;;  %v5719_v57 = vmax.f32 %v5687_v18, 0.0 }
 0xd84   :  { %v5686_v8 = vadd.f32 %v5654_v37, %v5532_v40  ;;  %v5534_v6 = vpop.f32.mrb[158].mxu0  ;;  %v5692_v41 = vadd.f32 %v5659_v60, %v5609_v32  ;;  %v5720_v42 = vmax.f32 %v5688_v30, 0.0 }
 0xd85   :  { %v5723_v23 = vmax.f32 %v5691_v53, 0.0  ;;  %v5689_v13 = vadd.f32 %v5659_v60, %v5534_v6  ;;  %v5536_v51 = vpop.f32.mrb[159].mxu0  ;;  %v5717_v12 = vmax.f32 %v5685_v22, 0.0 }
 0xd86   :  { %v5724_v21 = vmax.f32 %v5692_v41, 0.0  ;;  %v5690_v50 = vadd.f32 %v5659_v60, %v5536_v51  ;;  %5815 = vrot.lane.b32.xlu1 %v5712_v19, %s10777_s24  ;;  %v5718_v24 = vmax.f32 %v5686_v8, 0.0  ;;  %v9665_v51 = vld [vmem:[%s15633_s10 + $0xc0] sm:$0xff]  ;;  %v9670_v41 = vld [vmem:[%s15633_s10 + $0xe8] sm:$0xff] }
 0xd87   :  { %v10571_v58 = vpack.i.bf16 %v5723_v23, %v5719_v57  ;;  %v13990_v61 = vpack.c.bf16 %v5723_v23, %v5719_v57  ;;  %v5721_v7 = vmax.f32 %v5689_v13, 0.0  ;;  %5767 = vrot.lane.b32.xlu0 %v5709_v45, %s10777_s24  ;;  %v9668_v13 = vld [vmem:[%s15633_s10 + $0xd8] sm:$0xff]  ;;  %v9667_v57 = vld [vmem:[%s15633_s10 + $0xd0] sm:$0xff]  ;;  %v9669_v19 = vld [vmem:[%s15633_s10 + $0xe0] sm:$0xff] }
 0xd88   :  { %v13993_v37 = vpack.c.bf16 %v5724_v21, %v5720_v42  ;;  %v5722_v40 = vmax.f32 %v5690_v50, 0.0  ;;  %v9666_v50 = vld [vmem:[%s15633_s10 + $0xc8] sm:$0xff]  ;;  %v9671_v45 = vld [vmem:[%s15633_s10 + $0xf0] sm:$0xff] }
 0xd89   :  { %v13995_v18 = vpack.c.bf16 %v5721_v7, %v5717_v12 }
 0xd8a   :  { %v10576_v6 = vpack.i.bf16 %v5722_v40, %v5718_v24  ;;  %v13997_v53 = vpack.c.bf16 %v5722_v40, %v5718_v24  ;;  %5769 = vrot.lane.b32.xlu1 %v5713_v2, %s10777_s24 }
 0xd8b   :  { %10562 = vrot.lane.b32.xlu0 %v10561_v4, %s10777_s24 }
 0xd8e   :  { %10567 = vrot.lane.b32.xlu1 %v10566_v25, %s10777_s24 }
 0xd8f   :  { %5817 = vrot.lane.b32.xlu0 %v5716_v15, %s10777_s24  ;;  %v9672_v15 = vld [vmem:[%s15633_s10 + $0xf8] sm:$0xff] }
 0xd92   :  { %5819 = vrot.lane.b32.xlu1 %v5720_v42, %s10777_s24 }
 0xd93   :  { %5771 = vrot.lane.b32.xlu0 %v5717_v12, %s10777_s24 }
 0xd96   :  { %5773 = vrot.lane.b32.xlu1 %v5721_v7, %s10777_s24 }
 0xd97   :  { %10572 = vrot.lane.b32.xlu0 %v10571_v58, %s10777_s24 }
 0xd9a   :  { %10577 = vrot.lane.b32.xlu1 %v10576_v6, %s10777_s24 }
 0xd9b   :  { %5821 = vrot.lane.b32.xlu0 %v5724_v21, %s10777_s24 }
 0xd9e   :  { %6275 = vperm.xlu1 %10260, %v9666_v50  }
 0xd9f   :  { %6270 = vperm.xlu0 %10259, %v9665_v51  }
 0xda2   :  { %6285 = vperm.xlu1 %10260, %v9668_v13  }
 0xda3   :  { %6280 = vperm.xlu0 %10259, %v9667_v57  }
 0xda6   :  { %6295 = vperm.xlu1 %10260, %v9670_v41  }
 0xda7   :  { %6290 = vperm.xlu0 %10259, %v9669_v19  }
 0xdaa   :  { %6305 = vperm.xlu1 %10260, %v9672_v15  }
 0xdab   :  { %6300 = vperm.xlu0 %10259, %v9671_v45  }
 0xde0   :  { %v5808_v4 = vpop.permute.xlu1 %5807 }
 0xde1   :  { %v5760_v2 = vpop.permute.xlu0 %5759 }
 0xde2   :  { %v5847_v22 = vsel %vm5175_vm10, %v5808_v4, %v5760_v2 }
 0xde3   :  { %v5855_v12 = vmul.f32 %v13788_v38, %v5847_v22 }
 0xde4   :  { %v5762_v60 = vpop.permute.xlu1 %5761 }
 0xde5   :  { %v10543_v25 = vpop.permute.xlu0 %10542 }
 0xde6   :  { %v10544_v30 = vunpack.i.l.bf16 %v10543_v25  ;;  %v10545_v32 = vunpack.i.h.bf16 %v10543_v25 }
 0xde8   :  { %v10548_v8 = vpop.permute.xlu1 %10547  ;;  %v5823_v24 = vsel %vm5175_vm10, %v10544_v30, %v5808_v4 }
 0xde9   :  { %v5810_v23 = vpop.permute.xlu0 %5809  ;;  %v10550_v42 = vunpack.i.h.bf16 %v10548_v8  ;;  %v10549_v21 = vunpack.i.l.bf16 %v10548_v8 }
 0xdea   :  { %v5824_v58 = vsel %vm5175_vm10, %v10545_v32, %v5810_v23  ;;  %v5848_v7 = vsel %vm5175_vm10, %v5810_v23, %v5762_v60 }
 0xdeb   :  { %v5859_v40 = vmul.f32 %v13788_v38, %v5848_v7  ;;  %v5832_v6 = vsel %vm5175_vm10, %v10550_v42, %v10545_v32  ;;  %v5831_v50 = vsel %vm5175_vm10, %v10549_v21, %v10544_v30  ;;  %v5890_v51 = vpack.c.bf16 %v5824_v58, %v5823_v24 }
 0xdec   :  { %v5812_v13 = vpop.permute.xlu1 %5811  ;;  %v5839_v57 = vsel %vm5175_vm10, %v5760_v2, %v10549_v21  ;;  %v5840_v41 = vsel %vm5175_vm10, %v5762_v60, %v10550_v42  ;;  %v5889_v19 = vpack.c.bf16 %v5832_v6, %v5831_v50 }
 0xded   :  { %v5887_v15 = vpack.c.bf16 %v5859_v40, %v5855_v12  ;;  %6008 = vmatprep.subr.bf16.mxu1 %v5890_v51  ;;  %v5764_v45 = vpop.permute.xlu0 %5763  ;;  %v5888_v4 = vpack.c.bf16 %v5840_v41, %v5839_v57 }
 0xdee   :  { %6009 = vmatpush1.bf16.msra.mxu1 %v5889_v19  ;;  %v5849_v30 = vsel %vm5175_vm10, %v5812_v13, %v5764_v45 }
 0xdef   :  { %5935 = vmatprep.subr.bf16.mxu0 %v5888_v4  ;;  %v5863_v60 = vmul.f32 %v13788_v38, %v5849_v30 }
 0xdf0   :  { %5936 = vmatpush1.bf16.msra.mxu0 %v5887_v15  ;;  %v5766_v25 = vpop.permute.xlu1 %5765 }
 0xdf1   :  { %v10553_v22 = vpop.permute.xlu0 %10552 }
 0xdf2   :  { %v10554_v32 = vunpack.i.l.bf16 %v10553_v22  ;;  %v10555_v8 = vunpack.i.h.bf16 %v10553_v22 }
 0xdf4   :  { %v10558_v23 = vpop.permute.xlu1 %10557  ;;  %v5825_v7 = vsel %vm5175_vm10, %v10554_v32, %v5812_v13 }
 0xdf5   :  { %v5814_v2 = vpop.permute.xlu0 %5813  ;;  %v10560_v21 = vunpack.i.h.bf16 %v10558_v23  ;;  %v10559_v58 = vunpack.i.l.bf16 %v10558_v23 }
 0xdf6   :  { %v5826_v42 = vsel %vm5175_vm10, %v10555_v8, %v5814_v2  ;;  %v5850_v12 = vsel %vm5175_vm10, %v5814_v2, %v5766_v25 }
 0xdf7   :  { %v5867_v24 = vmul.f32 %v13788_v38, %v5850_v12  ;;  %v5834_v40 = vsel %vm5175_vm10, %v10560_v21, %v10555_v8  ;;  %v5833_v6 = vsel %vm5175_vm10, %v10559_v58, %v10554_v32  ;;  %v5894_v50 = vpack.c.bf16 %v5826_v42, %v5825_v7 }
 0xdf8   :  { %v5816_v51 = vpop.permute.xlu1 %5815  ;;  %v5841_v57 = vsel %vm5175_vm10, %v5764_v45, %v10559_v58  ;;  %v5842_v41 = vsel %vm5175_vm10, %v5766_v25, %v10560_v21  ;;  %v5893_v19 = vpack.c.bf16 %v5834_v40, %v5833_v6 }
 0xdf9   :  { %v5891_v15 = vpack.c.bf16 %v5867_v24, %v5863_v60  ;;  %6010 = vmatprep.subr.bf16.mxu1 %v5894_v50  ;;  %v5768_v13 = vpop.permute.xlu0 %5767  ;;  %v5892_v4 = vpack.c.bf16 %v5842_v41, %v5841_v57 }
 0xdfa   :  { %6011 = vmatpush1.bf16.msra.mxu1 %v5893_v19  ;;  %v5851_v32 = vsel %vm5175_vm10, %v5816_v51, %v5768_v13 }
 0xdfb   :  { %5937 = vmatprep.subr.bf16.mxu0 %v5892_v4  ;;  %v5871_v25 = vmul.f32 %v13788_v38, %v5851_v32 }
 0xdfc   :  { %5938 = vmatpush1.bf16.msra.mxu0 %v5891_v15  ;;  %v5770_v22 = vpop.permute.xlu1 %5769 }
 0xdfd   :  { %v10563_v30 = vpop.permute.xlu0 %10562 }
 0xdfe   :  { %v10564_v8 = vunpack.i.l.bf16 %v10563_v30  ;;  %v10565_v23 = vunpack.i.h.bf16 %v10563_v30 }
 0xe00   :  { %v10568_v2 = vpop.permute.xlu1 %10567  ;;  %v5827_v12 = vsel %vm5175_vm10, %v10564_v8, %v5816_v51 }
 0xe01   :  { %v5818_v45 = vpop.permute.xlu0 %5817  ;;  %v10570_v58 = vunpack.i.h.bf16 %v10568_v2  ;;  %v10569_v42 = vunpack.i.l.bf16 %v10568_v2 }
 0xe02   :  { %v5828_v21 = vsel %vm5175_vm10, %v10565_v23, %v5818_v45  ;;  %v5852_v60 = vsel %vm5175_vm10, %v5818_v45, %v5770_v22 }
 0xe03   :  { %v5875_v7 = vmul.f32 %v13788_v38, %v5852_v60  ;;  %v5836_v24 = vsel %vm5175_vm10, %v10570_v58, %v10565_v23  ;;  %v5835_v40 = vsel %vm5175_vm10, %v10569_v42, %v10564_v8  ;;  %v5898_v6 = vpack.c.bf16 %v5828_v21, %v5827_v12 }
 0xe04   :  { %v5820_v50 = vpop.permute.xlu1 %5819  ;;  %v5843_v57 = vsel %vm5175_vm10, %v5768_v13, %v10569_v42  ;;  %v5844_v41 = vsel %vm5175_vm10, %v5770_v22, %v10570_v58  ;;  %v5897_v19 = vpack.c.bf16 %v5836_v24, %v5835_v40 }
 0xe05   :  { %v5895_v15 = vpack.c.bf16 %v5875_v7, %v5871_v25  ;;  %6012 = vmatprep.subr.bf16.mxu1 %v5898_v6  ;;  %v5772_v51 = vpop.permute.xlu0 %5771  ;;  %v5896_v4 = vpack.c.bf16 %v5844_v41, %v5843_v57 }
 0xe06   :  { %6013 = vmatpush1.bf16.msra.mxu1 %v5897_v19  ;;  %v5853_v8 = vsel %vm5175_vm10, %v5820_v50, %v5772_v51 }
 0xe07   :  { %5939 = vmatprep.subr.bf16.mxu0 %v5896_v4  ;;  %v5879_v22 = vmul.f32 %v13788_v38, %v5853_v8 }
 0xe08   :  { %5940 = vmatpush1.bf16.msra.mxu0 %v5895_v15  ;;  %v5774_v30 = vpop.permute.xlu1 %5773 }
 0xe09   :  { %v10573_v32 = vpop.permute.xlu0 %10572 }
 0xe0a   :  { %v10574_v23 = vunpack.i.l.bf16 %v10573_v32  ;;  %v10575_v2 = vunpack.i.h.bf16 %v10573_v32 }
 0xe0c   :  { %v10578_v45 = vpop.permute.xlu1 %10577  ;;  %v5829_v60 = vsel %vm5175_vm10, %v10574_v23, %v5820_v50 }
 0xe0d   :  { %v5822_v13 = vpop.permute.xlu0 %5821  ;;  %v10580_v42 = vunpack.i.h.bf16 %v10578_v45  ;;  %v10579_v21 = vunpack.i.l.bf16 %v10578_v45 }
 0xe0e   :  { %v5830_v58 = vsel %vm5175_vm10, %v10575_v2, %v5822_v13  ;;  %v5854_v25 = vsel %vm5175_vm10, %v5822_v13, %v5774_v30 }
 0xe0f   :  { %v5883_v12 = vmul.f32 %v13788_v38, %v5854_v25  ;;  %v5838_v7 = vsel %vm5175_vm10, %v10580_v42, %v10575_v2  ;;  %v5837_v24 = vsel %vm5175_vm10, %v10579_v21, %v10574_v23  ;;  %v5902_v40 = vpack.c.bf16 %v5830_v58, %v5829_v60  ;;  %v10731_v38 = vld [vmem:[%s15632_s9 + $0x60] sm:$0xff]  }
 0xe10   :  { %v5901_v6 = vpack.c.bf16 %v5838_v7, %v5837_v24  ;;  %v5845_v57 = vsel %vm5175_vm10, %v5772_v51, %v10579_v21  ;;  %v5846_v41 = vsel %vm5175_vm10, %v5774_v30, %v10580_v42 }
 0xe11   :  { %v5899_v19 = vpack.c.bf16 %v5883_v12, %v5879_v22  ;;  %6014 = vmatprep.subr.bf16.mxu1 %v5902_v40  ;;  %v5900_v15 = vpack.c.bf16 %v5846_v41, %v5845_v57 }
 0xe12   :  { %6015 = vmatpush1.bf16.msra.mxu1 %v5901_v6 }
 0xe13   :  { %5941 = vmatprep.subr.bf16.mxu0 %v5900_v15  ;;  %6186 = vmatprep.subr.bf16.mxu1 %v13954_v29  ;;  %v10732_v29 = vld [vmem:[%s15632_s9 + $0x68] sm:$0xff]  }
 0xe14   :  { %5942 = vmatpush1.bf16.msra.mxu0 %v5899_v19 }
 0xe15   :  { %6113 = vmatprep.subr.bf16.mxu0 %v13958_v39  ;;  %9649 = vmatmul.mubr.msk.bf16.vlgmr.msra.gmra.mrb[160].mxu1 %vm602_vm3, %v10731_v38  ;;  %v10735_v39 = vld [vmem:[%s15634_s8 + $0x60] sm:$0xff]  }
 0xe16   :  { %6187 = vmatpush1.bf16.msra.mxu1 %v13951_v34  ;;  %6050 = vmatprep.mubr.bf16.mxu1 %v15935_v52  ;;  %v10733_v34 = vld [vmem:[%s15632_s9 + $0x70] sm:$0xff]  }
 0xe17   :  { %9645 = vmatmul.mubr.msk.bf16.vlgmr.msra.gmra.mrb[160].mxu0 %vm602_vm3, %v10731_v38  ;;  %6188 = vmatprep.subr.bf16.mxu1 %v13969_v48  ;;  %v10737_v48 = vld [vmem:[%s15634_s8 + $0x70] sm:$0xff]  }
 0xe18   :  { %6114 = vmatpush1.bf16.msra.mxu0 %v13956_v54  ;;  %5977 = vmatprep.mubr.bf16.mxu0 %v15935_v52  ;;  %v10734_v54 = vld [vmem:[%s15632_s9 + $0x78] sm:$0xff]  }
 0xe19   :  { %6115 = vmatprep.subr.bf16.mxu0 %v13973_v5 }
 0xe1a   :  { %6189 = vmatpush1.bf16.msra.mxu1 %v13966_v33  ;;  %v10736_v33 = vld [vmem:[%s15634_s8 + $0x68] sm:$0xff]  }
 0xe1b   :  { %6190 = vmatprep.subr.bf16.mxu1 %v13981_v49 }
 0xe1c   :  { %6116 = vmatpush1.bf16.msra.mxu0 %v13971_v10  ;;  %v10738_v10 = vld [vmem:[%s15634_s8 + $0x78] sm:$0xff]  }
 0xe1d   :  { %6117 = vmatprep.subr.bf16.mxu0 %v13985_v27  ;;  %9650 = vmatmul.mubr.msk.bf16.gmra.mrb[164].mxu1 %vm602_vm3, %v10732_v29  ;;  %v6276_v49 = vpop.permute.xlu1 %6275 }
 0xe1e   :  { %6191 = vmatpush1.bf16.msra.mxu1 %v13978_v17  ;;  %6060 = vmatprep.mubr.bf16.mxu1 %v15935_v52  ;;  %v6271_v5 = vpop.permute.xlu0 %6270 }
 0xe1f   :  { %9646 = vmatmul.mubr.msk.bf16.gmra.mrb[164].mxu0 %vm602_vm3, %v10732_v29  ;;  %6192 = vmatprep.subr.bf16.mxu1 %v13993_v37 }
 0xe20   :  { %6118 = vmatpush1.bf16.msra.mxu0 %v13983_v59  ;;  %5987 = vmatprep.mubr.bf16.mxu0 %v15935_v52 }
 0xe21   :  { %6119 = vmatprep.subr.bf16.mxu0 %v13997_v53 }
 0xe22   :  { %6193 = vmatpush1.bf16.msra.mxu1 %v13990_v61 }
 0xe24   :  { %6120 = vmatpush1.bf16.msra.mxu0 %v13995_v18 }
 0xe25   :  { %9651 = vmatmul.mubr.msk.bf16.gmra.mrb[168].mxu1 %vm602_vm3, %v10733_v34 }
 0xe26   :  { %6070 = vmatprep.mubr.bf16.mxu1 %v15935_v52 }
 0xe27   :  { %9647 = vmatmul.mubr.msk.bf16.gmra.mrb[168].mxu0 %vm602_vm3, %v10733_v34 }
 0xe28   :  { %5997 = vmatprep.mubr.bf16.mxu0 %v15935_v52 }
 0xe2d   :  { %9652 = vmatmul.mubr.msk.bf16.gmra.mrb[172].mxu1 %vm602_vm3, %v10734_v54 }
 0xe2e   :  { %6218 = vmatprep.mubr.bf16.mxu1 %v15935_v52 }
 0xe2f   :  { %9648 = vmatmul.mubr.msk.bf16.gmra.mrb[172].mxu0 %vm602_vm3, %v10734_v54 }
 0xe30   :  { %6145 = vmatprep.mubr.bf16.mxu0 %v15935_v52 }
 0xe35   :  { %9661 = vmatmul.mubr.msk.bf16.vlgmr.msra.gmra.mrb[160].mxu1 %vm602_vm3, %v10735_v39 }
 0xe36   :  { %6228 = vmatprep.mubr.bf16.mxu1 %v15935_v52 }
 0xe37   :  { %9657 = vmatmul.mubr.msk.bf16.vlgmr.msra.gmra.mrb[160].mxu0 %vm602_vm3, %v10735_v39 }
 0xe38   :  { %6155 = vmatprep.mubr.bf16.mxu0 %v15935_v52 }
 0xe3d   :  { %9662 = vmatmul.mubr.msk.bf16.gmra.mrb[164].mxu1 %vm602_vm3, %v10736_v33 }
 0xe3e   :  { %6238 = vmatprep.mubr.bf16.mxu1 %v15935_v52 }
 0xe3f   :  { %9658 = vmatmul.mubr.msk.bf16.gmra.mrb[164].mxu0 %vm602_vm3, %v10736_v33 }
 0xe40   :  { %6165 = vmatprep.mubr.bf16.mxu0 %v15935_v52 }
 0xe45   :  { %9663 = vmatmul.mubr.msk.bf16.gmra.mrb[168].mxu1 %vm602_vm3, %v10737_v48 }
 0xe46   :  { %6248 = vmatprep.mubr.bf16.mxu1 %v15935_v52 }
 0xe47   :  { %9659 = vmatmul.mubr.msk.bf16.gmra.mrb[168].mxu0 %vm602_vm3, %v10737_v48  ;;  %v6286_v48 = vpop.permute.xlu1 %6285 }
 0xe48   :  { %6175 = vmatprep.mubr.bf16.mxu0 %v15935_v52 }
 0xe4d   :  { %9664 = vmatmul.mubr.msk.bf16.gmra.mrb[172].mxu1 %vm602_vm3, %v10738_v10 }
 0xe4e   :  { %6796 = vmatprep.mubr.bf16.mxu1 %v15935_v52 }
 0xe4f   :  { %9660 = vmatmul.mubr.msk.bf16.gmra.mrb[172].mxu0 %vm602_vm3, %v10738_v10 }
 0xe50   :  { %6723 = vmatprep.mubr.bf16.mxu0 %v15935_v52 }
 0xf08   :  { %v6220_v17 = vpop.f32.mrb[160].mxu1 }
 0xf09   :  { %v6310_v59 = vadd.f32 %v6271_v5, %v6220_v17  ;;  %v6222_v27 = vpop.f32.mrb[161].mxu1 }
 0xf0a   :  { %v6147_v61 = vpop.f32.mrb[160].mxu0  ;;  %v6311_v37 = vadd.f32 %v6271_v5, %v6222_v27  ;;  %v6224_v18 = vpop.f32.mrb[162].mxu1 }
 0xf0b   :  { %v6342_v53 = vmax.f32 %v6310_v59, 0.0  ;;  %v6308_v50 = vadd.f32 %v6271_v5, %v6147_v61  ;;  %v6149_v51 = vpop.f32.mrb[161].mxu0  ;;  %v6314_v4 = vadd.f32 %v6276_v49, %v6224_v18  ;;  %v6226_v30 = vpop.f32.mrb[163].mxu1  ;;  %v16296_v61 = vld [vmem:[#allocation30_spill] sm:$0xff] }
 0xf0c   :  { %v6343_v32 = vmax.f32 %v6311_v37, 0.0  ;;  %v6309_v23 = vadd.f32 %v6271_v5, %v6149_v51  ;;  %v6151_v8 = vpop.f32.mrb[162].mxu0  ;;  %v14180_v42 = vadd.f32 %v6276_v49, %v6226_v30 }
 0xf0d   :  { %v14178_v2 = vadd.f32 %v6342_v53, %v13447_v56  ;;  %v6340_v45 = vmax.f32 %v6308_v50, 0.0  ;;  %v6346_v13 = vmax.f32 %v6314_v4, 0.0  ;;  %v6153_v21 = vpop.f32.mrb[163].mxu0  ;;  %v6312_v60 = vadd.f32 %v6276_v49, %v6151_v8  ;;  %v16297_v50 = vld [vmem:[#allocation61_spill] sm:$0xff] }
 0xf0e   :  { %v14183_v22 = vadd.f32 %v6343_v32, %v13452_v1  ;;  %v6407_v58 = vadd.f32 %v6343_v32, %v13462_v9  ;;  %v6341_v25 = vmax.f32 %v6309_v23, 0.0  ;;  %v6281_v1 = vpop.permute.xlu0 %6280  ;;  %v6347_v41 = vmax.f32 %v14180_v42, 0.0  ;;  %v16301_v42 = vld [vmem:[#allocation66_spill] sm:$0xff] }
 0xf0f   :  { %v14187_v12 = vadd.f32 %v6340_v45, %v13456_v62  ;;  %v6404_v7 = vadd.f32 %v6340_v45, %v13467_v28  ;;  %v14191_v56 = vadd.f32 %v6346_v13, %v13460_v31  ;;  %v6344_v9 = vmax.f32 %v6312_v60, 0.0 }
 0xf10   :  { %v14193_v24 = vmax.f32 %v6407_v58, 0.0  ;;  %v14196_v40 = vadd.f32 %v6341_v25, %v13465_v0  ;;  %v6230_v6 = vpop.f32.mrb[164].mxu1  ;;  %v6313_v19 = vadd.f32 %v6276_v49, %v6153_v21  ;;  %v6410_v0 = vadd.f32 %v6346_v13, %v13499_v46  ;;  %v16303_v58 = vld [vmem:[#allocation28_spill] sm:$0xff] }
 0xf11   :  { %v14198_v57 = vmax.f32 %v6404_v7, 0.0  ;;  %v6232_v62 = vpop.f32.mrb[165].mxu1  ;;  %v14201_v15 = vadd.f32 %v6281_v1, %v6230_v6  ;;  %v14207_v29 = vadd.f32 %v6344_v9, %v13476_v35  ;;  %v6408_v34 = vadd.f32 %v6344_v9, %v13486_v26 }
 0xf12   :  { %v6157_v28 = vpop.f32.mrb[164].mxu0  ;;  %v6319_v38 = vadd.f32 %v6281_v1, %v6232_v62  ;;  %6562 = vrot.lane.b32.xlu1 %v14193_v24, %s10778_s26  ;;  %v6234_v31 = vpop.f32.mrb[166].mxu1  ;;  %v14211_v54 = vadd.f32 %v6347_v41, %v13480_v55  ;;  %v6345_v10 = vmax.f32 %v6313_v19, 0.0  ;;  %v6406_v35 = vadd.f32 %v6342_v53, %v13508_v43  ;;  %v16299_v43 = vld [vmem:[#allocation63_spill] sm:$0xff] }
 0xf13   :  { %6514 = vrot.lane.b32.xlu0 %v14198_v57, %s10778_s26  ;;  %v6159_v39 = vpop.f32.mrb[165].mxu0  ;;  %v6236_v33 = vpop.f32.mrb[167].mxu1  ;;  %v6350_v5 = vmax.f32 %v14201_v15, 0.0  ;;  %v6316_v17 = vadd.f32 %v6281_v1, %v6157_v28  ;;  %v14217_v59 = vmax.f32 %v6408_v34, 0.0  ;;  %v6322_v26 = vadd.f32 %v6286_v48, %v6234_v31 }
 0xf14   :  { %v6351_v49 = vmax.f32 %v6319_v38, 0.0  ;;  %v6161_v46 = vpop.f32.mrb[166].mxu0  ;;  %v14219_v27 = vadd.f32 %v6281_v1, %v6159_v39  ;;  %v14222_v37 = vadd.f32 %v6345_v10, %v16296_v61  ;;  %v6409_v18 = vadd.f32 %v6345_v10, %v13516_v3  ;;  %v16305_v1 = vld [vmem:[#allocation32_spill] sm:$0xff]  ;;  %v6291_v39 = vpop.permute.xlu0 %6290 }
 0xf15   :  { %v6163_v55 = vpop.f32.mrb[167].mxu0  ;;  %v14228_v51 = vadd.f32 %v6350_v5, %v16297_v50  ;;  %v14230_v4 = vmax.f32 %v6410_v0, 0.0  ;;  %v6348_v30 = vmax.f32 %v6316_v17, 0.0  ;;  %v6354_v32 = vmax.f32 %v6322_v26, 0.0  ;;  %v6296_v61 = vpop.permute.xlu1 %6295 }
 0xf16   :  { %v14233_v53 = vadd.f32 %v6351_v49, %v16299_v43  ;;  %6516 = vrot.lane.b32.xlu1 %v14217_v59, %s10778_s26  ;;  %v6405_v23 = vadd.f32 %v6341_v25, %v13530_v11  ;;  %v15825_v8 = vmax.f32 %v14219_v27, 0.0  ;;  %v6320_v3 = vadd.f32 %v6286_v48, %v6161_v46  ;;  %v16307_v46 = vld [vmem:[#allocation29_spill] sm:$0xff] }
 0xf17   :  { %16298 = vst [vmem:[#allocation12_spill] sm:$0xff] %v14228_v51  ;;  %v14239_v13 = vmax.f32 %v6406_v35, 0.0  ;;  %v14242_v21 = vadd.f32 %v6348_v30, %v16301_v42  ;;  %v14245_v60 = vadd.f32 %v6354_v32, %v16303_v58  ;;  %v14247_v6 = vmax.f32 %v6409_v18, 0.0  ;;  %v16311_v42 = vld [vmem:[#allocation36_spill] sm:$0xff] }
 0xf18   :  { %16300 = vst [vmem:[#allocation48_spill] sm:$0xff] %v14233_v53  ;;  %v6240_v45 = vpop.f32.mrb[168].mxu1  ;;  %v14252_v9 = vadd.f32 %v15825_v8, %v16305_v1  ;;  %v6352_v11 = vmax.f32 %v6320_v3, 0.0  ;;  %v6411_v62 = vadd.f32 %v6347_v41, %v13549_v16  ;;  %v14255_v28 = vadd.f32 %v6286_v48, %v6236_v33 }
 0xf19   :  { %16302 = vst [vmem:[#allocation13_spill] sm:$0xff] %v14242_v21  ;;  %16304 = vst [vmem:[#allocation49_spill] sm:$0xff] %v14245_v60  ;;  %v6242_v7 = vpop.f32.mrb[169].mxu1  ;;  %v14257_v38 = vadd.f32 %v6286_v48, %v6163_v55  ;;  %v10581_v31 = vpack.i.bf16 %v14230_v4, %v14239_v13  ;;  %v14261_v10 = vmax.f32 %v6405_v23, 0.0  ;;  %v6415_v17 = vadd.f32 %v6351_v49, %v13563_v20  ;;  %v16309_v23 = vld [vmem:[#allocation69_spill] sm:$0xff] }
 0xf1a   :  { %16306 = vst [vmem:[#allocation16_spill] sm:$0xff] %v14252_v9  ;;  %v6167_v25 = vpop.f32.mrb[168].mxu0  ;;  %v6244_v19 = vpop.f32.mrb[170].mxu1  ;;  %v14265_v35 = vadd.f32 %v6352_v11, %v16307_v46  ;;  %v6355_v16 = vmax.f32 %v14255_v28, 0.0  ;;  %v14270_v33 = vadd.f32 %v6291_v39, %v6240_v45  ;;  %v14274_v18 = vadd.f32 %v6291_v39, %v6242_v7  ;;  %v16314_v46 = vld [vmem:[#allocation76_spill] sm:$0xff] }
 0xf1b   :  { %v6169_v0 = vpop.f32.mrb[169].mxu0  ;;  %v6246_v34 = vpop.f32.mrb[171].mxu1  ;;  %v6353_v41 = vmax.f32 %v14257_v38, 0.0  ;;  %10582 = vrot.lane.b32.xlu0 %v10581_v31, %s10778_s26  ;;  %v14272_v48 = vadd.f32 %v6291_v39, %v6167_v25  ;;  %v14276_v50 = vadd.f32 %v6296_v61, %v6244_v19  ;;  %v10586_v20 = vpack.i.bf16 %v14247_v6, %v14261_v10 }
 0xf1c   :  { %16308 = vst [vmem:[#allocation52_spill] sm:$0xff] %v14265_v35  ;;  %v6171_v26 = vpop.f32.mrb[170].mxu0  ;;  %v14280_v49 = vmax.f32 %v6411_v62, 0.0  ;;  %v6412_v43 = vadd.f32 %v6348_v30, %v13583_v36  ;;  %v14284_v3 = vadd.f32 %v6355_v16, %v16309_v23  ;;  %v15821_v58 = vmax.f32 %v14270_v33, 0.0 }
 0xf1d   :  { %v6173_v55 = vpop.f32.mrb[171].mxu0  ;;  %v14287_v45 = vadd.f32 %v6353_v41, %v16311_v42  ;;  %v15823_v7 = vmax.f32 %v14272_v48, 0.0  ;;  %v15822_v1 = vmax.f32 %v14274_v18, 0.0  ;;  %v15824_v25 = vmax.f32 %v14276_v50, 0.0  ;;  %10587 = vrot.lane.b32.xlu1 %v10586_v20, %s10778_s26  ;;  %v16316_v20 = vld [vmem:[#allocation33_spill] sm:$0xff] }
 0xf1e   :  { %16310 = vst [vmem:[#allocation17_spill] sm:$0xff] %v14284_v3  ;;  %v14294_v62 = vmax.f32 %v6415_v17, 0.0  ;;  %v14298_v36 = vadd.f32 %v6291_v39, %v6169_v0  ;;  %v14300_v30 = vadd.f32 %v6296_v61, %v6171_v26  ;;  %v6418_v38 = vadd.f32 %v6354_v32, %v13606_v14  ;;  %v16318_v26 = vld [vmem:[#allocation73_spill] sm:$0xff] }
 0xf1f   :  { %16312 = vst [vmem:[#allocation53_spill] sm:$0xff] %v14287_v45  ;;  %6564 = vrot.lane.b32.xlu0 %v14280_v49, %s10778_s26  ;;  %v6416_v31 = vadd.f32 %v6352_v11, %v13608_v44  ;;  %v14307_v23 = vadd.f32 %v15821_v58, %v16314_v46  ;;  %v14312_v17 = vadd.f32 %v15823_v7, %v16316_v20  ;;  %v14314_v39 = vmax.f32 %v6412_v43, 0.0  ;;  %v16320_v44 = vld [vmem:[#allocation37_spill] sm:$0xff] }
 0xf20   :  { %v6250_v19 = vpop.f32.mrb[172].mxu1  ;;  %16313 = vst [vmem:[#allocation15_spill] sm:$0xff] %v14294_v62  ;;  %v14319_v14 = vadd.f32 %v15822_v1, %v16318_v26  ;;  %v14324_v32 = vadd.f32 %v15824_v25, %v16320_v44  ;;  %v6414_v20 = vadd.f32 %v6350_v5, %v13621_v63  ;;  %v15826_v58 = vmax.f32 %v14298_v36, 0.0  ;;  %v6301_v25 = vpop.permute.xlu0 %6300  ;;  %v16324_v63 = vld [vmem:[#allocation39_spill] sm:$0xff] }
 0xf21   :  { %v6252_v28 = vpop.f32.mrb[173].mxu1  ;;  %16315 = vst [vmem:[#allocation51_spill] sm:$0xff] %v14307_v23  ;;  %16317 = vst [vmem:[#allocation18_spill] sm:$0xff] %v14312_v17  ;;  %v6360_v43 = vmax.f32 %v14300_v30, 0.0  ;;  %6566 = vrot.lane.b32.xlu1 %v14294_v62, %s10778_s26  ;;  %v14333_v1 = vadd.f32 %v6296_v61, %v6246_v34  ;;  %v6329_v7 = vadd.f32 %v6296_v61, %v6173_v55  ;;  %v14337_v8 = vmax.f32 %v6418_v38, 0.0  ;;  %v16326_v30 = vld [vmem:[#allocation67_spill] sm:$0xff]  ;;  %v6306_v34 = vpop.permute.xlu1 %6305 }
 0xf22   :  { %v6177_v42 = vpop.f32.mrb[172].mxu0  ;;  %v6254_v0 = vpop.f32.mrb[174].mxu1  ;;  %16319 = vst [vmem:[#allocation54_spill] sm:$0xff] %v14319_v14  ;;  %16321 = vst [vmem:[#allocation19_spill] sm:$0xff] %v14324_v32  ;;  %v14339_v15 = vmax.f32 %v6416_v31, 0.0  ;;  %v14344_v5 = vadd.f32 %v15826_v58, %v16324_v63  ;;  %v14350_v14 = vadd.f32 %v6301_v25, %v6250_v19  ;;  %v14352_v17 = vmax.f32 %v6414_v20, 0.0 }
 0xf23   :  { %v6179_v11 = vpop.f32.mrb[173].mxu0  ;;  %v6256_v46 = vpop.f32.mrb[175].mxu1  ;;  %6518 = vrot.lane.b32.xlu0 %v14314_v39, %s10778_s26  ;;  %16322 = vst [vmem:[#allocation55_spill] sm:$0xff] %v14337_v8  ;;  %v14347_v32 = vadd.f32 %v6360_v43, %v16326_v30  ;;  %v6363_v61 = vmax.f32 %v14333_v1, 0.0  ;;  %v6361_v55 = vmax.f32 %v6329_v7, 0.0  ;;  %v6332_v23 = vadd.f32 %v6301_v25, %v6177_v42  ;;  %v16329_v38 = vld [vmem:[#allocation34_spill] sm:$0xff] }
 0xf24   :  { %v6181_v26 = vpop.f32.mrb[174].mxu0  ;;  %16323 = vst [vmem:[#allocation21_spill] sm:$0xff] %v14339_v15  ;;  %16325 = vst [vmem:[#allocation22_spill] sm:$0xff] %v14344_v5  ;;  %v6417_v31 = vadd.f32 %v6353_v41, %v16329_v38  ;;  %v6335_v3 = vadd.f32 %v6301_v25, %v6252_v28  ;;  %v6338_v60 = vadd.f32 %v6306_v34, %v6254_v0  ;;  %v16330_v63 = vld [vmem:[#allocation75_spill] sm:$0xff]  ;;  %v16331_v30 = vmax.f32 %v14219_v27, 0.0  ;;  %v16333_v1 = vld [vmem:[#allocation68_spill] sm:$0xff] }
 0xf25   :  { %v6183_v44 = vpop.f32.mrb[175].mxu0  ;;  %16327 = vst [vmem:[#allocation56_spill] sm:$0xff] %v14347_v32  ;;  %16328 = vst [vmem:[#allocation59_spill] sm:$0xff] %v14352_v17  ;;  %6520 = vrot.lane.b32.xlu1 %v14339_v15, %s10778_s26  ;;  %v16332_v32 = vld [vmem:[#allocation77_spill] sm:$0xff]  ;;  %v14362_v7 = vadd.f32 %v6363_v61, %v16333_v1  ;;  %v16335_v19 = vld [vmem:[#allocation70_spill] sm:$0xff]  ;;  %v6366_v20 = vmax.f32 %v14350_v14, 0.0  ;;  %v10591_v38 = vpack.i.bf16 %v14337_v8, %v14352_v17 }
 0xf26   :  { %v6413_v58 = vadd.f32 %v16331_v30, %v16330_v63  ;;  %v6419_v5 = vadd.f32 %v6355_v16, %v16332_v32  ;;  %v14365_v42 = vadd.f32 %v6361_v55, %v16335_v19  ;;  %v6364_v41 = vmax.f32 %v6332_v23, 0.0  ;;  %v16337_v27 = vld [vmem:[#allocation74_spill] sm:$0xff]  ;;  %v16339_v16 = vld [vmem:[#allocation71_spill] sm:$0xff] }
 0xf27   :  { %16334 = vst [vmem:[#allocation20_spill] sm:$0xff] %v14362_v7  ;;  %v6367_v28 = vmax.f32 %v6335_v3, 0.0  ;;  %v6370_v0 = vmax.f32 %v6338_v60, 0.0  ;;  %v6333_v53 = vadd.f32 %v6301_v25, %v6179_v11  ;;  %v14370_v51 = vmax.f32 %v6417_v31, 0.0  ;;  %v16341_v30 = vld [vmem:[#allocation35_spill] sm:$0xff]  ;;  %v16343_v19 = vld [vmem:[#allocation38_spill] sm:$0xff]  ;;  %10592 = vrot.lane.b32.xlu0 %v10591_v38, %s10778_s26 }
 0xf28   :  { %16336 = vst [vmem:[#allocation57_spill] sm:$0xff] %v14365_v42  ;;  %v14373_v63 = vadd.f32 %v6366_v20, %v16337_v27  ;;  %v14376_v32 = vadd.f32 %v6364_v41, %v16339_v16  ;;  %v14385_v60 = vmax.f32 %v6413_v58, 0.0  ;;  %v14387_v3 = vmax.f32 %v6419_v5, 0.0  ;;  %v16346_v11 = vld [vmem:[#allocation42_spill] sm:$0xff]  ;;  %v16348_v16 = vld [vmem:[#allocation43_spill] sm:$0xff]  ;;  %v16352_v58 = vld [vmem:[#allocation41_spill] sm:$0xff] }
 0xf29   :  { %v14379_v1 = vadd.f32 %v6367_v28, %v16341_v30  ;;  %v14382_v14 = vadd.f32 %v6370_v0, %v16343_v19  ;;  %v6365_v25 = vmax.f32 %v6333_v53, 0.0  ;;  %v6336_v23 = vadd.f32 %v6306_v34, %v6181_v26  ;;  %v16350_v19 = vld [vmem:[#allocation46_spill] sm:$0xff] }
 0xf2a   :  { %16338 = vst [vmem:[#allocation25_spill] sm:$0xff] %v14373_v63  ;;  %16340 = vst [vmem:[#allocation64_spill] sm:$0xff] %v14376_v32  ;;  %v16347_v31 = vmax.f32 %v14272_v48, 0.0  ;;  %v16349_v63 = vmax.f32 %v14276_v50, 0.0  ;;  %v6337_v32 = vadd.f32 %v6306_v34, %v6183_v44  ;;  %v10596_v53 = vpack.i.bf16 %v14370_v51, %v14385_v60  ;;  %v16354_v26 = vld [vmem:[#allocation78_spill] sm:$0xff] }
 0xf2b   :  { %16342 = vst [vmem:[#allocation23_spill] sm:$0xff] %v14379_v1  ;;  %16344 = vst [vmem:[#allocation60_spill] sm:$0xff] %v14382_v14  ;;  %v6339_v1 = vadd.f32 %v6306_v34, %v6256_v46  ;;  %v16351_v14 = vmax.f32 %v14274_v18, 0.0  ;;  %v14399_v7 = vadd.f32 %v6365_v25, %v16352_v58  ;;  %v6368_v5 = vmax.f32 %v6336_v23, 0.0  ;;  %6568 = vrot.lane.b32.xlu0 %v14387_v3, %s10778_s26  ;;  %v16356_v46 = vld [vmem:[#allocation40_spill] sm:$0xff]  ;;  %v16362_v23 = vld [vmem:[#allocation45_spill] sm:$0xff] }
 0xf2c   :  { %16345 = vst [vmem:[#allocation26_spill] sm:$0xff] %v14387_v3  ;;  %v6420_v27 = vadd.f32 %v16347_v31, %v16346_v11  ;;  %v6426_v30 = vadd.f32 %v16349_v63, %v16348_v16  ;;  %v16355_v48 = vmax.f32 %v14270_v33, 0.0  ;;  %v6369_v50 = vmax.f32 %v6337_v32, 0.0  ;;  %10597 = vrot.lane.b32.xlu1 %v10596_v53, %s10778_s26  ;;  %v16360_v63 = vld [vmem:[#allocation44_spill] sm:$0xff]  ;;  %v16365_v32 = vld [vmem:[#allocation5_spill] sm:$0xff] }
 0xf2d   :  { %v6423_v38 = vadd.f32 %v16351_v14, %v16350_v19  ;;  %16353 = vst [vmem:[#allocation65_spill] sm:$0xff] %v14399_v7  ;;  %v6371_v31 = vmax.f32 %v6339_v1, 0.0  ;;  %v14409_v44 = vadd.f32 %v6368_v5, %v16356_v46  ;;  %v6424_v16 = vadd.f32 %v6360_v43, %v16365_v32  ;;  %v16366_v19 = vld [vmem:[#allocation3_spill] sm:$0xff]  ;;  %v16376_v32 = vld [vmem:[#allocation6_spill] sm:$0xff] }
 0xf2e   :  { %v6422_v11 = vadd.f32 %v16355_v48, %v16354_v26  ;;  %v14412_v18 = vmax.f32 %v6420_v27, 0.0  ;;  %v14414_v34 = vmax.f32 %v6426_v30, 0.0  ;;  %v14420_v33 = vadd.f32 %v6369_v50, %v16362_v23  ;;  %v16368_v27 = vld [vmem:[#allocation4_spill] sm:$0xff]  ;;  %v16370_v48 = vld [vmem:[#allocation9_spill] sm:$0xff] }
 0xf2f   :  { %16357 = vst [vmem:[#allocation24_spill] sm:$0xff] %v14409_v44  ;;  %v14417_v14 = vadd.f32 %v6371_v31, %v16360_v63  ;;  %v14422_v1 = vmax.f32 %v6423_v38, 0.0  ;;  %v6425_v58 = vadd.f32 %v6361_v55, %v16366_v19  ;;  %v16369_v30 = vmax.f32 %v14298_v36, 0.0  ;;  %v16375_v63 = vld [vmem:[#allocation7_spill] sm:$0xff]  ;;  %v16377_v19 = vld [vmem:[#allocation10_spill] sm:$0xff] }
 0xf30   :  { %16358 = vst [vmem:[#allocation62_spill] sm:$0xff] %v14412_v18  ;;  %16359 = vst [vmem:[#allocation58_spill] sm:$0xff] %v14414_v34  ;;  %v14426_v26 = vmax.f32 %v6422_v11, 0.0  ;;  %6522 = vrot.lane.b32.xlu0 %v14412_v18, %s10778_s26  ;;  %v6427_v46 = vadd.f32 %v6363_v61, %v16370_v48  ;;  %v14438_v43 = vmax.f32 %v6424_v16, 0.0  ;;  %v6428_v23 = vadd.f32 %v6364_v41, %v16375_v63  ;;  %v16382_v41 = vld [vmem:[#allocation14_spill] sm:$0xff] }
 0xf31   :  { %16361 = vst [vmem:[#allocation31_spill] sm:$0xff] %v14417_v14  ;;  %16363 = vst [vmem:[#allocation72_spill] sm:$0xff] %v14420_v33  ;;  %v6421_v53 = vadd.f32 %v16369_v30, %v16368_v27  ;;  %6570 = vrot.lane.b32.xlu1 %v14422_v1, %s10778_s26  ;;  %v14440_v55 = vmax.f32 %v6425_v58, 0.0  ;;  %v6434_v61 = vadd.f32 %v6370_v0, %v16376_v32  ;;  %v16378_v58 = vld [vmem:[#allocation8_spill] sm:$0xff] }
 0xf32   :  { %16364 = vst [vmem:[#allocation27_spill] sm:$0xff] %v14422_v1  ;;  %16367 = vst [vmem:[#allocation30_spill] sm:$0xff] %v14426_v26  ;;  %v10601_v38 = vpack.i.bf16 %v14414_v34, %v14426_v26  ;;  %v14447_v36 = vmax.f32 %v6427_v46, 0.0  ;;  %v6431_v27 = vadd.f32 %v6367_v28, %v16377_v19  ;;  %v6430_v30 = vadd.f32 %v6366_v20, %v16378_v58  ;;  %v16385_v20 = vld [vmem:[#allocation11_spill] sm:$0xff] }
 0xf33   :  { %16371 = vst [vmem:[#allocation61_spill] sm:$0xff] %v14438_v43  ;;  %16372 = vst [vmem:[#allocation63_spill] sm:$0xff] %v14440_v55  ;;  %v14443_v11 = vmax.f32 %v6421_v53, 0.0  ;;  %v14458_v53 = vmax.f32 %v6428_v23, 0.0  ;;  %v14460_v48 = vmax.f32 %v6434_v61, 0.0  ;;  %v6432_v0 = vadd.f32 %v6368_v5, %v16382_v41  ;;  %v16386_v23 = vld [vmem:[#allocation47_spill] sm:$0xff] }
 0xf34   :  { %10602 = vrot.lane.b32.xlu0 %v10601_v38, %s10778_s26  ;;  %16374 = vst [vmem:[#allocation28_spill] sm:$0xff] %v14447_v36  ;;  %v14462_v46 = vmax.f32 %v6431_v27, 0.0  ;;  %v16383_v38 = vld [vmem:[#allocation50_spill] sm:$0xff]  ;;  %v14466_v63 = vmax.f32 %v6430_v30, 0.0  ;;  %v6429_v32 = vadd.f32 %v6365_v25, %v16385_v20  ;;  %v6435_v19 = vadd.f32 %v6371_v31, %v16386_v23  ;;  %v9715_v58 = vld [vmem:[%s15630_s7 + $0x108] sm:$0xff]  ;;  %v9716_v30 = vld [vmem:[%s15630_s7 + $0x110] sm:$0xff] }
 0xf35   :  { %16373 = vst [vmem:[#allocation66_spill] sm:$0xff] %v14443_v11  ;;  %6524 = vrot.lane.b32.xlu1 %v14438_v43, %s10778_s26  ;;  %v10606_v16 = vpack.i.bf16 %v14440_v55, %v14443_v11  ;;  %16379 = vst [vmem:[#allocation32_spill] sm:$0xff] %v14458_v53  ;;  %v6433_v28 = vadd.f32 %v6369_v50, %v16383_v38  ;;  %v14476_v27 = vmax.f32 %v6432_v0, 0.0  ;;  %v9714_v31 = vld [vmem:[%s15630_s7 + $0x100] sm:$0xff]  ;;  %v9717_v41 = vld [vmem:[%s15630_s7 + $0x118] sm:$0xff] }
 0xf36   :  { %16380 = vst [vmem:[#allocation29_spill] sm:$0xff] %v14460_v48  ;;  %16381 = vst [vmem:[#allocation69_spill] sm:$0xff] %v14462_v46  ;;  %v10611_v61 = vpack.i.bf16 %v14460_v48, %v14466_v63  ;;  %v14481_v50 = vmax.f32 %v6429_v32, 0.0  ;;  %v14485_v25 = vmax.f32 %v6435_v19, 0.0  ;;  %v9718_v0 = vld [vmem:[%s15630_s7 + $0x120] sm:$0xff]  ;;  %v9719_v38 = vld [vmem:[%s15630_s7 + $0x128] sm:$0xff] }
 0xf37   :  { %16384 = vst [vmem:[#allocation36_spill] sm:$0xff] %v14466_v63  ;;  %16387 = vst [vmem:[#allocation76_spill] sm:$0xff] %v14476_v27  ;;  %v14478_v5 = vmax.f32 %v6433_v28, 0.0  ;;  %v9720_v28 = vld [vmem:[%s15630_s7 + $0x130] sm:$0xff]  ;;  %v9721_v20 = vld [vmem:[%s15630_s7 + $0x138] sm:$0xff] }
 0xf38   :  { %6572 = vrot.lane.b32.xlu0 %v14447_v36, %s10778_s26  ;;  %16389 = vst [vmem:[#allocation73_spill] sm:$0xff] %v14481_v50  ;;  %16390 = vst [vmem:[#allocation37_spill] sm:$0xff] %v14485_v25 }
 0xf39   :  { %10607 = vrot.lane.b32.xlu1 %v10606_v16, %s10778_s26  ;;  %16388 = vst [vmem:[#allocation33_spill] sm:$0xff] %v14478_v5  ;;  %v10616_v16 = vpack.i.bf16 %v14478_v5, %v14481_v50 }
 0xf3c   :  { %6526 = vrot.lane.b32.xlu0 %v14458_v53, %s10778_s26 }
 0xf3d   :  { %6574 = vrot.lane.b32.xlu1 %v14462_v46, %s10778_s26 }
 0xf40   :  { %10612 = vrot.lane.b32.xlu0 %v10611_v61, %s10778_s26 }
 0xf41   :  { %6528 = vrot.lane.b32.xlu1 %v14476_v27, %s10778_s26 }
 0xf44   :  { %6576 = vrot.lane.b32.xlu0 %v14485_v25, %s10778_s26 }
 0xf45   :  { %10617 = vrot.lane.b32.xlu1 %v10616_v16, %s10778_s26 }
 0xf48   :  { %7026 = vperm.xlu0 %10259, %v9714_v31   ;;  %v16391_v31 = vmov 0.0  }
 0xf49   :  { %7031 = vperm.xlu1 %10260, %v9715_v58   ;;  %v14519_v58 = vsel %vm6468_vm13, 1.0, %v16391_v31 }
 0xf4c   :  { %7036 = vperm.xlu0 %10259, %v9716_v30  }
 0xf4d   :  { %7041 = vperm.xlu1 %10260, %v9717_v41  }
 0xf50   :  { %7046 = vperm.xlu0 %10259, %v9718_v0  }
 0xf51   :  { %7051 = vperm.xlu1 %10260, %v9719_v38  }
 0xf54   :  { %7056 = vperm.xlu0 %10259, %v9720_v28  }
 0xf55   :  { %7061 = vperm.xlu1 %10260, %v9721_v20  }
 0xf84   :  { %v6563_v32 = vpop.permute.xlu1 %6562 }
 0xf85   :  { %v6515_v23 = vpop.permute.xlu0 %6514 }
 0xf86   :  { %v6603_v30 = vsel %vm6578_vm12, %v6563_v32, %v6515_v23 }
 0xf87   :  { %v6611_v14 = vmul.f32 %v14519_v58, %v6603_v30 }
 0xf88   :  { %v6517_v19 = vpop.permute.xlu1 %6516 }
 0xf8d   :  { %v10583_v61 = vpop.permute.xlu0 %10582 }
 0xf8e   :  { %v10584_v16 = vunpack.i.l.bf16 %v10583_v61  ;;  %v10585_v41 = vunpack.i.h.bf16 %v10583_v61 }
 0xf8f   :  { %v10588_v0 = vpop.permute.xlu1 %10587 }
 0xf90   :  { %v10590_v28 = vunpack.i.h.bf16 %v10588_v0  ;;  %v10589_v20 = vunpack.i.l.bf16 %v10588_v0  ;;  %v6579_v33 = vsel %vm6578_vm12, %v10584_v16, %v6563_v32 }
 0xf91   :  { %v6565_v38 = vpop.permute.xlu0 %6564 }
 0xf92   :  { %v6580_v44 = vsel %vm6578_vm12, %v10585_v41, %v6565_v38  ;;  %v6604_v31 = vsel %vm6578_vm12, %v6565_v38, %v6517_v19  ;;  %v6588_v61 = vsel %vm6578_vm12, %v10590_v28, %v10585_v41  ;;  %v6587_v0 = vsel %vm6578_vm12, %v10589_v20, %v10584_v16 }
 0xf93   :  { %v6615_v7 = vmul.f32 %v14519_v58, %v6604_v31  ;;  %v6646_v42 = vpack.c.bf16 %v6580_v44, %v6579_v33  ;;  %v6645_v45 = vpack.c.bf16 %v6588_v61, %v6587_v0  ;;  %v6595_v30 = vsel %vm6578_vm12, %v6515_v23, %v10589_v20  ;;  %v6567_v38 = vpop.permute.xlu1 %6566 }
 0xf94   :  { %v6596_v32 = vsel %vm6578_vm12, %v6517_v19, %v10590_v28 }
 0xf95   :  { %v6643_v35 = vpack.c.bf16 %v6615_v7, %v6611_v14  ;;  %6764 = vmatprep.subr.bf16.mxu1 %v6646_v42  ;;  %v6644_v9 = vpack.c.bf16 %v6596_v32, %v6595_v30  ;;  %v6519_v31 = vpop.permute.xlu0 %6518 }
 0xf96   :  { %6765 = vmatpush1.bf16.msra.mxu1 %v6645_v45  ;;  %v6605_v16 = vsel %vm6578_vm12, %v6567_v38, %v6519_v31 }
 0xf97   :  { %6691 = vmatprep.subr.bf16.mxu0 %v6644_v9  ;;  %v6521_v44 = vpop.permute.xlu1 %6520  ;;  %v6619_v28 = vmul.f32 %v14519_v58, %v6605_v16 }
 0xf98   :  { %6692 = vmatpush1.bf16.msra.mxu0 %v6643_v35 }
 0xf99   :  { %v10593_v33 = vpop.permute.xlu0 %10592 }
 0xf9a   :  { %v10594_v41 = vunpack.i.l.bf16 %v10593_v33  ;;  %v10595_v21 = vunpack.i.h.bf16 %v10593_v33 }
 0xf9c   :  { %v6581_v23 = vsel %vm6578_vm12, %v10594_v41, %v6567_v38 }
 0xf9d   :  { %v6569_v61 = vpop.permute.xlu0 %6568 }
 0xf9e   :  { %v6582_v7 = vsel %vm6578_vm12, %v10595_v21, %v6569_v61  ;;  %v6606_v45 = vsel %vm6578_vm12, %v6569_v61, %v6521_v44  ;;  %v10598_v42 = vpop.permute.xlu1 %10597 }
 0xf9f   :  { %v6623_v9 = vmul.f32 %v14519_v58, %v6606_v45  ;;  %v6650_v35 = vpack.c.bf16 %v6582_v7, %v6581_v23  ;;  %v10600_v14 = vunpack.i.h.bf16 %v10598_v42  ;;  %v10599_v19 = vunpack.i.l.bf16 %v10598_v42 }
 0xfa1   :  { %v6590_v20 = vsel %vm6578_vm12, %v10600_v14, %v10595_v21  ;;  %v6589_v0 = vsel %vm6578_vm12, %v10599_v19, %v10594_v41  ;;  %6766 = vmatprep.subr.bf16.mxu1 %v6650_v35  ;;  %v6597_v32 = vsel %vm6578_vm12, %v6519_v31, %v10599_v19  ;;  %v6647_v38 = vpack.c.bf16 %v6623_v9, %v6619_v28 }
 0xfa2   :  { %v6523_v30 = vpop.permute.xlu0 %6522  ;;  %v6649_v33 = vpack.c.bf16 %v6590_v20, %v6589_v0  ;;  %v6598_v23 = vsel %vm6578_vm12, %v6521_v44, %v10600_v14 }
 0xfa3   :  { %v6571_v61 = vpop.permute.xlu1 %6570  ;;  %v6648_v7 = vpack.c.bf16 %v6598_v23, %v6597_v32 }
 0xfa4   :  { %6767 = vmatpush1.bf16.msra.mxu1 %v6649_v33  ;;  %v6607_v41 = vsel %vm6578_vm12, %v6571_v61, %v6523_v30 }
 0xfa5   :  { %6693 = vmatprep.subr.bf16.mxu0 %v6648_v7  ;;  %v6627_v32 = vmul.f32 %v14519_v58, %v6607_v41 }
 0xfa6   :  { %v10603_v16 = vpop.permute.xlu0 %10602  ;;  %6694 = vmatpush1.bf16.msra.mxu0 %v6647_v38 }
 0xfa7   :  { %v10604_v21 = vunpack.i.l.bf16 %v10603_v16  ;;  %v6525_v45 = vpop.permute.xlu1 %6524  ;;  %v10605_v42 = vunpack.i.h.bf16 %v10603_v16 }
 0xfa9   :  { %v6583_v31 = vsel %vm6578_vm12, %v10604_v21, %v6571_v61 }
 0xfaa   :  { %v6573_v35 = vpop.permute.xlu0 %6572 }
 0xfab   :  { %v6584_v9 = vsel %vm6578_vm12, %v10605_v42, %v6573_v35  ;;  %v6608_v44 = vsel %vm6578_vm12, %v6573_v35, %v6525_v45  ;;  %v10608_v14 = vpop.permute.xlu1 %10607 }
 0xfac   :  { %v6631_v19 = vmul.f32 %v14519_v58, %v6608_v44  ;;  %v6654_v28 = vpack.c.bf16 %v6584_v9, %v6583_v31  ;;  %v10610_v20 = vunpack.i.h.bf16 %v10608_v14  ;;  %v10609_v0 = vunpack.i.l.bf16 %v10608_v14 }
 0xfae   :  { %v6592_v38 = vsel %vm6578_vm12, %v10610_v20, %v10605_v42  ;;  %v6591_v33 = vsel %vm6578_vm12, %v10609_v0, %v10604_v21  ;;  %6768 = vmatprep.subr.bf16.mxu1 %v6654_v28  ;;  %v6527_v61 = vpop.permute.xlu0 %6526  ;;  %v6599_v23 = vsel %vm6578_vm12, %v6523_v30, %v10609_v0  ;;  %v6651_v7 = vpack.c.bf16 %v6631_v19, %v6627_v32 }
 0xfaf   :  { %v6653_v16 = vpack.c.bf16 %v6592_v38, %v6591_v33  ;;  %v6575_v35 = vpop.permute.xlu1 %6574  ;;  %v6600_v31 = vsel %vm6578_vm12, %v6525_v45, %v10610_v20 }
 0xfb0   :  { %v6652_v9 = vpack.c.bf16 %v6600_v31, %v6599_v23  ;;  %v6609_v21 = vsel %vm6578_vm12, %v6575_v35, %v6527_v61 }
 0xfb1   :  { %6769 = vmatpush1.bf16.msra.mxu1 %v6653_v16  ;;  %v6635_v23 = vmul.f32 %v14519_v58, %v6609_v21  ;;  %v6489_v21 = vpack.c.bf16 %v14217_v59, %v14198_v57 }
 0xfb2   :  { %6695 = vmatprep.subr.bf16.mxu0 %v6652_v9  ;;  %v10613_v41 = vpop.permute.xlu0 %10612 }
 0xfb3   :  { %6696 = vmatpush1.bf16.msra.mxu0 %v6651_v7  ;;  %v10614_v42 = vunpack.i.l.bf16 %v10613_v41  ;;  %v6529_v44 = vpop.permute.xlu1 %6528  ;;  %v10615_v14 = vunpack.i.h.bf16 %v10613_v41 }
 0xfb5   :  { %v6585_v30 = vsel %vm6578_vm12, %v10614_v42, %v6575_v35 }
 0xfb6   :  { %v6577_v28 = vpop.permute.xlu0 %6576 }
 0xfb7   :  { %v6586_v19 = vsel %vm6578_vm12, %v10615_v14, %v6577_v28  ;;  %v6610_v45 = vsel %vm6578_vm12, %v6577_v28, %v6529_v44  ;;  %v10618_v20 = vpop.permute.xlu1 %10617 }
 0xfb8   :  { %v6639_v0 = vmul.f32 %v14519_v58, %v6610_v45  ;;  %v6658_v32 = vpack.c.bf16 %v6586_v19, %v6585_v30  ;;  %v10620_v38 = vunpack.i.h.bf16 %v10618_v20  ;;  %v10619_v33 = vunpack.i.l.bf16 %v10618_v20 }
 0xfb9   :  { %v6492_v30 = vpack.c.bf16 %v14280_v49, %v14193_v24  ;;  %v6494_v19 = vpack.c.bf16 %v14370_v51, %v14385_v60  ;;  %v6495_v45 = vpack.c.bf16 %v14337_v8, %v14352_v17  ;;  %v6500_v20 = vpack.c.bf16 %v14447_v36, %v14422_v1 }
 0xfba   :  { %v6594_v7 = vsel %vm6578_vm12, %v10620_v38, %v10615_v14  ;;  %v6593_v16 = vsel %vm6578_vm12, %v10619_v33, %v10614_v42  ;;  %6770 = vmatprep.subr.bf16.mxu1 %v6658_v32  ;;  %v6601_v35 = vsel %vm6578_vm12, %v6527_v61, %v10619_v33  ;;  %v6655_v31 = vpack.c.bf16 %v6639_v0, %v6635_v23  ;;  %v10739_v14 = vld [vmem:[%s15629_s6 + $0x80] sm:$0xff]   ;;  %v10740_v0 = vld [vmem:[%s15629_s6 + $0x88] sm:$0xff]  }
 0xfbb   :  { %v6657_v9 = vpack.c.bf16 %v6594_v7, %v6593_v16  ;;  %v6602_v41 = vsel %vm6578_vm12, %v6529_v44, %v10620_v38  ;;  %v6490_v42 = vpack.c.bf16 %v14247_v6, %v14261_v10  ;;  %v6491_v61 = vpack.c.bf16 %v14230_v4, %v14239_v13 }
 0xfbc   :  { %v6656_v28 = vpack.c.bf16 %v6602_v41, %v6601_v35  ;;  %v6496_v44 = vpack.c.bf16 %v14387_v3, %v14294_v62  ;;  %v6493_v32 = vpack.c.bf16 %v14339_v15, %v14314_v39  ;;  %v6498_v38 = vpack.c.bf16 %v14440_v55, %v14443_v11  ;;  %v10742_v41 = vld [vmem:[%s15629_s6 + $0x98] sm:$0xff]  }
 0xfbd   :  { %6771 = vmatpush1.bf16.msra.mxu1 %v6657_v9  ;;  %v6499_v33 = vpack.c.bf16 %v14414_v34, %v14426_v26  ;;  %v6504_v23 = vpack.c.bf16 %v14485_v25, %v14462_v46  ;;  %v6497_v7 = vpack.c.bf16 %v14438_v43, %v14412_v18  ;;  %v6502_v16 = vpack.c.bf16 %v14478_v5, %v14481_v50 }
 0xfbe   :  { %6697 = vmatprep.subr.bf16.mxu0 %v6656_v28  ;;  %6942 = vmatprep.subr.bf16.mxu1 %v6492_v30  ;;  %v6503_v35 = vpack.c.bf16 %v14460_v48, %v14466_v63  ;;  %v6501_v9 = vpack.c.bf16 %v14476_v27, %v14458_v53  ;;  %v10743_v28 = vld [vmem:[%s15631_s5 + $0x80] sm:$0xff]   ;;  %v10744_v30 = vld [vmem:[%s15631_s5 + $0x88] sm:$0xff]  }
 0xfbf   :  { %6698 = vmatpush1.bf16.msra.mxu0 %v6655_v31  ;;  %v10741_v31 = vld [vmem:[%s15629_s6 + $0x90] sm:$0xff]  }
 0xfc0   :  { %6869 = vmatprep.subr.bf16.mxu0 %v6490_v42  ;;  %9698 = vmatmul.mubr.msk.bf16.vlgmr.msra.gmra.mrb[176].mxu1 %vm602_vm3, %v10739_v14  ;;  %v10746_v42 = vld [vmem:[%s15631_s5 + $0x98] sm:$0xff]  }
 0xfc1   :  { %6943 = vmatpush1.bf16.msra.mxu1 %v6491_v61  ;;  %6806 = vmatprep.mubr.bf16.mxu1 %v15935_v52  ;;  %v18_v61 = vstv %s15635_s12 }
 0xfc2   :  { %9694 = vmatmul.mubr.msk.bf16.vlgmr.msra.gmra.mrb[176].mxu0 %vm602_vm3, %v10739_v14  ;;  %6944 = vmatprep.subr.bf16.mxu1 %v6496_v44  ;;  %v10745_v14 = vld [vmem:[%s15631_s5 + $0x90] sm:$0xff]   ;;  %19 = vst [vmem:[#allocation2] sm:$0x1] %v18_v61 }
 0xfc3   :  { %6870 = vmatpush1.bf16.msra.mxu0 %v6489_v21  ;;  %6733 = vmatprep.mubr.bf16.mxu0 %v15935_v52 }
 0xfc4   :  { %6871 = vmatprep.subr.bf16.mxu0 %v6494_v19 }
 0xfc5   :  { %6945 = vmatpush1.bf16.msra.mxu1 %v6495_v45 }
 0xfc6   :  { %6946 = vmatprep.subr.bf16.mxu1 %v6500_v20 }
 0xfc7   :  { %6872 = vmatpush1.bf16.msra.mxu0 %v6493_v32  ;;  %v7027_v44 = vpop.permute.xlu0 %7026 }
 0xfc8   :  { %6873 = vmatprep.subr.bf16.mxu0 %v6498_v38  ;;  %9699 = vmatmul.mubr.msk.bf16.gmra.mrb[180].mxu1 %vm602_vm3, %v10740_v0  ;;  %v7032_v19 = vpop.permute.xlu1 %7031 }
 0xfc9   :  { %6947 = vmatpush1.bf16.msra.mxu1 %v6499_v33  ;;  %6816 = vmatprep.mubr.bf16.mxu1 %v15935_v52 }
 0xfca   :  { %9695 = vmatmul.mubr.msk.bf16.gmra.mrb[180].mxu0 %vm602_vm3, %v10740_v0  ;;  %6948 = vmatprep.subr.bf16.mxu1 %v6504_v23 }
 0xfcb   :  { %6874 = vmatpush1.bf16.msra.mxu0 %v6497_v7  ;;  %6743 = vmatprep.mubr.bf16.mxu0 %v15935_v52 }
 0xfcc   :  { %6875 = vmatprep.subr.bf16.mxu0 %v6502_v16 }
 0xfcd   :  { %6949 = vmatpush1.bf16.msra.mxu1 %v6503_v35 }
 0xfcf   :  { %6876 = vmatpush1.bf16.msra.mxu0 %v6501_v9 }
 0xfd0   :  { %9700 = vmatmul.mubr.msk.bf16.gmra.mrb[184].mxu1 %vm602_vm3, %v10741_v31 }
 0xfd1   :  { %6826 = vmatprep.mubr.bf16.mxu1 %v15935_v52 }
 0xfd2   :  { %9696 = vmatmul.mubr.msk.bf16.gmra.mrb[184].mxu0 %vm602_vm3, %v10741_v31 }
 0xfd3   :  { %6753 = vmatprep.mubr.bf16.mxu0 %v15935_v52 }
 0xfd8   :  { %9701 = vmatmul.mubr.msk.bf16.gmra.mrb[188].mxu1 %vm602_vm3, %v10742_v41 }
 0xfd9   :  { %6974 = vmatprep.mubr.bf16.mxu1 %v15935_v52 }
 0xfda   :  { %9697 = vmatmul.mubr.msk.bf16.gmra.mrb[188].mxu0 %vm602_vm3, %v10742_v41 }
 0xfdb   :  { %6901 = vmatprep.mubr.bf16.mxu0 %v15935_v52 }
 0xfe0   :  { %9710 = vmatmul.mubr.msk.bf16.vlgmr.msra.gmra.mrb[176].mxu1 %vm602_vm3, %v10743_v28 }
 0xfe1   :  { %6984 = vmatprep.mubr.bf16.mxu1 %v15935_v52 }
 0xfe2   :  { %9706 = vmatmul.mubr.msk.bf16.vlgmr.msra.gmra.mrb[176].mxu0 %vm602_vm3, %v10743_v28 }
 0xfe3   :  { %6911 = vmatprep.mubr.bf16.mxu0 %v15935_v52 }
 0xfe8   :  { %9711 = vmatmul.mubr.msk.bf16.gmra.mrb[180].mxu1 %vm602_vm3, %v10744_v30 }
 0xfe9   :  { %6994 = vmatprep.mubr.bf16.mxu1 %v15935_v52 }
 0xfea   :  { %9707 = vmatmul.mubr.msk.bf16.gmra.mrb[180].mxu0 %vm602_vm3, %v10744_v30 }
 0xfeb   :  { %6921 = vmatprep.mubr.bf16.mxu0 %v15935_v52 }
 0xff0   :  { %9712 = vmatmul.mubr.msk.bf16.gmra.mrb[184].mxu1 %vm602_vm3, %v10745_v14 }
 0xff1   :  { %7004 = vmatprep.mubr.bf16.mxu1 %v15935_v52 }
 0xff2   :  { %9708 = vmatmul.mubr.msk.bf16.gmra.mrb[184].mxu0 %vm602_vm3, %v10745_v14 }
 0xff3   :  { %6931 = vmatprep.mubr.bf16.mxu0 %v15935_v52 }
 0xff8   :  { %9713 = vmatmul.mubr.msk.bf16.gmra.mrb[188].mxu1 %vm602_vm3, %v10746_v42 }
 0xff9   :  { %7443 = vmatprep.mubr.bf16.mxu1 %v15935_v52 }
 0xffa   :  { %9709 = vmatmul.mubr.msk.bf16.gmra.mrb[188].mxu0 %vm602_vm3, %v10746_v42 }
 0xffb   :  { %7370 = vmatprep.mubr.bf16.mxu0 %v15935_v52 }
0x10b3   :  { %v6976_v21 = vpop.f32.mrb[176].mxu1 }
0x10b4   :  { %v7066_v45 = vadd.f32 %v7027_v44, %v6976_v21  ;;  %v6978_v20 = vpop.f32.mrb[177].mxu1 }
0x10b5   :  { %v6903_v0 = vpop.f32.mrb[176].mxu0  ;;  %v7067_v32 = vadd.f32 %v7027_v44, %v6978_v20  ;;  %v6980_v38 = vpop.f32.mrb[178].mxu1 }
0x10b6   :  { %v7064_v33 = vadd.f32 %v7027_v44, %v6903_v0  ;;  %v6905_v23 = vpop.f32.mrb[177].mxu0  ;;  %v7070_v7 = vadd.f32 %v7032_v19, %v6980_v38  ;;  %v6982_v16 = vpop.f32.mrb[179].mxu1  ;;  %v7098_v41 = vmax.f32 %v7066_v45, 0.0 }
0x10b7   :  { %v7065_v35 = vadd.f32 %v7027_v44, %v6905_v23  ;;  %v6907_v31 = vpop.f32.mrb[178].mxu0  ;;  %v7071_v9 = vadd.f32 %v7032_v19, %v6982_v16  ;;  %v7099_v61 = vmax.f32 %v7067_v32, 0.0  ;;  %v7037_v0 = vpop.permute.xlu0 %7036 }
0x10b8   :  { %v7096_v28 = vmax.f32 %v7064_v33, 0.0  ;;  %v7102_v30 = vmax.f32 %v7070_v7, 0.0  ;;  %v7068_v14 = vadd.f32 %v7032_v19, %v6907_v31  ;;  %v6909_v42 = vpop.f32.mrb[179].mxu0  ;;  %v7042_v45 = vpop.permute.xlu1 %7041 }
0x10b9   :  { %v7103_v25 = vmax.f32 %v7071_v9, 0.0  ;;  %v7069_v48 = vadd.f32 %v7032_v19, %v6909_v42  ;;  %v7097_v38 = vmax.f32 %v7065_v35, 0.0 }
0x10ba   :  { %v10621_v21 = vpack.i.bf16 %v7102_v30, %v7098_v41  ;;  %v14684_v50 = vpack.c.bf16 %v7102_v30, %v7098_v41  ;;  %v7100_v20 = vmax.f32 %v7068_v14, 0.0  ;;  %7162 = vrot.lane.b32.xlu0 %v7096_v28, %s10778_s26 }
0x10bb   :  { %v14687_v46 = vpack.c.bf16 %v7103_v25, %v7099_v61  ;;  %v7101_v44 = vmax.f32 %v7069_v48, 0.0  ;;  %v6986_v23 = vpop.f32.mrb[180].mxu1 }
0x10bc   :  { %v14689_v33 = vpack.c.bf16 %v7100_v20, %v7096_v28  ;;  %v7074_v7 = vadd.f32 %v7037_v0, %v6986_v23  ;;  %10622 = vrot.lane.b32.xlu1 %v10621_v21, %s10778_s26  ;;  %v6988_v32 = vpop.f32.mrb[181].mxu1 }
0x10bd   :  { %v10626_v19 = vpack.i.bf16 %v7101_v44, %v7097_v38  ;;  %v14692_v16 = vpack.c.bf16 %v7101_v44, %v7097_v38  ;;  %v6913_v31 = vpop.f32.mrb[180].mxu0  ;;  %v7075_v9 = vadd.f32 %v7037_v0, %v6988_v32  ;;  %v6990_v41 = vpop.f32.mrb[182].mxu1 }
0x10be   :  { %v7072_v30 = vadd.f32 %v7037_v0, %v6913_v31  ;;  %v7078_v14 = vadd.f32 %v7042_v45, %v6990_v41  ;;  %7210 = vrot.lane.b32.xlu0 %v7099_v61, %s10778_s26  ;;  %v6915_v35 = vpop.f32.mrb[181].mxu0  ;;  %v6992_v48 = vpop.f32.mrb[183].mxu1  ;;  %v7106_v23 = vmax.f32 %v7074_v7, 0.0 }
0x10bf   :  { %v7073_v42 = vadd.f32 %v7037_v0, %v6915_v35  ;;  %v6917_v63 = vpop.f32.mrb[182].mxu0  ;;  %v14695_v28 = vadd.f32 %v7042_v45, %v6992_v48  ;;  %v7107_v38 = vmax.f32 %v7075_v9, 0.0  ;;  %v7047_v0 = vpop.permute.xlu0 %7046 }
0x10c0   :  { %v7110_v5 = vmax.f32 %v7078_v14, 0.0  ;;  %v7076_v21 = vadd.f32 %v7042_v45, %v6917_v63  ;;  %v6919_v27 = vpop.f32.mrb[183].mxu0  ;;  %7164 = vrot.lane.b32.xlu1 %v7100_v20, %s10778_s26  ;;  %v7104_v31 = vmax.f32 %v7072_v30, 0.0  ;;  %v7052_v20 = vpop.permute.xlu1 %7051 }
0x10c1   :  { %v15835_v44 = vmax.f32 %v14695_v28, 0.0  ;;  %v7077_v32 = vadd.f32 %v7042_v45, %v6919_v27  ;;  %v7105_v35 = vmax.f32 %v7073_v42, 0.0 }
0x10c2   :  { %v10631_v41 = vpack.i.bf16 %v7110_v5, %v7106_v23  ;;  %v14699_v53 = vpack.c.bf16 %v7110_v5, %v7106_v23  ;;  %v7108_v61 = vmax.f32 %v7076_v21, 0.0  ;;  %10627 = vrot.lane.b32.xlu0 %v10626_v19, %s10778_s26 }
0x10c3   :  { %v14704_v7 = vpack.c.bf16 %v15835_v44, %v7107_v38  ;;  %v7109_v63 = vmax.f32 %v7077_v32, 0.0  ;;  %v6996_v14 = vpop.f32.mrb[184].mxu1 }
0x10c4   :  { %v14706_v9 = vpack.c.bf16 %v7108_v61, %v7104_v31  ;;  %v7082_v48 = vadd.f32 %v7047_v0, %v6996_v14  ;;  %v6998_v27 = vpop.f32.mrb[185].mxu1  ;;  %7212 = vrot.lane.b32.xlu1 %v7103_v25, %s10778_s26 }
0x10c5   :  { %v10636_v5 = vpack.i.bf16 %v7109_v63, %v7105_v35  ;;  %v14709_v45 = vpack.c.bf16 %v7109_v63, %v7105_v35  ;;  %v14711_v30 = vadd.f32 %v7047_v0, %v6998_v27  ;;  %v6923_v19 = vpop.f32.mrb[184].mxu0  ;;  %v7000_v42 = vpop.f32.mrb[186].mxu1 }
0x10c6   :  { %v7080_v23 = vadd.f32 %v7047_v0, %v6923_v19  ;;  %v7086_v21 = vadd.f32 %v7052_v20, %v7000_v42  ;;  %7166 = vrot.lane.b32.xlu0 %v7104_v31, %s10778_s26  ;;  %v6925_v32 = vpop.f32.mrb[185].mxu0  ;;  %v7002_v44 = vpop.f32.mrb[187].mxu1  ;;  %v7114_v14 = vmax.f32 %v7082_v48, 0.0 }
0x10c7   :  { %v7081_v34 = vadd.f32 %v7047_v0, %v6925_v32  ;;  %v6927_v36 = vpop.f32.mrb[186].mxu0  ;;  %v7087_v26 = vadd.f32 %v7052_v20, %v7002_v44  ;;  %v7115_v35 = vmax.f32 %v14711_v30, 0.0  ;;  %v7057_v0 = vpop.permute.xlu0 %7056 }
0x10c8   :  { %v7118_v1 = vmax.f32 %v7086_v21, 0.0  ;;  %v7084_v55 = vadd.f32 %v7052_v20, %v6927_v36  ;;  %v6929_v25 = vpop.f32.mrb[187].mxu0  ;;  %10632 = vrot.lane.b32.xlu1 %v10631_v41, %s10778_s26  ;;  %v7112_v43 = vmax.f32 %v7080_v23, 0.0  ;;  %v7062_v21 = vpop.permute.xlu1 %7061 }
0x10c9   :  { %v7119_v63 = vmax.f32 %v7087_v26, 0.0  ;;  %v7085_v27 = vadd.f32 %v7052_v20, %v6929_v25  ;;  %v7113_v32 = vmax.f32 %v7081_v34, 0.0 }
0x10ca   :  { %v10641_v19 = vpack.i.bf16 %v7118_v1, %v7114_v14  ;;  %v14716_v42 = vpack.c.bf16 %v7118_v1, %v7114_v14  ;;  %v7116_v31 = vmax.f32 %v7084_v55, 0.0  ;;  %7214 = vrot.lane.b32.xlu0 %v7107_v38, %s10778_s26 }
0x10cb   :  { %v14719_v44 = vpack.c.bf16 %v7119_v63, %v7115_v35  ;;  %v7117_v48 = vmax.f32 %v7085_v27, 0.0  ;;  %v7006_v36 = vpop.f32.mrb[188].mxu1 }
0x10cc   :  { %v14721_v11 = vpack.c.bf16 %v7116_v31, %v7112_v43  ;;  %v7090_v41 = vadd.f32 %v7057_v0, %v7006_v36  ;;  %v7008_v30 = vpop.f32.mrb[189].mxu1  ;;  %7168 = vrot.lane.b32.xlu1 %v7108_v61, %s10778_s26  ;;  %v16392_v61 = vmax.f32 %v14695_v28, 0.0 }
0x10cd   :  { %v10646_v26 = vpack.i.bf16 %v7117_v48, %v7113_v32  ;;  %v14724_v20 = vpack.c.bf16 %v7117_v48, %v7113_v32  ;;  %v7091_v1 = vadd.f32 %v7057_v0, %v7008_v30  ;;  %v6933_v55 = vpop.f32.mrb[188].mxu0  ;;  %v7010_v23 = vpop.f32.mrb[190].mxu1 }
0x10ce   :  { %v7088_v38 = vadd.f32 %v7057_v0, %v6933_v55  ;;  %v7094_v14 = vadd.f32 %v7062_v21, %v7010_v23  ;;  %10637 = vrot.lane.b32.xlu0 %v10636_v5, %s10778_s26  ;;  %v6935_v34 = vpop.f32.mrb[189].mxu0  ;;  %v7012_v25 = vpop.f32.mrb[191].mxu1  ;;  %v7122_v8 = vmax.f32 %v7090_v41, 0.0 }
0x10cf   :  { %v7089_v27 = vadd.f32 %v7057_v0, %v6935_v34  ;;  %v6937_v18 = vpop.f32.mrb[190].mxu0  ;;  %v7095_v3 = vadd.f32 %v7062_v21, %v7012_v25  ;;  %v7123_v32 = vmax.f32 %v7091_v1, 0.0  ;;  %v9813_v1 = vld [vmem:[%s15630_s7 + $0x158] sm:$0xff]  ;;  %v9815_v25 = vld [vmem:[%s15630_s7 + $0x168] sm:$0xff] }
0x10d0   :  { %v7126_v36 = vmax.f32 %v7094_v14, 0.0  ;;  %v7092_v62 = vadd.f32 %v7062_v21, %v6937_v18  ;;  %v6939_v17 = vpop.f32.mrb[191].mxu0  ;;  %7216 = vrot.lane.b32.xlu1 %v16392_v61, %s10778_s26  ;;  %v7120_v55 = vmax.f32 %v7088_v38, 0.0  ;;  %v9814_v38 = vld [vmem:[%s15630_s7 + $0x160] sm:$0xff] }
0x10d1   :  { %v7127_v48 = vmax.f32 %v7095_v3, 0.0  ;;  %v7093_v30 = vadd.f32 %v7062_v21, %v6939_v17  ;;  %v7121_v0 = vmax.f32 %v7089_v27, 0.0  ;;  %v9764_v17 = vld [vmem:[%s15633_s10 + $0x110] sm:$0xff]  ;;  %v9765_v3 = vld [vmem:[%s15633_s10 + $0x118] sm:$0xff]  ;;  %v9811_v21 = vld [vmem:[%s15630_s7 + $0x148] sm:$0xff] }
0x10d2   :  { %v10656_v23 = vpack.i.bf16 %v7126_v36, %v7122_v8  ;;  %v14730_v15 = vpack.c.bf16 %v7126_v36, %v7122_v8  ;;  %v7124_v5 = vmax.f32 %v7092_v62, 0.0  ;;  %7170 = vrot.lane.b32.xlu0 %v7112_v43, %s10778_s26  ;;  %v9762_v8 = vld [vmem:[%s15633_s10 + $0x100] sm:$0xff]  ;;  %v9763_v62 = vld [vmem:[%s15633_s10 + $0x108] sm:$0xff]  ;;  %v9816_v27 = vld [vmem:[%s15630_s7 + $0x170] sm:$0xff] }
0x10d3   :  { %v14733_v34 = vpack.c.bf16 %v7127_v48, %v7123_v32  ;;  %v7125_v41 = vmax.f32 %v7093_v30, 0.0  ;;  %v9766_v43 = vld [vmem:[%s15633_s10 + $0x120] sm:$0xff]  ;;  %v9817_v36 = vld [vmem:[%s15630_s7 + $0x178] sm:$0xff] }
0x10d4   :  { %v14735_v18 = vpack.c.bf16 %v7124_v5, %v7120_v55  ;;  %10642 = vrot.lane.b32.xlu1 %v10641_v19, %s10778_s26  ;;  %v9769_v19 = vld [vmem:[%s15633_s10 + $0x138] sm:$0xff]  ;;  %v9858_v61 = vld [vmem:[%s15633_s10 + $0x140] sm:$0xff] }
0x10d5   :  { %v10651_v28 = vpack.i.bf16 %v7125_v41, %v7121_v0  ;;  %v14738_v14 = vpack.c.bf16 %v7125_v41, %v7121_v0  ;;  %v9861_v30 = vld [vmem:[%s15633_s10 + $0x158] sm:$0xff]  ;;  %v9113_v0 = vld [vmem:[%s15636_s11] sm:$0xff]  ;;  %v9114_v41 = vld [vmem:[%s15636_s11 + $0x8] sm:$0xff] }
0x10d6   :  { %7218 = vrot.lane.b32.xlu0 %v7115_v35, %s10778_s26  ;;  %v9767_v35 = vld [vmem:[%s15633_s10 + $0x128] sm:$0xff] }
0x10d8   :  { %7172 = vrot.lane.b32.xlu1 %v7116_v31, %s10778_s26  ;;  %v9810_v31 = vld [vmem:[%s15630_s7 + $0x140] sm:$0xff] }
0x10da   :  { %10647 = vrot.lane.b32.xlu0 %v10646_v26, %s10778_s26  ;;  %v9812_v26 = vld [vmem:[%s15630_s7 + $0x150] sm:$0xff] }
0x10dc   :  { %7220 = vrot.lane.b32.xlu1 %v7119_v63, %s10778_s26  ;;  %v9768_v63 = vld [vmem:[%s15633_s10 + $0x130] sm:$0xff] }
0x10de   :  { %7174 = vrot.lane.b32.xlu0 %v7120_v55, %s10778_s26  ;;  %v9862_v55 = vld [vmem:[%s15633_s10 + $0x160] sm:$0xff] }
0x10e0   :  { %7176 = vrot.lane.b32.xlu1 %v7124_v5, %s10778_s26  ;;  %v9864_v5 = vld [vmem:[%s15633_s10 + $0x170] sm:$0xff] }
0x10e2   :  { %7222 = vrot.lane.b32.xlu0 %v7123_v32, %s10778_s26  ;;  %v9859_v32 = vld [vmem:[%s15633_s10 + $0x148] sm:$0xff] }
0x10e4   :  { %7224 = vrot.lane.b32.xlu1 %v7127_v48, %s10778_s26  ;;  %v9860_v48 = vld [vmem:[%s15633_s10 + $0x150] sm:$0xff] }
0x10e6   :  { %10652 = vrot.lane.b32.xlu0 %v10651_v28, %s10778_s26  ;;  %v9865_v28 = vld [vmem:[%s15633_s10 + $0x178] sm:$0xff] }
0x10e8   :  { %10657 = vrot.lane.b32.xlu1 %v10656_v23, %s10778_s26  ;;  %v9863_v23 = vld [vmem:[%s15633_s10 + $0x168] sm:$0xff] }
0x10ea   :  { %7673 = vperm.xlu0 %10259, %v9762_v8   ;;  %v9115_v8 = vld [vmem:[%s15636_s11 + $0x10] sm:$0xff] }
0x10ec   :  { %7678 = vperm.xlu1 %10260, %v9763_v62   ;;  %v9116_v62 = vld [vmem:[%s15636_s11 + $0x18] sm:$0xff] }
0x10ee   :  { %7683 = vperm.xlu0 %10259, %v9764_v17   ;;  %v9117_v17 = vld [vmem:[%s15636_s11 + $0x20] sm:$0xff] }
0x10f0   :  { %7688 = vperm.xlu1 %10260, %v9765_v3   ;;  %v9118_v3 = vld [vmem:[%s15636_s11 + $0x28] sm:$0xff] }
0x10f2   :  { %7693 = vperm.xlu0 %10259, %v9766_v43   ;;  %v9119_v43 = vld [vmem:[%s15636_s11 + $0x30] sm:$0xff] }
0x10f4   :  { %7698 = vperm.xlu1 %10260, %v9767_v35   ;;  %v9120_v35 = vld [vmem:[%s15636_s11 + $0x38] sm:$0xff] }
0x10f6   :  { %7703 = vperm.xlu0 %10259, %v9768_v63   ;;  %v9245_v63 = vld [vmem:[#allocation2] sm:$0x1] }
0x10f8   :  { %7708 = vperm.xlu1 %10260, %v9769_v19  }
0x10fa   :  { %8332 = vperm.xlu0 %10259, %v9810_v31  }
0x10fc   :  { %8337 = vperm.xlu1 %10260, %v9811_v21  }
0x10fe   :  { %8342 = vperm.xlu0 %10259, %v9812_v26  }
0x1100   :  { %8347 = vperm.xlu1 %10260, %v9813_v1  }
0x1102   :  { %8352 = vperm.xlu0 %10259, %v9814_v38  }
0x1104   :  { %8357 = vperm.xlu1 %10260, %v9815_v25  }
0x1106   :  { %8362 = vperm.xlu0 %10259, %v9816_v27  }
0x1108   :  { %8367 = vperm.xlu1 %10260, %v9817_v36  }
0x110a   :  { %8883 = vperm.xlu0 %10259, %v9858_v61  }
0x110c   :  { %8888 = vperm.xlu1 %10260, %v9859_v32  }
0x110e   :  { %8893 = vperm.xlu0 %10259, %v9860_v48  }
0x1110   :  { %8898 = vperm.xlu1 %10260, %v9861_v30  }
0x1112   :  { %8903 = vperm.xlu0 %10259, %v9862_v55  }
0x1114   :  { %8908 = vperm.xlu1 %10260, %v9863_v23  }
0x1116   :  { %8913 = vperm.xlu0 %10259, %v9864_v5  }
0x1118   :  { %9123 = vperm.xlu1 %10260, %v9113_v0  }
0x111a   :  { %9128 = vperm.xlu0 %10259, %v9114_v41  }
0x111c   :  { %8918 = vperm.xlu1 %10260, %v9865_v28  }
0x111e   :  { %9133 = vperm.xlu0 %10259, %v9115_v8  }
0x1120   :  { %9138 = vperm.xlu1 %10260, %v9116_v62  }
0x1122   :  { %9143 = vperm.xlu0 %10259, %v9117_v17  }
0x1124   :  { %9148 = vperm.xlu1 %10260, %v9118_v3  }
0x1126   :  { %9153 = vperm.xlu0 %10259, %v9119_v43  }
0x1128   :  { %9158 = vperm.xlu1 %10260, %v9120_v35  }
0x112a   :  { %9248 = vperm.xlu0 %10259, %v9245_v63  }
0x112c   :  { %v7163_v19 = vpop.permute.xlu0 %7162 }
0x112e   :  { %v10623_v31 = vpop.permute.xlu1 %10622 }
0x112f   :  { %v10624_v26 = vunpack.i.l.bf16 %v10623_v31  ;;  %v10625_v25 = vunpack.i.h.bf16 %v10623_v31 }
0x1130   :  { %v7211_v21 = vpop.permute.xlu0 %7210 }
0x1131   :  { %v7250_v27 = vsel %vm6578_vm12, %v7211_v21, %v7163_v19  ;;  %v7226_v32 = vsel %vm6578_vm12, %v10624_v26, %v7211_v21 }
0x1132   :  { %v7165_v1 = vpop.permute.xlu1 %7164  ;;  %v7258_v0 = vmul.f32 %v14519_v58, %v7250_v27 }
0x1134   :  { %v10628_v38 = vpop.permute.xlu0 %10627 }
0x1135   :  { %v10630_v36 = vunpack.i.h.bf16 %v10628_v38  ;;  %v10629_v61 = vunpack.i.l.bf16 %v10628_v38 }
0x1136   :  { %v7213_v48 = vpop.permute.xlu1 %7212 }
0x1137   :  { %v7235_v30 = vsel %vm6578_vm12, %v10630_v36, %v10625_v25  ;;  %v7234_v55 = vsel %vm6578_vm12, %v10629_v61, %v10624_v26  ;;  %v7227_v23 = vsel %vm6578_vm12, %v10625_v25, %v7213_v48  ;;  %v7251_v5 = vsel %vm6578_vm12, %v7213_v48, %v7165_v1 }
0x1138   :  { %v7262_v41 = vmul.f32 %v14519_v58, %v7251_v5  ;;  %v7293_v28 = vpack.c.bf16 %v7227_v23, %v7226_v32  ;;  %v7167_v8 = vpop.permute.xlu0 %7166  ;;  %v7242_v62 = vsel %vm6578_vm12, %v7163_v19, %v10629_v61  ;;  %v7292_v17 = vpack.c.bf16 %v7235_v30, %v7234_v55 }
0x1139   :  { %v7243_v3 = vsel %vm6578_vm12, %v7165_v1, %v10630_v36 }
0x113a   :  { %v7290_v43 = vpack.c.bf16 %v7262_v41, %v7258_v0  ;;  %v7291_v35 = vpack.c.bf16 %v7243_v3, %v7242_v62  ;;  %7411 = vmatprep.subr.bf16.mxu1 %v7293_v28  ;;  %v10633_v63 = vpop.permute.xlu1 %10632 }
0x113b   :  { %7412 = vmatpush1.bf16.msra.mxu1 %v7292_v17  ;;  %v10634_v21 = vunpack.i.l.bf16 %v10633_v63  ;;  %v10635_v25 = vunpack.i.h.bf16 %v10633_v63 }
0x113c   :  { %7338 = vmatprep.subr.bf16.mxu0 %v7291_v35  ;;  %v7215_v31 = vpop.permute.xlu0 %7214 }
0x113d   :  { %7339 = vmatpush1.bf16.msra.mxu0 %v7290_v43  ;;  %v7252_v27 = vsel %vm6578_vm12, %v7215_v31, %v7167_v8  ;;  %v7228_v1 = vsel %vm6578_vm12, %v10634_v21, %v7215_v31 }
0x113e   :  { %v7169_v26 = vpop.permute.xlu1 %7168  ;;  %v7266_v23 = vmul.f32 %v14519_v58, %v7252_v27 }
0x1140   :  { %v10638_v38 = vpop.permute.xlu0 %10637 }
0x1141   :  { %v10640_v19 = vunpack.i.h.bf16 %v10638_v38  ;;  %v10639_v61 = vunpack.i.l.bf16 %v10638_v38 }
0x1142   :  { %v7217_v36 = vpop.permute.xlu1 %7216 }
0x1143   :  { %v7237_v32 = vsel %vm6578_vm12, %v10640_v19, %v10635_v25  ;;  %v7236_v48 = vsel %vm6578_vm12, %v10639_v61, %v10634_v21  ;;  %v7229_v30 = vsel %vm6578_vm12, %v10635_v25, %v7217_v36  ;;  %v7253_v55 = vsel %vm6578_vm12, %v7217_v36, %v7169_v26 }
0x1144   :  { %v7270_v5 = vmul.f32 %v14519_v58, %v7253_v55  ;;  %v7297_v0 = vpack.c.bf16 %v7229_v30, %v7228_v1  ;;  %v7171_v41 = vpop.permute.xlu0 %7170  ;;  %v7244_v28 = vsel %vm6578_vm12, %v7167_v8, %v10639_v61  ;;  %v7296_v62 = vpack.c.bf16 %v7237_v32, %v7236_v48 }
0x1145   :  { %v7245_v17 = vsel %vm6578_vm12, %v7169_v26, %v10640_v19 }
0x1146   :  { %v7294_v3 = vpack.c.bf16 %v7270_v5, %v7266_v23  ;;  %v7295_v43 = vpack.c.bf16 %v7245_v17, %v7244_v28  ;;  %7413 = vmatprep.subr.bf16.mxu1 %v7297_v0  ;;  %v10643_v35 = vpop.permute.xlu1 %10642 }
0x1147   :  { %7414 = vmatpush1.bf16.msra.mxu1 %v7296_v62  ;;  %v10644_v31 = vunpack.i.l.bf16 %v10643_v35  ;;  %v10645_v25 = vunpack.i.h.bf16 %v10643_v35 }
0x1148   :  { %7340 = vmatprep.subr.bf16.mxu0 %v7295_v43  ;;  %v7219_v63 = vpop.permute.xlu0 %7218 }
0x1149   :  { %7341 = vmatpush1.bf16.msra.mxu0 %v7294_v3  ;;  %v7254_v27 = vsel %vm6578_vm12, %v7219_v63, %v7171_v41  ;;  %v7230_v26 = vsel %vm6578_vm12, %v10644_v31, %v7219_v63 }
0x114a   :  { %v7173_v21 = vpop.permute.xlu1 %7172  ;;  %v7274_v30 = vmul.f32 %v14519_v58, %v7254_v27 }
0x114c   :  { %v10648_v38 = vpop.permute.xlu0 %10647 }
0x114d   :  { %v10650_v8 = vunpack.i.h.bf16 %v10648_v38  ;;  %v10649_v61 = vunpack.i.l.bf16 %v10648_v38 }
0x114e   :  { %v7221_v19 = vpop.permute.xlu1 %7220 }
0x114f   :  { %v7239_v1 = vsel %vm6578_vm12, %v10650_v8, %v10645_v25  ;;  %v7238_v36 = vsel %vm6578_vm12, %v10649_v61, %v10644_v31  ;;  %v7231_v32 = vsel %vm6578_vm12, %v10645_v25, %v7221_v19  ;;  %v7255_v48 = vsel %vm6578_vm12, %v7221_v19, %v7173_v21 }
0x1150   :  { %v7278_v55 = vmul.f32 %v14519_v58, %v7255_v48  ;;  %v7301_v23 = vpack.c.bf16 %v7231_v32, %v7230_v26  ;;  %v7175_v5 = vpop.permute.xlu0 %7174  ;;  %v7246_v0 = vsel %vm6578_vm12, %v7171_v41, %v10649_v61  ;;  %v7300_v28 = vpack.c.bf16 %v7239_v1, %v7238_v36 }
0x1151   :  { %v7247_v62 = vsel %vm6578_vm12, %v7173_v21, %v10650_v8 }
0x1152   :  { %v7298_v17 = vpack.c.bf16 %v7278_v55, %v7274_v30  ;;  %v7299_v3 = vpack.c.bf16 %v7247_v62, %v7246_v0  ;;  %7415 = vmatprep.subr.bf16.mxu1 %v7301_v23  ;;  %v7177_v43 = vpop.permute.xlu1 %7176 }
0x1153   :  { %7416 = vmatpush1.bf16.msra.mxu1 %v7300_v28  ;;  %v10747_v28 = vld [vmem:[%s15632_s9 + $0x80] sm:$0xff]  }
0x1154   :  { %7342 = vmatprep.subr.bf16.mxu0 %v7299_v3  ;;  %v7223_v35 = vpop.permute.xlu0 %7222 }
0x1155   :  { %7343 = vmatpush1.bf16.msra.mxu0 %v7298_v17  ;;  %v7256_v31 = vsel %vm6578_vm12, %v7223_v35, %v7175_v5 }
0x1156   :  { %v7225_v63 = vpop.permute.xlu1 %7224  ;;  %v7282_v8 = vmul.f32 %v14519_v58, %v7256_v31 }
0x1157   :  { %v7257_v38 = vsel %vm6578_vm12, %v7225_v63, %v7177_v43 }
0x1158   :  { %v7286_v41 = vmul.f32 %v14519_v58, %v7257_v38  ;;  %v10653_v25 = vpop.permute.xlu0 %10652 }
0x1159   :  { %v10655_v27 = vunpack.i.h.bf16 %v10653_v25  ;;  %v10654_v21 = vunpack.i.l.bf16 %v10653_v25 }
0x115a   :  { %v10658_v61 = vpop.permute.xlu1 %10657  ;;  %v7302_v32 = vpack.c.bf16 %v7286_v41, %v7282_v8 }
0x115b   :  { %v10660_v26 = vunpack.i.h.bf16 %v10658_v61  ;;  %v10659_v19 = vunpack.i.l.bf16 %v10658_v61  ;;  %v7248_v1 = vsel %vm6578_vm12, %v7175_v5, %v10654_v21  ;;  %v7249_v36 = vsel %vm6578_vm12, %v7177_v43, %v10655_v27 }
0x115c   :  { %v7303_v48 = vpack.c.bf16 %v7249_v36, %v7248_v1 }
0x115d   :  { %v7240_v30 = vsel %vm6578_vm12, %v10654_v21, %v10659_v19  ;;  %v7241_v55 = vsel %vm6578_vm12, %v10655_v27, %v10660_v26  ;;  %v7232_v58 = vsel %vm6578_vm12, %v10659_v19, %v7223_v35  ;;  %v7233_v23 = vsel %vm6578_vm12, %v10660_v26, %v7225_v63 }
0x115e   :  { %v7304_v0 = vpack.c.bf16 %v7241_v55, %v7240_v30  ;;  %7344 = vmatprep.subr.bf16.mxu0 %v7303_v48  ;;  %v7305_v5 = vpack.c.bf16 %v7233_v23, %v7232_v58 }
0x115f   :  { %7345 = vmatpush1.bf16.msra.mxu0 %v7302_v32 }
0x1160   :  { %7516 = vmatprep.subr.bf16.mxu0 %v14692_v16  ;;  %7417 = vmatprep.subr.bf16.mxu1 %v7305_v5 }
0x1161   :  { %7418 = vmatpush1.bf16.msra.mxu1 %v7304_v0 }
0x1162   :  { %9742 = vmatmul.mubr.msk.bf16.vlgmr.msra.gmra.mrb[192].mxu0 %vm602_vm3, %v10747_v28  ;;  %7589 = vmatprep.subr.bf16.mxu1 %v14687_v46  ;;  %v10752_v46 = vld [vmem:[%s15634_s8 + $0x88] sm:$0xff]  }
0x1163   :  { %7517 = vmatpush1.bf16.msra.mxu0 %v14689_v33  ;;  %7380 = vmatprep.mubr.bf16.mxu0 %v15935_v52  ;;  %v10754_v33 = vld [vmem:[%s15634_s8 + $0x98] sm:$0xff]  }
0x1164   :  { %7518 = vmatprep.subr.bf16.mxu0 %v14709_v45  ;;  %9746 = vmatmul.mubr.msk.bf16.vlgmr.msra.gmra.mrb[192].mxu1 %vm602_vm3, %v10747_v28 }
0x1165   :  { %7590 = vmatpush1.bf16.msra.mxu1 %v14684_v50  ;;  %7453 = vmatprep.mubr.bf16.mxu1 %v15935_v52  ;;  %v10753_v50 = vld [vmem:[%s15634_s8 + $0x90] sm:$0xff]  }
0x1166   :  { %7591 = vmatprep.subr.bf16.mxu1 %v14704_v7 }
0x1167   :  { %7519 = vmatpush1.bf16.msra.mxu0 %v14706_v9 }
0x1168   :  { %7520 = vmatprep.subr.bf16.mxu0 %v14724_v20 }
0x1169   :  { %7592 = vmatpush1.bf16.msra.mxu1 %v14699_v53  ;;  %v10749_v53 = vld [vmem:[%s15632_s9 + $0x90] sm:$0xff]   ;;  %v7674_v16 = vpop.permute.xlu0 %7673 }
0x116a   :  { %9743 = vmatmul.mubr.msk.bf16.gmra.mrb[196].mxu0 %vm602_vm3, %v10748_v47  ;;  %7593 = vmatprep.subr.bf16.mxu1 %v14719_v44 }
0x116b   :  { %7521 = vmatpush1.bf16.msra.mxu0 %v14721_v11  ;;  %7390 = vmatprep.mubr.bf16.mxu0 %v15935_v52  ;;  %v10750_v11 = vld [vmem:[%s15632_s9 + $0x98] sm:$0xff]   ;;  %v7679_v9 = vpop.permute.xlu1 %7678 }
0x116c   :  { %7522 = vmatprep.subr.bf16.mxu0 %v14738_v14  ;;  %9747 = vmatmul.mubr.msk.bf16.gmra.mrb[196].mxu1 %vm602_vm3, %v10748_v47 }
0x116d   :  { %7594 = vmatpush1.bf16.msra.mxu1 %v14716_v42  ;;  %7463 = vmatprep.mubr.bf16.mxu1 %v15935_v52  ;;  %v7684_v36 = vpop.permute.xlu0 %7683 }
0x116e   :  { %7595 = vmatprep.subr.bf16.mxu1 %v14733_v34 }
0x116f   :  { %7523 = vmatpush1.bf16.msra.mxu0 %v14735_v18  ;;  %v7689_v48 = vpop.permute.xlu1 %7688 }
0x1171   :  { %7596 = vmatpush1.bf16.msra.mxu1 %v14730_v15  ;;  %v10751_v15 = vld [vmem:[%s15634_s8 + $0x80] sm:$0xff]  }
0x1172   :  { %9744 = vmatmul.mubr.msk.bf16.gmra.mrb[200].mxu0 %vm602_vm3, %v10749_v53 }
0x1173   :  { %7400 = vmatprep.mubr.bf16.mxu0 %v15935_v52 }
0x1174   :  { %9748 = vmatmul.mubr.msk.bf16.gmra.mrb[200].mxu1 %vm602_vm3, %v10749_v53 }
0x1175   :  { %7473 = vmatprep.mubr.bf16.mxu1 %v15935_v52 }
0x117a   :  { %9745 = vmatmul.mubr.msk.bf16.gmra.mrb[204].mxu0 %vm602_vm3, %v10750_v11 }
0x117b   :  { %7548 = vmatprep.mubr.bf16.mxu0 %v15935_v52 }
0x117c   :  { %9749 = vmatmul.mubr.msk.bf16.gmra.mrb[204].mxu1 %vm602_vm3, %v10750_v11 }
0x117d   :  { %7621 = vmatprep.mubr.bf16.mxu1 %v15935_v52 }
0x1182   :  { %9754 = vmatmul.mubr.msk.bf16.vlgmr.msra.gmra.mrb[192].mxu0 %vm602_vm3, %v10751_v15 }
0x1183   :  { %7558 = vmatprep.mubr.bf16.mxu0 %v15935_v52 }
0x1184   :  { %9758 = vmatmul.mubr.msk.bf16.vlgmr.msra.gmra.mrb[192].mxu1 %vm602_vm3, %v10751_v15 }
0x1185   :  { %7631 = vmatprep.mubr.bf16.mxu1 %v15935_v52 }
0x118a   :  { %9755 = vmatmul.mubr.msk.bf16.gmra.mrb[196].mxu0 %vm602_vm3, %v10752_v46 }
0x118b   :  { %7568 = vmatprep.mubr.bf16.mxu0 %v15935_v52 }
0x118c   :  { %9759 = vmatmul.mubr.msk.bf16.gmra.mrb[196].mxu1 %vm602_vm3, %v10752_v46 }
0x118d   :  { %7641 = vmatprep.mubr.bf16.mxu1 %v15935_v52 }
0x1192   :  { %9756 = vmatmul.mubr.msk.bf16.gmra.mrb[200].mxu0 %vm602_vm3, %v10753_v50 }
0x1193   :  { %7578 = vmatprep.mubr.bf16.mxu0 %v15935_v52 }
0x1194   :  { %9760 = vmatmul.mubr.msk.bf16.gmra.mrb[200].mxu1 %vm602_vm3, %v10753_v50 }
0x1195   :  { %7651 = vmatprep.mubr.bf16.mxu1 %v15935_v52 }
0x119a   :  { %9757 = vmatmul.mubr.msk.bf16.gmra.mrb[204].mxu0 %vm602_vm3, %v10754_v33 }
0x119b   :  { %8029 = vmatprep.mubr.bf16.mxu0 %v15935_v52 }
0x119c   :  { %9761 = vmatmul.mubr.msk.bf16.gmra.mrb[204].mxu1 %vm602_vm3, %v10754_v33 }
0x119d   :  { %8102 = vmatprep.mubr.bf16.mxu1 %v15935_v52 }
0x1255   :  { %v7550_v7 = vpop.f32.mrb[192].mxu0 }
0x1256   :  { %v7711_v45 = vadd.f32 %v7674_v16, %v7550_v7  ;;  %v7552_v42 = vpop.f32.mrb[193].mxu0 }
0x1257   :  { %v7712_v44 = vadd.f32 %v7674_v16, %v7552_v42  ;;  %v7554_v20 = vpop.f32.mrb[194].mxu0  ;;  %v7623_v34 = vpop.f32.mrb[192].mxu1 }
0x1258   :  { %v7743_v18 = vmax.f32 %v7711_v45, 0.0  ;;  %v7715_v14 = vadd.f32 %v7679_v9, %v7554_v20  ;;  %v7556_v62 = vpop.f32.mrb[195].mxu0  ;;  %v7713_v17 = vadd.f32 %v7674_v16, %v7623_v34  ;;  %v7625_v3 = vpop.f32.mrb[193].mxu1  ;;  %v16393_v34 = vld [vmem:[#allocation13_spill] sm:$0xff] }
0x1259   :  { %v7744_v43 = vmax.f32 %v7712_v44, 0.0  ;;  %v7716_v35 = vadd.f32 %v7679_v9, %v7556_v62  ;;  %v7714_v63 = vadd.f32 %v7674_v16, %v7625_v3  ;;  %v7627_v31 = vpop.f32.mrb[194].mxu1  ;;  %v16394_v62 = vld [vmem:[#allocation16_spill] sm:$0xff] }
0x125a   :  { %v14991_v38 = vadd.f32 %v7743_v18, %v14187_v12  ;;  %v14994_v41 = vadd.f32 %v7743_v18, %v14198_v57  ;;  %v7747_v25 = vmax.f32 %v7715_v14, 0.0  ;;  %v7745_v27 = vmax.f32 %v7713_v17, 0.0  ;;  %v7629_v21 = vpop.f32.mrb[195].mxu1 }
0x125b   :  { %v14997_v8 = vadd.f32 %v7744_v43, %v14196_v40  ;;  %v7748_v61 = vmax.f32 %v7716_v35, 0.0  ;;  %v7746_v26 = vmax.f32 %v7714_v63, 0.0  ;;  %v15006_v12 = vadd.f32 %v7744_v43, %v14261_v10 }
0x125c   :  { %v15000_v19 = vadd.f32 %v7747_v25, %v14207_v29  ;;  %v15003_v1 = vadd.f32 %v7745_v27, %v14178_v2  ;;  %v15854_v30 = vmax.f32 %v14994_v41, 0.0  ;;  %v7717_v55 = vadd.f32 %v7679_v9, %v7627_v31  ;;  %v16397_v31 = vld [vmem:[#allocation52_spill] sm:$0xff] }
0x125d   :  { %v15009_v57 = vadd.f32 %v7748_v61, %v14222_v37  ;;  %v15012_v32 = vadd.f32 %v7748_v61, %v14247_v6  ;;  %v7560_v40 = vpop.f32.mrb[196].mxu0  ;;  %v15016_v29 = vadd.f32 %v7746_v26, %v14183_v22  ;;  %v7810_v2 = vadd.f32 %v7746_v26, %v14193_v24  ;;  %v16399_v26 = vld [vmem:[#allocation53_spill] sm:$0xff] }
0x125e   :  { %v7562_v58 = vpop.f32.mrb[197].mxu0  ;;  %v15020_v10 = vadd.f32 %v7747_v25, %v14217_v59  ;;  %v15023_v37 = vadd.f32 %v7745_v27, %v14239_v13  ;;  %v7718_v23 = vadd.f32 %v7679_v9, %v7629_v21  ;;  %v7719_v6 = vadd.f32 %v7684_v36, %v7560_v40 }
0x125f   :  { %v7564_v0 = vpop.f32.mrb[198].mxu0  ;;  %v7633_v5 = vpop.f32.mrb[196].mxu1  ;;  %v15849_v28 = vmax.f32 %v15012_v32, 0.0  ;;  %v7749_v47 = vmax.f32 %v7717_v55, 0.0  ;;  %v7720_v53 = vadd.f32 %v7684_v36, %v7562_v58  ;;  %v15026_v24 = vmax.f32 %v7810_v2, 0.0 }
0x1260   :  { %v7723_v22 = vadd.f32 %v7689_v48, %v7564_v0  ;;  %v7566_v11 = vpop.f32.mrb[199].mxu0  ;;  %v7635_v15 = vpop.f32.mrb[197].mxu1  ;;  %v7750_v46 = vmax.f32 %v7718_v23, 0.0  ;;  %v7751_v50 = vmax.f32 %v7719_v6, 0.0  ;;  %v15852_v13 = vmax.f32 %v15006_v12, 0.0 }
0x1261   :  { %v7724_v59 = vadd.f32 %v7689_v48, %v7566_v11  ;;  %v7637_v33 = vpop.f32.mrb[198].mxu1  ;;  %v15030_v16 = vadd.f32 %v7749_v47, %v14191_v56  ;;  %v15033_v7 = vadd.f32 %v7749_v47, %v14230_v4  ;;  %v7752_v9 = vmax.f32 %v7720_v53, 0.0  ;;  %v7694_v53 = vpop.permute.xlu0 %7693 }
0x1262   :  { %v7639_v45 = vpop.f32.mrb[199].mxu1  ;;  %v15851_v42 = vmax.f32 %v15020_v10, 0.0  ;;  %v15037_v44 = vadd.f32 %v7750_v46, %v14211_v54  ;;  %v7814_v20 = vadd.f32 %v7750_v46, %v14280_v49  ;;  %v15041_v18 = vadd.f32 %v7751_v50, %v16393_v34 }
0x1263   :  { %v15853_v14 = vmax.f32 %v15023_v37, 0.0  ;;  %v15045_v56 = vadd.f32 %v7751_v50, %v14314_v39  ;;  %v15048_v4 = vadd.f32 %v7752_v9, %v16394_v62  ;;  %v7755_v17 = vmax.f32 %v7723_v22, 0.0  ;;  %v16402_v22 = vld [vmem:[#allocation21_spill] sm:$0xff] }
0x1264   :  { %v15054_v54 = vpack.c.bf16 %v15849_v28, %v15852_v13  ;;  %v15057_v49 = vmul.f32 0.0, %v15026_v24  ;;  %v7756_v3 = vmax.f32 %v7724_v59, 0.0  ;;  %v7721_v43 = vadd.f32 %v7684_v36, %v7633_v5  ;;  %v16419_v13 = vld [vmem:[#allocation62_spill] sm:$0xff] }
0x1265   :  { %16395 = vst [vmem:[#allocation39_spill] sm:$0xff] %v15048_v4  ;;  %v7570_v35 = vpop.f32.mrb[200].mxu0  ;;  %v15850_v63 = vmax.f32 %v15033_v7, 0.0  ;;  %v15061_v39 = vadd.f32 %v7752_v9, %v14385_v60  ;;  %v15064_v25 = vadd.f32 %v7755_v17, %v16397_v31  ;;  %v7722_v27 = vadd.f32 %v7684_v36, %v7635_v15  ;;  %v16404_v15 = vld [vmem:[#allocation12_spill] sm:$0xff]  ;;  %v16409_v31 = vld [vmem:[#allocation15_spill] sm:$0xff] }
0x1266   :  { %v7572_v21 = vpop.f32.mrb[201].mxu0  ;;  %v15066_v61 = vmax.f32 %v7814_v20, 0.0  ;;  %v15069_v40 = vadd.f32 %v7756_v3, %v16399_v26  ;;  %v15072_v2 = vadd.f32 %v7756_v3, %v14370_v51  ;;  %v7753_v55 = vmax.f32 %v7721_v43, 0.0  ;;  %v16407_v20 = vld [vmem:[#allocation48_spill] sm:$0xff] }
0x1267   :  { %16396 = vst [vmem:[#allocation67_spill] sm:$0xff] %v15061_v39  ;;  %16398 = vst [vmem:[#allocation34_spill] sm:$0xff] %v15064_v25  ;;  %v7574_v58 = vpop.f32.mrb[202].mxu0  ;;  %v7643_v23 = vpop.f32.mrb[200].mxu1  ;;  %v7754_v60 = vmax.f32 %v7722_v27, 0.0  ;;  %v7725_v0 = vadd.f32 %v7689_v48, %v7637_v33  ;;  %v15079_v36 = vpack.c.bf16 %v15851_v42, %v15854_v30  ;;  %v15082_v11 = vadd.f32 %v7755_v17, %v16402_v22  ;;  %v16405_v33 = vld [vmem:[#allocation59_spill] sm:$0xff] }
0x1268   :  { %16400 = vst [vmem:[#allocation75_spill] sm:$0xff] %v15069_v40  ;;  %16401 = vst [vmem:[#allocation77_spill] sm:$0xff] %v15072_v2  ;;  %v7576_v5 = vpop.f32.mrb[203].mxu0  ;;  %v7645_v47 = vpop.f32.mrb[201].mxu1  ;;  %v15855_v51 = vmax.f32 %v15072_v2, 0.0  ;;  %v15086_v46 = vadd.f32 %v7753_v55, %v16404_v15  ;;  %v7726_v50 = vadd.f32 %v7689_v48, %v7639_v45  ;;  %v15089_v9 = vadd.f32 %v7753_v55, %v16405_v33  ;;  %v16410_v22 = vld [vmem:[#allocation49_spill] sm:$0xff] }
0x1269   :  { %16403 = vst [vmem:[#allocation68_spill] sm:$0xff] %v15082_v11  ;;  %v7647_v59 = vpop.f32.mrb[202].mxu1  ;;  %v15092_v34 = vadd.f32 %v7754_v60, %v16407_v20  ;;  %v7757_v62 = vmax.f32 %v7725_v0, 0.0  ;;  %7997 = vmatprep.subr.bf16.mxu0 %v15079_v36  ;;  %v7727_v3 = vadd.f32 %v7694_v53, %v7570_v35  ;;  %v15856_v17 = vmax.f32 %v15061_v39, 0.0  ;;  %v7699_v45 = vpop.permute.xlu1 %7698  ;;  %v16412_v15 = vld [vmem:[#allocation55_spill] sm:$0xff]  ;;  %v16414_v20 = vld [vmem:[#allocation17_spill] sm:$0xff] }
0x126a   :  { %16406 = vst [vmem:[#allocation70_spill] sm:$0xff] %v15089_v9  ;;  %v7649_v43 = vpop.f32.mrb[203].mxu1  ;;  %v7818_v27 = vadd.f32 %v7754_v60, %v16409_v31  ;;  %v7758_v26 = vmax.f32 %v7726_v50, 0.0  ;;  %v15101_v48 = vpack.c.bf16 %v15850_v63, %v15853_v14  ;;  %v7921_v55 = vmul.f32 0.0, %v15066_v61  ;;  %v16416_v60 = vld [vmem:[#allocation26_spill] sm:$0xff] }
0x126b   :  { %16408 = vst [vmem:[#allocation74_spill] sm:$0xff] %v15092_v34  ;;  %v15105_v0 = vadd.f32 %v7757_v62, %v16410_v22  ;;  %v15108_v35 = vadd.f32 %v7757_v62, %v16412_v15  ;;  %v7759_v33 = vmax.f32 %v7727_v3, 0.0  ;;  %v7728_v31 = vadd.f32 %v7694_v53, %v7572_v21  ;;  %v16417_v3 = vld [vmem:[#allocation18_spill] sm:$0xff]  ;;  %v16445_v34 = vld [vmem:[#allocation28_spill] sm:$0xff] }
0x126c   :  { %v15111_v28 = vadd.f32 %v7758_v26, %v16414_v20  ;;  %v7822_v50 = vadd.f32 %v7758_v26, %v16416_v60  ;;  %8070 = vmatprep.subr.bf16.mxu1 %v15101_v48  ;;  %v7731_v63 = vadd.f32 %v7699_v45, %v7574_v58  ;;  %v15120_v22 = vpack.c.bf16 %v15855_v51, %v15856_v17 }
0x126d   :  { %16411 = vst [vmem:[#allocation71_spill] sm:$0xff] %v15105_v0  ;;  %16413 = vst [vmem:[#allocation35_spill] sm:$0xff] %v15108_v35  ;;  %v7580_v42 = vpop.f32.mrb[204].mxu0  ;;  %v15124_v15 = vadd.f32 %v7759_v33, %v16417_v3  ;;  %8071 = vmatpush1.bf16.msra.mxu1 %v15054_v54  ;;  %v15127_v20 = vmax.f32 %v7818_v27, 0.0  ;;  %v7760_v21 = vmax.f32 %v7728_v31, 0.0  ;;  %v7732_v60 = vadd.f32 %v7699_v45, %v7576_v5  ;;  %v16420_v27 = vld [vmem:[#allocation22_spill] sm:$0xff] }
0x126e   :  { %16415 = vst [vmem:[#allocation38_spill] sm:$0xff] %v15111_v28  ;;  %v7582_v26 = vpop.f32.mrb[205].mxu0  ;;  %v7763_v58 = vmax.f32 %v7731_v63, 0.0  ;;  %v15130_v6 = vadd.f32 %v7759_v33, %v16419_v13  ;;  %v7729_v51 = vadd.f32 %v7694_v53, %v7643_v23  ;;  %v7949_v17 = vpack.c.bf16 %v7921_v55, %v15057_v49  ;;  %v16422_v63 = vld [vmem:[#allocation56_spill] sm:$0xff]  ;;  %v16424_v13 = vld [vmem:[#allocation66_spill] sm:$0xff]  ;;  %v16425_v55 = vld [vmem:[#allocation61_spill] sm:$0xff] }
0x126f   :  { %16418 = vst [vmem:[#allocation42_spill] sm:$0xff] %v15124_v15  ;;  %v7584_v14 = vpop.f32.mrb[206].mxu0  ;;  %v7653_v30 = vpop.f32.mrb[204].mxu1  ;;  %v7730_v62 = vadd.f32 %v7694_v53, %v7645_v47  ;;  %v15134_v2 = vmax.f32 %v7822_v50, 0.0  ;;  %v15137_v40 = vadd.f32 %v7760_v21, %v16420_v27  ;;  %v15145_v33 = vadd.f32 %v7760_v21, %v16424_v13  ;;  %v16435_v0 = vld [vmem:[#allocation54_spill] sm:$0xff] }
0x1270   :  { %v7586_v28 = vpop.f32.mrb[207].mxu0  ;;  %v7655_v3 = vpop.f32.mrb[205].mxu1  ;;  %v15140_v5 = vadd.f32 %v7763_v58, %v16422_v63  ;;  %v7764_v23 = vmax.f32 %v7732_v60, 0.0  ;;  %v7761_v49 = vmax.f32 %v7729_v51, 0.0  ;;  %7998 = vmatpush1.bf16.msra.mxu0 %v7949_v17  ;;  %v15150_v50 = vadd.f32 %v7763_v58, %v16425_v55  ;;  %v16429_v51 = vld [vmem:[#allocation57_spill] sm:$0xff]  ;;  %v16433_v55 = vld [vmem:[#allocation63_spill] sm:$0xff] }
0x1271   :  { %16421 = vst [vmem:[#allocation43_spill] sm:$0xff] %v15137_v40  ;;  %v15142_v31 = vpop.f32.mrb[206].mxu1  ;;  %v7762_v47 = vmax.f32 %v7730_v62, 0.0  ;;  %v7733_v15 = vadd.f32 %v7699_v45, %v7647_v59  ;;  %v16427_v27 = vmax.f32 %v15045_v56, 0.0  ;;  %v16428_v63 = vmax.f32 %v15082_v11, 0.0  ;;  %v16431_v62 = vld [vmem:[#allocation51_spill] sm:$0xff]  ;;  %v7704_v58 = vpop.permute.xlu0 %7703 }
0x1272   :  { %16423 = vst [vmem:[#allocation46_spill] sm:$0xff] %v15140_v5  ;;  %v15147_v53 = vpop.f32.mrb[207].mxu1  ;;  %16426 = vst [vmem:[#allocation41_spill] sm:$0xff] %v15150_v50  ;;  %v7734_v40 = vadd.f32 %v7699_v45, %v7649_v43  ;;  %v7925_v21 = vmul.f32 0.0, %v15127_v20  ;;  %v15161_v17 = vadd.f32 %v7764_v23, %v16429_v51  ;;  %v15164_v13 = vadd.f32 %v7761_v49, %v16431_v62 }
0x1273   :  { %v15156_v5 = vpack.c.bf16 %v16428_v63, %v16427_v27  ;;  %v15167_v59 = vadd.f32 %v7764_v23, %v16433_v55  ;;  %v15170_v25 = vadd.f32 %v7762_v47, %v16435_v0  ;;  %v16437_v27 = vld [vmem:[#allocation27_spill] sm:$0xff]  ;;  %v7765_v43 = vmax.f32 %v7733_v15, 0.0  ;;  %v16440_v55 = vld [vmem:[#allocation30_spill] sm:$0xff] }
0x1274   :  { %16430 = vst [vmem:[#allocation78_spill] sm:$0xff] %v15161_v17  ;;  %16432 = vst [vmem:[#allocation40_spill] sm:$0xff] %v15164_v13  ;;  %v7826_v63 = vadd.f32 %v7762_v47, %v16437_v27  ;;  %v7929_v45 = vmul.f32 0.0, %v15134_v2  ;;  %v7766_v60 = vmax.f32 %v7734_v40, 0.0  ;;  %v7735_v51 = vadd.f32 %v7704_v58, %v7580_v42  ;;  %v16441_v15 = vld [vmem:[#allocation19_spill] sm:$0xff]  ;;  %v7709_v27 = vpop.permute.xlu1 %7708  ;;  %v16443_v42 = vld [vmem:[#allocation20_spill] sm:$0xff] }
0x1275   :  { %16434 = vst [vmem:[#allocation44_spill] sm:$0xff] %v15167_v59  ;;  %16436 = vst [vmem:[#allocation45_spill] sm:$0xff] %v15170_v25  ;;  %7999 = vmatprep.subr.bf16.mxu0 %v15156_v5  ;;  %v16438_v17 = vmax.f32 %v15089_v9, 0.0  ;;  %v16439_v62 = vmax.f32 %v15108_v35, 0.0  ;;  %v15184_v25 = vadd.f32 %v7761_v49, %v16440_v55  ;;  %v15187_v47 = vadd.f32 %v7765_v43, %v16441_v15  ;;  %v16446_v23 = vld [vmem:[#allocation58_spill] sm:$0xff] }
0x1276   :  { %v15189_v11 = vmax.f32 %v7826_v63, 0.0  ;;  %v15192_v40 = vadd.f32 %v7766_v60, %v16443_v42  ;;  %v7830_v35 = vadd.f32 %v7766_v60, %v16445_v34  ;;  %v15198_v0 = vadd.f32 %v7765_v43, %v16446_v23  ;;  %v16449_v63 = vld [vmem:[#allocation64_spill] sm:$0xff] }
0x1277   :  { %v15179_v13 = vpack.c.bf16 %v16439_v62, %v16438_v17  ;;  %16442 = vst [vmem:[#allocation5_spill] sm:$0xff] %v15187_v47  ;;  %v7767_v17 = vmax.f32 %v7735_v51, 0.0  ;;  %v7736_v49 = vadd.f32 %v7704_v58, %v7582_v26  ;;  %v7739_v55 = vadd.f32 %v7709_v27, %v7584_v14  ;;  %v16451_v42 = vld [vmem:[#allocation32_spill] sm:$0xff] }
0x1278   :  { %16444 = vst [vmem:[#allocation3_spill] sm:$0xff] %v15192_v40  ;;  %16447 = vst [vmem:[#allocation4_spill] sm:$0xff] %v15198_v0  ;;  %v15201_v15 = vmax.f32 %v7830_v35, 0.0  ;;  %v7740_v34 = vadd.f32 %v7709_v27, %v7586_v28  ;;  %v7737_v39 = vadd.f32 %v7704_v58, %v7653_v30  ;;  %v7953_v62 = vpack.c.bf16 %v7929_v45, %v7925_v21  ;;  %v16453_v35 = vld [vmem:[#allocation65_spill] sm:$0xff]  ;;  %v16459_v21 = vld [vmem:[#allocation72_spill] sm:$0xff] }
0x1279   :  { %8072 = vmatprep.subr.bf16.mxu1 %v15179_v13  ;;  %v15204_v47 = vadd.f32 %v7767_v17, %v16449_v63  ;;  %v15207_v40 = vadd.f32 %v7767_v17, %v16451_v42  ;;  %v7768_v60 = vmax.f32 %v7736_v49, 0.0  ;;  %v7771_v51 = vmax.f32 %v7739_v55, 0.0  ;;  %v16455_v63 = vld [vmem:[#allocation24_spill] sm:$0xff] }
0x127a   :  { %8073 = vmatpush1.bf16.msra.mxu1 %v15120_v22  ;;  %16448 = vst [vmem:[#allocation9_spill] sm:$0xff] %v15201_v15  ;;  %v7933_v26 = vmul.f32 0.0, %v15189_v11  ;;  %v7772_v23 = vmax.f32 %v7740_v34, 0.0  ;;  %v7738_v4 = vadd.f32 %v7704_v58, %v7655_v3  ;;  %v16457_v17 = vld [vmem:[#allocation76_spill] sm:$0xff]  ;;  %8000 = vmatpush1.bf16.msra.mxu0 %v7953_v62  ;;  %v7937_v30 = vmul.f32 0.0, %v15201_v15  ;;  %v16471_v58 = vld [vmem:[#allocation69_spill] sm:$0xff] }
0x127b   :  { %16450 = vst [vmem:[#allocation7_spill] sm:$0xff] %v15204_v47  ;;  %16452 = vst [vmem:[#allocation6_spill] sm:$0xff] %v15207_v40  ;;  %v15213_v9 = vadd.f32 %v7768_v60, %v16453_v35  ;;  %v15216_v47 = vadd.f32 %v7771_v51, %v16455_v63  ;;  %v15219_v28 = vadd.f32 %v7771_v51, %v16457_v17  ;;  %v7769_v49 = vmax.f32 %v7737_v39, 0.0  ;;  %v16463_v63 = vld [vmem:[#allocation33_spill] sm:$0xff] }
0x127c   :  { %v15223_v45 = vadd.f32 %v7772_v23, %v16459_v21  ;;  %v7770_v55 = vmax.f32 %v7738_v4, 0.0  ;;  %v7741_v42 = vadd.f32 %v7709_v27, %v15142_v31  ;;  %v16461_v34 = vmax.f32 %v15130_v6, 0.0  ;;  %v16465_v17 = vld [vmem:[#allocation25_spill] sm:$0xff]  ;;  %v16467_v21 = vld [vmem:[#allocation36_spill] sm:$0xff]  ;;  %v16469_v4 = vld [vmem:[#allocation23_spill] sm:$0xff] }
0x127d   :  { %16454 = vst [vmem:[#allocation10_spill] sm:$0xff] %v15213_v9  ;;  %16456 = vst [vmem:[#allocation8_spill] sm:$0xff] %v15216_v47  ;;  %v16462_v35 = vmax.f32 %v15150_v50, 0.0  ;;  %v15233_v62 = vadd.f32 %v7772_v23, %v16463_v63  ;;  %v15236_v14 = vadd.f32 %v7769_v49, %v16465_v17  ;;  %v15239_v39 = vadd.f32 %v7769_v49, %v16467_v21  ;;  %v16476_v21 = vld [vmem:[#allocation73_spill] sm:$0xff] }
0x127e   :  { %16458 = vst [vmem:[#allocation14_spill] sm:$0xff] %v15219_v28  ;;  %16460 = vst [vmem:[#allocation50_spill] sm:$0xff] %v15223_v45  ;;  %v15242_v3 = vadd.f32 %v7770_v55, %v16469_v4  ;;  %v7834_v43 = vadd.f32 %v7770_v55, %v16471_v58  ;;  %v7773_v31 = vmax.f32 %v7741_v42, 0.0  ;;  %v7742_v45 = vadd.f32 %v7709_v27, %v15147_v53  ;;  %v16480_v53 = vld [vmem:[#allocation60_spill] sm:$0xff] }
0x127f   :  { %v7900_v51 = vpack.c.bf16 %v16462_v35, %v16461_v34  ;;  %16464 = vst [vmem:[#allocation11_spill] sm:$0xff] %v15233_v62  ;;  %16466 = vst [vmem:[#allocation47_spill] sm:$0xff] %v15236_v14  ;;  %v16472_v34 = vmax.f32 %v15184_v25, 0.0  ;;  %v16473_v23 = vmax.f32 %v15198_v0, 0.0  ;;  %v16474_v63 = vmax.f32 %v15145_v33, 0.0 }
0x1280   :  { %16468 = vst [vmem:[#allocation13_spill] sm:$0xff] %v15239_v39  ;;  %16470 = vst [vmem:[#allocation16_spill] sm:$0xff] %v15242_v3  ;;  %v16475_v17 = vmax.f32 %v15167_v59, 0.0  ;;  %v15255_v47 = vadd.f32 %v7768_v60, %v16476_v21  ;;  %v7957_v4 = vpack.c.bf16 %v7937_v30, %v7933_v26  ;;  %v16478_v55 = vmax.f32 %v15207_v40, 0.0  ;;  %v16482_v3 = vld [vmem:[#allocation29_spill] sm:$0xff]  ;;  %v16485_v30 = vld [vmem:[#allocation31_spill] sm:$0xff] }
0x1281   :  { %8001 = vmatprep.subr.bf16.mxu0 %v7900_v51  ;;  %v7902_v35 = vpack.c.bf16 %v16473_v23, %v16472_v34  ;;  %v16479_v58 = vmax.f32 %v15219_v28, 0.0  ;;  %v15262_v27 = vadd.f32 %v7773_v31, %v16480_v53  ;;  %v15265_v9 = vadd.f32 %v7773_v31, %v16482_v3  ;;  %v16487_v21 = vld [vmem:[#allocation37_spill] sm:$0xff] }
0x1282   :  { %v7901_v49 = vpack.c.bf16 %v16475_v17, %v16474_v63  ;;  %16477 = vst [vmem:[#allocation52_spill] sm:$0xff] %v15255_v47  ;;  %v7774_v34 = vmax.f32 %v7742_v45, 0.0  ;;  %v15862_v23 = vmax.f32 %v15233_v62, 0.0  ;;  %v15865_v63 = vmax.f32 %v15239_v39, 0.0  ;;  %8002 = vmatpush1.bf16.msra.mxu0 %v7957_v4 }
0x1283   :  { %v7904_v42 = vpack.c.bf16 %v16479_v58, %v16478_v55  ;;  %16481 = vst [vmem:[#allocation53_spill] sm:$0xff] %v15262_v27  ;;  %16483 = vst [vmem:[#allocation21_spill] sm:$0xff] %v15265_v9  ;;  %8074 = vmatprep.subr.bf16.mxu1 %v7902_v35  ;;  %v15269_v60 = vmax.f32 %v7834_v43, 0.0  ;;  %v15863_v26 = vmax.f32 %v15265_v9, 0.0  ;;  %v15864_v3 = vmax.f32 %v15255_v47, 0.0 }
0x1284   :  { %8075 = vmatpush1.bf16.msra.mxu1 %v7901_v49  ;;  %v15273_v17 = vadd.f32 %v7774_v34, %v16485_v30  ;;  %v7838_v55 = vadd.f32 %v7774_v34, %v16487_v21  ;;  %v7895_v53 = vpack.c.bf16 %v15066_v61, %v15026_v24  ;;  %v10755_v34 = vld [vmem:[%s15629_s6 + $0xa0] sm:$0xff]   ;;  %v7899_v21 = vpack.c.bf16 %v15134_v2, %v15127_v20 }
0x1285   :  { %16484 = vst [vmem:[#allocation12_spill] sm:$0xff] %v15269_v60  ;;  %8003 = vmatprep.subr.bf16.mxu0 %v7904_v42  ;;  %v7906_v31 = vpack.c.bf16 %v15863_v26, %v15865_v63  ;;  %v7905_v43 = vpack.c.bf16 %v15862_v23, %v15864_v3  ;;  %v7941_v4 = vmul.f32 0.0, %v15269_v60 }
0x1286   :  { %16486 = vst [vmem:[#allocation59_spill] sm:$0xff] %v15273_v17  ;;  %v15277_v45 = vmax.f32 %v7838_v55, 0.0  ;;  %v7903_v55 = vpack.c.bf16 %v15201_v15, %v15189_v11 }
0x1287   :  { %8076 = vmatprep.subr.bf16.mxu1 %v7906_v31 }
0x1288   :  { %16488 = vst [vmem:[#allocation48_spill] sm:$0xff] %v15277_v45  ;;  %v7945_v58 = vmul.f32 0.0, %v15277_v45  ;;  %8077 = vmatpush1.bf16.msra.mxu1 %v7905_v43 }
0x1289   :  { %8248 = vmatprep.subr.bf16.mxu1 %v7895_v53 }
0x128a   :  { %v7961_v30 = vpack.c.bf16 %v7945_v58, %v7941_v4  ;;  %v10756_v4 = vld [vmem:[%s15629_s6 + $0xa8] sm:$0xff]  }
0x128b   :  { %9794 = vmatmul.mubr.msk.bf16.vlgmr.msra.gmra.mrb[208].mxu1 %vm602_vm3, %v10755_v34 }
0x128c   :  { %8004 = vmatpush1.bf16.msra.mxu0 %v7961_v30  ;;  %8249 = vmatpush1.bf16.msra.mxu1 %v15101_v48  ;;  %v10758_v48 = vld [vmem:[%s15629_s6 + $0xb8] sm:$0xff]  }
0x128d   :  { %8175 = vmatprep.subr.bf16.mxu0 %v15054_v54  ;;  %8250 = vmatprep.subr.bf16.mxu1 %v7899_v21  ;;  %v7907_v54 = vpack.c.bf16 %v15277_v45, %v15269_v60 }
0x128e   :  { %8112 = vmatprep.mubr.bf16.mxu1 %v15935_v52 }
0x128f   :  { %9790 = vmatmul.mubr.msk.bf16.vlgmr.msra.gmra.mrb[208].mxu0 %vm602_vm3, %v10755_v34 }
0x1290   :  { %8176 = vmatpush1.bf16.msra.mxu0 %v15079_v36  ;;  %8039 = vmatprep.mubr.bf16.mxu0 %v15935_v52  ;;  %v10757_v36 = vld [vmem:[%s15629_s6 + $0xb0] sm:$0xff]  }
0x1291   :  { %8177 = vmatprep.subr.bf16.mxu0 %v15120_v22  ;;  %8251 = vmatpush1.bf16.msra.mxu1 %v15179_v13  ;;  %v10759_v22 = vld [vmem:[%s15631_s5 + $0xa0] sm:$0xff]   ;;  %v10761_v13 = vld [vmem:[%s15631_s5 + $0xb0] sm:$0xff]  }
0x1292   :  { %8252 = vmatprep.subr.bf16.mxu1 %v7903_v55 }
0x1293   :  { %9795 = vmatmul.mubr.msk.bf16.gmra.mrb[212].mxu1 %vm602_vm3, %v10756_v4 }
0x1294   :  { %8178 = vmatpush1.bf16.msra.mxu0 %v15156_v5  ;;  %8122 = vmatprep.mubr.bf16.mxu1 %v15935_v52  ;;  %v10760_v5 = vld [vmem:[%s15631_s5 + $0xa8] sm:$0xff]  }
0x1295   :  { %8179 = vmatprep.subr.bf16.mxu0 %v7901_v49  ;;  %8253 = vmatpush1.bf16.msra.mxu1 %v7902_v35  ;;  %v8333_v35 = vpop.permute.xlu0 %8332 }
0x1296   :  { %8254 = vmatprep.subr.bf16.mxu1 %v7907_v54 }
0x1297   :  { %9791 = vmatmul.mubr.msk.bf16.gmra.mrb[212].mxu0 %vm602_vm3, %v10756_v4 }
0x1298   :  { %8180 = vmatpush1.bf16.msra.mxu0 %v7900_v51  ;;  %8049 = vmatprep.mubr.bf16.mxu0 %v15935_v52  ;;  %v10762_v51 = vld [vmem:[%s15631_s5 + $0xb8] sm:$0xff]  }
0x1299   :  { %8181 = vmatprep.subr.bf16.mxu0 %v7905_v43  ;;  %8255 = vmatpush1.bf16.msra.mxu1 %v7906_v31  ;;  %v8338_v43 = vpop.permute.xlu1 %8337 }
0x129b   :  { %9796 = vmatmul.mubr.msk.bf16.gmra.mrb[216].mxu1 %vm602_vm3, %v10757_v36 }
0x129c   :  { %8182 = vmatpush1.bf16.msra.mxu0 %v7904_v42  ;;  %8132 = vmatprep.mubr.bf16.mxu1 %v15935_v52 }
0x129f   :  { %9792 = vmatmul.mubr.msk.bf16.gmra.mrb[216].mxu0 %vm602_vm3, %v10757_v36 }
0x12a0   :  { %8059 = vmatprep.mubr.bf16.mxu0 %v15935_v52 }
0x12a3   :  { %9797 = vmatmul.mubr.msk.bf16.gmra.mrb[220].mxu1 %vm602_vm3, %v10758_v48 }
0x12a4   :  { %8280 = vmatprep.mubr.bf16.mxu1 %v15935_v52 }
0x12a7   :  { %9793 = vmatmul.mubr.msk.bf16.gmra.mrb[220].mxu0 %vm602_vm3, %v10758_v48 }
0x12a8   :  { %8207 = vmatprep.mubr.bf16.mxu0 %v15935_v52 }
0x12ab   :  { %9806 = vmatmul.mubr.msk.bf16.vlgmr.msra.gmra.mrb[208].mxu1 %vm602_vm3, %v10759_v22 }
0x12ac   :  { %8290 = vmatprep.mubr.bf16.mxu1 %v15935_v52 }
0x12af   :  { %9802 = vmatmul.mubr.msk.bf16.vlgmr.msra.gmra.mrb[208].mxu0 %vm602_vm3, %v10759_v22 }
0x12b0   :  { %8217 = vmatprep.mubr.bf16.mxu0 %v15935_v52 }
0x12b3   :  { %9807 = vmatmul.mubr.msk.bf16.gmra.mrb[212].mxu1 %vm602_vm3, %v10760_v5 }
0x12b4   :  { %8300 = vmatprep.mubr.bf16.mxu1 %v15935_v52 }
0x12b7   :  { %9803 = vmatmul.mubr.msk.bf16.gmra.mrb[212].mxu0 %vm602_vm3, %v10760_v5 }
0x12b8   :  { %8227 = vmatprep.mubr.bf16.mxu0 %v15935_v52 }
0x12bb   :  { %9808 = vmatmul.mubr.msk.bf16.gmra.mrb[216].mxu1 %vm602_vm3, %v10761_v13 }
0x12bc   :  { %8310 = vmatprep.mubr.bf16.mxu1 %v15935_v52 }
0x12bf   :  { %9804 = vmatmul.mubr.msk.bf16.gmra.mrb[216].mxu0 %vm602_vm3, %v10761_v13 }
0x12c0   :  { %8237 = vmatprep.mubr.bf16.mxu0 %v15935_v52 }
0x12c3   :  { %9809 = vmatmul.mubr.msk.bf16.gmra.mrb[220].mxu1 %vm602_vm3, %v10762_v51 }
0x12c4   :  { %8653 = vmatprep.mubr.bf16.mxu1 %v15935_v52 }
0x12c7   :  { %9805 = vmatmul.mubr.msk.bf16.gmra.mrb[220].mxu0 %vm602_vm3, %v10762_v51 }
0x12c8   :  { %8580 = vmatprep.mubr.bf16.mxu0 %v15935_v52 }
0x137e   :  { %v8282_v49 = vpop.f32.mrb[208].mxu1 }
0x137f   :  { %v8372_v42 = vadd.f32 %v8333_v35, %v8282_v49  ;;  %v8284_v31 = vpop.f32.mrb[209].mxu1 }
0x1380   :  { %v8373_v58 = vadd.f32 %v8333_v35, %v8284_v31  ;;  %v8286_v53 = vpop.f32.mrb[210].mxu1  ;;  %v8343_v31 = vpop.permute.xlu0 %8342 }
0x1381   :  { %v8376_v30 = vadd.f32 %v8338_v43, %v8286_v53  ;;  %v8288_v21 = vpop.f32.mrb[211].mxu1  ;;  %v8404_v48 = vmax.f32 %v8372_v42, 0.0 }
0x1382   :  { %v8209_v34 = vpop.f32.mrb[208].mxu0  ;;  %v8405_v55 = vmax.f32 %v8373_v58, 0.0  ;;  %v8377_v36 = vadd.f32 %v8338_v43, %v8288_v21 }
0x1383   :  { %v8370_v4 = vadd.f32 %v8333_v35, %v8209_v34  ;;  %v8211_v54 = vpop.f32.mrb[209].mxu0  ;;  %v8408_v22 = vmax.f32 %v8376_v30, 0.0 }
0x1384   :  { %v8371_v5 = vadd.f32 %v8333_v35, %v8211_v54  ;;  %v8213_v13 = vpop.f32.mrb[210].mxu0  ;;  %v8409_v51 = vmax.f32 %v8377_v36, 0.0  ;;  %v8468_v3 = vmul.f32 0.0, %v8405_v55  ;;  %v8348_v35 = vpop.permute.xlu1 %8347 }
0x1385   :  { %v8374_v23 = vadd.f32 %v8338_v43, %v8213_v13  ;;  %v8215_v26 = vpop.f32.mrb[211].mxu0  ;;  %v15359_v49 = vpack.c.bf16 %v8408_v22, %v8404_v48  ;;  %v8402_v45 = vmax.f32 %v8370_v4, 0.0 }
0x1386   :  { %v8375_v63 = vadd.f32 %v8338_v43, %v8215_v26  ;;  %v15361_v17 = vpack.c.bf16 %v8409_v51, %v8405_v55  ;;  %v8472_v53 = vmul.f32 0.0, %v8409_v51  ;;  %v8292_v34 = vpop.f32.mrb[212].mxu1  ;;  %v8403_v62 = vmax.f32 %v8371_v5, 0.0 }
0x1387   :  { %v8406_v58 = vmax.f32 %v8374_v23, 0.0  ;;  %v8380_v42 = vadd.f32 %v8343_v31, %v8292_v34  ;;  %v8294_v30 = vpop.f32.mrb[213].mxu1  ;;  %8621 = vmatprep.subr.bf16.mxu1 %v15359_v49 }
0x1388   :  { %v8407_v21 = vmax.f32 %v8375_v63, 0.0  ;;  %v8500_v54 = vpack.c.bf16 %v8472_v53, %v8468_v3  ;;  %v8381_v48 = vadd.f32 %v8343_v31, %v8294_v30  ;;  %v8296_v22 = vpop.f32.mrb[214].mxu1  ;;  %v8353_v30 = vpop.permute.xlu0 %8352 }
0x1389   :  { %v15364_v36 = vpack.c.bf16 %v8406_v58, %v8402_v45  ;;  %v8384_v55 = vadd.f32 %v8348_v35, %v8296_v22  ;;  %v8298_v4 = vpop.f32.mrb[215].mxu1  ;;  %v8412_v63 = vmax.f32 %v8380_v42, 0.0 }
0x138a   :  { %v15366_v26 = vpack.c.bf16 %v8407_v21, %v8403_v62  ;;  %v8219_v43 = vpop.f32.mrb[212].mxu0  ;;  %v8413_v13 = vmax.f32 %v8381_v48, 0.0  ;;  %v8385_v5 = vadd.f32 %v8348_v35, %v8298_v4 }
0x138b   :  { %v8378_v23 = vadd.f32 %v8343_v31, %v8219_v43  ;;  %v8221_v51 = vpop.f32.mrb[213].mxu0  ;;  %8548 = vmatprep.subr.bf16.mxu0 %v15364_v36  ;;  %v8416_v34 = vmax.f32 %v8384_v55, 0.0 }
0x138c   :  { %v8379_v9 = vadd.f32 %v8343_v31, %v8221_v51  ;;  %v8223_v27 = vpop.f32.mrb[214].mxu0  ;;  %8549 = vmatpush1.bf16.msra.mxu0 %v8500_v54  ;;  %8622 = vmatpush1.bf16.msra.mxu1 %v15366_v26  ;;  %v8417_v3 = vmax.f32 %v8385_v5, 0.0  ;;  %v8476_v53 = vmul.f32 0.0, %v8413_v13  ;;  %v8358_v5 = vpop.permute.xlu1 %8357 }
0x138d   :  { %v8382_v45 = vadd.f32 %v8348_v35, %v8223_v27  ;;  %v8225_v62 = vpop.f32.mrb[215].mxu0  ;;  %v15370_v58 = vpack.c.bf16 %v8416_v34, %v8412_v63  ;;  %v8410_v48 = vmax.f32 %v8378_v23, 0.0 }
0x138e   :  { %v8383_v21 = vadd.f32 %v8348_v35, %v8225_v62  ;;  %v15372_v22 = vpack.c.bf16 %v8417_v3, %v8413_v13  ;;  %v8480_v43 = vmul.f32 0.0, %v8417_v3  ;;  %v8302_v42 = vpop.f32.mrb[216].mxu1  ;;  %v8411_v55 = vmax.f32 %v8379_v9, 0.0 }
0x138f   :  { %v8414_v4 = vmax.f32 %v8382_v45, 0.0  ;;  %v8388_v51 = vadd.f32 %v8353_v30, %v8302_v42  ;;  %v8304_v54 = vpop.f32.mrb[217].mxu1  ;;  %8623 = vmatprep.subr.bf16.mxu1 %v15370_v58 }
0x1390   :  { %v8415_v31 = vmax.f32 %v8383_v21, 0.0  ;;  %v8504_v27 = vpack.c.bf16 %v8480_v43, %v8476_v53  ;;  %v8389_v63 = vadd.f32 %v8353_v30, %v8304_v54  ;;  %v8306_v34 = vpop.f32.mrb[218].mxu1  ;;  %v8363_v54 = vpop.permute.xlu0 %8362 }
0x1391   :  { %v15375_v28 = vpack.c.bf16 %v8414_v4, %v8410_v48  ;;  %v8392_v13 = vadd.f32 %v8358_v5, %v8306_v34  ;;  %v8308_v62 = vpop.f32.mrb[219].mxu1  ;;  %v8420_v21 = vmax.f32 %v8388_v51, 0.0 }
0x1392   :  { %v15377_v35 = vpack.c.bf16 %v8415_v31, %v8411_v55  ;;  %v8229_v23 = vpop.f32.mrb[216].mxu0  ;;  %v8421_v3 = vmax.f32 %v8389_v63, 0.0  ;;  %v8393_v9 = vadd.f32 %v8358_v5, %v8308_v62 }
0x1393   :  { %v8386_v45 = vadd.f32 %v8353_v30, %v8229_v23  ;;  %v8231_v60 = vpop.f32.mrb[217].mxu0  ;;  %8550 = vmatprep.subr.bf16.mxu0 %v15375_v28  ;;  %v8424_v42 = vmax.f32 %v8392_v13, 0.0 }
0x1394   :  { %v8387_v47 = vadd.f32 %v8353_v30, %v8231_v60  ;;  %v8233_v39 = vpop.f32.mrb[218].mxu0  ;;  %8551 = vmatpush1.bf16.msra.mxu0 %v8504_v27  ;;  %8624 = vmatpush1.bf16.msra.mxu1 %v15377_v35  ;;  %v8425_v53 = vmax.f32 %v8393_v9, 0.0  ;;  %v8484_v4 = vmul.f32 0.0, %v8421_v3  ;;  %v8368_v27 = vpop.permute.xlu1 %8367 }
0x1395   :  { %v8390_v48 = vadd.f32 %v8358_v5, %v8233_v39  ;;  %v8235_v43 = vpop.f32.mrb[219].mxu0  ;;  %v15381_v55 = vpack.c.bf16 %v8424_v42, %v8420_v21  ;;  %v8418_v63 = vmax.f32 %v8386_v45, 0.0 }
0x1396   :  { %v8391_v31 = vadd.f32 %v8358_v5, %v8235_v43  ;;  %v8454_v34 = vpack.c.bf16 %v8425_v53, %v8421_v3  ;;  %v8488_v23 = vmul.f32 0.0, %v8425_v53  ;;  %v8312_v14 = vpop.f32.mrb[220].mxu1  ;;  %v8419_v51 = vmax.f32 %v8387_v47, 0.0 }
0x1397   :  { %v8422_v62 = vmax.f32 %v8390_v48, 0.0  ;;  %v8396_v60 = vadd.f32 %v8363_v54, %v8312_v14  ;;  %v8314_v30 = vpop.f32.mrb[221].mxu1  ;;  %8625 = vmatprep.subr.bf16.mxu1 %v15381_v55 }
0x1398   :  { %v8423_v13 = vmax.f32 %v8391_v31, 0.0  ;;  %v8508_v9 = vpack.c.bf16 %v8488_v23, %v8484_v4  ;;  %v8397_v40 = vadd.f32 %v8363_v54, %v8314_v30  ;;  %v8316_v15 = vpop.f32.mrb[222].mxu1 }
0x1399   :  { %v8451_v39 = vpack.c.bf16 %v8422_v62, %v8418_v63  ;;  %v8400_v5 = vadd.f32 %v8368_v27, %v8316_v15  ;;  %v8318_v43 = vpop.f32.mrb[223].mxu1  ;;  %v8428_v47 = vmax.f32 %v8396_v60, 0.0 }
0x139a   :  { %v8452_v21 = vpack.c.bf16 %v8423_v13, %v8419_v51  ;;  %v8239_v42 = vpop.f32.mrb[220].mxu0  ;;  %v8429_v45 = vmax.f32 %v8397_v40, 0.0  ;;  %v8401_v48 = vadd.f32 %v8368_v27, %v8318_v43 }
0x139b   :  { %v8394_v3 = vadd.f32 %v8363_v54, %v8239_v42  ;;  %v8241_v53 = vpop.f32.mrb[221].mxu0  ;;  %8552 = vmatprep.subr.bf16.mxu0 %v8451_v39  ;;  %v8432_v31 = vmax.f32 %v8400_v5, 0.0 }
0x139c   :  { %v8395_v14 = vadd.f32 %v8363_v54, %v8241_v53  ;;  %v8243_v59 = vpop.f32.mrb[222].mxu0  ;;  %8553 = vmatpush1.bf16.msra.mxu0 %v8508_v9  ;;  %8626 = vmatpush1.bf16.msra.mxu1 %v8452_v21  ;;  %v8433_v0 = vmax.f32 %v8401_v48, 0.0  ;;  %v8492_v23 = vmul.f32 0.0, %v8429_v45  ;;  %v10763_v54 = vld [vmem:[%s15632_s9 + $0xa0] sm:$0xff]  }
0x139d   :  { %v8398_v4 = vadd.f32 %v8368_v27, %v8243_v59  ;;  %v8245_v63 = vpop.f32.mrb[223].mxu0  ;;  %v8457_v62 = vpack.c.bf16 %v8432_v31, %v8428_v47  ;;  %v8426_v13 = vmax.f32 %v8394_v3, 0.0  ;;  %v10765_v59 = vld [vmem:[%s15632_s9 + $0xb0] sm:$0xff]  }
0x139e   :  { %v8399_v51 = vadd.f32 %v8368_v27, %v8245_v63  ;;  %v8458_v15 = vpack.c.bf16 %v8433_v0, %v8429_v45  ;;  %v8496_v30 = vmul.f32 0.0, %v8433_v0  ;;  %v8427_v42 = vmax.f32 %v8395_v14, 0.0  ;;  %v10766_v0 = vld [vmem:[%s15632_s9 + $0xb8] sm:$0xff]  }
0x139f   :  { %v8430_v40 = vmax.f32 %v8398_v4, 0.0  ;;  %8627 = vmatprep.subr.bf16.mxu1 %v8457_v62 }
0x13a0   :  { %v8431_v50 = vmax.f32 %v8399_v51, 0.0  ;;  %v8512_v43 = vpack.c.bf16 %v8496_v30, %v8492_v23 }
0x13a1   :  { %v8455_v60 = vpack.c.bf16 %v8430_v40, %v8426_v13 }
0x13a2   :  { %v8456_v5 = vpack.c.bf16 %v8431_v50, %v8427_v42  ;;  %v10764_v50 = vld [vmem:[%s15632_s9 + $0xa8] sm:$0xff]   ;;  %v16489_v42 = vmax.f32 %v14994_v41, 0.0 }
0x13a3   :  { %8554 = vmatprep.subr.bf16.mxu0 %v8455_v60 }
0x13a4   :  { %8555 = vmatpush1.bf16.msra.mxu0 %v8512_v43  ;;  %8628 = vmatpush1.bf16.msra.mxu1 %v8456_v5 }
0x13a5   :  { %8726 = vmatprep.subr.bf16.mxu0 %v15366_v26  ;;  %8799 = vmatprep.subr.bf16.mxu1 %v15361_v17  ;;  %v10768_v17 = vld [vmem:[%s15634_s8 + $0xa8] sm:$0xff]   ;;  %v8884_v26 = vpop.permute.xlu0 %8883 }
0x13a7   :  { %9838 = vmatmul.mubr.msk.bf16.vlgmr.msra.gmra.mrb[224].mxu0 %vm602_vm3, %v10763_v54  ;;  %9842 = vmatmul.mubr.msk.bf16.vlgmr.msra.gmra.mrb[224].mxu1 %vm602_vm3, %v10763_v54 }
0x13a8   :  { %8727 = vmatpush1.bf16.msra.mxu0 %v15364_v36  ;;  %8800 = vmatpush1.bf16.msra.mxu1 %v15359_v49  ;;  %v10769_v49 = vld [vmem:[%s15634_s8 + $0xb0] sm:$0xff]   ;;  %v10770_v36 = vld [vmem:[%s15634_s8 + $0xb8] sm:$0xff]  }
0x13a9   :  { %8728 = vmatprep.subr.bf16.mxu0 %v15377_v35  ;;  %8801 = vmatprep.subr.bf16.mxu1 %v15372_v22  ;;  %v15447_v22 = vpop.permute.xlu0 %8893 }
0x13aa   :  { %8590 = vmatprep.mubr.bf16.mxu0 %v15935_v52  ;;  %8663 = vmatprep.mubr.bf16.mxu1 %v15935_v52 }
0x13ac   :  { %8729 = vmatpush1.bf16.msra.mxu0 %v15375_v28  ;;  %8802 = vmatpush1.bf16.msra.mxu1 %v15370_v58  ;;  %v10767_v28 = vld [vmem:[%s15634_s8 + $0xa0] sm:$0xff]   ;;  %v8889_v58 = vpop.permute.xlu1 %8888 }
0x13ad   :  { %8730 = vmatprep.subr.bf16.mxu0 %v8452_v21  ;;  %8803 = vmatprep.subr.bf16.mxu1 %v8454_v34 }
0x13af   :  { %9839 = vmatmul.mubr.msk.bf16.gmra.mrb[228].mxu0 %vm602_vm3, %v10764_v50  ;;  %9843 = vmatmul.mubr.msk.bf16.gmra.mrb[228].mxu1 %vm602_vm3, %v10764_v50 }
0x13b0   :  { %8731 = vmatpush1.bf16.msra.mxu0 %v8451_v39  ;;  %8804 = vmatpush1.bf16.msra.mxu1 %v15381_v55  ;;  %v15449_v35 = vpop.permute.xlu1 %8898  ;;  %v15451_v55 = vpop.permute.xlu0 %8903 }
0x13b1   :  { %8732 = vmatprep.subr.bf16.mxu0 %v8456_v5  ;;  %8805 = vmatprep.subr.bf16.mxu1 %v8458_v15  ;;  %v16490_v5 = vmax.f32 %v15023_v37, 0.0 }
0x13b2   :  { %8600 = vmatprep.mubr.bf16.mxu0 %v15935_v52  ;;  %8673 = vmatprep.mubr.bf16.mxu1 %v15935_v52 }
0x13b4   :  { %8733 = vmatpush1.bf16.msra.mxu0 %v8455_v60  ;;  %8806 = vmatpush1.bf16.msra.mxu1 %v8457_v62  ;;  %v15453_v34 = vpop.permute.xlu1 %8908 }
0x13b7   :  { %9840 = vmatmul.mubr.msk.bf16.gmra.mrb[232].mxu0 %vm602_vm3, %v10765_v59  ;;  %9844 = vmatmul.mubr.msk.bf16.gmra.mrb[232].mxu1 %vm602_vm3, %v10765_v59  ;;  %v16491_v59 = vmax.f32 %v15006_v12, 0.0 }
0x13b8   :  { %8610 = vmatprep.mubr.bf16.mxu0 %v15935_v52  ;;  %8683 = vmatprep.mubr.bf16.mxu1 %v15935_v52 }
0x13bf   :  { %9841 = vmatmul.mubr.msk.bf16.gmra.mrb[236].mxu0 %vm602_vm3, %v10766_v0  ;;  %9845 = vmatmul.mubr.msk.bf16.gmra.mrb[236].mxu1 %vm602_vm3, %v10766_v0 }
0x13c0   :  { %8758 = vmatprep.mubr.bf16.mxu0 %v15935_v52  ;;  %8831 = vmatprep.mubr.bf16.mxu1 %v15935_v52 }
0x13c7   :  { %9850 = vmatmul.mubr.msk.bf16.vlgmr.msra.gmra.mrb[224].mxu0 %vm602_vm3, %v10767_v28  ;;  %9854 = vmatmul.mubr.msk.bf16.vlgmr.msra.gmra.mrb[224].mxu1 %vm602_vm3, %v10767_v28 }
0x13c8   :  { %8768 = vmatprep.mubr.bf16.mxu0 %v15935_v52  ;;  %8841 = vmatprep.mubr.bf16.mxu1 %v15935_v52 }
0x13cf   :  { %9851 = vmatmul.mubr.msk.bf16.gmra.mrb[228].mxu0 %vm602_vm3, %v10768_v17  ;;  %9855 = vmatmul.mubr.msk.bf16.gmra.mrb[228].mxu1 %vm602_vm3, %v10768_v17 }
0x13d0   :  { %8778 = vmatprep.mubr.bf16.mxu0 %v15935_v52  ;;  %8851 = vmatprep.mubr.bf16.mxu1 %v15935_v52 }
0x13d7   :  { %9852 = vmatmul.mubr.msk.bf16.gmra.mrb[232].mxu0 %vm602_vm3, %v10769_v49  ;;  %9856 = vmatmul.mubr.msk.bf16.gmra.mrb[232].mxu1 %vm602_vm3, %v10769_v49  ;;  %v15466_v49 = vpop.permute.xlu0 %8913 }
0x13d8   :  { %8788 = vmatprep.mubr.bf16.mxu0 %v15935_v52  ;;  %8861 = vmatprep.mubr.bf16.mxu1 %v15935_v52 }
0x13df   :  { %9853 = vmatmul.mubr.msk.bf16.gmra.mrb[236].mxu0 %vm602_vm3, %v10770_v36  ;;  %9857 = vmatmul.mubr.msk.bf16.gmra.mrb[236].mxu1 %vm602_vm3, %v10770_v36 }
0x149a   :  { %v8760_v27 = vpop.f32.mrb[224].mxu0  ;;  %v8833_v52 = vpop.f32.mrb[224].mxu1 }
0x149b   :  { %v8921_v9 = vadd.f32 %v8884_v26, %v8760_v27  ;;  %v8923_v39 = vadd.f32 %v8884_v26, %v8833_v52  ;;  %v8762_v21 = vpop.f32.mrb[225].mxu0  ;;  %v8835_v45 = vpop.f32.mrb[225].mxu1 }
0x149c   :  { %v8922_v3 = vadd.f32 %v8884_v26, %v8762_v21  ;;  %v8924_v53 = vadd.f32 %v8884_v26, %v8835_v45  ;;  %v8764_v48 = vpop.f32.mrb[226].mxu0  ;;  %v8837_v47 = vpop.f32.mrb[226].mxu1 }
0x149d   :  { %v8953_v31 = vmax.f32 %v8921_v9, 0.0  ;;  %v8955_v14 = vmax.f32 %v8923_v39, 0.0  ;;  %v8925_v4 = vadd.f32 %v8889_v58, %v8764_v48  ;;  %v8927_v63 = vadd.f32 %v8889_v58, %v8837_v47  ;;  %v8766_v23 = vpop.f32.mrb[227].mxu0  ;;  %v8839_v62 = vpop.f32.mrb[227].mxu1 }
0x149e   :  { %v8954_v51 = vmax.f32 %v8922_v3, 0.0  ;;  %v8956_v13 = vmax.f32 %v8924_v53, 0.0  ;;  %v8926_v15 = vadd.f32 %v8889_v58, %v8766_v23  ;;  %v8928_v30 = vadd.f32 %v8889_v58, %v8839_v62 }
0x149f   :  { %v8985_v40 = vadd.f32 %v8953_v31, %v14991_v38  ;;  %v9017_v43 = vadd.f32 %v8953_v31, %v16489_v42  ;;  %v8987_v60 = vadd.f32 %v8955_v14, %v15003_v1  ;;  %v9019_v54 = vadd.f32 %v8955_v14, %v16490_v5  ;;  %v9124_v38 = vpop.permute.xlu1 %9123 }
0x14a0   :  { %v8986_v50 = vadd.f32 %v8954_v51, %v14997_v8  ;;  %v9018_v0 = vadd.f32 %v8954_v51, %v16491_v59  ;;  %v8988_v28 = vadd.f32 %v8956_v13, %v15016_v29  ;;  %v9020_v17 = vadd.f32 %v8956_v13, %v15026_v24 }
0x14a1   :  { %v9049_v36 = vmax.f32 %v9017_v43, 0.0  ;;  %v9051_v41 = vmax.f32 %v9019_v54, 0.0  ;;  %v8957_v26 = vmax.f32 %v8925_v4, 0.0  ;;  %v8959_v58 = vmax.f32 %v8927_v63, 0.0  ;;  %v9129_v54 = vpop.permute.xlu0 %9128 }
0x14a2   :  { %v9050_v1 = vmax.f32 %v9018_v0, 0.0  ;;  %v9052_v27 = vmax.f32 %v9020_v17, 0.0  ;;  %v8958_v37 = vmax.f32 %v8926_v15, 0.0  ;;  %v8960_v52 = vmax.f32 %v8928_v30, 0.0  ;;  %v8770_v9 = vpop.f32.mrb[228].mxu0  ;;  %v8843_v8 = vpop.f32.mrb[228].mxu1 }
0x14a3   :  { %v9081_v39 = vadd.f32 %v9049_v36, %v8985_v40  ;;  %v9083_v12 = vadd.f32 %v9051_v41, %v8987_v60  ;;  %v8989_v21 = vadd.f32 %v8957_v26, %v15000_v19  ;;  %v16492_v29 = vmax.f32 %v15020_v10, 0.0  ;;  %v8772_v45 = vpop.f32.mrb[229].mxu0  ;;  %v8845_v3 = vpop.f32.mrb[229].mxu1 }
0x14a4   :  { %v9082_v53 = vadd.f32 %v9050_v1, %v8986_v50  ;;  %v9084_v48 = vadd.f32 %v9052_v27, %v8988_v28  ;;  %v8991_v47 = vadd.f32 %v8959_v58, %v15030_v16  ;;  %v16493_v31 = vmax.f32 %v15033_v7, 0.0  ;;  %v8774_v4 = vpop.f32.mrb[230].mxu0  ;;  %v8847_v63 = vpop.f32.mrb[230].mxu1 }
0x14a5   :  { %v9021_v24 = vadd.f32 %v8957_v26, %v16492_v29  ;;  %v9161_v23 = vmul.f32 %v9124_v38, %v9081_v39  ;;  %v9163_v62 = vmul.f32 %v9124_v38, %v9083_v12  ;;  %v8990_v13 = vadd.f32 %v8958_v37, %v15009_v57  ;;  %v8776_v19 = vpop.f32.mrb[231].mxu0  ;;  %v15475_v15 = vpop.f32.mrb[231].mxu1  ;;  %v16496_v29 = vld [vmem:[#allocation70_spill] sm:$0xff] }
0x14a6   :  { %v9023_v14 = vadd.f32 %v8959_v58, %v16493_v31  ;;  %v9162_v10 = vmul.f32 %v9124_v38, %v9082_v53  ;;  %v9164_v30 = vmul.f32 %v9124_v38, %v9084_v48  ;;  %v16494_v42 = vmax.f32 %v15012_v32, 0.0  ;;  %v16499_v31 = vld [vmem:[#allocation67_spill] sm:$0xff] }
0x14a7   :  { %v9053_v51 = vmax.f32 %v9021_v24, 0.0  ;;  %v8992_v7 = vadd.f32 %v8960_v52, %v15037_v44  ;;  %v9024_v60 = vadd.f32 %v8960_v52, %v15066_v61  ;;  %v8929_v5 = vadd.f32 %v15447_v22, %v8770_v9 }
0x14a8   :  { %v9055_v40 = vmax.f32 %v9023_v14, 0.0  ;;  %v9022_v43 = vadd.f32 %v8958_v37, %v16494_v42  ;;  %v8931_v57 = vadd.f32 %v15447_v22, %v8843_v8  ;;  %v8930_v0 = vadd.f32 %v15447_v22, %v8772_v45 }
0x14a9   :  { %v9085_v16 = vadd.f32 %v9053_v51, %v8989_v21  ;;  %v9056_v17 = vmax.f32 %v9024_v60, 0.0  ;;  %v8961_v38 = vmax.f32 %v8929_v5, 0.0  ;;  %v8932_v32 = vadd.f32 %v15447_v22, %v8845_v3  ;;  %v9134_v5 = vpop.permute.xlu0 %9133 }
0x14aa   :  { %v9087_v50 = vadd.f32 %v9055_v40, %v8991_v47  ;;  %v9054_v59 = vmax.f32 %v9022_v43, 0.0  ;;  %v8963_v26 = vmax.f32 %v8931_v57, 0.0  ;;  %v8962_v44 = vmax.f32 %v8930_v0, 0.0  ;;  %v8780_v58 = vpop.f32.mrb[232].mxu0  ;;  %v15485_v61 = vpop.f32.mrb[232].mxu1  ;;  %v16498_v47 = vld [vmem:[#allocation39_spill] sm:$0xff] }
0x14ab   :  { %v9165_v28 = vmul.f32 %v9129_v54, %v9085_v16  ;;  %v9088_v27 = vadd.f32 %v9056_v17, %v8992_v7  ;;  %v8993_v37 = vadd.f32 %v8961_v38, %v15041_v18  ;;  %v16495_v52 = vmax.f32 %v15045_v56, 0.0  ;;  %v15490_v8 = vpop.f32.mrb[233].mxu0  ;;  %v15492_v39 = vpop.f32.mrb[233].mxu1 }
0x14ac   :  { %v9167_v36 = vmul.f32 %v9129_v54, %v9087_v50  ;;  %v9086_v41 = vadd.f32 %v9054_v59, %v8990_v13  ;;  %v8995_v21 = vadd.f32 %v8963_v26, %v15086_v46  ;;  %v16497_v24 = vmax.f32 %v16496_v29, 0.0  ;;  %v15497_v3 = vpop.f32.mrb[234].mxu0  ;;  %v15499_v53 = vpop.f32.mrb[234].mxu1  ;;  %v16501_v50 = vld [vmem:[#allocation74_spill] sm:$0xff] }
0x14ad   :  { %v9193_v1 = vadd.f32 %v9165_v28, %v9161_v23  ;;  %v9025_v9 = vadd.f32 %v8961_v38, %v16495_v52  ;;  %v9168_v48 = vmul.f32 %v9129_v54, %v9088_v27  ;;  %v8994_v56 = vadd.f32 %v8962_v44, %v16498_v47  ;;  %v15504_v51 = vpop.f32.mrb[235].mxu0  ;;  %v15512_v28 = vpop.permute.xlu1 %8918 }
0x14ae   :  { %v9219_v12 = vadd.f32 %v9167_v36, %v9163_v62  ;;  %v9166_v22 = vmul.f32 %v9129_v54, %v9086_v41  ;;  %v9027_v45 = vadd.f32 %v8963_v26, %v16497_v24  ;;  %v16500_v14 = vmax.f32 %v16499_v31, 0.0  ;;  %v15506_v62 = vpop.f32.mrb[235].mxu1  ;;  %v16502_v36 = vld [vmem:[#allocation34_spill] sm:$0xff]  ;;  %v16503_v26 = vld [vmem:[#allocation68_spill] sm:$0xff] }
0x14af   :  { %v9057_v18 = vmax.f32 %v9025_v9, 0.0  ;;  %v8964_v40 = vmax.f32 %v8932_v32, 0.0  ;;  %v8933_v42 = vadd.f32 %v15449_v35, %v8774_v4  ;;  %v9232_v43 = vadd.f32 %v9168_v48, %v9164_v30  ;;  %v16505_v9 = vld [vmem:[#allocation71_spill] sm:$0xff] }
0x14b0   :  { %v9026_v23 = vadd.f32 %v8962_v44, %v16500_v14  ;;  %v9206_v13 = vadd.f32 %v9166_v22, %v9162_v10  ;;  %v9059_v46 = vmax.f32 %v9027_v45, 0.0  ;;  %v8935_v60 = vadd.f32 %v15449_v35, %v8847_v63 }
0x14b1   :  { %v9089_v16 = vadd.f32 %v9057_v18, %v8993_v37  ;;  %v8996_v59 = vadd.f32 %v8964_v40, %v16501_v50  ;;  %v9028_v57 = vadd.f32 %v8964_v40, %v15127_v20  ;;  %v8965_v0 = vmax.f32 %v8933_v42, 0.0  ;;  %v16509_v50 = vld [vmem:[#allocation77_spill] sm:$0xff] }
0x14b2   :  { %v9058_v7 = vmax.f32 %v9026_v23, 0.0  ;;  %v9091_v54 = vadd.f32 %v9059_v46, %v8995_v21  ;;  %v8967_v38 = vmax.f32 %v8935_v60, 0.0  ;;  %v8934_v32 = vadd.f32 %v15449_v35, %v8776_v19  ;;  %v15518_v27 = vpop.f32.mrb[236].mxu0  ;;  %v15520_v37 = vpop.f32.mrb[236].mxu1  ;;  %v16506_v21 = vld [vmem:[#allocation35_spill] sm:$0xff] }
0x14b3   :  { %v9169_v17 = vmul.f32 %v9134_v5, %v9089_v16  ;;  %v9060_v30 = vmax.f32 %v9028_v57, 0.0  ;;  %v8997_v41 = vadd.f32 %v8965_v0, %v16502_v36  ;;  %v16504_v63 = vmax.f32 %v16503_v26, 0.0  ;;  %v15525_v45 = vpop.f32.mrb[237].mxu0  ;;  %v15527_v19 = vpop.f32.mrb[237].mxu1  ;;  %v16508_v60 = vld [vmem:[#allocation75_spill] sm:$0xff] }
0x14b4   :  { %v9090_v10 = vadd.f32 %v9058_v7, %v8994_v56  ;;  %v9171_v4 = vmul.f32 %v9134_v5, %v9091_v54  ;;  %v8999_v22 = vadd.f32 %v8967_v38, %v16505_v9  ;;  %v16507_v29 = vmax.f32 %v16506_v21, 0.0  ;;  %v15529_v31 = vpop.f32.mrb[238].mxu0  ;;  %v15531_v14 = vpop.f32.mrb[238].mxu1 }
0x14b5   :  { %v9029_v44 = vadd.f32 %v8965_v0, %v16504_v63  ;;  %v9194_v20 = vadd.f32 %v9193_v1, %v9169_v17  ;;  %v9092_v18 = vadd.f32 %v9060_v30, %v8996_v59  ;;  %v8966_v56 = vmax.f32 %v8934_v32, 0.0  ;;  %v15536_v42 = vpop.f32.mrb[239].mxu0  ;;  %v15538_v16 = vpop.f32.mrb[239].mxu1 }
0x14b6   :  { %v9170_v52 = vmul.f32 %v9134_v5, %v9090_v10  ;;  %v9031_v24 = vadd.f32 %v8967_v38, %v16507_v29  ;;  %v9220_v48 = vadd.f32 %v9219_v12, %v9171_v4  ;;  %v8936_v46 = vadd.f32 %v15449_v35, %v15475_v15  ;;  %v9139_v0 = vpop.permute.xlu1 %9138  ;;  %v16511_v4 = vld [vmem:[#allocation38_spill] sm:$0xff] }
0x14b7   :  { %v9061_v47 = vmax.f32 %v9029_v44, 0.0  ;;  %v8937_v40 = vadd.f32 %v15451_v55, %v8780_v58  ;;  %v9172_v7 = vmul.f32 %v9134_v5, %v9092_v18  ;;  %v8998_v54 = vadd.f32 %v8966_v56, %v16508_v60  ;;  %v16514_v18 = vld [vmem:[#allocation40_spill] sm:$0xff] }
0x14b8   :  { %v9207_v23 = vadd.f32 %v9206_v13, %v9170_v52  ;;  %v9063_v1 = vmax.f32 %v9031_v24, 0.0  ;;  %v16510_v59 = vmax.f32 %v16509_v50, 0.0  ;;  %v8968_v13 = vmax.f32 %v8936_v46, 0.0 }
0x14b9   :  { %v9093_v12 = vadd.f32 %v9061_v47, %v8997_v41  ;;  %v8969_v10 = vmax.f32 %v8937_v40, 0.0  ;;  %v8939_v35 = vadd.f32 %v15451_v55, %v15485_v61  ;;  %v9233_v15 = vadd.f32 %v9232_v43, %v9172_v7  ;;  %v16512_v41 = vld [vmem:[#allocation42_spill] sm:$0xff] }
0x14ba   :  { %v9030_v57 = vadd.f32 %v8966_v56, %v16510_v59  ;;  %v9095_v17 = vadd.f32 %v9063_v1, %v8999_v22  ;;  %v8938_v32 = vadd.f32 %v15451_v55, %v15490_v8  ;;  %v9000_v30 = vadd.f32 %v8968_v13, %v16511_v4  ;;  %v16518_v59 = vld [vmem:[#allocation45_spill] sm:$0xff] }
0x14bb   :  { %v9173_v58 = vmul.f32 %v9139_v0, %v9093_v12  ;;  %v9032_v36 = vadd.f32 %v8968_v13, %v15134_v2  ;;  %v9001_v26 = vadd.f32 %v8969_v10, %v16512_v41  ;;  %v16513_v52 = vmax.f32 %v15130_v6, 0.0  ;;  %v16520_v4 = vld [vmem:[#allocation41_spill] sm:$0xff] }
0x14bc   :  { %v9062_v38 = vmax.f32 %v9030_v57, 0.0  ;;  %v9175_v5 = vmul.f32 %v9139_v0, %v9095_v17  ;;  %v8971_v22 = vmax.f32 %v8939_v35, 0.0  ;;  %v8970_v21 = vmax.f32 %v8938_v32, 0.0 }
0x14bd   :  { %v9195_v63 = vadd.f32 %v9194_v20, %v9173_v58  ;;  %v9033_v9 = vadd.f32 %v8969_v10, %v16513_v52  ;;  %v9064_v43 = vmax.f32 %v9032_v36, 0.0  ;;  %v8940_v29 = vadd.f32 %v15451_v55, %v15492_v39  ;;  %v16516_v20 = vld [vmem:[#allocation43_spill] sm:$0xff]  ;;  %v9144_v39 = vpop.permute.xlu0 %9143 }
0x14be   :  { %v9094_v44 = vadd.f32 %v9062_v38, %v8998_v54  ;;  %v9221_v61 = vadd.f32 %v9220_v48, %v9175_v5  ;;  %v9003_v47 = vadd.f32 %v8971_v22, %v16514_v18  ;;  %v16515_v2 = vmax.f32 %v15184_v25, 0.0  ;;  %v16525_v18 = vld [vmem:[#allocation78_spill] sm:$0xff] }
0x14bf   :  { %v9065_v24 = vmax.f32 %v9033_v9, 0.0  ;;  %v9096_v1 = vadd.f32 %v9064_v43, %v9000_v30  ;;  %v9002_v46 = vadd.f32 %v8970_v21, %v16516_v20  ;;  %v16517_v6 = vmax.f32 %v15145_v33, 0.0  ;;  %v9149_v20 = vpop.permute.xlu1 %9148 }
0x14c0   :  { %v9174_v8 = vmul.f32 %v9139_v0, %v9094_v44  ;;  %v9035_v56 = vadd.f32 %v8971_v22, %v16515_v2  ;;  %v8972_v7 = vmax.f32 %v8940_v29, 0.0  ;;  %v8941_v55 = vadd.f32 %v15453_v34, %v15497_v3  ;;  %v16522_v22 = vld [vmem:[#allocation5_spill] sm:$0xff]  ;;  %v16526_v2 = vld [vmem:[#allocation44_spill] sm:$0xff] }
0x14c1   :  { %v9034_v40 = vadd.f32 %v8970_v21, %v16517_v6  ;;  %v9097_v12 = vadd.f32 %v9065_v24, %v9001_v26  ;;  %v9176_v54 = vmul.f32 %v9139_v0, %v9096_v1  ;;  %v8943_v33 = vadd.f32 %v15453_v34, %v15499_v53  ;;  %v16519_v0 = vld [vmem:[#allocation46_spill] sm:$0xff]  ;;  %v16523_v21 = vld [vmem:[#allocation4_spill] sm:$0xff] }
0x14c2   :  { %v9208_v48 = vadd.f32 %v9207_v23, %v9174_v8  ;;  %v9067_v60 = vmax.f32 %v9035_v56, 0.0  ;;  %v9004_v57 = vadd.f32 %v8972_v7, %v16518_v59  ;;  %v9036_v25 = vadd.f32 %v8972_v7, %v15189_v11  ;;  %v16528_v7 = vld [vmem:[#allocation3_spill] sm:$0xff] }
0x14c3   :  { %v9066_v50 = vmax.f32 %v9034_v40, 0.0  ;;  %v9177_v17 = vmul.f32 %v9144_v39, %v9097_v12  ;;  %v8973_v10 = vmax.f32 %v8941_v55, 0.0  ;;  %v9234_v35 = vadd.f32 %v9233_v15, %v9176_v54  ;;  %v16529_v12 = vld [vmem:[#allocation9_spill] sm:$0xff] }
0x14c4   :  { %v9099_v13 = vadd.f32 %v9067_v60, %v9003_v47  ;;  %v9068_v58 = vmax.f32 %v9036_v25, 0.0  ;;  %v8942_v38 = vadd.f32 %v15453_v34, %v15504_v51  ;;  %v16521_v30 = vmax.f32 %v16520_v4, 0.0 }
0x14c5   :  { %v9098_v23 = vadd.f32 %v9066_v50, %v9002_v46  ;;  %v9196_v3 = vadd.f32 %v9195_v63, %v9177_v17  ;;  %v9005_v5 = vadd.f32 %v8973_v10, %v16519_v0  ;;  %v8975_v26 = vmax.f32 %v8943_v33, 0.0  ;;  %v16531_v50 = vld [vmem:[#allocation6_spill] sm:$0xff] }
0x14c6   :  { %v9179_v32 = vmul.f32 %v9144_v39, %v9099_v13  ;;  %v9037_v36 = vadd.f32 %v8973_v10, %v16521_v30  ;;  %v9100_v41 = vadd.f32 %v9068_v58, %v9004_v57  ;;  %v8974_v44 = vmax.f32 %v8942_v38, 0.0  ;;  %v16534_v38 = vld [vmem:[#allocation13_spill] sm:$0xff] }
0x14c7   :  { %v9178_v11 = vmul.f32 %v9144_v39, %v9098_v23  ;;  %v8944_v53 = vadd.f32 %v15453_v34, %v15506_v62  ;;  %v8945_v15 = vadd.f32 %v15466_v49, %v15518_v27  ;;  %v9007_v43 = vadd.f32 %v8975_v26, %v16522_v22  ;;  %v16533_v23 = vld [vmem:[#allocation47_spill] sm:$0xff] }
0x14c8   :  { %v9222_v52 = vadd.f32 %v9221_v61, %v9179_v32  ;;  %v9069_v9 = vmax.f32 %v9037_v36, 0.0  ;;  %v9180_v63 = vmul.f32 %v9144_v39, %v9100_v41  ;;  %v16524_v29 = vmax.f32 %v16523_v21, 0.0  ;;  %v16530_v39 = vld [vmem:[#allocation7_spill] sm:$0xff] }
0x14c9   :  { %v9209_v51 = vadd.f32 %v9208_v48, %v9178_v11  ;;  %v9006_v47 = vadd.f32 %v8974_v44, %v16525_v18  ;;  %v16527_v56 = vmax.f32 %v16526_v2, 0.0  ;;  %v8976_v1 = vmax.f32 %v8944_v53, 0.0  ;;  %v16536_v53 = vld [vmem:[#allocation10_spill] sm:$0xff] }
0x14ca   :  { %v9039_v8 = vadd.f32 %v8975_v26, %v16524_v29  ;;  %v9101_v24 = vadd.f32 %v9069_v9, %v9005_v5  ;;  %v9235_v46 = vadd.f32 %v9234_v35, %v9180_v63  ;;  %v8977_v62 = vmax.f32 %v8945_v15, 0.0  ;;  %v16537_v63 = vld [vmem:[#allocation52_spill] sm:$0xff] }
0x14cb   :  { %v9038_v61 = vadd.f32 %v8974_v44, %v16527_v56  ;;  %v8947_v27 = vadd.f32 %v15466_v49, %v15520_v37  ;;  %v9008_v48 = vadd.f32 %v8976_v1, %v16528_v7  ;;  %v9040_v60 = vadd.f32 %v8976_v1, %v16529_v12  ;;  %v16540_v56 = vld [vmem:[#allocation12_spill] sm:$0xff] }
0x14cc   :  { %v9071_v34 = vmax.f32 %v9039_v8, 0.0  ;;  %v9181_v6 = vmul.f32 %v9149_v20, %v9101_v24  ;;  %v9009_v54 = vadd.f32 %v8977_v62, %v16530_v39  ;;  %v16532_v59 = vmax.f32 %v16531_v50, 0.0  ;;  %v16545_v39 = vld [vmem:[#allocation21_spill] sm:$0xff] }
0x14cd   :  { %v9070_v40 = vmax.f32 %v9038_v61, 0.0  ;;  %v8979_v25 = vmax.f32 %v8947_v27, 0.0  ;;  %v9072_v10 = vmax.f32 %v9040_v60, 0.0  ;;  %v8946_v33 = vadd.f32 %v15466_v49, %v15525_v45  ;;  %v9154_v45 = vpop.permute.xlu0 %9153  ;;  %v16544_v60 = vld [vmem:[#allocation53_spill] sm:$0xff] }
0x14ce   :  { %v9103_v55 = vadd.f32 %v9071_v34, %v9007_v43  ;;  %v9041_v57 = vadd.f32 %v8977_v62, %v16532_v59  ;;  %v9197_v17 = vadd.f32 %v9196_v3, %v9181_v6  ;;  %v16535_v32 = vmax.f32 %v16534_v38, 0.0  ;;  %v16542_v62 = vld [vmem:[#allocation14_spill] sm:$0xff] }
0x14cf   :  { %v9102_v13 = vadd.f32 %v9070_v40, %v9006_v47  ;;  %v9011_v58 = vadd.f32 %v8979_v25, %v16533_v23  ;;  %v9104_v4 = vadd.f32 %v9072_v10, %v9008_v48  ;;  %v8978_v30 = vmax.f32 %v8946_v33, 0.0  ;;  %v16539_v47 = vld [vmem:[#allocation16_spill] sm:$0xff] }
0x14d0   :  { %v9183_v37 = vmul.f32 %v9149_v20, %v9103_v55  ;;  %v9073_v35 = vmax.f32 %v9041_v57, 0.0  ;;  %v9043_v0 = vadd.f32 %v8979_v25, %v16535_v32  ;;  %v8948_v36 = vadd.f32 %v15466_v49, %v15527_v19  ;;  %v16547_v57 = vld [vmem:[#allocation50_spill] sm:$0xff] }
0x14d1   :  { %v9182_v5 = vmul.f32 %v9149_v20, %v9102_v13  ;;  %v8949_v26 = vadd.f32 %v15512_v28, %v15529_v31  ;;  %v9184_v9 = vmul.f32 %v9149_v20, %v9104_v4  ;;  %v9010_v15 = vadd.f32 %v8978_v30, %v16536_v53  ;;  %v16541_v20 = vld [vmem:[#allocation8_spill] sm:$0xff] }
0x14d2   :  { %v9223_v11 = vadd.f32 %v9222_v52, %v9183_v37  ;;  %v9105_v3 = vadd.f32 %v9073_v35, %v9009_v54  ;;  %v9075_v41 = vmax.f32 %v9043_v0, 0.0  ;;  %v16538_v22 = vmax.f32 %v16537_v63, 0.0  ;;  %v16551_v0 = vld [vmem:[#allocation48_spill] sm:$0xff] }
0x14d3   :  { %v9210_v44 = vadd.f32 %v9209_v51, %v9182_v5  ;;  %v8980_v8 = vmax.f32 %v8948_v36, 0.0  ;;  %v8981_v24 = vmax.f32 %v8949_v26, 0.0  ;;  %v9236_v18 = vadd.f32 %v9235_v46, %v9184_v9 }
0x14d4   :  { %v9042_v43 = vadd.f32 %v8978_v30, %v16538_v22  ;;  %v9185_v21 = vmul.f32 %v9154_v45, %v9105_v3  ;;  %v9107_v29 = vadd.f32 %v9075_v41, %v9011_v58  ;;  %v8951_v19 = vadd.f32 %v15512_v28, %v15531_v14  ;;  %v9159_v58 = vpop.permute.xlu1 %9158 }
0x14d5   :  { %v8950_v31 = vadd.f32 %v15512_v28, %v15536_v42  ;;  %v9012_v2 = vadd.f32 %v8980_v8, %v16539_v47  ;;  %v9044_v61 = vadd.f32 %v8980_v8, %v16540_v56  ;;  %v9013_v34 = vadd.f32 %v8981_v24, %v16541_v20  ;;  %v9249_v20 = vpop.permute.xlu0 %9248 }
0x14d6   :  { %v9074_v49 = vmax.f32 %v9042_v43, 0.0  ;;  %v9198_v52 = vadd.f32 %v9197_v17, %v9185_v21  ;;  %v9187_v51 = vmul.f32 %v9154_v45, %v9107_v29  ;;  %v16543_v27 = vmax.f32 %v16542_v62, 0.0  ;;  %v16548_v17 = vld [vmem:[#allocation11_spill] sm:$0xff] }
0x14d7   :  { %v8983_v46 = vmax.f32 %v8951_v19, 0.0  ;;  %v9076_v7 = vmax.f32 %v9044_v61, 0.0  ;;  %v8982_v48 = vmax.f32 %v8950_v31, 0.0  ;;  %v8952_v14 = vadd.f32 %v15512_v28, %v15538_v16  ;;  %v16550_v16 = vld [vmem:[#allocation59_spill] sm:$0xff] }
0x14d8   :  { %v9106_v1 = vadd.f32 %v9074_v49, %v9010_v15  ;;  %v9045_v6 = vadd.f32 %v8981_v24, %v16543_v27  ;;  %v9224_v40 = vadd.f32 %v9223_v11, %v9187_v51  ;;  %v16546_v54 = vmax.f32 %v16545_v39, 0.0 }
0x14d9   :  { %v9015_v55 = vadd.f32 %v8983_v46, %v16544_v60  ;;  %v9108_v59 = vadd.f32 %v9076_v7, %v9012_v2  ;;  %v9014_v25 = vadd.f32 %v8982_v48, %v16547_v57  ;;  %v16549_v13 = vmax.f32 %v16548_v17, 0.0 }
0x14da   :  { %v9186_v42 = vmul.f32 %v9154_v45, %v9106_v1  ;;  %v9077_v12 = vmax.f32 %v9045_v6, 0.0  ;;  %v9047_v50 = vadd.f32 %v8983_v46, %v16546_v54  ;;  %v8984_v33 = vmax.f32 %v8952_v14, 0.0 }
0x14db   :  { %v9046_v10 = vadd.f32 %v8982_v48, %v16549_v13  ;;  %v9188_v38 = vmul.f32 %v9154_v45, %v9108_v59  ;;  %v16552_v21 = vlaneseq  ;;  %v10779_v2 = vmov 1966171168  }
0x14dc   :  { %v9211_v37 = vadd.f32 %v9210_v44, %v9186_v42  ;;  %v9109_v35 = vadd.f32 %v9077_v12, %v9013_v34  ;;  %v9079_v23 = vmax.f32 %v9047_v50, 0.0  ;;  %v9016_v32 = vadd.f32 %v8984_v33, %v16550_v16 }
0x14dd   :  { %v9078_v28 = vmax.f32 %v9046_v10, 0.0  ;;  %v9048_v5 = vadd.f32 %v8984_v33, %v16551_v0  ;;  %v9237_v36 = vadd.f32 %v9236_v18, %v9188_v38  ;;  %v9252_v29 = vshrl.u32 %v16552_v21, 7 }
0x14de   :  { %v9189_v4 = vmul.f32 %v9159_v58, %v9109_v35  ;;  %v9111_v30 = vadd.f32 %v9079_v23, %v9015_v55  ;;  %v9266_v56 = vunpack.c.l.s4 %v10779_v2  ;;  %vm9290_vm14 = vcmp.lt.s32.totalorder %v16552_v21, 512 }
0x14df   :  { %v9110_v11 = vadd.f32 %v9078_v28, %v9014_v25  ;;  %v9080_v3 = vmax.f32 %v9048_v5, 0.0 }
0x14e0   :  { %v9199_v41 = vadd.f32 %v9198_v52, %v9189_v4  ;;  %v9191_v26 = vmul.f32 %v9159_v58, %v9111_v30  ;;  %v9253_v52 = vsub.s32 0, %v9252_v29  ;;  %v9267_v7 = vunpack.c.0.s8 %v9266_v56 }
0x14e1   :  { %v9190_v9 = vmul.f32 %v9159_v58, %v9110_v11  ;;  %v9112_v53 = vadd.f32 %v9080_v3, %v9016_v32 }
0x14e2   :  { %v9200_v15 = vrot.slane %v9199_v41, 4  ;;  %v9225_v44 = vadd.f32 %v9224_v40, %v9191_v26  ;;  %v9254_v48 = vrot.slane %v9249_v20, %v9253_v52  ;;  %v9270_v54 = vsub.s32 %v9267_v7, %v9252_v29 }
0x14e3   :  { %v9212_v63 = vadd.f32 %v9211_v37, %v9190_v9  ;;  %v9192_v22 = vmul.f32 %v9159_v58, %v9112_v53 }
0x14e4   :  { %v9201_v43 = vadd.f32 %v9200_v15, %v9199_v41  ;;  %v9226_v45 = vrot.slane %v9225_v44, 4 }
0x14e5   :  { %v9213_v8 = vrot.slane %v9212_v63, 4  ;;  %v9238_v24 = vadd.f32 %v9237_v36, %v9192_v22 }
0x14e6   :  { %v9202_v49 = vrot.slane %v9201_v43, 2  ;;  %v9227_v19 = vadd.f32 %v9226_v45, %v9225_v44 }
0x14e7   :  { %v9214_v31 = vadd.f32 %v9213_v8, %v9212_v63  ;;  %v9239_v18 = vrot.slane %v9238_v24, 4 }
0x14e8   :  { %v9203_v51 = vadd.f32 %v9202_v49, %v9201_v43  ;;  %v9228_v47 = vrot.slane %v9227_v19, 2 }
0x14e9   :  { %v9215_v61 = vrot.slane %v9214_v31, 2  ;;  %v9240_v1 = vadd.f32 %v9239_v18, %v9238_v24 }
0x14ea   :  { %v9204_v34 = vrot.slane %v9203_v51, 1  ;;  %v9229_v62 = vadd.f32 %v9228_v47, %v9227_v19 }
0x14eb   :  { %v9216_v27 = vadd.f32 %v9215_v61, %v9214_v31  ;;  %v9241_v6 = vrot.slane %v9240_v1, 2 }
0x14ec   :  { %v9205_v46 = vadd.f32 %v9204_v34, %v9203_v51  ;;  %v9230_v40 = vrot.slane %v9229_v62, 1 }
0x14ed   :  { %v9217_v14 = vrot.slane %v9216_v27, 1  ;;  %v9242_v42 = vadd.f32 %v9241_v6, %v9240_v1 }
0x14ee   :  { %v9231_v12 = vadd.f32 %v9230_v40, %v9229_v62  ;;  %v9255_v60 = vadd.f32 %v9254_v48, %v9205_v46 }
0x14ef   :  { %v9218_v55 = vadd.f32 %v9217_v14, %v9216_v27  ;;  %v9243_v39 = vrot.slane %v9242_v42, 1 }
0x14f0   :  { %v9257_v50 = vadd.f32 %v9254_v48, %v9231_v12 }
0x14f1   :  { %v9256_v59 = vadd.f32 %v9254_v48, %v9218_v55  ;;  %v9244_v57 = vadd.f32 %v9243_v39, %v9242_v42 }
0x14f3   :  { %v9263_v25 = vcombine.low %v9255_v60, %v9256_v59  ;;  %v9258_v17 = vadd.f32 %v9254_v48, %v9244_v57 }
0x14f5   :  { %v9271_v13 = vrot.slane %v9263_v25, %v9270_v54  ;;  %v9264_v10 = vcombine.low %v9257_v50, %v9258_v17 }
0x14f7   :  { %v9278_v33 = vrot.slane %v9264_v10, %v9270_v54 }
0x14f9   :  { %v9279_v37 = vcombine.low %v9271_v13, %v9278_v33 }
0x14fb   :  { %v9286_v35 = vrot.slane %v9279_v37, %v9270_v54 }
0x14fd   :  { %9292 = vst.msk [vmem:[%s15637_s13] sm:$0xf] %vm9290_vm14, %v9286_v35 }

</bundles_post_ra>
